<compile_context>
chip_gen: v7x
topology: tpu7x:2x2x1
jax: 0.10.0
libtpu: 0.0.40
codegen_flags: <defaults>
</compile_context>

<pallas_src>
import jax
import jax.numpy as jnp
import numpy as np
from jax.experimental import pallas as pl
from jax.experimental.pallas import tpu as pltpu

# ---- hyper-parameters (from chunking.py; externals picked small) -------------------------
chunking_hn_size = 200          # defined in the module
chunking_nb_layers = 2          # defined in the module
chunking_postag_emb_size = 20   # defined in the module
embedding_size = 32             # external, chosen small
nb_postags = 8                  # external, chosen small
postag_hn_size = 16             # external, chosen small
max_sentence_size = 16          # external, chosen small
nb_chunktags = 8                # external, chosen small

H = chunking_hn_size
INPUT_SIZE = embedding_size + nb_postags + postag_hn_size * 2   # = 72
HN2 = postag_hn_size * 2                                        # = 32

# padded / lane-aligned sizes used by the kernel
Hp = 256          # hidden padded to a 256-lane (2-vreg) slab -> gate slices are aligned
GT_PAD = 128      # LSTM layer-0 input (72) padded to one vreg row
FC_PAD = 128      # fc output lanes (nb_chunktags=8 padded to 128 -> unmasked store)


# ---- fused forward kernel -----------------------------------------------------------------
def chunking_fwd_kernel(x_ref, tags_ref, hn_ref, emb_sum_ref,
                        h0_ref, c0_ref, w0_ref, w1_ref, b_ref,
                        wfc_ref, bfc_ref,
                        chunk_ref, out_ref):
    S = x_ref.shape[0]
    f32 = jnp.float32
    bf16 = jnp.bfloat16

    # mult_pos_emb: y_pos[s, p] = tags[s, p] * sum_e emb[p, e]   (emb row-sums precomputed)
    y_pos = tags_ref[...] * emb_sum_ref[...]                               # (S, P)

    # gt = cat([hn_tags, x, y_pos]), padded to a lane-aligned 128-wide slab
    gt = jnp.concatenate(
        [hn_ref[...], x_ref[...], y_pos,
         jnp.zeros((S, GT_PAD - INPUT_SIZE), f32)], axis=-1)               # (S, 128)
    gt_b = gt.astype(bf16)

    h0 = h0_ref[...]                                                       # (4, S, Hp) f32
    c0 = c0_ref[...]                                                       # (4, S, Hp) f32

    def cell(x_b, h0_d, c0_d, w_b, b_d):
        # one fused MXU matmul: [x, h] @ [W_ih ; W_hh]  (bf16 inputs, f32 accumulation)
        xh = jnp.concatenate([x_b, h0_d.astype(bf16)], axis=-1)
        gates = jnp.dot(xh, w_b, preferred_element_type=f32) + b_d
        # PyTorch gate order i, f, g, o; each gate sits in its own 256-lane slab
        i = jax.nn.sigmoid(gates[:, 0 * Hp:1 * Hp])
        f = jax.nn.sigmoid(gates[:, 1 * Hp:2 * Hp])
        g = jnp.tanh(gates[:, 2 * Hp:3 * Hp])
        o = jax.nn.sigmoid(gates[:, 3 * Hp:4 * Hp])
        c = f * c0_d + i * g
        return o * jnp.tanh(c)           # padded lanes: 0.5*tanh(0) == 0 -> stay exactly 0

    # bidirectional 2-layer LSTM, seq_len == 1  (state index = layer*2 + direction)
    h_f0 = cell(gt_b, h0[0], c0[0], w0_ref[0], b_ref[0])
    h_b0 = cell(gt_b, h0[1], c0[1], w0_ref[1], b_ref[1])
    x1 = jnp.concatenate([h_f0, h_b0], axis=-1)                            # (S, 2*Hp)
    x1_b = x1.astype(bf16)
    h_f1 = cell(x1_b, h0[2], c0[2], w1_ref[0], b_ref[2])
    h_b1 = cell(x1_b, h0[3], c0[3], w1_ref[1], b_ref[3])
    outp = jnp.concatenate([h_f1, h_b1], axis=-1)                          # (S, 2*Hp)

    out_ref[...] = outp                                                    # lane-dense store
    chunk_ref[...] = (jnp.dot(outp.astype(bf16), wfc_ref[...],
                              preferred_element_type=f32) + bfc_ref[...])  # (S, 128)


# ---- one-time parameter preparation (hoisted out of the per-call path) ---------------------
def prepare_params(params):
    def gate_pad_cols(w):                # (rows, 4*H) -> (rows, 4*Hp), gate k placed at k*Hp
        out = jnp.zeros((w.shape[0], 4 * Hp), jnp.float32)
        for k in range(4):
            out = out.at[:, k * Hp:k * Hp + H].set(w[:, k * H:(k + 1) * H])
        return out

    def layer0_w(suf):                   # fused [W_ih ; W_hh] for (layer 0, direction suf)
        w = jnp.zeros((GT_PAD + Hp, 4 * Hp), jnp.float32)
        w = w.at[:INPUT_SIZE].set(gate_pad_cols(params[f"w_ih_l0{suf}"].T))
        w = w.at[GT_PAD:GT_PAD + H].set(gate_pad_cols(params[f"w_hh_l0{suf}"].T))
        return w

    def layer1_w(suf):                   # fused [W_ih ; W_hh] for (layer 1, direction suf)
        wih = params[f"w_ih_l1{suf}"].T                                    # (2H, 4H)
        w = jnp.zeros((3 * Hp, 4 * Hp), jnp.float32)
        w = w.at[0:H].set(gate_pad_cols(wih[:H]))          # fwd half of x1 (lanes [0:200))
        w = w.at[Hp:Hp + H].set(gate_pad_cols(wih[H:]))    # bwd half of x1 (lanes [256:456))
        w = w.at[2 * Hp:2 * Hp + H].set(gate_pad_cols(params[f"w_hh_l1{suf}"].T))
        return w

    def bias(layer, suf):                # combined b_ih + b_hh, gate-padded
        b = (params[f"b_ih_l{layer}{suf}"] + params[f"b_hh_l{layer}{suf}"])[None, :]
        return gate_pad_cols(b)                                            # (1, 4Hp)

    w0 = jnp.stack([layer0_w(""), layer0_w("r")]).astype(jnp.bfloat16)     # (2, 384, 1024)
    w1 = jnp.stack([layer1_w(""), layer1_w("r")]).astype(jnp.bfloat16)     # (2, 768, 1024)
    b = jnp.stack([bias(0, ""), bias(0, "r"), bias(1, ""), bias(1, "r")])  # (4, 1, 1024) f32

    h0 = jnp.pad(params["h"], ((0, 0), (0, 0), (0, Hp - H)))               # (4, maxS, Hp)
    c0 = jnp.pad(params["w"], ((0, 0), (0, 0), (0, Hp - H)))               # (4, maxS, Hp)

    fcw = params["fc_w"].T                                                 # (2H, C)
    wfc = jnp.zeros((2 * Hp, FC_PAD), jnp.float32)
    wfc = wfc.at[:H, :nb_chunktags].set(fcw[:H])
    wfc = wfc.at[Hp:Hp + H, :nb_chunktags].set(fcw[H:])
    wfc = wfc.astype(jnp.bfloat16)                                         # (512, 128)
    bfc = jnp.zeros((1, FC_PAD), jnp.float32).at[0, :nb_chunktags].set(params["fc_b"])

    emb_sum = params["emb"].sum(axis=1)[None, :]                           # (1, P)
    return dict(w0=w0, w1=w1, b=b, h0=h0, c0=c0, wfc=wfc, bfc=bfc, emb_sum=emb_sum)


# ---- batched wrapper: grid over sentences, weights stay VMEM-resident ----------------------
def chunking_forward_batch(x, tags, hn_tags, prep):
    """x: (B,S,emb), tags: (B,S,P), hn_tags: (B,S,2*postag_hn) -> (chunk (B,S,C), out (B,S,2H))."""
    B, S, _ = x.shape
    const3 = lambda shape: pl.BlockSpec(shape, lambda b: (0, 0, 0))
    const2 = lambda shape: pl.BlockSpec(shape, lambda b: (0, 0))
    batched = lambda feat: pl.BlockSpec((None, S, feat), lambda b: (b, 0, 0))

    chunk_pad, out_pad = pl.pallas_call(
        chunking_fwd_kernel,
        grid=(B,),
        in_specs=[
            batched(embedding_size),                # x
            batched(nb_postags),                    # tags
            batched(HN2),                           # hn_tags
            const2((1, nb_postags)),                # emb row-sums
            const3((4, S, Hp)),                     # h0 (reads rows [:S])
            const3((4, S, Hp)),                     # c0
            const3((2, GT_PAD + Hp, 4 * Hp)),       # fused layer-0 weights (bf16)
            const3((2, 3 * Hp, 4 * Hp)),            # fused layer-1 weights (bf16)
            const3((4, 1, 4 * Hp)),                 # fused biases
            const2((2 * Hp, FC_PAD)),               # fc weight (bf16)
            const2((1, FC_PAD)),                    # fc bias
        ],
        out_specs=(
            pl.BlockSpec((None, S, FC_PAD), lambda b: (b, 0, 0)),
            pl.BlockSpec((None, S, 2 * Hp), lambda b: (b, 0, 0)),
        ),
        out_shape=(jax.ShapeDtypeStruct((B, S, FC_PAD), jnp.float32),
                   jax.ShapeDtypeStruct((B, S, 2 * Hp), jnp.float32)),
        compiler_params=pltpu.CompilerParams(
            dimension_semantics=("parallel",),
            vmem_limit_bytes=32 * 1024 * 1024),
    )(x, tags, hn_tags, prep["emb_sum"], prep["h0"], prep["c0"],
      prep["w0"], prep["w1"], prep["b"], prep["wfc"], prep["bfc"])

    chunk = chunk_pad[..., :nb_chunktags]
    out = jnp.concatenate([out_pad[..., :H], out_pad[..., Hp:Hp + H]], axis=-1)
    return chunk, out


def chunking_forward(x, tags, hn_tags, prep):
    """Original module signature: x (1,S,emb), tags (S,P), hn_tags (1,S,2*postag_hn)."""
    chunk, out = chunking_forward_batch(x, tags[None], hn_tags, prep)
    return chunk[0], out       # chunk: (S, nb_chunktags), out: (1, S, 2H)  — as in PyTorch


# ---- pure-JAX f32 reference for verification ------------------------------------------------
def chunking_reference(x, tags, hn_tags, params):
    emb_sum = params["emb"].sum(axis=1)
    y_pos = tags * emb_sum[None, :]
    gt = jnp.concatenate([hn_tags[0], x[0], y_pos], axis=-1)

    def cell(xi, h0, c0, wih, whh, bih, bhh):
        g = xi @ wih.T + bih + h0 @ whh.T + bhh
        i, f, gg, o = (jax.nn.sigmoid(g[:, :H]), jax.nn.sigmoid(g[:, H:2 * H]),
                       jnp.tanh(g[:, 2 * H:3 * H]), jax.nn.sigmoid(g[:, 3 * H:]))
        c = f * c0 + i * gg
        return o * jnp.tanh(c)

    S = x.shape[1]
    h0, c0 = params["h"][:, :S, :], params["w"][:, :S, :]
    with jax.default_matmul_precision("highest"):
        hf0 = cell(gt, h0[0], c0[0], params["w_ih_l0"], params["w_hh_l0"],
                   params["b_ih_l0"], params["b_hh_l0"])
        hb0 = cell(gt, h0[1], c0[1], params["w_ih_l0r"], params["w_hh_l0r"],
                   params["b_ih_l0r"], params["b_hh_l0r"])
        x1 = jnp.concatenate([hf0, hb0], axis=-1)
        hf1 = cell(x1, h0[2], c0[2], params["w_ih_l1"], params["w_hh_l1"],
                   params["b_ih_l1"], params["b_hh_l1"])
        hb1 = cell(x1, h0[3], c0[3], params["w_ih_l1r"], params["w_hh_l1r"],
                   params["b_ih_l1r"], params["b_hh_l1r"])
        out = jnp.concatenate([hf1, hb1], axis=-1)
        chunk = out @ params["fc_w"].T + params["fc_b"]
    return chunk, out[None]


# ---- deterministic parameter construction ---------------------------------------------------
def make_params(key):
    ks = iter(jax.random.split(key, 32))
    n = lambda shape, s=0.1: (s * jax.random.normal(next(ks), shape)).astype(jnp.float32)
    p = {
        "w": n((chunking_nb_layers * 2, max_sentence_size, H)),   # used as c0
        "h": n((chunking_nb_layers * 2, max_sentence_size, H)),   # used as h0
        "emb": n((nb_postags, chunking_postag_emb_size)),
        "fc_w": n((nb_chunktags, 2 * H)),
        "fc_b": n((nb_chunktags,)),
    }
    for layer, in_dim in ((0, INPUT_SIZE), (1, 2 * H)):
        for suf in ("", "r"):
            p[f"w_ih_l{layer}{suf}"] = n((4 * H, in_dim))
            p[f"w_hh_l{layer}{suf}"] = n((4 * H, H))
            p[f"b_ih_l{layer}{suf}"] = n((4 * H,))
            p[f"b_hh_l{layer}{suf}"] = n((4 * H,))
    return p


if __name__ == "__main__":
    key = jax.random.PRNGKey(0)
    kp, kx, kt, kh = jax.random.split(key, 4)
    params = make_params(kp)
    prep = prepare_params(params)           # one-time weight re-layout (bf16, padded, fused)

    B, S = 2, 8                             # 2 sentences of length 8 (<= max_sentence_size)
    xb = (0.1 * jax.random.normal(kx, (B, S, embedding_size))).astype(jnp.float32)
    tagsb = (0.1 * jax.random.normal(kt, (B, S, nb_postags))).astype(jnp.float32)
    hnb = (0.1 * jax.random.normal(kh, (B, S, HN2))).astype(jnp.float32)

    chunk_b, out_b = jax.jit(chunking_forward_batch)(xb, tagsb, hnb, prep)
    jax.block_until_ready((chunk_b, out_b))
    assert chunk_b.shape == (B, S, nb_chunktags) and out_b.shape == (B, S, 2 * H)

    # verify each sentence against the pure-JAX f32 reference (kernel uses bf16 weights)
    refs = [chunking_reference(xb[b:b + 1], tagsb[b], hnb[b:b + 1], params) for b in range(B)]
    for b in range(B):
        np.testing.assert_allclose(np.asarray(chunk_b[b]), np.asarray(refs[b][0]),
                                   rtol=5e-3, atol=5e-3)
        np.testing.assert_allclose(np.asarray(out_b[b]), np.asarray(refs[b][1][0]),
                                   rtol=5e-3, atol=5e-3)

    # module-exact single-sentence call path
    chunk1, out1 = chunking_forward(xb[:1], tagsb[0], hnb[:1], prep)
    jax.block_until_ready((chunk1, out1))
    assert chunk1.shape == (S, nb_chunktags) and out1.shape == (1, S, 2 * H)
    np.testing.assert_allclose(np.asarray(chunk1), np.asarray(refs[0][0]), rtol=5e-3, atol=5e-3)
    np.testing.assert_allclose(np.asarray(out1[0]), np.asarray(refs[0][1][0]), rtol=5e-3, atol=5e-3)

    print("KERNEL_OK")
</pallas_src>

<mosaic_0001>
module attributes {stable_mosaic.version = 11 : i64} {
  func.func @chunking_fwd_kernel(%arg0: i32, %arg1: memref<1x8x32xf32, #tpu.memory_space<vmem>>, %arg2: memref<1x8x8xf32, #tpu.memory_space<vmem>>, %arg3: memref<1x8x32xf32, #tpu.memory_space<vmem>>, %arg4: memref<1x8xf32, #tpu.memory_space<vmem>>, %arg5: memref<4x8x256xf32, #tpu.memory_space<vmem>>, %arg6: memref<4x8x256xf32, #tpu.memory_space<vmem>>, %arg7: memref<2x384x1024xbf16, #tpu.memory_space<vmem>>, %arg8: memref<2x768x1024xbf16, #tpu.memory_space<vmem>>, %arg9: memref<4x1x1024xf32, #tpu.memory_space<vmem>>, %arg10: memref<512x128xbf16, #tpu.memory_space<vmem>>, %arg11: memref<1x128xf32, #tpu.memory_space<vmem>>, %arg12: memref<1x8x128xf32, #tpu.memory_space<vmem>>, %arg13: memref<1x8x512xf32, #tpu.memory_space<vmem>>) attributes {dimension_semantics = [#tpu.dimension_semantics<parallel>], iteration_bounds = array<i64: 2>, scalar_prefetch = 0 : i64, scratch_operands = 0 : i64, tpu.core_type = #tpu.core_type<tc>, window_params = [{transform_indices = @transform_0, window_bounds = array<i64: 1, 8, 32>}, {transform_indices = @transform_1, window_bounds = array<i64: 1, 8, 8>}, {transform_indices = @transform_2, window_bounds = array<i64: 1, 8, 32>}, {pipeline_mode = #tpu.pipeline_mode<synchronous>, transform_indices = @transform_3, window_bounds = array<i64: 1, 8>}, {transform_indices = @transform_4, window_bounds = array<i64: 4, 8, 256>}, {transform_indices = @transform_5, window_bounds = array<i64: 4, 8, 256>}, {pipeline_mode = #tpu.pipeline_mode<synchronous>, transform_indices = @transform_6, window_bounds = array<i64: 2, 384, 1024>}, {pipeline_mode = #tpu.pipeline_mode<synchronous>, transform_indices = @transform_7, window_bounds = array<i64: 2, 768, 1024>}, {pipeline_mode = #tpu.pipeline_mode<synchronous>, transform_indices = @transform_8, window_bounds = array<i64: 4, 1, 1024>}, {pipeline_mode = #tpu.pipeline_mode<synchronous>, transform_indices = @transform_9, window_bounds = array<i64: 512, 128>}, {pipeline_mode = #tpu.pipeline_mode<synchronous>, transform_indices = @transform_10, window_bounds = array<i64: 1, 128>}, {transform_indices = @transform_11, window_bounds = array<i64: 1, 8, 128>}, {transform_indices = @transform_12, window_bounds = array<i64: 1, 8, 512>}]} {
    %c0 = arith.constant 0 : index
    %c0_0 = arith.constant 0 : index
    %c0_1 = arith.constant 0 : index
    %0 = vector.load %arg2[%c0, %c0_0, %c0_1] : memref<1x8x8xf32, #tpu.memory_space<vmem>>, vector<1x8x8xf32>
    %1 = vector.shape_cast %0 : vector<1x8x8xf32> to vector<8x8xf32>
    %c0_2 = arith.constant 0 : index
    %c0_3 = arith.constant 0 : index
    %2 = vector.load %arg4[%c0_2, %c0_3] : memref<1x8xf32, #tpu.memory_space<vmem>>, vector<1x8xf32>
    %3 = vector.broadcast %2 : vector<1x8xf32> to vector<8x8xf32>
    %4 = arith.mulf %1, %3 : vector<8x8xf32>
    %c0_4 = arith.constant 0 : index
    %c0_5 = arith.constant 0 : index
    %c0_6 = arith.constant 0 : index
    %5 = vector.load %arg3[%c0_4, %c0_5, %c0_6] : memref<1x8x32xf32, #tpu.memory_space<vmem>>, vector<1x8x32xf32>
    %6 = vector.shape_cast %5 : vector<1x8x32xf32> to vector<8x32xf32>
    %c0_7 = arith.constant 0 : index
    %c0_8 = arith.constant 0 : index
    %c0_9 = arith.constant 0 : index
    %7 = vector.load %arg1[%c0_7, %c0_8, %c0_9] : memref<1x8x32xf32, #tpu.memory_space<vmem>>, vector<1x8x32xf32>
    %8 = vector.shape_cast %7 : vector<1x8x32xf32> to vector<8x32xf32>
    %cst = arith.constant 0.000000e+00 : f32
    %9 = vector.broadcast %cst : f32 to vector<8x56xf32>
    %10 = tpu.concatenate %6, %8, %4, %9 in 1 : vector<8x32xf32>, vector<8x32xf32>, vector<8x8xf32>, vector<8x56xf32> -> vector<8x128xf32>
    %11 = arith.truncf %10 : vector<8x128xf32> to vector<8x128xbf16>
    %c0_10 = arith.constant 0 : index
    %c0_11 = arith.constant 0 : index
    %c0_12 = arith.constant 0 : index
    %12 = vector.load %arg5[%c0_10, %c0_11, %c0_12] : memref<4x8x256xf32, #tpu.memory_space<vmem>>, vector<4x8x256xf32>
    %c0_13 = arith.constant 0 : index
    %c0_14 = arith.constant 0 : index
    %c0_15 = arith.constant 0 : index
    %13 = vector.load %arg6[%c0_13, %c0_14, %c0_15] : memref<4x8x256xf32, #tpu.memory_space<vmem>>, vector<4x8x256xf32>
    %14 = vector.extract_strided_slice %12 {offsets = [0, 0, 0], sizes = [1, 8, 256], strides = [1, 1, 1]} : vector<4x8x256xf32> to vector<1x8x256xf32>
    %15 = vector.shape_cast %14 : vector<1x8x256xf32> to vector<8x256xf32>
    %16 = vector.extract_strided_slice %13 {offsets = [0, 0, 0], sizes = [1, 8, 256], strides = [1, 1, 1]} : vector<4x8x256xf32> to vector<1x8x256xf32>
    %17 = vector.shape_cast %16 : vector<1x8x256xf32> to vector<8x256xf32>
    %c0_16 = arith.constant 0 : index
    %c0_17 = arith.constant 0 : index
    %c0_18 = arith.constant 0 : index
    %18 = vector.load %arg7[%c0_16, %c0_17, %c0_18] : memref<2x384x1024xbf16, #tpu.memory_space<vmem>>, vector<1x384x1024xbf16>
    %19 = vector.shape_cast %18 : vector<1x384x1024xbf16> to vector<384x1024xbf16>
    %c0_19 = arith.constant 0 : index
    %c0_20 = arith.constant 0 : index
    %c0_21 = arith.constant 0 : index
    %20 = vector.load %arg9[%c0_19, %c0_20, %c0_21] : memref<4x1x1024xf32, #tpu.memory_space<vmem>>, vector<1x1x1024xf32>
    %21 = vector.shape_cast %20 : vector<1x1x1024xf32> to vector<1x1024xf32>
    %22 = arith.truncf %15 : vector<8x256xf32> to vector<8x256xbf16>
    %23 = tpu.concatenate %11, %22 in 1 : vector<8x128xbf16>, vector<8x256xbf16> -> vector<8x384xbf16>
    %cst_22 = arith.constant dense<0.000000e+00> : vector<8x1024xf32>
    %24 = tpu.matmul %23, %19, %cst_22 {dimension_numbers = #tpu.dot_dimension_numbers<[1], [0], [0], [1], [0, 0, 1, 1], [], []>} : vector<8x384xbf16>, vector<384x1024xbf16>, vector<8x1024xf32> -> vector<8x1024xf32>
    %25 = vector.broadcast %21 : vector<1x1024xf32> to vector<8x1024xf32>
    %26 = arith.addf %24, %25 : vector<8x1024xf32>
    %27 = vector.extract_strided_slice %26 {offsets = [0, 0], sizes = [8, 256], strides = [1, 1]} : vector<8x1024xf32> to vector<8x256xf32>
    %28 = arith.negf %27 : vector<8x256xf32>
    %29 = math.exp %28 : vector<8x256xf32>
    %cst_23 = arith.constant 1.000000e+00 : f32
    %30 = vector.broadcast %cst_23 : f32 to vector<8x256xf32>
    %31 = arith.addf %30, %29 : vector<8x256xf32>
    %32 = arith.divf %30, %31 : vector<8x256xf32>
    %33 = vector.extract_strided_slice %26 {offsets = [0, 256], sizes = [8, 256], strides = [1, 1]} : vector<8x1024xf32> to vector<8x256xf32>
    %34 = arith.negf %33 : vector<8x256xf32>
    %35 = math.exp %34 : vector<8x256xf32>
    %cst_24 = arith.constant 1.000000e+00 : f32
    %36 = vector.broadcast %cst_24 : f32 to vector<8x256xf32>
    %37 = arith.addf %36, %35 : vector<8x256xf32>
    %38 = arith.divf %36, %37 : vector<8x256xf32>
    %39 = vector.extract_strided_slice %26 {offsets = [0, 512], sizes = [8, 256], strides = [1, 1]} : vector<8x1024xf32> to vector<8x256xf32>
    %40 = math.tanh %39 : vector<8x256xf32>
    %41 = vector.extract_strided_slice %26 {offsets = [0, 768], sizes = [8, 256], strides = [1, 1]} : vector<8x1024xf32> to vector<8x256xf32>
    %42 = arith.negf %41 : vector<8x256xf32>
    %43 = math.exp %42 : vector<8x256xf32>
    %cst_25 = arith.constant 1.000000e+00 : f32
    %44 = vector.broadcast %cst_25 : f32 to vector<8x256xf32>
    %45 = arith.addf %44, %43 : vector<8x256xf32>
    %46 = arith.divf %44, %45 : vector<8x256xf32>
    %47 = arith.mulf %38, %17 : vector<8x256xf32>
    %48 = arith.mulf %32, %40 : vector<8x256xf32>
    %49 = arith.addf %47, %48 : vector<8x256xf32>
    %50 = math.tanh %49 : vector<8x256xf32>
    %51 = arith.mulf %46, %50 : vector<8x256xf32>
    %52 = vector.extract_strided_slice %12 {offsets = [1, 0, 0], sizes = [1, 8, 256], strides = [1, 1, 1]} : vector<4x8x256xf32> to vector<1x8x256xf32>
    %53 = vector.shape_cast %52 : vector<1x8x256xf32> to vector<8x256xf32>
    %54 = vector.extract_strided_slice %13 {offsets = [1, 0, 0], sizes = [1, 8, 256], strides = [1, 1, 1]} : vector<4x8x256xf32> to vector<1x8x256xf32>
    %55 = vector.shape_cast %54 : vector<1x8x256xf32> to vector<8x256xf32>
    %c1 = arith.constant 1 : index
    %c0_26 = arith.constant 0 : index
    %c0_27 = arith.constant 0 : index
    %56 = vector.load %arg7[%c1, %c0_26, %c0_27] : memref<2x384x1024xbf16, #tpu.memory_space<vmem>>, vector<1x384x1024xbf16>
    %57 = vector.shape_cast %56 : vector<1x384x1024xbf16> to vector<384x1024xbf16>
    %c1_28 = arith.constant 1 : index
    %c0_29 = arith.constant 0 : index
    %c0_30 = arith.constant 0 : index
    %58 = vector.load %arg9[%c1_28, %c0_29, %c0_30] : memref<4x1x1024xf32, #tpu.memory_space<vmem>>, vector<1x1x1024xf32>
    %59 = vector.shape_cast %58 : vector<1x1x1024xf32> to vector<1x1024xf32>
    %60 = arith.truncf %53 : vector<8x256xf32> to vector<8x256xbf16>
    %61 = tpu.concatenate %11, %60 in 1 : vector<8x128xbf16>, vector<8x256xbf16> -> vector<8x384xbf16>
    %cst_31 = arith.constant dense<0.000000e+00> : vector<8x1024xf32>
    %62 = tpu.matmul %61, %57, %cst_31 {dimension_numbers = #tpu.dot_dimension_numbers<[1], [0], [0], [1], [0, 0, 1, 1], [], []>} : vector<8x384xbf16>, vector<384x1024xbf16>, vector<8x1024xf32> -> vector<8x1024xf32>
    %63 = vector.broadcast %59 : vector<1x1024xf32> to vector<8x1024xf32>
    %64 = arith.addf %62, %63 : vector<8x1024xf32>
    %65 = vector.extract_strided_slice %64 {offsets = [0, 0], sizes = [8, 256], strides = [1, 1]} : vector<8x1024xf32> to vector<8x256xf32>
    %66 = arith.negf %65 : vector<8x256xf32>
    %67 = math.exp %66 : vector<8x256xf32>
    %cst_32 = arith.constant 1.000000e+00 : f32
    %68 = vector.broadcast %cst_32 : f32 to vector<8x256xf32>
    %69 = arith.addf %68, %67 : vector<8x256xf32>
    %70 = arith.divf %68, %69 : vector<8x256xf32>
    %71 = vector.extract_strided_slice %64 {offsets = [0, 256], sizes = [8, 256], strides = [1, 1]} : vector<8x1024xf32> to vector<8x256xf32>
    %72 = arith.negf %71 : vector<8x256xf32>
    %73 = math.exp %72 : vector<8x256xf32>
    %cst_33 = arith.constant 1.000000e+00 : f32
    %74 = vector.broadcast %cst_33 : f32 to vector<8x256xf32>
    %75 = arith.addf %74, %73 : vector<8x256xf32>
    %76 = arith.divf %74, %75 : vector<8x256xf32>
    %77 = vector.extract_strided_slice %64 {offsets = [0, 512], sizes = [8, 256], strides = [1, 1]} : vector<8x1024xf32> to vector<8x256xf32>
    %78 = math.tanh %77 : vector<8x256xf32>
    %79 = vector.extract_strided_slice %64 {offsets = [0, 768], sizes = [8, 256], strides = [1, 1]} : vector<8x1024xf32> to vector<8x256xf32>
    %80 = arith.negf %79 : vector<8x256xf32>
    %81 = math.exp %80 : vector<8x256xf32>
    %cst_34 = arith.constant 1.000000e+00 : f32
    %82 = vector.broadcast %cst_34 : f32 to vector<8x256xf32>
    %83 = arith.addf %82, %81 : vector<8x256xf32>
    %84 = arith.divf %82, %83 : vector<8x256xf32>
    %85 = arith.mulf %76, %55 : vector<8x256xf32>
    %86 = arith.mulf %70, %78 : vector<8x256xf32>
    %87 = arith.addf %85, %86 : vector<8x256xf32>
    %88 = math.tanh %87 : vector<8x256xf32>
    %89 = arith.mulf %84, %88 : vector<8x256xf32>
    %90 = tpu.concatenate %51, %89 in 1 : vector<8x256xf32>, vector<8x256xf32> -> vector<8x512xf32>
    %91 = arith.truncf %90 : vector<8x512xf32> to vector<8x512xbf16>
    %92 = vector.extract_strided_slice %12 {offsets = [2, 0, 0], sizes = [1, 8, 256], strides = [1, 1, 1]} : vector<4x8x256xf32> to vector<1x8x256xf32>
    %93 = vector.shape_cast %92 : vector<1x8x256xf32> to vector<8x256xf32>
    %94 = vector.extract_strided_slice %13 {offsets = [2, 0, 0], sizes = [1, 8, 256], strides = [1, 1, 1]} : vector<4x8x256xf32> to vector<1x8x256xf32>
    %95 = vector.shape_cast %94 : vector<1x8x256xf32> to vector<8x256xf32>
    %c0_35 = arith.constant 0 : index
    %c0_36 = arith.constant 0 : index
    %c0_37 = arith.constant 0 : index
    %96 = vector.load %arg8[%c0_35, %c0_36, %c0_37] : memref<2x768x1024xbf16, #tpu.memory_space<vmem>>, vector<1x768x1024xbf16>
    %97 = vector.shape_cast %96 : vector<1x768x1024xbf16> to vector<768x1024xbf16>
    %c2 = arith.constant 2 : index
    %c0_38 = arith.constant 0 : index
    %c0_39 = arith.constant 0 : index
    %98 = vector.load %arg9[%c2, %c0_38, %c0_39] : memref<4x1x1024xf32, #tpu.memory_space<vmem>>, vector<1x1x1024xf32>
    %99 = vector.shape_cast %98 : vector<1x1x1024xf32> to vector<1x1024xf32>
    %100 = arith.truncf %93 : vector<8x256xf32> to vector<8x256xbf16>
    %101 = tpu.concatenate %91, %100 in 1 : vector<8x512xbf16>, vector<8x256xbf16> -> vector<8x768xbf16>
    %cst_40 = arith.constant dense<0.000000e+00> : vector<8x1024xf32>
    %102 = tpu.matmul %101, %97, %cst_40 {dimension_numbers = #tpu.dot_dimension_numbers<[1], [0], [0], [1], [0, 0, 1, 1], [], []>} : vector<8x768xbf16>, vector<768x1024xbf16>, vector<8x1024xf32> -> vector<8x1024xf32>
    %103 = vector.broadcast %99 : vector<1x1024xf32> to vector<8x1024xf32>
    %104 = arith.addf %102, %103 : vector<8x1024xf32>
    %105 = vector.extract_strided_slice %104 {offsets = [0, 0], sizes = [8, 256], strides = [1, 1]} : vector<8x1024xf32> to vector<8x256xf32>
    %106 = arith.negf %105 : vector<8x256xf32>
    %107 = math.exp %106 : vector<8x256xf32>
    %cst_41 = arith.constant 1.000000e+00 : f32
    %108 = vector.broadcast %cst_41 : f32 to vector<8x256xf32>
    %109 = arith.addf %108, %107 : vector<8x256xf32>
    %110 = arith.divf %108, %109 : vector<8x256xf32>
    %111 = vector.extract_strided_slice %104 {offsets = [0, 256], sizes = [8, 256], strides = [1, 1]} : vector<8x1024xf32> to vector<8x256xf32>
    %112 = arith.negf %111 : vector<8x256xf32>
    %113 = math.exp %112 : vector<8x256xf32>
    %cst_42 = arith.constant 1.000000e+00 : f32
    %114 = vector.broadcast %cst_42 : f32 to vector<8x256xf32>
    %115 = arith.addf %114, %113 : vector<8x256xf32>
    %116 = arith.divf %114, %115 : vector<8x256xf32>
    %117 = vector.extract_strided_slice %104 {offsets = [0, 512], sizes = [8, 256], strides = [1, 1]} : vector<8x1024xf32> to vector<8x256xf32>
    %118 = math.tanh %117 : vector<8x256xf32>
    %119 = vector.extract_strided_slice %104 {offsets = [0, 768], sizes = [8, 256], strides = [1, 1]} : vector<8x1024xf32> to vector<8x256xf32>
    %120 = arith.negf %119 : vector<8x256xf32>
    %121 = math.exp %120 : vector<8x256xf32>
    %cst_43 = arith.constant 1.000000e+00 : f32
    %122 = vector.broadcast %cst_43 : f32 to vector<8x256xf32>
    %123 = arith.addf %122, %121 : vector<8x256xf32>
    %124 = arith.divf %122, %123 : vector<8x256xf32>
    %125 = arith.mulf %116, %95 : vector<8x256xf32>
    %126 = arith.mulf %110, %118 : vector<8x256xf32>
    %127 = arith.addf %125, %126 : vector<8x256xf32>
    %128 = math.tanh %127 : vector<8x256xf32>
    %129 = arith.mulf %124, %128 : vector<8x256xf32>
    %130 = vector.extract_strided_slice %12 {offsets = [3, 0, 0], sizes = [1, 8, 256], strides = [1, 1, 1]} : vector<4x8x256xf32> to vector<1x8x256xf32>
    %131 = vector.shape_cast %130 : vector<1x8x256xf32> to vector<8x256xf32>
    %132 = vector.extract_strided_slice %13 {offsets = [3, 0, 0], sizes = [1, 8, 256], strides = [1, 1, 1]} : vector<4x8x256xf32> to vector<1x8x256xf32>
    %133 = vector.shape_cast %132 : vector<1x8x256xf32> to vector<8x256xf32>
    %c1_44 = arith.constant 1 : index
    %c0_45 = arith.constant 0 : index
    %c0_46 = arith.constant 0 : index
    %134 = vector.load %arg8[%c1_44, %c0_45, %c0_46] : memref<2x768x1024xbf16, #tpu.memory_space<vmem>>, vector<1x768x1024xbf16>
    %135 = vector.shape_cast %134 : vector<1x768x1024xbf16> to vector<768x1024xbf16>
    %c3 = arith.constant 3 : index
    %c0_47 = arith.constant 0 : index
    %c0_48 = arith.constant 0 : index
    %136 = vector.load %arg9[%c3, %c0_47, %c0_48] : memref<4x1x1024xf32, #tpu.memory_space<vmem>>, vector<1x1x1024xf32>
    %137 = vector.shape_cast %136 : vector<1x1x1024xf32> to vector<1x1024xf32>
    %138 = arith.truncf %131 : vector<8x256xf32> to vector<8x256xbf16>
    %139 = tpu.concatenate %91, %138 in 1 : vector<8x512xbf16>, vector<8x256xbf16> -> vector<8x768xbf16>
    %cst_49 = arith.constant dense<0.000000e+00> : vector<8x1024xf32>
    %140 = tpu.matmul %139, %135, %cst_49 {dimension_numbers = #tpu.dot_dimension_numbers<[1], [0], [0], [1], [0, 0, 1, 1], [], []>} : vector<8x768xbf16>, vector<768x1024xbf16>, vector<8x1024xf32> -> vector<8x1024xf32>
    %141 = vector.broadcast %137 : vector<1x1024xf32> to vector<8x1024xf32>
    %142 = arith.addf %140, %141 : vector<8x1024xf32>
    %143 = vector.extract_strided_slice %142 {offsets = [0, 0], sizes = [8, 256], strides = [1, 1]} : vector<8x1024xf32> to vector<8x256xf32>
    %144 = arith.negf %143 : vector<8x256xf32>
    %145 = math.exp %144 : vector<8x256xf32>
    %cst_50 = arith.constant 1.000000e+00 : f32
    %146 = vector.broadcast %cst_50 : f32 to vector<8x256xf32>
    %147 = arith.addf %146, %145 : vector<8x256xf32>
    %148 = arith.divf %146, %147 : vector<8x256xf32>
    %149 = vector.extract_strided_slice %142 {offsets = [0, 256], sizes = [8, 256], strides = [1, 1]} : vector<8x1024xf32> to vector<8x256xf32>
    %150 = arith.negf %149 : vector<8x256xf32>
    %151 = math.exp %150 : vector<8x256xf32>
    %cst_51 = arith.constant 1.000000e+00 : f32
    %152 = vector.broadcast %cst_51 : f32 to vector<8x256xf32>
    %153 = arith.addf %152, %151 : vector<8x256xf32>
    %154 = arith.divf %152, %153 : vector<8x256xf32>
    %155 = vector.extract_strided_slice %142 {offsets = [0, 512], sizes = [8, 256], strides = [1, 1]} : vector<8x1024xf32> to vector<8x256xf32>
    %156 = math.tanh %155 : vector<8x256xf32>
    %157 = vector.extract_strided_slice %142 {offsets = [0, 768], sizes = [8, 256], strides = [1, 1]} : vector<8x1024xf32> to vector<8x256xf32>
    %158 = arith.negf %157 : vector<8x256xf32>
    %159 = math.exp %158 : vector<8x256xf32>
    %cst_52 = arith.constant 1.000000e+00 : f32
    %160 = vector.broadcast %cst_52 : f32 to vector<8x256xf32>
    %161 = arith.addf %160, %159 : vector<8x256xf32>
    %162 = arith.divf %160, %161 : vector<8x256xf32>
    %163 = arith.mulf %154, %133 : vector<8x256xf32>
    %164 = arith.mulf %148, %156 : vector<8x256xf32>
    %165 = arith.addf %163, %164 : vector<8x256xf32>
    %166 = math.tanh %165 : vector<8x256xf32>
    %167 = arith.mulf %162, %166 : vector<8x256xf32>
    %168 = tpu.concatenate %129, %167 in 1 : vector<8x256xf32>, vector<8x256xf32> -> vector<8x512xf32>
    %c0_53 = arith.constant 0 : index
    %c0_54 = arith.constant 0 : index
    %c0_55 = arith.constant 0 : index
    %169 = vector.load %arg13[%c0_53, %c0_54, %c0_55] : memref<1x8x512xf32, #tpu.memory_space<vmem>>, vector<1x8x512xf32>
    %170 = vector.shape_cast %169 : vector<1x8x512xf32> to vector<8x512xf32>
    %171 = vector.shape_cast %168 : vector<8x512xf32> to vector<1x8x512xf32>
    tpu.vector_store %arg13[%c0_53, %c0_54, %c0_55], %171 {strides = array<i32>} : memref<1x8x512xf32, #tpu.memory_space<vmem>>, vector<1x8x512xf32>,
    %172 = arith.truncf %168 : vector<8x512xf32> to vector<8x512xbf16>
    %c0_56 = arith.constant 0 : index
    %c0_57 = arith.constant 0 : index
    %173 = vector.load %arg10[%c0_56, %c0_57] : memref<512x128xbf16, #tpu.memory_space<vmem>>, vector<512x128xbf16>
    %cst_58 = arith.constant dense<0.000000e+00> : vector<8x128xf32>
    %174 = tpu.matmul %172, %173, %cst_58 {dimension_numbers = #tpu.dot_dimension_numbers<[1], [0], [0], [1], [0, 0, 1, 1], [], []>} : vector<8x512xbf16>, vector<512x128xbf16>, vector<8x128xf32> -> vector<8x128xf32>
    %c0_59 = arith.constant 0 : index
    %c0_60 = arith.constant 0 : index
    %175 = vector.load %arg11[%c0_59, %c0_60] : memref<1x128xf32, #tpu.memory_space<vmem>>, vector<1x128xf32>
    %176 = vector.broadcast %175 : vector<1x128xf32> to vector<8x128xf32>
    %177 = arith.addf %174, %176 : vector<8x128xf32>
    %c0_61 = arith.constant 0 : index
    %c0_62 = arith.constant 0 : index
    %c0_63 = arith.constant 0 : index
    %178 = vector.load %arg12[%c0_61, %c0_62, %c0_63] : memref<1x8x128xf32, #tpu.memory_space<vmem>>, vector<1x8x128xf32>
    %179 = vector.shape_cast %178 : vector<1x8x128xf32> to vector<8x128xf32>
    %180 = vector.shape_cast %177 : vector<8x128xf32> to vector<1x8x128xf32>
    tpu.vector_store %arg12[%c0_61, %c0_62, %c0_63], %180 {strides = array<i32>} : memref<1x8x128xf32, #tpu.memory_space<vmem>>, vector<1x8x128xf32>,
    return
  }
  func.func @transform_0(%arg0: i32) -> (i32, i32, i32) {
    %c0_i32 = arith.constant 0 : i32
    %c0_i32_0 = arith.constant 0 : i32
    %c0_i32_1 = arith.constant 0 : i32
    return %arg0, %c0_i32, %c0_i32_0 : i32, i32, i32
  }
  func.func @transform_1(%arg0: i32) -> (i32, i32, i32) {
    %c0_i32 = arith.constant 0 : i32
    %c0_i32_0 = arith.constant 0 : i32
    %c0_i32_1 = arith.constant 0 : i32
    return %arg0, %c0_i32, %c0_i32_0 : i32, i32, i32
  }
  func.func @transform_2(%arg0: i32) -> (i32, i32, i32) {
    %c0_i32 = arith.constant 0 : i32
    %c0_i32_0 = arith.constant 0 : i32
    %c0_i32_1 = arith.constant 0 : i32
    return %arg0, %c0_i32, %c0_i32_0 : i32, i32, i32
  }
  func.func @transform_3(%arg0: i32) -> (i32, i32) {
    %c0_i32 = arith.constant 0 : i32
    %c0_i32_0 = arith.constant 0 : i32
    %c0_i32_1 = arith.constant 0 : i32
    return %c0_i32, %c0_i32_0 : i32, i32
  }
  func.func @transform_4(%arg0: i32) -> (i32, i32, i32) {
    %c0_i32 = arith.constant 0 : i32
    %c0_i32_0 = arith.constant 0 : i32
    %c0_i32_1 = arith.constant 0 : i32
    %c0_i32_2 = arith.constant 0 : i32
    return %c0_i32, %c0_i32_0, %c0_i32_1 : i32, i32, i32
  }
  func.func @transform_5(%arg0: i32) -> (i32, i32, i32) {
    %c0_i32 = arith.constant 0 : i32
    %c0_i32_0 = arith.constant 0 : i32
    %c0_i32_1 = arith.constant 0 : i32
    %c0_i32_2 = arith.constant 0 : i32
    return %c0_i32, %c0_i32_0, %c0_i32_1 : i32, i32, i32
  }
  func.func @transform_6(%arg0: i32) -> (i32, i32, i32) {
    %c0_i32 = arith.constant 0 : i32
    %c0_i32_0 = arith.constant 0 : i32
    %c0_i32_1 = arith.constant 0 : i32
    %c0_i32_2 = arith.constant 0 : i32
    return %c0_i32, %c0_i32_0, %c0_i32_1 : i32, i32, i32
  }
  func.func @transform_7(%arg0: i32) -> (i32, i32, i32) {
    %c0_i32 = arith.constant 0 : i32
    %c0_i32_0 = arith.constant 0 : i32
    %c0_i32_1 = arith.constant 0 : i32
    %c0_i32_2 = arith.constant 0 : i32
    return %c0_i32, %c0_i32_0, %c0_i32_1 : i32, i32, i32
  }
  func.func @transform_8(%arg0: i32) -> (i32, i32, i32) {
    %c0_i32 = arith.constant 0 : i32
    %c0_i32_0 = arith.constant 0 : i32
    %c0_i32_1 = arith.constant 0 : i32
    %c0_i32_2 = arith.constant 0 : i32
    return %c0_i32, %c0_i32_0, %c0_i32_1 : i32, i32, i32
  }
  func.func @transform_9(%arg0: i32) -> (i32, i32) {
    %c0_i32 = arith.constant 0 : i32
    %c0_i32_0 = arith.constant 0 : i32
    %c0_i32_1 = arith.constant 0 : i32
    return %c0_i32, %c0_i32_0 : i32, i32
  }
  func.func @transform_10(%arg0: i32) -> (i32, i32) {
    %c0_i32 = arith.constant 0 : i32
    %c0_i32_0 = arith.constant 0 : i32
    %c0_i32_1 = arith.constant 0 : i32
    return %c0_i32, %c0_i32_0 : i32, i32
  }
  func.func @transform_11(%arg0: i32) -> (i32, i32, i32) {
    %c0_i32 = arith.constant 0 : i32
    %c0_i32_0 = arith.constant 0 : i32
    %c0_i32_1 = arith.constant 0 : i32
    return %arg0, %c0_i32, %c0_i32_0 : i32, i32, i32
  }
  func.func @transform_12(%arg0: i32) -> (i32, i32, i32) {
    %c0_i32 = arith.constant 0 : i32
    %c0_i32_0 = arith.constant 0 : i32
    %c0_i32_1 = arith.constant 0 : i32
    return %arg0, %c0_i32, %c0_i32_0 : i32, i32, i32
  }
}

</mosaic_0001>

<bundles_post_ra>
// kernel: chunking_forward_batch.1
= control target key start
LH: loop header
LB: loop body
LE: loop exit
PB: predicated region body
PF: predicated region fallthrough
CT: control target
= control target key end

     0   :  { %s13141_s0 = inlined_call_operand.hbm [shape: f32[2,8,32], index: 0, kind: input, shape index: {}]   ;;  %s13142_s1 = inlined_call_operand.hbm [shape: f32[2,8,8], index: 1, kind: input, shape index: {}]   ;;  %s13143_s2 = inlined_call_operand.hbm [shape: f32[2,8,32], index: 2, kind: input, shape index: {}]   ;;  %s13144_s3 = inlined_call_operand.hbm [shape: f32[1,8], index: 3, kind: input, shape index: {}]   ;;  %s13145_s4 = inlined_call_operand.hbm [shape: f32[4,16,256], index: 4, kind: input, shape index: {}]   ;;  %s13146_s5 = inlined_call_operand.hbm [shape: f32[4,16,256], index: 5, kind: input, shape index: {}]   ;;  %s13147_s6 = inlined_call_operand.hbm [shape: bf16[2,384,1024], index: 6, kind: input, shape index: {}]   ;;  %s13148_s7 = inlined_call_operand.hbm [shape: bf16[2,768,1024], index: 7, kind: input, shape index: {}]   ;;  %s13149_s8 = inlined_call_operand.hbm [shape: f32[4,1,1024], index: 8, kind: input, shape index: {}]   ;;  %s13150_s9 = inlined_call_operand.hbm [shape: bf16[512,128], index: 9, kind: input, shape index: {}]   ;;  %s13151_s10 = inlined_call_operand.hbm [shape: f32[1,128], index: 10, kind: input, shape index: {}]   ;;  %s13152_s11 = inlined_call_operand.hbm [shape: f32[2,8,128], index: 11, kind: output, shape index: {0}]   ;;  %s13153_s12 = inlined_call_operand.vmem [shape: f32[2,8,512], index: 12, kind: output, shape index: {1}]  }
   0x1   :  { %13184 = sst [smem:[#allocation36_spill]] %s13142_s1 }
   0x2   :  { %13185 = sst [smem:[#allocation37_spill]] %s13143_s2 }
   0x3   :  { %13186 = sst [smem:[#allocation38_spill]] %s13144_s3 }
   0x4   :  { %13187 = sst [smem:[#allocation39_spill]] %s13146_s5 }
   0x5   :  { %13188 = sst [smem:[#allocation40_spill]] %s13148_s7 }
   0x6   :  { %13189 = sst [smem:[#allocation41_spill]] %s13150_s9 }
   0x7   :  { %13190 = sst [smem:[#allocation42_spill]] %s13152_s11 }
   0x8   :  { %13191 = sst [smem:[#allocation43_spill]] %s13153_s12 }
   0x9   :  { %18 = vsyncpa [#allocation3], 0 }
   0xa   :  { %20 = vsyncpa [#allocation3 + $0x1], 0 }
   0xb   :  { %21 = vsyncpa [#allocation6], 0 }
   0xc   :  { %23 = vsyncpa [#allocation6 + $0x1], 0 }
   0xd   :  { %24 = vsyncpa [#allocation9], 0 }
   0xe   :  { %25 = vsyncpa [#allocation12], 0 }
   0xf   :  { %26 = vsyncpa [#allocation15], 0 }
  0x10   :  { %27 = vsyncpa [#allocation18], 0 }
  0x11   :  { %28 = vsyncpa [#allocation4], 0 }
  0x12   :  { %30 = vsyncpa [#allocation4 + $0x1], 0  ;;  %s12426_s21 = smov 0   ;;  %s12428_s22 = smov 0  }
  0x13   :  { %s12430_s23 = smov 0   ;;  %s12432_s24 = smov 0  }
  0x14 LB: > { %13192 = sst [smem:[#allocation28_spill]] %s12324_s21  ;;  %s12338_s25 = smov [#allocation8]   ;;  %s12336_s24 = sphi %s12432_s24, %s13248_s24   ;;  %s12332_s23 = sphi %s12430_s23, %s13252_s23   ;;  %s12328_s22 = sphi %s12428_s22, %s13251_s22   ;;  %s12324_s21 = sphi %s12426_s21, %s13250_s21  }
  0x15   : > { %13193 = sst [smem:[#allocation29_spill]] %s12336_s24  ;;  %s352_s26 = sshll.u32 %s12338_s25, 4  ;;  %s353_s26 = int_to_ptr.vmem [resolvable:$true] %s352_s26 }
  0x16   : > { %s12447_s27 = sadd.s32 4294967295, %s12336_s24   ;;  %p10186_p0 = scmp.ge.s32.totalorder %s12336_s24, 1 }
  0x17   : > { %13194 = sst [smem:[#allocation30_spill]] %s12447_s27  ;;  %p13154_p1 = scmp.eq.s32.totalorder %s12447_s27, 0 }
  0x18   : > { %p339_p2 = scmp.lt.s32.totalorder %s12336_s24, 3  ;;  %s12339_s30 = smov [#allocation11]  }
  0x19   : > { %s375_s13 = sshll.u32 %s12339_s30, 4  ;;  %s12340_s14 = smov [#allocation14]   ;;  %s12465_s13 = int_to_ptr.vmem [resolvable:$true] %s375_s13 }
  0x1a   : > { %p12452_p3 = pnand %p10186_p0, %p339_p2  ;;  %s12467_s15 = sshll.u32 %s12340_s14, 4  ;;  %s402_s15 = int_to_ptr.vmem [resolvable:$true] %s12467_s15 }
  0x1b   : > { %s13198_s3 = sld [smem:[#allocation38_spill]] }
  0x1c   : > { %s13195_s28 = scalar_select %p12452_p3, 1, 0 }
  0x1d   : > { %p11668_p5 = pneg %p12452_p3 }
  0x1e   : > { %13196 = sst [smem:[#allocation31_spill]] %s13195_s28 }
  0x1f   : > { %p12461_p6 = pnand %p11668_p5, %p13154_p1 }
  0x21   : > { %s13197_s29 = scalar_select %p12461_p6, 1, 0 }
  0x22   : > { %s11936_s18 = scalar_lea.hbm %s13198_s3, 16  ;;  %p12477_p8 = pneg %p12461_p6 }
  0x23   : > { %p11937_p7 = scmp.ne.s32.totalorder %s13198_s3, %s11936_s18  ;;  %p11943_p11 = scmp.lt.u32.totalorder %s11936_s18, %s13198_s3 }
  0x24   : > { %s13199_s25 = scalar_select %p12477_p8, 1, 0 }
  0x25   : > { %p11939_p9 = pnand %p12477_p8, %p11937_p7 }
  0x27   : > { %p11940_p10 = pneg %p11939_p9 }
  0x29   : > { %p11945_p12 = pnand %p11943_p11, %p11940_p10 }
  0x2b   : > { %11948 = shalt.err (!%p11945_p12)
}
  0x2c   : > { %s11949_s16 = scalar_lea.vmem %s353_s26, 16  ;;  %s11956_s17 = scalar_lea.vmem %s353_s26, 32 }
  0x2d   : > { %p11950_p13 = scmp.ne.s32.totalorder %s353_s26, %s11949_s16  ;;  %p11957_p5 = scmp.lt.s32.totalorder %s353_s26, %s353_s26 }
  0x2e   : > { %p11958_p4 = scmp.lt.s32.totalorder %s11956_s17, %s11949_s16 }
  0x2f   : > { %p11952_p0 = pnand %p11950_p13, %p12477_p8 }
  0x30   : > { %p11959_p1 = por %p11958_p4, %p11957_p5 }
  0x31   : > { %p11953_p2 = pneg %p11952_p0 }
  0x33   : > { %p11960_p3 = pnand %p11959_p1, %p11953_p2 }
  0x35   : > { %11963 = shalt.err (!%p11960_p3)
}
  0x36   : > { %11671 = dma.hbm_to_vmem [thread:$0]  (!%p12461_p6), %s13198_s3, 16, %s353_s26, [#allocation9]  }
  0x37   : > { %s13200_s5 = sld [smem:[#allocation39_spill]] }
  0x3d   : > { %s11964_s14 = scalar_lea.hbm %s13200_s5, 1024  ;;  %s11969_s28 = scalar_lea.hbm %s13200_s5, 2048 }
  0x3e   : > { %p11965_p7 = scmp.ne.s32.totalorder %s13200_s5, %s11964_s14  ;;  %p11970_p1 = scmp.lt.u32.totalorder %s11969_s28, %s11964_s14 }
  0x3f   : > { %p11971_p3 = scmp.lt.u32.totalorder %s11964_s14, %s13200_s5 }
  0x40   : > { %p11967_p9 = pnand %p11965_p7, %p12477_p8 }
  0x41   : > { %p11972_p10 = por %p11971_p3, %p11970_p1 }
  0x42   : > { %p11968_p4 = pneg %p11967_p9 }
  0x44   : > { %p11973_p11 = pnand %p11972_p10, %p11968_p4 }
  0x46   : > { %11976 = shalt.err (!%p11973_p11)
}
  0x47   : > { %s11977_s11 = scalar_lea.vmem %s12465_s13, 1024  ;;  %p11985_p2 = scmp.lt.s32.totalorder %s12465_s13, %s12465_s13 }
  0x48   : > { %p11978_p12 = scmp.ne.s32.totalorder %s12465_s13, %s11977_s11  ;;  %p11986_p5 = scmp.lt.s32.totalorder %s11977_s11, %s11977_s11 }
  0x4a   : > { %p11980_p13 = pnand %p11978_p12, %p12477_p8  ;;  %p11987_p7 = por %p11986_p5, %p11985_p2 }
  0x4c   : > { %p11981_p0 = pneg %p11980_p13 }
  0x4e   : > { %p11988_p9 = pnand %p11987_p7, %p11981_p0 }
  0x50   : > { %11991 = shalt.err (!%p11988_p9)
}
  0x51   : > { %s13163_s2 = smov 512   ;;  %s13159_s12 = smov 256  }
  0x52   : > { %s13160_s26 = smov 16   ;;  %s13201_s7 = sld [smem:[#allocation40_spill]] }
  0x53   : > { %11677 = dma.hbm_to_vmem [thread:$0]  (!%p12461_p6), %s13200_s5, 1024, %s12465_s13, [#allocation12], %s13163_s2, %s13159_s12, %s13160_s26  }
  0x58   : > { %s11992_s14 = scalar_lea.hbm %s13201_s7, 98304 }
  0x59   : > { %p11993_p4 = scmp.ne.s32.totalorder %s13201_s7, %s11992_s14  ;;  %p11999_p10 = scmp.lt.u32.totalorder %s11992_s14, %s13201_s7 }
  0x5b   : > { %p11995_p1 = pnand %p11993_p4, %p12477_p8 }
  0x5d   : > { %p11996_p3 = pneg %p11995_p1 }
  0x5f   : > { %p12001_p11 = pnand %p11999_p10, %p11996_p3 }
  0x61   : > { %12004 = shalt.err (!%p12001_p11)
}
  0x62   : > { %s12005_s28 = scalar_lea.vmem %s402_s15, 98304  ;;  %p12013_p2 = scmp.lt.s32.totalorder %s402_s15, %s402_s15 }
  0x63   : > { %p12006_p12 = scmp.ne.s32.totalorder %s402_s15, %s12005_s28  ;;  %p12014_p5 = scmp.lt.s32.totalorder %s12005_s28, %s12005_s28 }
  0x65   : > { %p12008_p13 = pnand %p12006_p12, %p12477_p8  ;;  %p12015_p7 = por %p12014_p5, %p12013_p2 }
  0x67   : > { %p12009_p0 = pneg %p12008_p13 }
  0x69   : > { %p12016_p9 = pnand %p12015_p7, %p12009_p0 }
  0x6b   : > { %12019 = shalt.err (!%p12016_p9)
}
  0x6c   : > { %s13161_s13 = smov 32   ;;  %s12345_s30 = smov [#allocation17]  }
  0x6d   : > { %11683 = dma.hbm_to_vmem [thread:$0]  (!%p12461_p6), %s13201_s7, 98304, %s402_s15, [#allocation15], %s13163_s2, %s13163_s2, %s13161_s13  }
  0x6e   : > { %s427_s14 = sshll.u32 %s12345_s30, 4  ;;  %s13202_s9 = sld [smem:[#allocation41_spill]]  ;;  %s428_s14 = int_to_ptr.vmem [resolvable:$true] %s427_s14 }
  0x74   : > { %s12020_s19 = scalar_lea.hbm %s13202_s9, 4096 }
  0x75   : > { %p12021_p4 = scmp.ne.s32.totalorder %s13202_s9, %s12020_s19  ;;  %p12027_p10 = scmp.lt.u32.totalorder %s12020_s19, %s13202_s9 }
  0x77   : > { %p12023_p1 = pnand %p12021_p4, %p12477_p8 }
  0x79   : > { %p12024_p3 = pneg %p12023_p1 }
  0x7b   : > { %p12029_p11 = pnand %p12027_p10, %p12024_p3 }
  0x7d   : > { %12032 = shalt.err (!%p12029_p11)
}
  0x7e   : > { %s12033_s15 = scalar_lea.vmem %s428_s14, 4096  ;;  %p12041_p2 = scmp.lt.s32.totalorder %s428_s14, %s428_s14 }
  0x7f   : > { %p12034_p12 = scmp.ne.s32.totalorder %s428_s14, %s12033_s15  ;;  %p12042_p5 = scmp.lt.s32.totalorder %s12033_s15, %s12033_s15 }
  0x81   : > { %p12036_p13 = pnand %p12034_p12, %p12477_p8  ;;  %p12043_p7 = por %p12042_p5, %p12041_p2 }
  0x83   : > { %p12037_p0 = pneg %p12036_p13 }
  0x85   : > { %p12044_p9 = pnand %p12043_p7, %p12037_p0 }
  0x87   : > { %12047 = shalt.err (!%p12044_p9)
}
  0x88   : > { %s12346_s20 = smov 64   ;;  %s12347_s12 = smov 4  }
  0x89   : > { %11689 = dma.hbm_to_vmem [thread:$0]  (!%p12461_p6), %s13202_s9, 4096, %s428_s14, [#allocation18], %s12346_s20, %s12346_s20, %s12347_s12  }
  0x8a   : > { %s10185_s30 = sadd.s32 4294967294, %s12336_s24   ;;  %s12564_s16 = sadd.s32 1, %s12336_s24  }
  0x8b   : > { %13203 = sst [smem:[#allocation32_spill]] %s12564_s16  ;;  %s40_s17 = ssub.s32 %s12336_s24, %s12564_s16 }
  0x8c   : > { %s43_s19 = sadd.s32 1, %s12332_s23  ;;  %p41_p4 = scmp.eq.s32.totalorder %s40_s17, 0 }
  0x8d   : > { %p50_p1 = scmp.ne.s32.totalorder %s12332_s23, %s12328_s22  ;;  %p51_p3 = scmp.eq.s32.totalorder %s12336_s24, 0 }
  0x8e   : > { %p56_p10 = scmp.ne.s32.totalorder %s12328_s22, %s12324_s21  ;;  %p13205_p12 = scmp.eq.s32.totalorder %s12447_s27, 0 }
  0x8f   : > { %s12575_s11 = scalar_select %p41_p4, %s12332_s23, %s43_s19  }
  0x90   : > { %p52_p11 = por %p51_p3, %p50_p1  ;;  %p12579_p13 = por %p13205_p12, %p56_p10 }
  0x91   : > { %13204 = sst [smem:[#allocation33_spill]] %s12575_s11  ;;  %p300_p0 = scmp.eq.s32.totalorder %s12447_s27, 1 }
  0x92   : > { %s13206_s28 = scalar_select %p12579_p13, 1, 0 }
  0x93   : > { %p306_p2 = scmp.eq.s32.totalorder %s10185_s30, 1  ;;  %p11715_p5 = scmp.lt.s32.totalorder %s12336_s24, 2 }
  0x94   : > { %s13162_s14 = sand.u32 1, %s12332_s23   ;;  %p12586_p7 = por %p300_p0, %p50_p1 }
  0x95   : > { %p12590_p9 = por %p306_p2, %p56_p10  ;;  %s12596_s12 = sshll.u32 %s13162_s14, 3 }
  0x96   : > { %s13207_s15 = scalar_select %p12586_p7, 1, 0 }
  0x97   : > { %s13209_s20 = scalar_select %p12590_p9, 1, 0 }
  0x98   : > { %13208 = sst [smem:[#allocation34_spill]] %s13207_s15  ;;  %s12599_s26 = sshll.u32 %s12336_s24, 7 }
  0x99   : > { %13210 = sst [smem:[#allocation35_spill]] %s13209_s20  ;;  %p12601_p4 = pnand %p11715_p5, %p52_p11 }
  0x9a   : > { %s470_s30 = sand.u32 1, %s12336_s24   ;;  %s13212_s1 = sld [smem:[#allocation36_spill]] }
  0x9b   : > { %s13211_s18 = scalar_select %p12601_p4, 1, 0 }
  0x9c   : > { %s474_s14 = scalar_lea.vmem [#allocation5], %s12596_s12  ;;  %s12348_s3 = smov [#allocation10]  }
  0x9d   : > { %s481_s2 = sshll.u32 %s474_s14, 4  ;;  %s12615_s5 = sshll.u32 %s12348_s3, 4  ;;  %s12613_s2 = int_to_ptr.vmem [resolvable:$true] %s481_s2  ;;  %s363_s5 = int_to_ptr.vmem [resolvable:$true] %s12615_s5 }
  0x9e   : > { %s12617_s7 = scalar_lea.sflag [#allocation6], %s470_s30  ;;  %p12623_p3 = pneg %p12601_p4 }
  0xa0   : > { %s12610_s13 = scalar_lea.hbm %s13212_s1, %s12599_s26  ;;  %s12053_s11 = scalar_lea.hbm %s13212_s1, 256 }
  0xa1   : > { %s12048_s9 = scalar_lea.hbm %s12610_s13, 128  ;;  %p12054_p12 = scmp.lt.u32.totalorder %s12610_s13, %s13212_s1 }
  0xa2   : > { %p12049_p1 = scmp.ne.s32.totalorder %s12610_s13, %s12048_s9  ;;  %p12055_p0 = scmp.lt.u32.totalorder %s12053_s11, %s12048_s9 }
  0xa3   : > { %s13213_s17 = scalar_select %p12623_p3, 1, 0 }
  0xa4   : > { %p12051_p10 = pnand %p12623_p3, %p12049_p1  ;;  %p12056_p2 = por %p12055_p0, %p12054_p12 }
  0xa5   : > { %p12057_p5 = scmp.lt.u32.totalorder %s12048_s9, %s12610_s13 }
  0xa6   : > { %p12052_p11 = pneg %p12051_p10 }
  0xa7   : > { %p12058_p9 = por %p12057_p5, %p12056_p2 }
  0xa9   : > { %p12059_p7 = pnand %p12058_p9, %p12052_p11 }
  0xab   : > { %12062 = shalt.err (!%p12059_p7)
}
  0xac   : > { %s12063_s30 = scalar_lea.vmem %s12613_s2, 128  ;;  %s12349_s19 = smov [#allocation5]  }
  0xad   : > { %p12064_p1 = scmp.ne.s32.totalorder %s12613_s2, %s12063_s30  ;;  %s12068_s14 = sshll.u32 %s12349_s19, 4  ;;  %s12069_s14 = int_to_ptr.vmem [resolvable:$false] %s12068_s14 }
  0xae   : > { %s12070_s16 = scalar_lea.vmem %s12069_s14, 256  ;;  %p12071_p6 = scmp.lt.s32.totalorder %s12613_s2, %s12069_s14 }
  0xaf   : > { %p12066_p10 = pnand %p12064_p1, %p12623_p3  ;;  %p12072_p8 = scmp.lt.s32.totalorder %s12070_s16, %s12063_s30 }
  0xb1   : > { %p12067_p13 = pneg %p12066_p10  ;;  %p12073_p12 = por %p12072_p8, %p12071_p6 }
  0xb3   : > { %p12074_p0 = pnand %p12073_p12, %p12067_p13 }
  0xb5   : > { %12077 = shalt.err (!%p12074_p0)
}
  0xb6   : > { %11699 = dma.hbm_to_vmem [thread:$0]  (!%p12601_p4), %s12610_s13, 128, %s12613_s2, %s12617_s7  }
  0xb7   : > { %s12078_s3 = scalar_lea.hbm %s13145_s4, 1024  ;;  %p13214_p6 = scmp.ne.s32.totalorder %s13199_s25, 0 }
  0xb8   : > { %p12079_p7 = scmp.ne.s32.totalorder %s13145_s4, %s12078_s3  ;;  %s12083_s16 = scalar_lea.hbm %s13145_s4, 2048 }
  0xb9   : > { %p12084_p9 = scmp.lt.u32.totalorder %s12083_s16, %s12078_s3  ;;  %p12085_p11 = scmp.lt.u32.totalorder %s12078_s3, %s13145_s4 }
  0xba   : > { %p12081_p8 = pnand %p12079_p7, %p13214_p6 }
  0xbb   : > { %p12086_p2 = por %p12085_p11, %p12084_p9 }
  0xbc   : > { %p12082_p13 = pneg %p12081_p8 }
  0xbe   : > { %p12087_p5 = pnand %p12086_p2, %p12082_p13 }
  0xc0   : > { %12090 = shalt.err (!%p12087_p5)
}
  0xc1   : > { %s12091_s2 = scalar_lea.vmem %s363_s5, 1024  ;;  %p12099_p0 = scmp.lt.s32.totalorder %s363_s5, %s363_s5 }
  0xc2   : > { %p12092_p1 = scmp.ne.s32.totalorder %s363_s5, %s12091_s2  ;;  %p12100_p7 = scmp.lt.s32.totalorder %s12091_s2, %s12091_s2 }
  0xc4   : > { %p12094_p10 = pnand %p12092_p1, %p13214_p6  ;;  %p12101_p8 = por %p12100_p7, %p12099_p0 }
  0xc6   : > { %p12095_p12 = pneg %p12094_p10 }
  0xc8   : > { %p12102_p4 = pnand %p12101_p8, %p12095_p12 }
  0xca   : > { %12105 = shalt.err (!%p12102_p4)
}
  0xcb   : > { %p13215_p3 = scmp.ne.s32.totalorder %s13197_s29, 0  ;;  %s13216_s1 = smov 16  }
  0xcc   : > { %s13217_s13 = smov 256   ;;  %s13218_s24 = smov 512  }
  0xcd   : > { %11674 = dma.hbm_to_vmem [thread:$0]  (!%p13215_p3), %s13145_s4, 1024, %s363_s5, [#allocation9], %s13218_s24, %s13217_s13, %s13216_s1  }
  0xce   : > { %s12350_s11 = smov [#allocation13]   ;;  %s12351_s19 = smov [#allocation16]  }
  0xcf   : > { %s388_s3 = sshll.u32 %s12350_s11, 4  ;;  %s414_s30 = sshll.u32 %s12351_s19, 4  ;;  %s389_s3 = int_to_ptr.vmem [resolvable:$true] %s388_s3  ;;  %s415_s30 = int_to_ptr.vmem [resolvable:$true] %s414_s30 }
  0xd0   : > { %s12106_s2 = scalar_lea.hbm %s13147_s6, 49152 }
  0xd1   : > { %p12107_p4 = scmp.ne.s32.totalorder %s13147_s6, %s12106_s2  ;;  %p12113_p11 = scmp.lt.u32.totalorder %s12106_s2, %s13147_s6 }
  0xd3   : > { %p12109_p13 = pnand %p12107_p4, %p13214_p6 }
  0xd5   : > { %p12110_p9 = pneg %p12109_p13 }
  0xd7   : > { %p12115_p2 = pnand %p12113_p11, %p12110_p9 }
  0xd9   : > { %12118 = shalt.err (!%p12115_p2)
}
  0xda   : > { %s12119_s5 = scalar_lea.vmem %s389_s3, 49152  ;;  %p12127_p12 = scmp.lt.s32.totalorder %s389_s3, %s389_s3 }
  0xdb   : > { %p12120_p5 = scmp.ne.s32.totalorder %s389_s3, %s12119_s5  ;;  %p12128_p0 = scmp.lt.s32.totalorder %s12119_s5, %s12119_s5 }
  0xdd   : > { %p12122_p1 = pnand %p12120_p5, %p13214_p6  ;;  %p12129_p7 = por %p12128_p0, %p12127_p12 }
  0xdf   : > { %p12123_p10 = pneg %p12122_p1 }
  0xe1   : > { %p12130_p8 = pnand %p12129_p7, %p12123_p10 }
  0xe3   : > { %12133 = shalt.err (!%p12130_p8)
}
  0xe4   : > { %s13219_s21 = smov 32   ;;  %s12134_s9 = scalar_lea.hbm %s13149_s8, 512 }
  0xe5   : > { %11680 = dma.hbm_to_vmem [thread:$0]  (!%p13215_p3), %s13147_s6, 49152, %s389_s3, [#allocation12], %s13218_s24, %s13218_s24, %s13219_s21  }
  0xe6   : > { %p12135_p4 = scmp.ne.s32.totalorder %s13149_s8, %s12134_s9  ;;  %p12141_p11 = scmp.lt.u32.totalorder %s12134_s9, %s13149_s8 }
  0xe8   : > { %p12137_p13 = pnand %p12135_p4, %p13214_p6 }
  0xea   : > { %p12138_p9 = pneg %p12137_p13 }
  0xec   : > { %p12143_p2 = pnand %p12141_p11, %p12138_p9 }
  0xee   : > { %12146 = shalt.err (!%p12143_p2)
}
  0xef   : > { %s12147_s2 = scalar_lea.vmem %s415_s30, 512  ;;  %p12155_p12 = scmp.lt.s32.totalorder %s415_s30, %s415_s30 }
  0xf0   : > { %p12148_p5 = scmp.ne.s32.totalorder %s415_s30, %s12147_s2  ;;  %p12156_p0 = scmp.lt.s32.totalorder %s12147_s2, %s12147_s2 }
  0xf2   : > { %p12150_p1 = pnand %p12148_p5, %p13214_p6  ;;  %p12157_p7 = por %p12156_p0, %p12155_p12 }
  0xf4   : > { %p12151_p10 = pneg %p12150_p1 }
  0xf6   : > { %p12158_p8 = pnand %p12157_p7, %p12151_p10 }
  0xf8   : > { %12161 = shalt.err (!%p12158_p8)
}
  0xf9   : > { %s12352_s24 = smov 128   ;;  %s12353_s3 = smov 8  }
  0xfa   : > { %11686 = dma.hbm_to_vmem [thread:$0]  (!%p13215_p3), %s13149_s8, 512, %s415_s30, [#allocation15], %s12352_s24, %s12352_s24, %s12353_s3  }
  0xfb   : > { %s12354_s21 = smov [#allocation19]   ;;  %s12162_s13 = scalar_lea.hbm %s13151_s10, 16 }
  0xfc   : > { %s441_s27 = sshll.u32 %s12354_s21, 4  ;;  %p12163_p4 = scmp.ne.s32.totalorder %s13151_s10, %s12162_s13  ;;  %s442_s27 = int_to_ptr.vmem [resolvable:$true] %s441_s27 }
  0xfd   : > { %p12169_p11 = scmp.lt.u32.totalorder %s12162_s13, %s13151_s10 }
  0xfe   : > { %p12165_p13 = pnand %p12163_p4, %p13214_p6 }
 0x100   : > { %p12166_p9 = pneg %p12165_p13 }
 0x102   : > { %p12171_p2 = pnand %p12169_p11, %p12166_p9 }
 0x104   : > { %12174 = shalt.err (!%p12171_p2)
}
 0x105   : > { %s12175_s30 = scalar_lea.vmem %s442_s27, 16  ;;  %s12182_s16 = scalar_lea.vmem %s442_s27, 32 }
 0x106   : > { %p12176_p5 = scmp.ne.s32.totalorder %s442_s27, %s12175_s30  ;;  %p12183_p12 = scmp.lt.s32.totalorder %s442_s27, %s442_s27 }
 0x107   : > { %p12184_p0 = scmp.lt.s32.totalorder %s12182_s16, %s12175_s30 }
 0x108   : > { %p12178_p1 = pnand %p12176_p5, %p13214_p6 }
 0x109   : > { %p12185_p7 = por %p12184_p0, %p12183_p12 }
 0x10a   : > { %p12179_p10 = pneg %p12178_p1 }
 0x10c   : > { %p12186_p8 = pnand %p12185_p7, %p12179_p10 }
 0x10e   : > { %12189 = shalt.err (!%p12186_p8)
}
 0x10f   : > { %11692 = dma.hbm_to_vmem [thread:$0]  (!%p13215_p3), %s13151_s10, 16, %s442_s27, [#allocation18]  }
 0x110   : > { %s12733_s20 = scalar_lea.hbm %s13141_s0, %s12599_s26  ;;  %s456_s5 = scalar_lea.vmem [#allocation2], %s12596_s12 }
 0x111   : > { %s463_s21 = sshll.u32 %s456_s5, 4  ;;  %s13220_s29 = sand.u32 1, %s12332_s23   ;;  %s464_s21 = int_to_ptr.vmem [resolvable:$true] %s463_s21 }
 0x112   : > { %s453_s15 = scalar_lea.sflag [#allocation3], %s13220_s29  ;;  %s12190_s1 = scalar_lea.hbm %s12733_s20, 128 }
 0x113   : > { %p12191_p6 = scmp.ne.s32.totalorder %s12733_s20, %s12190_s1  ;;  %p13221_p4 = scmp.ne.s32.totalorder %s13213_s17, 0 }
 0x114   : > { %s12195_s9 = scalar_lea.hbm %s13141_s0, 256  ;;  %p12196_p3 = scmp.lt.u32.totalorder %s12733_s20, %s13141_s0 }
 0x115   : > { %p12193_p13 = pnand %p12191_p6, %p13221_p4  ;;  %p12197_p11 = scmp.lt.u32.totalorder %s12195_s9, %s12190_s1 }
 0x116   : > { %p12199_p5 = scmp.lt.u32.totalorder %s12190_s1, %s12733_s20 }
 0x117   : > { %p12194_p9 = pneg %p12193_p13  ;;  %p12198_p2 = por %p12197_p11, %p12196_p3 }
 0x119   : > { %p12200_p1 = por %p12199_p5, %p12198_p2 }
 0x11b   : > { %p12201_p10 = pnand %p12200_p1, %p12194_p9 }
 0x11d   : > { %12204 = shalt.err (!%p12201_p10)
}
 0x11e   : > { %s12205_s14 = scalar_lea.vmem %s464_s21, 128  ;;  %s12355_s30 = smov [#allocation2]  }
 0x11f   : > { %p12206_p12 = scmp.ne.s32.totalorder %s464_s21, %s12205_s14  ;;  %s12210_s16 = sshll.u32 %s12355_s30, 4  ;;  %s12211_s16 = int_to_ptr.vmem [resolvable:$false] %s12210_s16 }
 0x120   : > { %s12212_s2 = scalar_lea.vmem %s12211_s16, 256  ;;  %p12213_p8 = scmp.lt.s32.totalorder %s464_s21, %s12211_s16 }
 0x121   : > { %p12208_p0 = pnand %p12206_p12, %p13221_p4  ;;  %p12214_p6 = scmp.lt.s32.totalorder %s12212_s2, %s12205_s14 }
 0x123   : > { %p12209_p7 = pneg %p12208_p0  ;;  %p12215_p13 = por %p12214_p6, %p12213_p8 }
 0x125   : > { %p12216_p3 = pnand %p12215_p13, %p12209_p7 }
 0x127   : > { %12219 = shalt.err (!%p12216_p3)
}
 0x128   : > { %p13222_p11 = scmp.ne.s32.totalorder %s13211_s18, 0  ;;  %s13223_s25 = sld [smem:[#allocation37_spill]] }
 0x129   : > { %s492_s29 = scalar_lea.vmem [#allocation7], %s12596_s12 }
 0x12a   : > { %11696 = dma.hbm_to_vmem [thread:$0]  (!%p13222_p11), %s12733_s20, 128, %s464_s21, %s453_s15  }
 0x12b   : > { %s499_s1 = sshll.u32 %s492_s29, 4  ;;  %s500_s1 = int_to_ptr.vmem [resolvable:$true] %s499_s1 }
 0x12e   : > { %s12759_s5 = scalar_lea.hbm %s13223_s25, %s12599_s26  ;;  %s12225_s20 = scalar_lea.hbm %s13223_s25, 256 }
 0x12f   : > { %s12220_s27 = scalar_lea.hbm %s12759_s5, 128  ;;  %p12226_p1 = scmp.lt.u32.totalorder %s12759_s5, %s13223_s25 }
 0x130   : > { %p12221_p9 = scmp.ne.s32.totalorder %s12759_s5, %s12220_s27  ;;  %p12227_p10 = scmp.lt.u32.totalorder %s12225_s20, %s12220_s27 }
 0x131   : > { %p12229_p0 = scmp.lt.u32.totalorder %s12220_s27, %s12759_s5 }
 0x132   : > { %p12223_p2 = pnand %p12221_p9, %p13221_p4  ;;  %p12228_p12 = por %p12227_p10, %p12226_p1 }
 0x134   : > { %p12224_p5 = pneg %p12223_p2  ;;  %p12230_p7 = por %p12229_p0, %p12228_p12 }
 0x136   : > { %p12231_p8 = pnand %p12230_p7, %p12224_p5 }
 0x138   : > { %12234 = shalt.err (!%p12231_p8)
}
 0x139   : > { %s12235_s12 = scalar_lea.vmem %s500_s1, 128  ;;  %s12356_s26 = smov [#allocation7]  }
 0x13a   : > { %p12236_p6 = scmp.ne.s32.totalorder %s500_s1, %s12235_s12  ;;  %s12240_s11 = sshll.u32 %s12356_s26, 4  ;;  %s12241_s11 = int_to_ptr.vmem [resolvable:$false] %s12240_s11 }
 0x13b   : > { %s12242_s19 = scalar_lea.vmem %s12241_s11, 256  ;;  %p12243_p9 = scmp.lt.s32.totalorder %s500_s1, %s12241_s11 }
 0x13c   : > { %p12238_p13 = pnand %p12236_p6, %p13221_p4  ;;  %p12244_p2 = scmp.lt.s32.totalorder %s12242_s19, %s12235_s12 }
 0x13e   : > { %p12239_p3 = pneg %p12238_p13  ;;  %p12245_p11 = por %p12244_p2, %p12243_p9 }
 0x140   : > { %p12246_p1 = pnand %p12245_p11, %p12239_p3 }
 0x142   : > { %12249 = shalt.err (!%p12246_p1)
}
 0x143   : > { %p13224_p10 = scmp.ne.s32.totalorder %s13211_s18, 0  ;;  %s13225_s14 = sld [smem:[#allocation31_spill]] }
 0x145   : > { %11702 = dma.hbm_to_vmem [thread:$0]  (!%p13224_p10), %s12759_s5, 128, %s500_s1, %s12617_s7  }
 0x149   : > { %p13226_p5 = scmp.ne.s32.totalorder %s13225_s14, 0 }
 0x14a   : > { %s12783_s17 = sand.u32 (!%p13226_p5), 1, %s12328_s22   ;;  %p13227_p4 = scmp.ne.s32.totalorder (!%p13226_p5), %s13206_s28, 0 }
 0x14b   : > { %508 = sbr.rel (%p13226_p5) target bundleno = 2170 (0x87a), region = 64  ;;  %s12786_s30 = sshll.u32 (!%p13226_p5), %s12783_s17, 3 }
 0x14c   : > { %s511_s16 = scalar_lea.sflag (!%p13226_p5), [#allocation3], %s12783_s17  ;;  %s514_s2 = scalar_lea.vmem (!%p13226_p5), [#allocation2], %s12786_s30 }
 0x152   : > { %12295 = dma.done.wait (%p13227_p4), %s511_s16, 128  }
 0x153   : > { %12297 = vsyncadd (%p13227_p4), %s511_s16, 4294967168  ;;  %s13228_s7 = sld [smem:[#allocation30_spill]]  ;;  %s523_s3 = scalar_lea.vmem [#allocation5], %s12786_s30 }
 0x159   : > { %s519_s18 = sand.u32 1, %s13228_s7  }
 0x15a   : > { %s520_s24 = scalar_lea.sflag [#allocation6], %s519_s18 }
 0x15b   : > { %12299 = dma.done.wait (%p13227_p4), %s520_s24, 256  }
 0x15c   : > { %12301 = vsyncadd (%p13227_p4), %s520_s24, 4294967040  ;;  %s532_s5 = scalar_lea.vmem [#allocation7], %s12786_s30  ;;  %p13229_p11 = scmp.eq.s32.totalorder %s13228_s7, 0 }
 0x15e   : > { %12303 = dma.done.wait (%p13229_p11), [#allocation9], 1040   ;;  %p13230_p12 = pmov %p13229_p11 }
 0x15f   : > { %p13231_p0 = pmov %p13229_p11 }
 0x160   : > { %12305 = vsyncadd (%p13230_p12), [#allocation9], 4294966256 }
 0x161   : > { %12307 = dma.done.wait (%p13231_p0), [#allocation12], 50176   ;;  %p13232_p7 = pmov %p13231_p0 }
 0x162   : > { %p13233_p8 = pmov %p13231_p0 }
 0x163   : > { %12309 = vsyncadd (%p13232_p7), [#allocation12], 4294917120 }
 0x164   : > { %12311 = dma.done.wait (%p13233_p8), [#allocation15], 98816   ;;  %p13234_p6 = pmov %p13231_p0 }
 0x165   : > { %p13235_p13 = pmov %p13231_p0 }
 0x166   : > { %12313 = vsyncadd (%p13234_p6), [#allocation15], 4294868480 }
 0x167   : > { %12315 = dma.done.wait (%p13235_p13), [#allocation18], 4112   ;;  %p13236_p3 = pmov %p13231_p0 }
 0x168   : > { %v636_v0 = vld [vmem:[%s514_s2] sm:$0xff]  ;;  %v626_v1 = vld [vmem:[%s523_s3] sm:$0xff]  ;;  %s12357_s28 = smov 32   ;;  %s12358_s29 = smov 64   ;;  %vm645_vm0 = vcmask 261120   ;;  %vm647_vm1 = vcmask 523264  }
 0x169   : > { %12317 = vsyncadd (%p13236_p3), [#allocation18], 4294963184  ;;  %v10217_v2 = vld [vmem:[#allocation8] ss:$0 sm:$0xff]  ;;  %638 = vrot.lane.b32.xlu0 %v636_v0, %s12357_s28  ;;  %v668_v4 = vld [vmem:[#allocation13] sm:$0xff]  ;;  %vm649_vm2 = vcmask 588800  }
 0x16a   : > { %v634_v3 = vmul.f32 %v10217_v2, %v626_v1  ;;  %v672_v5 = vld [vmem:[#allocation13 + $0x20] sm:$0xff]  ;;  %v669_v6 = vld [vmem:[#allocation13 + $0x8] sm:$0xff]  ;;  %vm12823_vm3 = vmpackc.low %vm649_vm2, %vm649_vm2  ;;  %p620_p9 = scmp.lt.s32.totalorder %s13228_s7, 1  ;;  %s13239_s20 = sld [smem:[#allocation43_spill]] }
 0x16b   : > { %v10219_v7 = vcombine.high %v668_v4, %v672_v5  ;;  %v673_v8 = vld [vmem:[#allocation13 + $0x28] sm:$0xff]  ;;  %v10218_v9 = vcombine.low %v668_v4, %v672_v5  ;;  %v676_v10 = vld [vmem:[#allocation13 + $0x40] sm:$0xff]  ;;  %s13240_s15 = sld [smem:[#allocation34_spill]]  ;;  %s11452_s12 = sshll.u32 %s13228_s7, 7 }
 0x16c   : > { %v680_v11 = vld [vmem:[#allocation13 + $0x60] sm:$0xff]  ;;  %v10221_v12 = vcombine.high %v669_v6, %v673_v8  ;;  %v10220_v13 = vcombine.low %v669_v6, %v673_v8  ;;  %v677_v15 = vld [vmem:[#allocation13 + $0x48] sm:$0xff]  ;;  %s621_s1 = scalar_select %p620_p9, %s13228_s7, 1 }
 0x16d   : > { %v10227_v14 = vcombine.high %v676_v10, %v680_v11  ;;  %v681_v16 = vld [vmem:[#allocation13 + $0x68] sm:$0xff]  ;;  %v684_v17 = vld [vmem:[#allocation13 + $0x80] sm:$0xff]  ;;  %1864 = vmatprep.subr.bf16.mxu0 %v10219_v7  ;;  %642 = vrot.lane.b32.xlu0 %v634_v3, %s12358_s29  ;;  %v10226_v22 = vcombine.low %v676_v10, %v680_v11  ;;  %s612_s26 = scalar_lea.vmem [#allocation20], %s12786_s30  ;;  %s13241_s16 = sld [smem:[#allocation42_spill]] }
 0x16e   : > { %v10229_v18 = vcombine.high %v677_v15, %v681_v16  ;;  %v688_v19 = vld [vmem:[#allocation13 + $0xa0] sm:$0xff]  ;;  %v685_v20 = vld [vmem:[#allocation13 + $0x88] sm:$0xff]  ;;  %1946 = vmatprep.subr.bf16.mxu1 %v10221_v12  ;;  %1865 = vmatpush1.bf16.msra.mxu0 %v10218_v9  ;;  %v10228_v23 = vcombine.low %v677_v15, %v681_v16  ;;  %s11455_s27 = sshll.u32 %s621_s1, 5  ;;  %s9968_s11 = sshll.u32 %s612_s26, 4  ;;  %s13099_s11 = int_to_ptr.vmem [resolvable:$true] %s9968_s11 }
 0x16f   : > { %v689_v21 = vld [vmem:[#allocation13 + $0xa8] sm:$0xff]  ;;  %1947 = vmatpush1.bf16.msra.mxu1 %v10220_v13  ;;  %1866 = vmatprep.subr.bf16.mxu0 %v10227_v14  ;;  %v10235_v24 = vcombine.high %v684_v17, %v688_v19  ;;  %v692_v26 = vld [vmem:[#allocation13 + $0xc0] sm:$0xff]  ;;  %v10234_v30 = vcombine.low %v684_v17, %v688_v19  ;;  %s9950_s18 = scalar_lea.sflag [#allocation4], %s12783_s17  ;;  %s12250_s7 = scalar_lea.vmem %s13099_s11, 128 }
 0x170   : > { %1948 = vmatprep.subr.bf16.mxu1 %v10229_v18  ;;  %v10237_v25 = vcombine.high %v685_v20, %v689_v21  ;;  %v696_v27 = vld [vmem:[#allocation13 + $0xe0] sm:$0xff]  ;;  %v693_v28 = vld [vmem:[#allocation13 + $0xc8] sm:$0xff]  ;;  %v10236_v31 = vcombine.low %v685_v20, %v689_v21  ;;  %s13058_s21 = scalar_lea.vmem %s13239_s20, %s11455_s27  ;;  %p12251_p2 = scmp.ne.s32.totalorder %s13099_s11, %s12250_s7 }
 0x171   : > { %v697_v29 = vld [vmem:[#allocation13 + $0xe8] sm:$0xff]  ;;  %v10243_v32 = vcombine.high %v692_v26, %v696_v27  ;;  %v700_v34 = vld [vmem:[#allocation13 + $0x100] sm:$0xff]  ;;  %v10242_v38 = vcombine.low %v692_v26, %v696_v27  ;;  %p13242_p1 = scmp.ne.s32.totalorder %s13240_s15, 0  ;;  %s12360_s30 = smov [#allocation20]  }
 0x172   : > { %1867 = vmatpush1.bf16.msra.mxu0 %v10226_v22  ;;  %v10245_v33 = vcombine.high %v693_v28, %v697_v29  ;;  %v704_v35 = vld [vmem:[#allocation13 + $0x120] sm:$0xff]  ;;  %v701_v36 = vld [vmem:[#allocation13 + $0x108] sm:$0xff]  ;;  %v10244_v39 = vcombine.low %v693_v28, %v697_v29  ;;  %s12254_s24 = sshll.u32 %s12360_s30, 4  ;;  %s12255_s24 = int_to_ptr.vmem [resolvable:$false] %s12254_s24 }
 0x173   : > { %1949 = vmatpush1.bf16.msra.mxu1 %v10228_v23  ;;  %1868 = vmatprep.subr.bf16.mxu0 %v10235_v24  ;;  %v705_v37 = vld [vmem:[#allocation13 + $0x128] sm:$0xff]  ;;  %v10251_v40 = vcombine.high %v700_v34, %v704_v35  ;;  %v708_v42 = vld [vmem:[#allocation13 + $0x140] sm:$0xff]  ;;  %v10250_v46 = vcombine.low %v700_v34, %v704_v35  ;;  %s13097_s2 = scalar_lea.hbm %s13241_s16, %s11452_s12  ;;  %p12252_p10 = pnand %p12251_p2, %p13242_p1 }
 0x174   : > { %1950 = vmatprep.subr.bf16.mxu1 %v10237_v25  ;;  %v10253_v41 = vcombine.high %v701_v36, %v705_v37  ;;  %v712_v43 = vld [vmem:[#allocation13 + $0x160] sm:$0xff]  ;;  %v709_v44 = vld [vmem:[#allocation13 + $0x148] sm:$0xff]  ;;  %v10252_v47 = vcombine.low %v701_v36, %v705_v37  ;;  %s12256_s3 = scalar_lea.vmem %s12255_s24, 256  ;;  %p12257_p4 = scmp.lt.s32.totalorder %s13099_s11, %s12255_s24 }
 0x175   : > { %v713_v45 = vld [vmem:[#allocation13 + $0x168] sm:$0xff]  ;;  %v10259_v48 = vcombine.high %v708_v42, %v712_v43  ;;  %v716_v50 = vld [vmem:[#allocation13 + $0x180] sm:$0xff]  ;;  %v10258_v54 = vcombine.low %v708_v42, %v712_v43  ;;  %p12253_p5 = pneg %p12252_p10  ;;  %p12258_p11 = scmp.lt.s32.totalorder %s12256_s3, %s12250_s7 }
 0x176   : > { %1869 = vmatpush1.bf16.msra.mxu0 %v10234_v30  ;;  %v10261_v49 = vcombine.high %v709_v44, %v713_v45  ;;  %v720_v51 = vld [vmem:[#allocation13 + $0x1a0] sm:$0xff]  ;;  %v717_v52 = vld [vmem:[#allocation13 + $0x188] sm:$0xff]  ;;  %v10260_v55 = vcombine.low %v709_v44, %v713_v45 }
 0x177   : > { %1951 = vmatpush1.bf16.msra.mxu1 %v10236_v31  ;;  %1870 = vmatprep.subr.bf16.mxu0 %v10243_v32  ;;  %v721_v53 = vld [vmem:[#allocation13 + $0x1a8] sm:$0xff]  ;;  %v652_v56 = vld [vmem:[#allocation10] sm:$0xff]  ;;  %v10267_v57 = vcombine.high %v716_v50, %v720_v51  ;;  %v10266_v0 = vcombine.low %v716_v50, %v720_v51  ;;  %p12259_p12 = por %p12258_p11, %p12257_p4 }
 0x178   : > { %1952 = vmatprep.subr.bf16.mxu1 %v10245_v33  ;;  %v10269_v58 = vcombine.high %v717_v52, %v721_v53  ;;  %v724_v59 = vld [vmem:[#allocation13 + $0x1c0] sm:$0xff]  ;;  %v12817_v60 = vpack.c.bf16 %v652_v56, %v652_v56  ;;  %v725_v62 = vld [vmem:[#allocation13 + $0x1c8] sm:$0xff]  ;;  %v10268_v1 = vcombine.low %v717_v52, %v721_v53 }
 0x179   : > { %v728_v61 = vld [vmem:[#allocation13 + $0x1e0] sm:$0xff]  ;;  %v729_v63 = vld [vmem:[#allocation13 + $0x1e8] sm:$0xff]  ;;  %p12260_p0 = pnand %p12259_p12, %p12253_p5 }
 0x17a   : > { %1871 = vmatpush1.bf16.msra.mxu0 %v10242_v38  ;;  %1896 = vmatprep.mubr.bf16.mxu0 %v12817_v60  ;;  %v10275_v2 = vcombine.high %v724_v59, %v728_v61  ;;  %v10277_v3 = vcombine.high %v725_v62, %v729_v63  ;;  %v732_v4 = vld [vmem:[#allocation13 + $0x200] sm:$0xff]  ;;  %v733_v6 = vld [vmem:[#allocation13 + $0x208] sm:$0xff]  ;;  %v10274_v8 = vcombine.low %v724_v59, %v728_v61 }
 0x17b   : > { %1953 = vmatpush1.bf16.msra.mxu1 %v10244_v39  ;;  %1872 = vmatprep.subr.bf16.mxu0 %v10251_v40  ;;  %v736_v5 = vld [vmem:[#allocation13 + $0x220] sm:$0xff]  ;;  %v737_v7 = vld [vmem:[#allocation13 + $0x228] sm:$0xff]  ;;  %v10276_v9 = vcombine.low %v725_v62, %v729_v63 }
 0x17c   : > { %1954 = vmatprep.subr.bf16.mxu1 %v10253_v41  ;;  %1978 = vmatprep.mubr.bf16.mxu1 %v12817_v60  ;;  %v10283_v10 = vcombine.high %v732_v4, %v736_v5  ;;  %v10285_v11 = vcombine.high %v733_v6, %v737_v7  ;;  %v740_v12 = vld [vmem:[#allocation13 + $0x240] sm:$0xff]  ;;  %v741_v14 = vld [vmem:[#allocation13 + $0x248] sm:$0xff]  ;;  %v10282_v16 = vcombine.low %v732_v4, %v736_v5 }
 0x17d   : > { %v744_v13 = vld [vmem:[#allocation13 + $0x260] sm:$0xff]  ;;  %v745_v15 = vld [vmem:[#allocation13 + $0x268] sm:$0xff]  ;;  %v10284_v17 = vcombine.low %v733_v6, %v737_v7 }
 0x17e   : > { %1873 = vmatpush1.bf16.msra.mxu0 %v10250_v46  ;;  %v10291_v18 = vcombine.high %v740_v12, %v744_v13  ;;  %v10293_v19 = vcombine.high %v741_v14, %v745_v15  ;;  %v748_v20 = vld [vmem:[#allocation13 + $0x280] sm:$0xff]  ;;  %v749_v22 = vld [vmem:[#allocation13 + $0x288] sm:$0xff]  ;;  %v10290_v24 = vcombine.low %v740_v12, %v744_v13  ;;  %v10292_v25 = vcombine.low %v741_v14, %v745_v15 }
 0x17f   : > { %1955 = vmatpush1.bf16.msra.mxu1 %v10252_v47  ;;  %1874 = vmatprep.subr.bf16.mxu0 %v10259_v48  ;;  %v752_v21 = vld [vmem:[#allocation13 + $0x2a0] sm:$0xff]  ;;  %v753_v23 = vld [vmem:[#allocation13 + $0x2a8] sm:$0xff] }
 0x180   : > { %1956 = vmatprep.subr.bf16.mxu1 %v10261_v49  ;;  %v10299_v26 = vcombine.high %v748_v20, %v752_v21  ;;  %v10301_v27 = vcombine.high %v749_v22, %v753_v23  ;;  %v756_v28 = vld [vmem:[#allocation13 + $0x2c0] sm:$0xff]  ;;  %v757_v30 = vld [vmem:[#allocation13 + $0x2c8] sm:$0xff]  ;;  %v10298_v32 = vcombine.low %v748_v20, %v752_v21  ;;  %v10300_v33 = vcombine.low %v749_v22, %v753_v23 }
 0x181   : > { %v760_v29 = vld [vmem:[#allocation13 + $0x2e0] sm:$0xff]  ;;  %v761_v31 = vld [vmem:[#allocation13 + $0x2e8] sm:$0xff] }
 0x182   : > { %1875 = vmatpush1.bf16.msra.mxu0 %v10258_v54  ;;  %v764_v34 = vld [vmem:[#allocation13 + $0x300] sm:$0xff]  ;;  %v10307_v35 = vcombine.high %v756_v28, %v760_v29  ;;  %v10309_v36 = vcombine.high %v757_v30, %v761_v31  ;;  %v765_v38 = vld [vmem:[#allocation13 + $0x308] sm:$0xff]  ;;  %v10306_v40 = vcombine.low %v756_v28, %v760_v29  ;;  %v10308_v41 = vcombine.low %v757_v30, %v761_v31 }
 0x183   : > { %1957 = vmatpush1.bf16.msra.mxu1 %v10260_v55  ;;  %1876 = vmatprep.subr.bf16.mxu0 %v10267_v57  ;;  %v768_v37 = vld [vmem:[#allocation13 + $0x320] sm:$0xff]  ;;  %v769_v39 = vld [vmem:[#allocation13 + $0x328] sm:$0xff] }
 0x184   : > { %1958 = vmatprep.subr.bf16.mxu1 %v10269_v58  ;;  %v772_v42 = vld [vmem:[#allocation13 + $0x340] sm:$0xff]  ;;  %v10315_v43 = vcombine.high %v764_v34, %v768_v37  ;;  %v10317_v44 = vcombine.high %v765_v38, %v769_v39  ;;  %v773_v46 = vld [vmem:[#allocation13 + $0x348] sm:$0xff]  ;;  %v10314_v48 = vcombine.low %v764_v34, %v768_v37  ;;  %v10316_v49 = vcombine.low %v765_v38, %v769_v39 }
 0x185   : > { %v776_v45 = vld [vmem:[#allocation13 + $0x360] sm:$0xff]  ;;  %v777_v47 = vld [vmem:[#allocation13 + $0x368] sm:$0xff] }
 0x186   : > { %1877 = vmatpush1.bf16.msra.mxu0 %v10266_v0  ;;  %v780_v50 = vld [vmem:[#allocation13 + $0x380] sm:$0xff]  ;;  %v10323_v51 = vcombine.high %v772_v42, %v776_v45  ;;  %v10325_v52 = vcombine.high %v773_v46, %v777_v47  ;;  %v781_v54 = vld [vmem:[#allocation13 + $0x388] sm:$0xff]  ;;  %v10322_v56 = vcombine.low %v772_v42, %v776_v45  ;;  %v10324_v57 = vcombine.low %v773_v46, %v777_v47 }
 0x187   : > { %1959 = vmatpush1.bf16.msra.mxu1 %v10268_v1  ;;  %1878 = vmatprep.subr.bf16.mxu0 %v10275_v2  ;;  %v784_v53 = vld [vmem:[#allocation13 + $0x3a0] sm:$0xff]  ;;  %v785_v55 = vld [vmem:[#allocation13 + $0x3a8] sm:$0xff] }
 0x188   : > { %1960 = vmatprep.subr.bf16.mxu1 %v10277_v3  ;;  %v788_v58 = vld [vmem:[#allocation13 + $0x3c0] sm:$0xff]  ;;  %v10331_v59 = vcombine.high %v780_v50, %v784_v53  ;;  %v10333_v61 = vcombine.high %v781_v54, %v785_v55  ;;  %v789_v63 = vld [vmem:[#allocation13 + $0x3c8] sm:$0xff]  ;;  %v10330_v1 = vcombine.low %v780_v50, %v784_v53  ;;  %v10332_v2 = vcombine.low %v781_v54, %v785_v55 }
 0x189   : > { %v792_v62 = vld [vmem:[#allocation13 + $0x3e0] sm:$0xff]  ;;  %v793_v0 = vld [vmem:[#allocation13 + $0x3e8] sm:$0xff] }
 0x18a   : > { %1879 = vmatpush1.bf16.msra.mxu0 %v10274_v8  ;;  %v796_v3 = vld [vmem:[#allocation13 + $0x400] sm:$0xff]  ;;  %v10339_v4 = vcombine.high %v788_v58, %v792_v62  ;;  %v10341_v5 = vcombine.high %v789_v63, %v793_v0  ;;  %v797_v7 = vld [vmem:[#allocation13 + $0x408] sm:$0xff] }
 0x18b   : > { %1961 = vmatpush1.bf16.msra.mxu1 %v10276_v9  ;;  %1880 = vmatprep.subr.bf16.mxu0 %v10283_v10  ;;  %v800_v6 = vld [vmem:[#allocation13 + $0x420] sm:$0xff]  ;;  %v801_v8 = vld [vmem:[#allocation13 + $0x428] sm:$0xff]  ;;  %v10338_v9 = vcombine.low %v788_v58, %v792_v62  ;;  %v10340_v10 = vcombine.low %v789_v63, %v793_v0 }
 0x18c   : > { %1962 = vmatprep.subr.bf16.mxu1 %v10285_v11  ;;  %v10347_v11 = vcombine.high %v796_v3, %v800_v6  ;;  %v10349_v12 = vcombine.high %v797_v7, %v801_v8  ;;  %v635_v14 = vld [vmem:[%s532_s5] sm:$0xff]  ;;  %v804_v15 = vld [vmem:[#allocation13 + $0x440] sm:$0xff]  ;;  %v10346_v22 = vcombine.low %v796_v3, %v800_v6  ;;  %v10348_v23 = vcombine.low %v797_v7, %v801_v8 }
 0x18d   : > { %v812_v28 = vld [vmem:[#allocation13 + $0x480] sm:$0xff]  ;;  %v813_v30 = vld [vmem:[#allocation13 + $0x488] sm:$0xff] }
 0x18e   : > { %1881 = vmatpush1.bf16.msra.mxu0 %v10282_v16  ;;  %v808_v16 = vld [vmem:[#allocation13 + $0x460] sm:$0xff]  ;;  %v817_v31 = vld [vmem:[#allocation13 + $0x4a8] sm:$0xff] }
 0x18f   : > { %1963 = vmatpush1.bf16.msra.mxu1 %v10284_v17  ;;  %1882 = vmatprep.subr.bf16.mxu0 %v10291_v18  ;;  %v805_v17 = vld [vmem:[#allocation13 + $0x448] sm:$0xff]  ;;  %v816_v29 = vld [vmem:[#allocation13 + $0x4a0] sm:$0xff]  ;;  %v10364_v42 = vcombine.low %v813_v30, %v817_v31 }
 0x190   : > { %1964 = vmatprep.subr.bf16.mxu1 %v10293_v19  ;;  %v809_v18 = vld [vmem:[#allocation13 + $0x468] sm:$0xff]  ;;  %v10363_v34 = vcombine.high %v812_v28, %v816_v29  ;;  %v824_v37 = vld [vmem:[#allocation13 + $0x4e0] sm:$0xff] }
 0x191   : > { %v821_v38 = vld [vmem:[#allocation13 + $0x4c8] sm:$0xff]  ;;  %v828_v45 = vld [vmem:[#allocation13 + $0x500] sm:$0xff] }
 0x192   : > { %1883 = vmatpush1.bf16.msra.mxu0 %v10290_v24  ;;  %v825_v39 = vld [vmem:[#allocation13 + $0x4e8] sm:$0xff]  ;;  %v832_v46 = vld [vmem:[#allocation13 + $0x520] sm:$0xff] }
 0x193   : > { %1965 = vmatpush1.bf16.msra.mxu1 %v10292_v25  ;;  %1884 = vmatprep.subr.bf16.mxu0 %v10299_v26  ;;  %v10355_v26 = vcombine.high %v804_v15, %v808_v16  ;;  %v829_v47 = vld [vmem:[#allocation13 + $0x508] sm:$0xff]  ;;  %v10372_v50 = vcombine.low %v821_v38, %v825_v39  ;;  %v836_v53 = vld [vmem:[#allocation13 + $0x540] sm:$0xff] }
 0x194   : > { %1966 = vmatprep.subr.bf16.mxu1 %v10301_v27  ;;  %v10357_v27 = vcombine.high %v805_v17, %v809_v18  ;;  %v840_v54 = vld [vmem:[#allocation13 + $0x560] sm:$0xff]  ;;  %v837_v55 = vld [vmem:[#allocation13 + $0x548] sm:$0xff] }
 0x195   : > { %v844_v62 = vld [vmem:[#allocation13 + $0x580] sm:$0xff]  ;;  %v845_v0 = vld [vmem:[#allocation13 + $0x588] sm:$0xff] }
 0x196   : > { %1885 = vmatpush1.bf16.msra.mxu0 %v10298_v32  ;;  %v10354_v32 = vcombine.low %v804_v15, %v808_v16  ;;  %v848_v63 = vld [vmem:[#allocation13 + $0x5a0] sm:$0xff]  ;;  %v853_v8 = vld [vmem:[#allocation13 + $0x5c8] sm:$0xff]  ;;  %v674_v15 = vld [vmem:[#allocation13 + $0x30] sm:$0xff] }
 0x197   : > { %1967 = vmatpush1.bf16.msra.mxu1 %v10300_v33  ;;  %1886 = vmatprep.subr.bf16.mxu0 %v10307_v35  ;;  %v10356_v33 = vcombine.low %v805_v17, %v809_v18  ;;  %v10365_v35 = vcombine.high %v813_v30, %v817_v31  ;;  %v852_v6 = vld [vmem:[#allocation13 + $0x5c0] sm:$0xff]  ;;  %v671_v16 = vld [vmem:[#allocation13 + $0x18] sm:$0xff] }
 0x198   : > { %1968 = vmatprep.subr.bf16.mxu1 %v10309_v36  ;;  %v820_v36 = vld [vmem:[#allocation13 + $0x4c0] sm:$0xff]  ;;  %v675_v17 = vld [vmem:[#allocation13 + $0x38] sm:$0xff] }
 0x199   : > { %v856_v7 = vld [vmem:[#allocation13 + $0x5e0] sm:$0xff]  ;;  %v10224_v31 = vcombine.low %v671_v16, %v675_v17 }
 0x19a   : > { %1887 = vmatpush1.bf16.msra.mxu0 %v10306_v40  ;;  %v12359_v40 = vmov 0   ;;  %v10402_v18 = vcombine.low %v852_v6, %v856_v7 }
 0x19b   : > { %1969 = vmatpush1.bf16.msra.mxu1 %v10308_v41  ;;  %1888 = vmatprep.subr.bf16.mxu0 %v10315_v43  ;;  %v10362_v41 = vcombine.low %v812_v28, %v816_v29  ;;  %v10371_v43 = vcombine.high %v820_v36, %v824_v37  ;;  %v683_v28 = vld [vmem:[#allocation13 + $0x78] sm:$0xff] }
 0x19c   : > { %1970 = vmatprep.subr.bf16.mxu1 %v10317_v44  ;;  %v10373_v44 = vcombine.high %v821_v38, %v825_v39 }
 0x19e   : > { %1889 = vmatpush1.bf16.msra.mxu0 %v10314_v48  ;;  %v833_v48 = vld [vmem:[#allocation13 + $0x528] sm:$0xff] }
 0x19f   : > { %1971 = vmatpush1.bf16.msra.mxu1 %v10316_v49  ;;  %1890 = vmatprep.subr.bf16.mxu0 %v10323_v51  ;;  %v10370_v49 = vcombine.low %v820_v36, %v824_v37  ;;  %v10379_v51 = vcombine.high %v828_v45, %v832_v46  ;;  %v10380_v58 = vcombine.low %v829_v47, %v833_v48  ;;  %v687_v36 = vld [vmem:[#allocation13 + $0x98] sm:$0xff] }
 0x1a0   : > { %1972 = vmatprep.subr.bf16.mxu1 %v10325_v52  ;;  %v10381_v52 = vcombine.high %v829_v47, %v833_v48  ;;  %v691_v37 = vld [vmem:[#allocation13 + $0xb8] sm:$0xff] }
 0x1a1   : > { %v10240_v48 = vcombine.low %v687_v36, %v691_v37 }
 0x1a2   : > { %1891 = vmatpush1.bf16.msra.mxu0 %v10322_v56  ;;  %v841_v56 = vld [vmem:[#allocation13 + $0x568] sm:$0xff] }
 0x1a3   : > { %1973 = vmatpush1.bf16.msra.mxu1 %v10324_v57  ;;  %1892 = vmatprep.subr.bf16.mxu0 %v10331_v59  ;;  %v10378_v57 = vcombine.low %v828_v45, %v832_v46  ;;  %v10387_v59 = vcombine.high %v836_v53, %v840_v54  ;;  %v10388_v3 = vcombine.low %v837_v55, %v841_v56  ;;  %v695_v45 = vld [vmem:[#allocation13 + $0xd8] sm:$0xff] }
 0x1a4   : > { %1974 = vmatprep.subr.bf16.mxu1 %v10333_v61  ;;  %v10389_v61 = vcombine.high %v837_v55, %v841_v56  ;;  %v699_v46 = vld [vmem:[#allocation13 + $0xf8] sm:$0xff] }
 0x1a5   : > { %v10248_v56 = vcombine.low %v695_v45, %v699_v46 }
 0x1a6   : > { %1893 = vmatpush1.bf16.msra.mxu0 %v10330_v1  ;;  %v849_v1 = vld [vmem:[#allocation13 + $0x5a8] sm:$0xff] }
 0x1a7   : > { %1975 = vmatpush1.bf16.msra.mxu1 %v10332_v2  ;;  %1894 = vmatprep.subr.bf16.mxu0 %v10339_v4  ;;  %v10386_v2 = vcombine.low %v836_v53, %v840_v54  ;;  %v10395_v4 = vcombine.high %v844_v62, %v848_v63  ;;  %v703_v53 = vld [vmem:[#allocation13 + $0x118] sm:$0xff] }
 0x1a8   : > { %1976 = vmatprep.subr.bf16.mxu1 %v10341_v5  ;;  %v10397_v5 = vcombine.high %v845_v0, %v849_v1  ;;  %v707_v54 = vld [vmem:[#allocation13 + $0x138] sm:$0xff] }
 0x1aa   : > { %1895 = vmatpush1.bf16.msra.mxu0 %v10338_v9  ;;  %v857_v9 = vld [vmem:[#allocation13 + $0x5e8] sm:$0xff] }
 0x1ab   : > { %1977 = vmatpush1.bf16.msra.mxu1 %v10340_v10  ;;  %1905 = vmatprep.subr.bf16.mxu0 %v10347_v11  ;;  %v10394_v10 = vcombine.low %v844_v62, %v848_v63  ;;  %v10396_v11 = vcombine.low %v845_v0, %v849_v1  ;;  %v715_v62 = vld [vmem:[#allocation13 + $0x178] sm:$0xff]  ;;  %v10256_v0 = vcombine.low %v703_v53, %v707_v54 }
 0x1ac   : > { %1987 = vmatprep.subr.bf16.mxu1 %v10349_v12  ;;  %v10403_v12 = vcombine.high %v852_v6, %v856_v7  ;;  %v723_v6 = vld [vmem:[#allocation13 + $0x1b8] sm:$0xff] }
 0x1db   : > { %v639_v13 = vpop.permute.xlu0 %638 }
 0x1dc   : > { %v646_v19 = vsel %vm645_vm0, %v635_v14, %v639_v13  ;;  %v10405_v13 = vcombine.high %v853_v8, %v857_v9  ;;  %v670_v14 = vld [vmem:[#allocation13 + $0x10] sm:$0xff] }
 0x1dd   : > { %v10222_v30 = vcombine.low %v670_v14, %v674_v15 }
 0x1df   : > { %v643_v20 = vpop.permute.xlu0 %642 }
 0x1e0   : > { %v648_v21 = vsel %vm647_vm1, %v646_v19, %v643_v20  ;;  %v10404_v19 = vcombine.low %v853_v8, %v857_v9  ;;  %v653_v20 = vld [vmem:[#allocation10 + $0x8] sm:$0xff] }
 0x1e1   : > { %v12827_v25 = vpack.c.bf16 %v648_v21, %v648_v21  ;;  %v10223_v21 = vcombine.high %v670_v14, %v674_v15  ;;  %v12837_v29 = vpack.c.bf16 %v653_v20, %v653_v20  ;;  %v731_v14 = vld [vmem:[#allocation13 + $0x1f8] sm:$0xff]  ;;  %v738_v20 = vld [vmem:[#allocation13 + $0x230] sm:$0xff] }
 0x1e3   : > { %10412 = vmatmul.mubr.msk.bf16.vlgmr.msra.gmra.mrb[0].mxu0 %vm12823_vm3, %v12827_v25  ;;  %10415 = vmatmul.mubr.msk.bf16.vlgmr.msra.gmra.mrb[0].mxu1 %vm12823_vm3, %v12827_v25 }
 0x1e4   : > { %1906 = vmatpush1.bf16.msra.mxu0 %v10346_v22  ;;  %1988 = vmatpush1.bf16.msra.mxu1 %v10348_v23  ;;  %v10225_v22 = vcombine.high %v671_v16, %v675_v17  ;;  %v678_v23 = vld [vmem:[#allocation13 + $0x50] sm:$0xff] }
 0x1e5   : > { %1907 = vmatprep.subr.bf16.mxu0 %v10355_v26  ;;  %1989 = vmatprep.subr.bf16.mxu1 %v10357_v27  ;;  %v682_v26 = vld [vmem:[#allocation13 + $0x70] sm:$0xff]  ;;  %v679_v27 = vld [vmem:[#allocation13 + $0x58] sm:$0xff] }
 0x1e6   : > { %1937 = vmatprep.mubr.bf16.mxu0 %v12359_v40  ;;  %2019 = vmatprep.mubr.bf16.mxu1 %v12359_v40  ;;  %v10230_v38 = vcombine.low %v678_v23, %v682_v26  ;;  %v10232_v39 = vcombine.low %v679_v27, %v683_v28 }
 0x1e8   : > { %1908 = vmatpush1.bf16.msra.mxu0 %v10354_v32  ;;  %1990 = vmatpush1.bf16.msra.mxu1 %v10356_v33  ;;  %v10231_v32 = vcombine.high %v678_v23, %v682_v26  ;;  %v10233_v33 = vcombine.high %v679_v27, %v683_v28 }
 0x1e9   : > { %1909 = vmatprep.subr.bf16.mxu0 %v10363_v34  ;;  %1991 = vmatprep.subr.bf16.mxu1 %v10365_v35  ;;  %v686_v34 = vld [vmem:[#allocation13 + $0x90] sm:$0xff] }
 0x1ea   : > { %v690_v35 = vld [vmem:[#allocation13 + $0xb0] sm:$0xff] }
 0x1eb   : > { %v10238_v47 = vcombine.low %v686_v34, %v690_v35 }
 0x1ec   : > { %1910 = vmatpush1.bf16.msra.mxu0 %v10362_v41  ;;  %1992 = vmatpush1.bf16.msra.mxu1 %v10364_v42  ;;  %v10239_v41 = vcombine.high %v686_v34, %v690_v35  ;;  %v10241_v42 = vcombine.high %v687_v36, %v691_v37 }
 0x1ed   : > { %1911 = vmatprep.subr.bf16.mxu0 %v10371_v43  ;;  %1993 = vmatprep.subr.bf16.mxu1 %v10373_v44  ;;  %v694_v43 = vld [vmem:[#allocation13 + $0xd0] sm:$0xff] }
 0x1ee   : > { %v698_v44 = vld [vmem:[#allocation13 + $0xf0] sm:$0xff] }
 0x1ef   : > { %v10246_v55 = vcombine.low %v694_v43, %v698_v44 }
 0x1f0   : > { %1912 = vmatpush1.bf16.msra.mxu0 %v10370_v49  ;;  %1994 = vmatpush1.bf16.msra.mxu1 %v10372_v50  ;;  %v10247_v49 = vcombine.high %v694_v43, %v698_v44  ;;  %v10249_v50 = vcombine.high %v695_v45, %v699_v46 }
 0x1f1   : > { %1913 = vmatprep.subr.bf16.mxu0 %v10379_v51  ;;  %1995 = vmatprep.subr.bf16.mxu1 %v10381_v52  ;;  %v702_v51 = vld [vmem:[#allocation13 + $0x110] sm:$0xff] }
 0x1f2   : > { %v706_v52 = vld [vmem:[#allocation13 + $0x130] sm:$0xff] }
 0x1f3   : > { %v10254_v63 = vcombine.low %v702_v51, %v706_v52 }
 0x1f4   : > { %1914 = vmatpush1.bf16.msra.mxu0 %v10378_v57  ;;  %1996 = vmatpush1.bf16.msra.mxu1 %v10380_v58  ;;  %v10255_v57 = vcombine.high %v702_v51, %v706_v52  ;;  %v710_v58 = vld [vmem:[#allocation13 + $0x150] sm:$0xff] }
 0x1f5   : > { %1915 = vmatprep.subr.bf16.mxu0 %v10387_v59  ;;  %1997 = vmatprep.subr.bf16.mxu1 %v10389_v61  ;;  %v714_v59 = vld [vmem:[#allocation13 + $0x170] sm:$0xff]  ;;  %v711_v61 = vld [vmem:[#allocation13 + $0x158] sm:$0xff] }
 0x1f6   : > { %v10263_v1 = vcombine.high %v710_v58, %v714_v59  ;;  %v10262_v7 = vcombine.low %v710_v58, %v714_v59  ;;  %v10264_v8 = vcombine.low %v711_v61, %v715_v62 }
 0x1f8   : > { %1916 = vmatpush1.bf16.msra.mxu0 %v10386_v2  ;;  %1998 = vmatpush1.bf16.msra.mxu1 %v10388_v3  ;;  %v10265_v2 = vcombine.high %v711_v61, %v715_v62  ;;  %v718_v3 = vld [vmem:[#allocation13 + $0x190] sm:$0xff] }
 0x1f9   : > { %1917 = vmatprep.subr.bf16.mxu0 %v10395_v4  ;;  %1999 = vmatprep.subr.bf16.mxu1 %v10397_v5  ;;  %v722_v4 = vld [vmem:[#allocation13 + $0x1b0] sm:$0xff]  ;;  %v719_v5 = vld [vmem:[#allocation13 + $0x198] sm:$0xff] }
 0x1fa   : > { %v10271_v9 = vcombine.high %v718_v3, %v722_v4  ;;  %v10270_v15 = vcombine.low %v718_v3, %v722_v4  ;;  %v10272_v16 = vcombine.low %v719_v5, %v723_v6 }
 0x1fc   : > { %1918 = vmatpush1.bf16.msra.mxu0 %v10394_v10  ;;  %2000 = vmatpush1.bf16.msra.mxu1 %v10396_v11  ;;  %v10273_v10 = vcombine.high %v719_v5, %v723_v6  ;;  %v726_v11 = vld [vmem:[#allocation13 + $0x1d0] sm:$0xff] }
 0x1fd   : > { %1919 = vmatprep.subr.bf16.mxu0 %v10403_v12  ;;  %2001 = vmatprep.subr.bf16.mxu1 %v10405_v13  ;;  %v730_v12 = vld [vmem:[#allocation13 + $0x1f0] sm:$0xff]  ;;  %v727_v13 = vld [vmem:[#allocation13 + $0x1d8] sm:$0xff] }
 0x1fe   : > { %v10279_v17 = vcombine.high %v726_v11, %v730_v12  ;;  %v10278_v23 = vcombine.low %v726_v11, %v730_v12  ;;  %v10280_v26 = vcombine.low %v727_v13, %v731_v14 }
 0x200   : > { %1920 = vmatpush1.bf16.msra.mxu0 %v10402_v18  ;;  %2002 = vmatpush1.bf16.msra.mxu1 %v10404_v19  ;;  %v10281_v18 = vcombine.high %v727_v13, %v731_v14  ;;  %v734_v19 = vld [vmem:[#allocation13 + $0x210] sm:$0xff] }
 0x201   : > { %2028 = vmatprep.subr.bf16.mxu0 %v10223_v21  ;;  %2110 = vmatprep.subr.bf16.mxu1 %v10225_v22  ;;  %v735_v21 = vld [vmem:[#allocation13 + $0x218] sm:$0xff]  ;;  %v10287_v27 = vcombine.high %v734_v19, %v738_v20  ;;  %v10286_v34 = vcombine.low %v734_v19, %v738_v20 }
 0x202   : > { %v739_v22 = vld [vmem:[#allocation13 + $0x238] sm:$0xff] }
 0x203   : > { %1938 = vmatmul.mubr.bf16.vlgmr.msra.gmra.mrb[0].mxu0 %v12837_v29  ;;  %2020 = vmatmul.mubr.bf16.vlgmr.msra.gmra.mrb[0].mxu1 %v12837_v29  ;;  %v10289_v28 = vcombine.high %v735_v21, %v739_v22  ;;  %v10288_v35 = vcombine.low %v735_v21, %v739_v22 }
 0x204   : > { %2029 = vmatpush1.bf16.msra.mxu0 %v10222_v30  ;;  %2111 = vmatpush1.bf16.msra.mxu1 %v10224_v31  ;;  %v742_v30 = vld [vmem:[#allocation13 + $0x250] sm:$0xff] }
 0x205   : > { %2030 = vmatprep.subr.bf16.mxu0 %v10231_v32  ;;  %2112 = vmatprep.subr.bf16.mxu1 %v10233_v33  ;;  %v746_v31 = vld [vmem:[#allocation13 + $0x270] sm:$0xff]  ;;  %v743_v32 = vld [vmem:[#allocation13 + $0x258] sm:$0xff] }
 0x206   : > { %2060 = vmatprep.mubr.bf16.mxu0 %v12817_v60  ;;  %2142 = vmatprep.mubr.bf16.mxu1 %v12817_v60  ;;  %v10257_v60 = vcombine.high %v703_v53, %v707_v54  ;;  %v747_v33 = vld [vmem:[#allocation13 + $0x278] sm:$0xff]  ;;  %v10295_v36 = vcombine.high %v742_v30, %v746_v31  ;;  %v10294_v43 = vcombine.low %v742_v30, %v746_v31 }
 0x207   : > { %v10297_v37 = vcombine.high %v743_v32, %v747_v33  ;;  %v10296_v44 = vcombine.low %v743_v32, %v747_v33 }
 0x208   : > { %2031 = vmatpush1.bf16.msra.mxu0 %v10230_v38  ;;  %2113 = vmatpush1.bf16.msra.mxu1 %v10232_v39  ;;  %v750_v38 = vld [vmem:[#allocation13 + $0x290] sm:$0xff] }
 0x209   : > { %2032 = vmatprep.subr.bf16.mxu0 %v10239_v41  ;;  %2114 = vmatprep.subr.bf16.mxu1 %v10241_v42  ;;  %v754_v39 = vld [vmem:[#allocation13 + $0x2b0] sm:$0xff]  ;;  %v751_v41 = vld [vmem:[#allocation13 + $0x298] sm:$0xff] }
 0x20a   : > { %v755_v42 = vld [vmem:[#allocation13 + $0x2b8] sm:$0xff]  ;;  %v10303_v45 = vcombine.high %v750_v38, %v754_v39  ;;  %v10302_v51 = vcombine.low %v750_v38, %v754_v39 }
 0x20b   : > { %v10305_v46 = vcombine.high %v751_v41, %v755_v42  ;;  %v10304_v52 = vcombine.low %v751_v41, %v755_v42 }
 0x20c   : > { %2033 = vmatpush1.bf16.msra.mxu0 %v10238_v47  ;;  %2115 = vmatpush1.bf16.msra.mxu1 %v10240_v48  ;;  %v758_v47 = vld [vmem:[#allocation13 + $0x2d0] sm:$0xff] }
 0x20d   : > { %2034 = vmatprep.subr.bf16.mxu0 %v10247_v49  ;;  %2116 = vmatprep.subr.bf16.mxu1 %v10249_v50  ;;  %v762_v48 = vld [vmem:[#allocation13 + $0x2f0] sm:$0xff]  ;;  %v759_v49 = vld [vmem:[#allocation13 + $0x2d8] sm:$0xff] }
 0x20e   : > { %v763_v50 = vld [vmem:[#allocation13 + $0x2f8] sm:$0xff]  ;;  %v10311_v53 = vcombine.high %v758_v47, %v762_v48  ;;  %v10310_v58 = vcombine.low %v758_v47, %v762_v48 }
 0x20f   : > { %v10313_v54 = vcombine.high %v759_v49, %v763_v50  ;;  %v10312_v59 = vcombine.low %v759_v49, %v763_v50 }
 0x210   : > { %2035 = vmatpush1.bf16.msra.mxu0 %v10246_v55  ;;  %2117 = vmatpush1.bf16.msra.mxu1 %v10248_v56  ;;  %v766_v55 = vld [vmem:[#allocation13 + $0x310] sm:$0xff] }
 0x211   : > { %2036 = vmatprep.subr.bf16.mxu0 %v10255_v57  ;;  %2118 = vmatprep.subr.bf16.mxu1 %v10257_v60  ;;  %v770_v56 = vld [vmem:[#allocation13 + $0x330] sm:$0xff]  ;;  %v767_v57 = vld [vmem:[#allocation13 + $0x318] sm:$0xff] }
 0x212   : > { %v771_v60 = vld [vmem:[#allocation13 + $0x338] sm:$0xff]  ;;  %v10319_v61 = vcombine.high %v766_v55, %v770_v56  ;;  %v10318_v3 = vcombine.low %v766_v55, %v770_v56 }
 0x213   : > { %v10321_v62 = vcombine.high %v767_v57, %v771_v60  ;;  %v10320_v4 = vcombine.low %v767_v57, %v771_v60 }
 0x214   : > { %2037 = vmatpush1.bf16.msra.mxu0 %v10254_v63  ;;  %2119 = vmatpush1.bf16.msra.mxu1 %v10256_v0  ;;  %v774_v63 = vld [vmem:[#allocation13 + $0x350] sm:$0xff] }
 0x215   : > { %2038 = vmatprep.subr.bf16.mxu0 %v10263_v1  ;;  %2120 = vmatprep.subr.bf16.mxu1 %v10265_v2  ;;  %v778_v0 = vld [vmem:[#allocation13 + $0x370] sm:$0xff]  ;;  %v775_v1 = vld [vmem:[#allocation13 + $0x358] sm:$0xff] }
 0x216   : > { %v779_v2 = vld [vmem:[#allocation13 + $0x378] sm:$0xff]  ;;  %v10327_v5 = vcombine.high %v774_v63, %v778_v0  ;;  %v10326_v11 = vcombine.low %v774_v63, %v778_v0 }
 0x217   : > { %v10329_v6 = vcombine.high %v775_v1, %v779_v2  ;;  %v10328_v12 = vcombine.low %v775_v1, %v779_v2 }
 0x218   : > { %2039 = vmatpush1.bf16.msra.mxu0 %v10262_v7  ;;  %2121 = vmatpush1.bf16.msra.mxu1 %v10264_v8  ;;  %v782_v7 = vld [vmem:[#allocation13 + $0x390] sm:$0xff] }
 0x219   : > { %2040 = vmatprep.subr.bf16.mxu0 %v10271_v9  ;;  %2122 = vmatprep.subr.bf16.mxu1 %v10273_v10  ;;  %v786_v8 = vld [vmem:[#allocation13 + $0x3b0] sm:$0xff]  ;;  %v783_v9 = vld [vmem:[#allocation13 + $0x398] sm:$0xff] }
 0x21a   : > { %v787_v10 = vld [vmem:[#allocation13 + $0x3b8] sm:$0xff]  ;;  %v10335_v13 = vcombine.high %v782_v7, %v786_v8  ;;  %v10334_v19 = vcombine.low %v782_v7, %v786_v8 }
 0x21b   : > { %v10337_v14 = vcombine.high %v783_v9, %v787_v10  ;;  %v10336_v20 = vcombine.low %v783_v9, %v787_v10 }
 0x21c   : > { %2041 = vmatpush1.bf16.msra.mxu0 %v10270_v15  ;;  %2123 = vmatpush1.bf16.msra.mxu1 %v10272_v16  ;;  %v790_v15 = vld [vmem:[#allocation13 + $0x3d0] sm:$0xff] }
 0x21d   : > { %2042 = vmatprep.subr.bf16.mxu0 %v10279_v17  ;;  %2124 = vmatprep.subr.bf16.mxu1 %v10281_v18  ;;  %v794_v16 = vld [vmem:[#allocation13 + $0x3f0] sm:$0xff]  ;;  %v791_v17 = vld [vmem:[#allocation13 + $0x3d8] sm:$0xff] }
 0x21e   : > { %v795_v18 = vld [vmem:[#allocation13 + $0x3f8] sm:$0xff]  ;;  %v10343_v21 = vcombine.high %v790_v15, %v794_v16  ;;  %v10342_v30 = vcombine.low %v790_v15, %v794_v16 }
 0x21f   : > { %v10345_v22 = vcombine.high %v791_v17, %v795_v18  ;;  %v10344_v31 = vcombine.low %v791_v17, %v795_v18 }
 0x220   : > { %2043 = vmatpush1.bf16.msra.mxu0 %v10278_v23  ;;  %2125 = vmatpush1.bf16.msra.mxu1 %v10280_v26  ;;  %v798_v23 = vld [vmem:[#allocation13 + $0x410] sm:$0xff] }
 0x221   : > { %2044 = vmatprep.subr.bf16.mxu0 %v10287_v27  ;;  %2126 = vmatprep.subr.bf16.mxu1 %v10289_v28  ;;  %v802_v26 = vld [vmem:[#allocation13 + $0x430] sm:$0xff]  ;;  %v799_v27 = vld [vmem:[#allocation13 + $0x418] sm:$0xff] }
 0x222   : > { %v803_v28 = vld [vmem:[#allocation13 + $0x438] sm:$0xff]  ;;  %v10351_v32 = vcombine.high %v798_v23, %v802_v26  ;;  %v10350_v38 = vcombine.low %v798_v23, %v802_v26 }
 0x223   : > { %v10353_v33 = vcombine.high %v799_v27, %v803_v28  ;;  %v10352_v39 = vcombine.low %v799_v27, %v803_v28 }
 0x224   : > { %2045 = vmatpush1.bf16.msra.mxu0 %v10286_v34  ;;  %2127 = vmatpush1.bf16.msra.mxu1 %v10288_v35  ;;  %v806_v34 = vld [vmem:[#allocation13 + $0x450] sm:$0xff] }
 0x225   : > { %2046 = vmatprep.subr.bf16.mxu0 %v10295_v36  ;;  %2128 = vmatprep.subr.bf16.mxu1 %v10297_v37  ;;  %v810_v35 = vld [vmem:[#allocation13 + $0x470] sm:$0xff]  ;;  %v807_v36 = vld [vmem:[#allocation13 + $0x458] sm:$0xff] }
 0x226   : > { %v811_v37 = vld [vmem:[#allocation13 + $0x478] sm:$0xff]  ;;  %v10359_v41 = vcombine.high %v806_v34, %v810_v35  ;;  %v10358_v47 = vcombine.low %v806_v34, %v810_v35 }
 0x227   : > { %v10361_v42 = vcombine.high %v807_v36, %v811_v37  ;;  %v10360_v48 = vcombine.low %v807_v36, %v811_v37 }
 0x228   : > { %2047 = vmatpush1.bf16.msra.mxu0 %v10294_v43  ;;  %2129 = vmatpush1.bf16.msra.mxu1 %v10296_v44  ;;  %v814_v43 = vld [vmem:[#allocation13 + $0x490] sm:$0xff] }
 0x229   : > { %2048 = vmatprep.subr.bf16.mxu0 %v10303_v45  ;;  %2130 = vmatprep.subr.bf16.mxu1 %v10305_v46  ;;  %v818_v44 = vld [vmem:[#allocation13 + $0x4b0] sm:$0xff]  ;;  %v815_v45 = vld [vmem:[#allocation13 + $0x498] sm:$0xff] }
 0x22a   : > { %v819_v46 = vld [vmem:[#allocation13 + $0x4b8] sm:$0xff]  ;;  %v10367_v49 = vcombine.high %v814_v43, %v818_v44  ;;  %v10366_v55 = vcombine.low %v814_v43, %v818_v44  ;;  %v654_v43 = vld [vmem:[#allocation10 + $0x10] sm:$0xff] }
 0x22b   : > { %v10369_v50 = vcombine.high %v815_v45, %v819_v46  ;;  %v10368_v56 = vcombine.low %v815_v45, %v819_v46 }
 0x22c   : > { %2049 = vmatpush1.bf16.msra.mxu0 %v10302_v51  ;;  %2131 = vmatpush1.bf16.msra.mxu1 %v10304_v52  ;;  %v822_v51 = vld [vmem:[#allocation13 + $0x4d0] sm:$0xff] }
 0x22d   : > { %2050 = vmatprep.subr.bf16.mxu0 %v10311_v53  ;;  %2132 = vmatprep.subr.bf16.mxu1 %v10313_v54  ;;  %v826_v52 = vld [vmem:[#allocation13 + $0x4f0] sm:$0xff]  ;;  %v823_v53 = vld [vmem:[#allocation13 + $0x4d8] sm:$0xff] }
 0x22e   : > { %v827_v54 = vld [vmem:[#allocation13 + $0x4f8] sm:$0xff]  ;;  %v10375_v57 = vcombine.high %v822_v51, %v826_v52  ;;  %v10374_v63 = vcombine.low %v822_v51, %v826_v52  ;;  %v2262_v51 = vld [vmem:[#allocation13 + $0x6a8] sm:$0xff]  ;;  %v12851_v52 = vpack.c.bf16 %v654_v43, %v654_v43 }
 0x22f   : > { %v10377_v60 = vcombine.high %v823_v53, %v827_v54  ;;  %v10376_v0 = vcombine.low %v823_v53, %v827_v54 }
 0x230   : > { %2051 = vmatpush1.bf16.msra.mxu0 %v10310_v58  ;;  %2133 = vmatpush1.bf16.msra.mxu1 %v10312_v59  ;;  %v830_v58 = vld [vmem:[#allocation13 + $0x510] sm:$0xff] }
 0x231   : > { %2052 = vmatprep.subr.bf16.mxu0 %v10319_v61  ;;  %2134 = vmatprep.subr.bf16.mxu1 %v10321_v62  ;;  %v834_v59 = vld [vmem:[#allocation13 + $0x530] sm:$0xff]  ;;  %v831_v61 = vld [vmem:[#allocation13 + $0x518] sm:$0xff] }
 0x232   : > { %v835_v62 = vld [vmem:[#allocation13 + $0x538] sm:$0xff]  ;;  %v10383_v1 = vcombine.high %v830_v58, %v834_v59  ;;  %v10382_v7 = vcombine.low %v830_v58, %v834_v59  ;;  %v2266_v58 = vld [vmem:[#allocation13 + $0x6c8] sm:$0xff] }
 0x233   : > { %v10385_v2 = vcombine.high %v831_v61, %v835_v62  ;;  %v10384_v8 = vcombine.low %v831_v61, %v835_v62  ;;  %v2270_v59 = vld [vmem:[#allocation13 + $0x6e8] sm:$0xff] }
 0x234   : > { %2053 = vmatpush1.bf16.msra.mxu0 %v10318_v3  ;;  %2135 = vmatpush1.bf16.msra.mxu1 %v10320_v4  ;;  %v838_v3 = vld [vmem:[#allocation13 + $0x550] sm:$0xff] }
 0x235   : > { %2054 = vmatprep.subr.bf16.mxu0 %v10327_v5  ;;  %2136 = vmatprep.subr.bf16.mxu1 %v10329_v6  ;;  %v842_v4 = vld [vmem:[#allocation13 + $0x570] sm:$0xff]  ;;  %v839_v5 = vld [vmem:[#allocation13 + $0x558] sm:$0xff] }
 0x236   : > { %v843_v6 = vld [vmem:[#allocation13 + $0x578] sm:$0xff]  ;;  %v10391_v9 = vcombine.high %v838_v3, %v842_v4  ;;  %v10390_v15 = vcombine.low %v838_v3, %v842_v4  ;;  %v2278_v3 = vld [vmem:[#allocation13 + $0x728] sm:$0xff] }
 0x237   : > { %v10393_v10 = vcombine.high %v839_v5, %v843_v6  ;;  %v10392_v16 = vcombine.low %v839_v5, %v843_v6  ;;  %v10454_v5 = vcombine.low %v2266_v58, %v2270_v59 }
 0x238   : > { %2055 = vmatpush1.bf16.msra.mxu0 %v10326_v11  ;;  %2137 = vmatpush1.bf16.msra.mxu1 %v10328_v12  ;;  %v846_v11 = vld [vmem:[#allocation13 + $0x590] sm:$0xff] }
 0x239   : > { %2056 = vmatprep.subr.bf16.mxu0 %v10335_v13  ;;  %2138 = vmatprep.subr.bf16.mxu1 %v10337_v14  ;;  %v850_v12 = vld [vmem:[#allocation13 + $0x5b0] sm:$0xff]  ;;  %v847_v13 = vld [vmem:[#allocation13 + $0x598] sm:$0xff] }
 0x23a   : > { %v851_v14 = vld [vmem:[#allocation13 + $0x5b8] sm:$0xff]  ;;  %v10399_v17 = vcombine.high %v846_v11, %v850_v12  ;;  %v10398_v23 = vcombine.low %v846_v11, %v850_v12  ;;  %v2286_v11 = vld [vmem:[#allocation13 + $0x768] sm:$0xff] }
 0x23b   : > { %v10401_v18 = vcombine.high %v847_v13, %v851_v14  ;;  %v10400_v26 = vcombine.low %v847_v13, %v851_v14 }
 0x23c   : > { %2057 = vmatpush1.bf16.msra.mxu0 %v10334_v19  ;;  %2139 = vmatpush1.bf16.msra.mxu1 %v10336_v20  ;;  %v854_v19 = vld [vmem:[#allocation13 + $0x5d0] sm:$0xff] }
 0x23d   : > { %2058 = vmatprep.subr.bf16.mxu0 %v10343_v21  ;;  %2140 = vmatprep.subr.bf16.mxu1 %v10345_v22  ;;  %v858_v20 = vld [vmem:[#allocation13 + $0x5f0] sm:$0xff]  ;;  %v855_v21 = vld [vmem:[#allocation13 + $0x5d8] sm:$0xff] }
 0x23e   : > { %v859_v22 = vld [vmem:[#allocation13 + $0x5f8] sm:$0xff]  ;;  %v10407_v27 = vcombine.high %v854_v19, %v858_v20  ;;  %v10406_v34 = vcombine.low %v854_v19, %v858_v20  ;;  %v2294_v19 = vld [vmem:[#allocation13 + $0x7a8] sm:$0xff] }
 0x23f   : > { %v10409_v28 = vcombine.high %v855_v21, %v859_v22  ;;  %v10408_v35 = vcombine.low %v855_v21, %v859_v22 }
 0x240   : > { %2059 = vmatpush1.bf16.msra.mxu0 %v10342_v30  ;;  %2141 = vmatpush1.bf16.msra.mxu1 %v10344_v31  ;;  %v2241_v30 = vld [vmem:[#allocation13 + $0x600] sm:$0xff] }
 0x241   : > { %2069 = vmatprep.subr.bf16.mxu0 %v10351_v32  ;;  %2151 = vmatprep.subr.bf16.mxu1 %v10353_v33  ;;  %v2245_v31 = vld [vmem:[#allocation13 + $0x620] sm:$0xff]  ;;  %v2242_v32 = vld [vmem:[#allocation13 + $0x608] sm:$0xff] }
 0x242   : > { %v2246_v33 = vld [vmem:[#allocation13 + $0x628] sm:$0xff]  ;;  %v10429_v36 = vcombine.high %v2241_v30, %v2245_v31  ;;  %v10428_v44 = vcombine.low %v2241_v30, %v2245_v31 }
 0x243   : > { %10418 = vmatmul.mubr.msk.bf16.vlgmr.msra.gmra.mrb[4].mxu0 %vm12823_vm3, %v12827_v25  ;;  %10421 = vmatmul.mubr.msk.bf16.vlgmr.msra.gmra.mrb[4].mxu1 %vm12823_vm3, %v12827_v25  ;;  %v10431_v37 = vcombine.high %v2242_v32, %v2246_v33  ;;  %v10430_v45 = vcombine.low %v2242_v32, %v2246_v33  ;;  %v2302_v30 = vld [vmem:[#allocation13 + $0x7e8] sm:$0xff] }
 0x244   : > { %2070 = vmatpush1.bf16.msra.mxu0 %v10350_v38  ;;  %2152 = vmatpush1.bf16.msra.mxu1 %v10352_v39  ;;  %v2249_v38 = vld [vmem:[#allocation13 + $0x640] sm:$0xff] }
 0x245   : > { %2071 = vmatprep.subr.bf16.mxu0 %v10359_v41  ;;  %2153 = vmatprep.subr.bf16.mxu1 %v10361_v42  ;;  %v2253_v39 = vld [vmem:[#allocation13 + $0x660] sm:$0xff]  ;;  %v2250_v41 = vld [vmem:[#allocation13 + $0x648] sm:$0xff] }
 0x246   : > { %2101 = vmatprep.mubr.bf16.mxu0 %v12359_v40  ;;  %2183 = vmatprep.mubr.bf16.mxu1 %v12359_v40  ;;  %v2254_v42 = vld [vmem:[#allocation13 + $0x668] sm:$0xff]  ;;  %v10437_v46 = vcombine.high %v2249_v38, %v2253_v39  ;;  %v10436_v53 = vcombine.low %v2249_v38, %v2253_v39 }
 0x247   : > { %v10438_v54 = vcombine.low %v2250_v41, %v2254_v42  ;;  %v2310_v38 = vld [vmem:[#allocation13 + $0x828] sm:$0xff] }
 0x248   : > { %2072 = vmatpush1.bf16.msra.mxu0 %v10358_v47  ;;  %2154 = vmatpush1.bf16.msra.mxu1 %v10360_v48  ;;  %v10439_v47 = vcombine.high %v2250_v41, %v2254_v42  ;;  %v2257_v48 = vld [vmem:[#allocation13 + $0x680] sm:$0xff] }
 0x249   : > { %2073 = vmatprep.subr.bf16.mxu0 %v10367_v49  ;;  %2155 = vmatprep.subr.bf16.mxu1 %v10369_v50  ;;  %v2261_v49 = vld [vmem:[#allocation13 + $0x6a0] sm:$0xff]  ;;  %v2258_v50 = vld [vmem:[#allocation13 + $0x688] sm:$0xff] }
 0x24a   : > { %v10444_v61 = vcombine.low %v2257_v48, %v2261_v49 }
 0x24c   : > { %2074 = vmatpush1.bf16.msra.mxu0 %v10366_v55  ;;  %2156 = vmatpush1.bf16.msra.mxu1 %v10368_v56  ;;  %v10445_v55 = vcombine.high %v2257_v48, %v2261_v49  ;;  %v10447_v56 = vcombine.high %v2258_v50, %v2262_v51 }
 0x24d   : > { %2075 = vmatprep.subr.bf16.mxu0 %v10375_v57  ;;  %2157 = vmatprep.subr.bf16.mxu1 %v10377_v60  ;;  %v2265_v57 = vld [vmem:[#allocation13 + $0x6c0] sm:$0xff] }
 0x24e   : > { %v2269_v60 = vld [vmem:[#allocation13 + $0x6e0] sm:$0xff] }
 0x24f   : > { %v10453_v62 = vcombine.high %v2265_v57, %v2269_v60  ;;  %v10452_v4 = vcombine.low %v2265_v57, %v2269_v60 }
 0x250   : > { %2076 = vmatpush1.bf16.msra.mxu0 %v10374_v63  ;;  %2158 = vmatpush1.bf16.msra.mxu1 %v10376_v0  ;;  %v10455_v63 = vcombine.high %v2266_v58, %v2270_v59  ;;  %v2273_v0 = vld [vmem:[#allocation13 + $0x700] sm:$0xff] }
 0x251   : > { %2077 = vmatprep.subr.bf16.mxu0 %v10383_v1  ;;  %2159 = vmatprep.subr.bf16.mxu1 %v10385_v2  ;;  %v2277_v1 = vld [vmem:[#allocation13 + $0x720] sm:$0xff]  ;;  %v2274_v2 = vld [vmem:[#allocation13 + $0x708] sm:$0xff] }
 0x252   : > { %v10461_v6 = vcombine.high %v2273_v0, %v2277_v1  ;;  %v10460_v12 = vcombine.low %v2273_v0, %v2277_v1  ;;  %v10462_v13 = vcombine.low %v2274_v2, %v2278_v3 }
 0x254   : > { %2078 = vmatpush1.bf16.msra.mxu0 %v10382_v7  ;;  %2160 = vmatpush1.bf16.msra.mxu1 %v10384_v8  ;;  %v10463_v7 = vcombine.high %v2274_v2, %v2278_v3  ;;  %v2281_v8 = vld [vmem:[#allocation13 + $0x740] sm:$0xff] }
 0x255   : > { %2079 = vmatprep.subr.bf16.mxu0 %v10391_v9  ;;  %2161 = vmatprep.subr.bf16.mxu1 %v10393_v10  ;;  %v2285_v9 = vld [vmem:[#allocation13 + $0x760] sm:$0xff]  ;;  %v2282_v10 = vld [vmem:[#allocation13 + $0x748] sm:$0xff] }
 0x256   : > { %v10469_v14 = vcombine.high %v2281_v8, %v2285_v9  ;;  %v10468_v20 = vcombine.low %v2281_v8, %v2285_v9  ;;  %v10470_v21 = vcombine.low %v2282_v10, %v2286_v11 }
 0x258   : > { %2080 = vmatpush1.bf16.msra.mxu0 %v10390_v15  ;;  %2162 = vmatpush1.bf16.msra.mxu1 %v10392_v16  ;;  %v10471_v15 = vcombine.high %v2282_v10, %v2286_v11  ;;  %v2289_v16 = vld [vmem:[#allocation13 + $0x780] sm:$0xff] }
 0x259   : > { %2081 = vmatprep.subr.bf16.mxu0 %v10399_v17  ;;  %2163 = vmatprep.subr.bf16.mxu1 %v10401_v18  ;;  %v2293_v17 = vld [vmem:[#allocation13 + $0x7a0] sm:$0xff]  ;;  %v2290_v18 = vld [vmem:[#allocation13 + $0x788] sm:$0xff] }
 0x25a   : > { %v10477_v22 = vcombine.high %v2289_v16, %v2293_v17  ;;  %v10476_v31 = vcombine.low %v2289_v16, %v2293_v17  ;;  %v10478_v32 = vcombine.low %v2290_v18, %v2294_v19 }
 0x25c   : > { %2082 = vmatpush1.bf16.msra.mxu0 %v10398_v23  ;;  %2164 = vmatpush1.bf16.msra.mxu1 %v10400_v26  ;;  %v10479_v23 = vcombine.high %v2290_v18, %v2294_v19  ;;  %v2297_v26 = vld [vmem:[#allocation13 + $0x7c0] sm:$0xff] }
 0x25d   : > { %2083 = vmatprep.subr.bf16.mxu0 %v10407_v27  ;;  %2165 = vmatprep.subr.bf16.mxu1 %v10409_v28  ;;  %v2301_v27 = vld [vmem:[#allocation13 + $0x7e0] sm:$0xff]  ;;  %v2298_v28 = vld [vmem:[#allocation13 + $0x7c8] sm:$0xff] }
 0x25e   : > { %v10485_v33 = vcombine.high %v2297_v26, %v2301_v27  ;;  %v10484_v39 = vcombine.low %v2297_v26, %v2301_v27  ;;  %v10486_v41 = vcombine.low %v2298_v28, %v2302_v30 }
 0x260   : > { %2084 = vmatpush1.bf16.msra.mxu0 %v10406_v34  ;;  %2166 = vmatpush1.bf16.msra.mxu1 %v10408_v35  ;;  %v10487_v34 = vcombine.high %v2298_v28, %v2302_v30  ;;  %v2305_v35 = vld [vmem:[#allocation13 + $0x800] sm:$0xff] }
 0x261   : > { %3438 = vmatprep.subr.bf16.mxu0 %v10429_v36  ;;  %3520 = vmatprep.subr.bf16.mxu1 %v10431_v37  ;;  %v2309_v36 = vld [vmem:[#allocation13 + $0x820] sm:$0xff]  ;;  %v2306_v37 = vld [vmem:[#allocation13 + $0x808] sm:$0xff] }
 0x262   : > { %v10493_v42 = vcombine.high %v2305_v35, %v2309_v36  ;;  %v10495_v43 = vcombine.high %v2306_v37, %v2310_v38  ;;  %v10492_v48 = vcombine.low %v2305_v35, %v2309_v36  ;;  %v10494_v49 = vcombine.low %v2306_v37, %v2310_v38 }
 0x263   : > { %2102 = vmatmul.mubr.bf16.vlgmr.msra.gmra.mrb[4].mxu0 %v12837_v29  ;;  %2184 = vmatmul.mubr.bf16.vlgmr.msra.gmra.mrb[4].mxu1 %v12837_v29  ;;  %v10446_v29 = vcombine.low %v2258_v50, %v2262_v51 }
 0x264   : > { %3439 = vmatpush1.bf16.msra.mxu0 %v10428_v44  ;;  %3521 = vmatpush1.bf16.msra.mxu1 %v10430_v45  ;;  %v2313_v44 = vld [vmem:[#allocation13 + $0x840] sm:$0xff] }
 0x265   : > { %3440 = vmatprep.subr.bf16.mxu0 %v10437_v46  ;;  %3522 = vmatprep.subr.bf16.mxu1 %v10439_v47  ;;  %v2317_v45 = vld [vmem:[#allocation13 + $0x860] sm:$0xff]  ;;  %v2314_v46 = vld [vmem:[#allocation13 + $0x848] sm:$0xff] }
 0x266   : > { %3470 = vmatprep.mubr.bf16.mxu0 %v12851_v52  ;;  %3552 = vmatprep.mubr.bf16.mxu1 %v12851_v52  ;;  %v2318_v47 = vld [vmem:[#allocation13 + $0x868] sm:$0xff]  ;;  %v10501_v50 = vcombine.high %v2313_v44, %v2317_v45  ;;  %v10500_v57 = vcombine.low %v2313_v44, %v2317_v45 }
 0x267   : > { %v10503_v51 = vcombine.high %v2314_v46, %v2318_v47  ;;  %v10502_v60 = vcombine.low %v2314_v46, %v2318_v47 }
 0x268   : > { %3441 = vmatpush1.bf16.msra.mxu0 %v10436_v53  ;;  %3523 = vmatpush1.bf16.msra.mxu1 %v10438_v54  ;;  %v2321_v53 = vld [vmem:[#allocation13 + $0x880] sm:$0xff] }
 0x269   : > { %3442 = vmatprep.subr.bf16.mxu0 %v10445_v55  ;;  %3524 = vmatprep.subr.bf16.mxu1 %v10447_v56  ;;  %v2325_v54 = vld [vmem:[#allocation13 + $0x8a0] sm:$0xff]  ;;  %v2322_v55 = vld [vmem:[#allocation13 + $0x888] sm:$0xff] }
 0x26a   : > { %v2326_v56 = vld [vmem:[#allocation13 + $0x8a8] sm:$0xff]  ;;  %v10509_v58 = vcombine.high %v2321_v53, %v2325_v54  ;;  %v10508_v0 = vcombine.low %v2321_v53, %v2325_v54 }
 0x26b   : > { %v10511_v59 = vcombine.high %v2322_v55, %v2326_v56  ;;  %v10510_v1 = vcombine.low %v2322_v55, %v2326_v56 }
 0x26c   : > { %3443 = vmatpush1.bf16.msra.mxu0 %v10444_v61  ;;  %3525 = vmatpush1.bf16.msra.mxu1 %v10446_v29  ;;  %v2329_v61 = vld [vmem:[#allocation13 + $0x8c0] sm:$0xff] }
 0x26d   : > { %3444 = vmatprep.subr.bf16.mxu0 %v10453_v62  ;;  %3526 = vmatprep.subr.bf16.mxu1 %v10455_v63  ;;  %v2333_v29 = vld [vmem:[#allocation13 + $0x8e0] sm:$0xff]  ;;  %v2330_v62 = vld [vmem:[#allocation13 + $0x8c8] sm:$0xff] }
 0x26e   : > { %v2334_v63 = vld [vmem:[#allocation13 + $0x8e8] sm:$0xff]  ;;  %v10517_v2 = vcombine.high %v2329_v61, %v2333_v29  ;;  %v10516_v8 = vcombine.low %v2329_v61, %v2333_v29 }
 0x26f   : > { %v10519_v3 = vcombine.high %v2330_v62, %v2334_v63  ;;  %v10518_v9 = vcombine.low %v2330_v62, %v2334_v63 }
 0x270   : > { %3445 = vmatpush1.bf16.msra.mxu0 %v10452_v4  ;;  %3527 = vmatpush1.bf16.msra.mxu1 %v10454_v5  ;;  %v2337_v4 = vld [vmem:[#allocation13 + $0x900] sm:$0xff] }
 0x271   : > { %3446 = vmatprep.subr.bf16.mxu0 %v10461_v6  ;;  %3528 = vmatprep.subr.bf16.mxu1 %v10463_v7  ;;  %v2341_v5 = vld [vmem:[#allocation13 + $0x920] sm:$0xff]  ;;  %v2338_v6 = vld [vmem:[#allocation13 + $0x908] sm:$0xff] }
 0x272   : > { %v2342_v7 = vld [vmem:[#allocation13 + $0x928] sm:$0xff]  ;;  %v10525_v10 = vcombine.high %v2337_v4, %v2341_v5  ;;  %v10524_v16 = vcombine.low %v2337_v4, %v2341_v5 }
 0x273   : > { %v10527_v11 = vcombine.high %v2338_v6, %v2342_v7  ;;  %v10526_v17 = vcombine.low %v2338_v6, %v2342_v7 }
 0x274   : > { %3447 = vmatpush1.bf16.msra.mxu0 %v10460_v12  ;;  %3529 = vmatpush1.bf16.msra.mxu1 %v10462_v13  ;;  %v2345_v12 = vld [vmem:[#allocation13 + $0x940] sm:$0xff] }
 0x275   : > { %3448 = vmatprep.subr.bf16.mxu0 %v10469_v14  ;;  %3530 = vmatprep.subr.bf16.mxu1 %v10471_v15  ;;  %v2349_v13 = vld [vmem:[#allocation13 + $0x960] sm:$0xff]  ;;  %v2346_v14 = vld [vmem:[#allocation13 + $0x948] sm:$0xff] }
 0x276   : > { %v2350_v15 = vld [vmem:[#allocation13 + $0x968] sm:$0xff]  ;;  %v10533_v18 = vcombine.high %v2345_v12, %v2349_v13  ;;  %v10532_v26 = vcombine.low %v2345_v12, %v2349_v13 }
 0x277   : > { %v10535_v19 = vcombine.high %v2346_v14, %v2350_v15  ;;  %v10534_v27 = vcombine.low %v2346_v14, %v2350_v15 }
 0x278   : > { %3449 = vmatpush1.bf16.msra.mxu0 %v10468_v20  ;;  %3531 = vmatpush1.bf16.msra.mxu1 %v10470_v21  ;;  %v2353_v20 = vld [vmem:[#allocation13 + $0x980] sm:$0xff] }
 0x279   : > { %3450 = vmatprep.subr.bf16.mxu0 %v10477_v22  ;;  %3532 = vmatprep.subr.bf16.mxu1 %v10479_v23  ;;  %v2357_v21 = vld [vmem:[#allocation13 + $0x9a0] sm:$0xff]  ;;  %v2354_v22 = vld [vmem:[#allocation13 + $0x988] sm:$0xff] }
 0x27a   : > { %v2358_v23 = vld [vmem:[#allocation13 + $0x9a8] sm:$0xff]  ;;  %v10541_v28 = vcombine.high %v2353_v20, %v2357_v21  ;;  %v10540_v35 = vcombine.low %v2353_v20, %v2357_v21 }
 0x27b   : > { %v10543_v30 = vcombine.high %v2354_v22, %v2358_v23  ;;  %v10542_v36 = vcombine.low %v2354_v22, %v2358_v23 }
 0x27c   : > { %3451 = vmatpush1.bf16.msra.mxu0 %v10476_v31  ;;  %3533 = vmatpush1.bf16.msra.mxu1 %v10478_v32  ;;  %v2361_v31 = vld [vmem:[#allocation13 + $0x9c0] sm:$0xff] }
 0x27d   : > { %3452 = vmatprep.subr.bf16.mxu0 %v10485_v33  ;;  %3534 = vmatprep.subr.bf16.mxu1 %v10487_v34  ;;  %v2365_v32 = vld [vmem:[#allocation13 + $0x9e0] sm:$0xff]  ;;  %v2362_v33 = vld [vmem:[#allocation13 + $0x9c8] sm:$0xff] }
 0x27e   : > { %v2366_v34 = vld [vmem:[#allocation13 + $0x9e8] sm:$0xff]  ;;  %v10549_v37 = vcombine.high %v2361_v31, %v2365_v32  ;;  %v10548_v44 = vcombine.low %v2361_v31, %v2365_v32 }
 0x27f   : > { %v10551_v38 = vcombine.high %v2362_v33, %v2366_v34  ;;  %v10550_v45 = vcombine.low %v2362_v33, %v2366_v34 }
 0x280   : > { %3453 = vmatpush1.bf16.msra.mxu0 %v10484_v39  ;;  %3535 = vmatpush1.bf16.msra.mxu1 %v10486_v41  ;;  %v2369_v39 = vld [vmem:[#allocation13 + $0xa00] sm:$0xff] }
 0x281   : > { %3454 = vmatprep.subr.bf16.mxu0 %v10493_v42  ;;  %3536 = vmatprep.subr.bf16.mxu1 %v10495_v43  ;;  %v2373_v41 = vld [vmem:[#allocation13 + $0xa20] sm:$0xff]  ;;  %v2370_v42 = vld [vmem:[#allocation13 + $0xa08] sm:$0xff] }
 0x282   : > { %v2374_v43 = vld [vmem:[#allocation13 + $0xa28] sm:$0xff]  ;;  %v10557_v46 = vcombine.high %v2369_v39, %v2373_v41  ;;  %v10556_v53 = vcombine.low %v2369_v39, %v2373_v41 }
 0x283   : > { %v10559_v47 = vcombine.high %v2370_v42, %v2374_v43  ;;  %v10558_v54 = vcombine.low %v2370_v42, %v2374_v43 }
 0x284   : > { %3455 = vmatpush1.bf16.msra.mxu0 %v10492_v48  ;;  %3537 = vmatpush1.bf16.msra.mxu1 %v10494_v49  ;;  %v2377_v48 = vld [vmem:[#allocation13 + $0xa40] sm:$0xff] }
 0x285   : > { %3456 = vmatprep.subr.bf16.mxu0 %v10501_v50  ;;  %3538 = vmatprep.subr.bf16.mxu1 %v10503_v51  ;;  %v2381_v49 = vld [vmem:[#allocation13 + $0xa60] sm:$0xff]  ;;  %v2378_v50 = vld [vmem:[#allocation13 + $0xa48] sm:$0xff] }
 0x286   : > { %v2382_v51 = vld [vmem:[#allocation13 + $0xa68] sm:$0xff]  ;;  %v10565_v55 = vcombine.high %v2377_v48, %v2381_v49  ;;  %v10564_v61 = vcombine.low %v2377_v48, %v2381_v49 }
 0x287   : > { %v10567_v56 = vcombine.high %v2378_v50, %v2382_v51  ;;  %v10566_v29 = vcombine.low %v2378_v50, %v2382_v51  ;;  %v655_v50 = vld [vmem:[#allocation10 + $0x18] sm:$0xff] }
 0x288   : > { %3457 = vmatpush1.bf16.msra.mxu0 %v10500_v57  ;;  %3539 = vmatpush1.bf16.msra.mxu1 %v10502_v60  ;;  %v2385_v57 = vld [vmem:[#allocation13 + $0xa80] sm:$0xff] }
 0x289   : > { %3458 = vmatprep.subr.bf16.mxu0 %v10509_v58  ;;  %3540 = vmatprep.subr.bf16.mxu1 %v10511_v59  ;;  %v2389_v60 = vld [vmem:[#allocation13 + $0xaa0] sm:$0xff]  ;;  %v2386_v58 = vld [vmem:[#allocation13 + $0xa88] sm:$0xff] }
 0x28a   : > { %v2390_v59 = vld [vmem:[#allocation13 + $0xaa8] sm:$0xff]  ;;  %v10573_v62 = vcombine.high %v2385_v57, %v2389_v60  ;;  %v10572_v4 = vcombine.low %v2385_v57, %v2389_v60  ;;  %v2256_v57 = vld [vmem:[#allocation13 + $0x678] sm:$0xff]  ;;  %v12865_v60 = vpack.c.bf16 %v655_v50, %v655_v50 }
 0x28b   : > { %v10575_v63 = vcombine.high %v2386_v58, %v2390_v59  ;;  %v10574_v5 = vcombine.low %v2386_v58, %v2390_v59 }
 0x28c   : > { %3459 = vmatpush1.bf16.msra.mxu0 %v10508_v0  ;;  %3541 = vmatpush1.bf16.msra.mxu1 %v10510_v1  ;;  %v2393_v0 = vld [vmem:[#allocation13 + $0xac0] sm:$0xff] }
 0x28d   : > { %3460 = vmatprep.subr.bf16.mxu0 %v10517_v2  ;;  %3542 = vmatprep.subr.bf16.mxu1 %v10519_v3  ;;  %v2397_v1 = vld [vmem:[#allocation13 + $0xae0] sm:$0xff]  ;;  %v2394_v2 = vld [vmem:[#allocation13 + $0xac8] sm:$0xff] }
 0x28e   : > { %v2398_v3 = vld [vmem:[#allocation13 + $0xae8] sm:$0xff]  ;;  %v10581_v6 = vcombine.high %v2393_v0, %v2397_v1  ;;  %v10580_v12 = vcombine.low %v2393_v0, %v2397_v1  ;;  %v2260_v0 = vld [vmem:[#allocation13 + $0x698] sm:$0xff] }
 0x28f   : > { %v10583_v7 = vcombine.high %v2394_v2, %v2398_v3  ;;  %v10582_v13 = vcombine.low %v2394_v2, %v2398_v3  ;;  %v2264_v1 = vld [vmem:[#allocation13 + $0x6b8] sm:$0xff] }
 0x290   : > { %3461 = vmatpush1.bf16.msra.mxu0 %v10516_v8  ;;  %3543 = vmatpush1.bf16.msra.mxu1 %v10518_v9  ;;  %v2401_v8 = vld [vmem:[#allocation13 + $0xb00] sm:$0xff] }
 0x291   : > { %3462 = vmatprep.subr.bf16.mxu0 %v10525_v10  ;;  %3544 = vmatprep.subr.bf16.mxu1 %v10527_v11  ;;  %v2405_v9 = vld [vmem:[#allocation13 + $0xb20] sm:$0xff]  ;;  %v2402_v10 = vld [vmem:[#allocation13 + $0xb08] sm:$0xff] }
 0x292   : > { %v2406_v11 = vld [vmem:[#allocation13 + $0xb28] sm:$0xff]  ;;  %v10589_v14 = vcombine.high %v2401_v8, %v2405_v9  ;;  %v10588_v20 = vcombine.low %v2401_v8, %v2405_v9  ;;  %v2268_v8 = vld [vmem:[#allocation13 + $0x6d8] sm:$0xff] }
 0x293   : > { %v10591_v15 = vcombine.high %v2402_v10, %v2406_v11  ;;  %v10590_v21 = vcombine.low %v2402_v10, %v2406_v11  ;;  %v2272_v9 = vld [vmem:[#allocation13 + $0x6f8] sm:$0xff]  ;;  %v10450_v11 = vcombine.low %v2260_v0, %v2264_v1 }
 0x294   : > { %3463 = vmatpush1.bf16.msra.mxu0 %v10524_v16  ;;  %3545 = vmatpush1.bf16.msra.mxu1 %v10526_v17  ;;  %v2409_v16 = vld [vmem:[#allocation13 + $0xb40] sm:$0xff] }
 0x295   : > { %3464 = vmatprep.subr.bf16.mxu0 %v10533_v18  ;;  %3546 = vmatprep.subr.bf16.mxu1 %v10535_v19  ;;  %v2413_v17 = vld [vmem:[#allocation13 + $0xb60] sm:$0xff]  ;;  %v2410_v18 = vld [vmem:[#allocation13 + $0xb48] sm:$0xff] }
 0x296   : > { %v2414_v19 = vld [vmem:[#allocation13 + $0xb68] sm:$0xff]  ;;  %v10597_v22 = vcombine.high %v2409_v16, %v2413_v17  ;;  %v10596_v31 = vcombine.low %v2409_v16, %v2413_v17  ;;  %v2276_v16 = vld [vmem:[#allocation13 + $0x718] sm:$0xff] }
 0x297   : > { %v10599_v23 = vcombine.high %v2410_v18, %v2414_v19  ;;  %v10598_v32 = vcombine.low %v2410_v18, %v2414_v19  ;;  %v2280_v17 = vld [vmem:[#allocation13 + $0x738] sm:$0xff]  ;;  %v10458_v19 = vcombine.low %v2268_v8, %v2272_v9 }
 0x298   : > { %3465 = vmatpush1.bf16.msra.mxu0 %v10532_v26  ;;  %3547 = vmatpush1.bf16.msra.mxu1 %v10534_v27  ;;  %v2417_v26 = vld [vmem:[#allocation13 + $0xb80] sm:$0xff] }
 0x299   : > { %3466 = vmatprep.subr.bf16.mxu0 %v10541_v28  ;;  %3548 = vmatprep.subr.bf16.mxu1 %v10543_v30  ;;  %v2421_v27 = vld [vmem:[#allocation13 + $0xba0] sm:$0xff]  ;;  %v2418_v28 = vld [vmem:[#allocation13 + $0xb88] sm:$0xff] }
 0x29a   : > { %v2422_v30 = vld [vmem:[#allocation13 + $0xba8] sm:$0xff]  ;;  %v10605_v33 = vcombine.high %v2417_v26, %v2421_v27  ;;  %v10604_v39 = vcombine.low %v2417_v26, %v2421_v27  ;;  %v2288_v26 = vld [vmem:[#allocation13 + $0x778] sm:$0xff] }
 0x29b   : > { %v10607_v34 = vcombine.high %v2418_v28, %v2422_v30  ;;  %v10606_v41 = vcombine.low %v2418_v28, %v2422_v30  ;;  %v10466_v28 = vcombine.low %v2276_v16, %v2280_v17 }
 0x29c   : > { %3467 = vmatpush1.bf16.msra.mxu0 %v10540_v35  ;;  %3549 = vmatpush1.bf16.msra.mxu1 %v10542_v36  ;;  %v2425_v35 = vld [vmem:[#allocation13 + $0xbc0] sm:$0xff] }
 0x29d   : > { %3468 = vmatprep.subr.bf16.mxu0 %v10549_v37  ;;  %3550 = vmatprep.subr.bf16.mxu1 %v10551_v38  ;;  %v2429_v36 = vld [vmem:[#allocation13 + $0xbe0] sm:$0xff]  ;;  %v2426_v37 = vld [vmem:[#allocation13 + $0xbc8] sm:$0xff] }
 0x29e   : > { %v2430_v38 = vld [vmem:[#allocation13 + $0xbe8] sm:$0xff]  ;;  %v10613_v42 = vcombine.high %v2425_v35, %v2429_v36  ;;  %v10612_v48 = vcombine.low %v2425_v35, %v2429_v36  ;;  %v2296_v35 = vld [vmem:[#allocation13 + $0x7b8] sm:$0xff] }
 0x29f   : > { %v10615_v43 = vcombine.high %v2426_v37, %v2430_v38  ;;  %v10614_v49 = vcombine.low %v2426_v37, %v2430_v38 }
 0x2a0   : > { %3469 = vmatpush1.bf16.msra.mxu0 %v10548_v44  ;;  %3551 = vmatpush1.bf16.msra.mxu1 %v10550_v45  ;;  %v2243_v44 = vld [vmem:[#allocation13 + $0x610] sm:$0xff] }
 0x2a1   : > { %3479 = vmatprep.subr.bf16.mxu0 %v10557_v46  ;;  %3561 = vmatprep.subr.bf16.mxu1 %v10559_v47  ;;  %v2247_v45 = vld [vmem:[#allocation13 + $0x630] sm:$0xff]  ;;  %v2244_v46 = vld [vmem:[#allocation13 + $0x618] sm:$0xff] }
 0x2a2   : > { %v2248_v47 = vld [vmem:[#allocation13 + $0x638] sm:$0xff]  ;;  %v10433_v51 = vcombine.high %v2243_v44, %v2247_v45  ;;  %v10432_v58 = vcombine.low %v2243_v44, %v2247_v45  ;;  %v2303_v44 = vld [vmem:[#allocation13 + $0x7f0] sm:$0xff] }
 0x2a3   : > { %10622 = vmatmul.mubr.msk.bf16.vlgmr.msra.gmra.mrb[8].mxu0 %vm12823_vm3, %v12827_v25  ;;  %10625 = vmatmul.mubr.msk.bf16.vlgmr.msra.gmra.mrb[8].mxu1 %vm12823_vm3, %v12827_v25  ;;  %v10434_v59 = vcombine.low %v2244_v46, %v2248_v47  ;;  %v2300_v45 = vld [vmem:[#allocation13 + $0x7d8] sm:$0xff] }
 0x2a4   : > { %3480 = vmatpush1.bf16.msra.mxu0 %v10556_v53  ;;  %3562 = vmatpush1.bf16.msra.mxu1 %v10558_v54  ;;  %v10435_v53 = vcombine.high %v2244_v46, %v2248_v47  ;;  %v2251_v54 = vld [vmem:[#allocation13 + $0x650] sm:$0xff]  ;;  %v2304_v46 = vld [vmem:[#allocation13 + $0x7f8] sm:$0xff] }
 0x2a5   : > { %3481 = vmatprep.subr.bf16.mxu0 %v10565_v55  ;;  %3563 = vmatprep.subr.bf16.mxu1 %v10567_v56  ;;  %v2255_v55 = vld [vmem:[#allocation13 + $0x670] sm:$0xff]  ;;  %v2252_v56 = vld [vmem:[#allocation13 + $0x658] sm:$0xff] }
 0x2a6   : > { %3511 = vmatprep.mubr.bf16.mxu0 %v12359_v40  ;;  %3593 = vmatprep.mubr.bf16.mxu1 %v12359_v40  ;;  %v10440_v2 = vcombine.low %v2251_v54, %v2255_v55  ;;  %v10442_v3 = vcombine.low %v2252_v56, %v2256_v57 }
 0x2a8   : > { %3482 = vmatpush1.bf16.msra.mxu0 %v10564_v61  ;;  %3564 = vmatpush1.bf16.msra.mxu1 %v10566_v29  ;;  %v10441_v61 = vcombine.high %v2251_v54, %v2255_v55  ;;  %v10443_v29 = vcombine.high %v2252_v56, %v2256_v57  ;;  %v10491_v57 = vcombine.high %v2300_v45, %v2304_v46 }
 0x2a9   : > { %3483 = vmatprep.subr.bf16.mxu0 %v10573_v62  ;;  %3565 = vmatprep.subr.bf16.mxu1 %v10575_v63  ;;  %v2259_v62 = vld [vmem:[#allocation13 + $0x690] sm:$0xff] }
 0x2aa   : > { %v2263_v63 = vld [vmem:[#allocation13 + $0x6b0] sm:$0xff] }
 0x2ab   : > { %v10448_v10 = vcombine.low %v2259_v62, %v2263_v63 }
 0x2ac   : > { %3484 = vmatpush1.bf16.msra.mxu0 %v10572_v4  ;;  %3566 = vmatpush1.bf16.msra.mxu1 %v10574_v5  ;;  %v10449_v4 = vcombine.high %v2259_v62, %v2263_v63  ;;  %v10451_v5 = vcombine.high %v2260_v0, %v2264_v1  ;;  %v10490_v63 = vcombine.low %v2300_v45, %v2304_v46 }
 0x2ad   : > { %3485 = vmatprep.subr.bf16.mxu0 %v10581_v6  ;;  %3567 = vmatprep.subr.bf16.mxu1 %v10583_v7  ;;  %v2267_v6 = vld [vmem:[#allocation13 + $0x6d0] sm:$0xff] }
 0x2ae   : > { %v2271_v7 = vld [vmem:[#allocation13 + $0x6f0] sm:$0xff] }
 0x2af   : > { %v10456_v18 = vcombine.low %v2267_v6, %v2271_v7 }
 0x2b0   : > { %3486 = vmatpush1.bf16.msra.mxu0 %v10580_v12  ;;  %3568 = vmatpush1.bf16.msra.mxu1 %v10582_v13  ;;  %v10457_v12 = vcombine.high %v2267_v6, %v2271_v7  ;;  %v10459_v13 = vcombine.high %v2268_v8, %v2272_v9 }
 0x2b1   : > { %3487 = vmatprep.subr.bf16.mxu0 %v10589_v14  ;;  %3569 = vmatprep.subr.bf16.mxu1 %v10591_v15  ;;  %v2275_v14 = vld [vmem:[#allocation13 + $0x710] sm:$0xff] }
 0x2b2   : > { %v2279_v15 = vld [vmem:[#allocation13 + $0x730] sm:$0xff] }
 0x2b3   : > { %v10464_v27 = vcombine.low %v2275_v14, %v2279_v15 }
 0x2b4   : > { %3488 = vmatpush1.bf16.msra.mxu0 %v10588_v20  ;;  %3570 = vmatpush1.bf16.msra.mxu1 %v10590_v21  ;;  %v10465_v20 = vcombine.high %v2275_v14, %v2279_v15  ;;  %v2283_v21 = vld [vmem:[#allocation13 + $0x750] sm:$0xff] }
 0x2b5   : > { %3489 = vmatprep.subr.bf16.mxu0 %v10597_v22  ;;  %3571 = vmatprep.subr.bf16.mxu1 %v10599_v23  ;;  %v2287_v22 = vld [vmem:[#allocation13 + $0x770] sm:$0xff]  ;;  %v2284_v23 = vld [vmem:[#allocation13 + $0x758] sm:$0xff] }
 0x2b6   : > { %v10473_v30 = vcombine.high %v2283_v21, %v2287_v22  ;;  %v10472_v36 = vcombine.low %v2283_v21, %v2287_v22  ;;  %v10474_v37 = vcombine.low %v2284_v23, %v2288_v26 }
 0x2b8   : > { %3490 = vmatpush1.bf16.msra.mxu0 %v10596_v31  ;;  %3572 = vmatpush1.bf16.msra.mxu1 %v10598_v32  ;;  %v10475_v31 = vcombine.high %v2284_v23, %v2288_v26  ;;  %v2291_v32 = vld [vmem:[#allocation13 + $0x790] sm:$0xff] }
 0x2b9   : > { %3491 = vmatprep.subr.bf16.mxu0 %v10605_v33  ;;  %3573 = vmatprep.subr.bf16.mxu1 %v10607_v34  ;;  %v2295_v33 = vld [vmem:[#allocation13 + $0x7b0] sm:$0xff]  ;;  %v2292_v34 = vld [vmem:[#allocation13 + $0x798] sm:$0xff] }
 0x2ba   : > { %v10481_v38 = vcombine.high %v2291_v32, %v2295_v33 }
 0x2bc   : > { %3492 = vmatpush1.bf16.msra.mxu0 %v10604_v39  ;;  %3574 = vmatpush1.bf16.msra.mxu1 %v10606_v41  ;;  %v10483_v39 = vcombine.high %v2292_v34, %v2296_v35  ;;  %v2299_v41 = vld [vmem:[#allocation13 + $0x7d0] sm:$0xff] }
 0x2bd   : > { %3493 = vmatprep.subr.bf16.mxu0 %v10613_v42  ;;  %3575 = vmatprep.subr.bf16.mxu1 %v10615_v43  ;;  %v10489_v56 = vcombine.high %v2299_v41, %v2303_v44  ;;  %v10488_v62 = vcombine.low %v2299_v41, %v2303_v44 }
 0x2c0   : > { %3494 = vmatpush1.bf16.msra.mxu0 %v10612_v48  ;;  %3576 = vmatpush1.bf16.msra.mxu1 %v10614_v49 }
 0x2c1   : > { %3602 = vmatprep.subr.bf16.mxu0 %v10433_v51  ;;  %3684 = vmatprep.subr.bf16.mxu1 %v10435_v53  ;;  %v10480_v51 = vcombine.low %v2291_v32, %v2295_v33  ;;  %v10482_v53 = vcombine.low %v2292_v34, %v2296_v35 }
 0x2c3   : > { %3512 = vmatmul.mubr.bf16.vlgmr.msra.gmra.mrb[8].mxu0 %v12865_v60  ;;  %3594 = vmatmul.mubr.bf16.vlgmr.msra.gmra.mrb[8].mxu1 %v12865_v60 }
 0x2c4   : > { %3603 = vmatpush1.bf16.msra.mxu0 %v10432_v58  ;;  %3685 = vmatpush1.bf16.msra.mxu1 %v10434_v59  ;;  %v2307_v58 = vld [vmem:[#allocation13 + $0x810] sm:$0xff] }
 0x2c5   : > { %3604 = vmatprep.subr.bf16.mxu0 %v10441_v61  ;;  %3686 = vmatprep.subr.bf16.mxu1 %v10443_v29  ;;  %v2311_v59 = vld [vmem:[#allocation13 + $0x830] sm:$0xff]  ;;  %v2308_v61 = vld [vmem:[#allocation13 + $0x818] sm:$0xff] }
 0x2c6   : > { %3634 = vmatprep.mubr.bf16.mxu0 %v12851_v52  ;;  %3716 = vmatprep.mubr.bf16.mxu1 %v12851_v52  ;;  %v10467_v52 = vcombine.high %v2276_v16, %v2280_v17  ;;  %v2312_v29 = vld [vmem:[#allocation13 + $0x838] sm:$0xff]  ;;  %v10497_v0 = vcombine.high %v2307_v58, %v2311_v59  ;;  %v10496_v6 = vcombine.low %v2307_v58, %v2311_v59  ;;  %v2363_v58 = vld [vmem:[#allocation13 + $0x9d0] sm:$0xff] }
 0x2c7   : > { %v10499_v1 = vcombine.high %v2308_v61, %v2312_v29  ;;  %v10498_v7 = vcombine.low %v2308_v61, %v2312_v29  ;;  %v2367_v59 = vld [vmem:[#allocation13 + $0x9f0] sm:$0xff]  ;;  %v2364_v61 = vld [vmem:[#allocation13 + $0x9d8] sm:$0xff] }
 0x2c8   : > { %3605 = vmatpush1.bf16.msra.mxu0 %v10440_v2  ;;  %3687 = vmatpush1.bf16.msra.mxu1 %v10442_v3  ;;  %v2315_v2 = vld [vmem:[#allocation13 + $0x850] sm:$0xff]  ;;  %v2368_v29 = vld [vmem:[#allocation13 + $0x9f8] sm:$0xff] }
 0x2c9   : > { %3606 = vmatprep.subr.bf16.mxu0 %v10449_v4  ;;  %3688 = vmatprep.subr.bf16.mxu1 %v10451_v5  ;;  %v2319_v3 = vld [vmem:[#allocation13 + $0x870] sm:$0xff]  ;;  %v2316_v4 = vld [vmem:[#allocation13 + $0x858] sm:$0xff] }
 0x2ca   : > { %v2320_v5 = vld [vmem:[#allocation13 + $0x878] sm:$0xff]  ;;  %v10505_v8 = vcombine.high %v2315_v2, %v2319_v3  ;;  %v10504_v14 = vcombine.low %v2315_v2, %v2319_v3  ;;  %v2371_v2 = vld [vmem:[#allocation13 + $0xa10] sm:$0xff] }
 0x2cb   : > { %v10507_v9 = vcombine.high %v2316_v4, %v2320_v5  ;;  %v10506_v15 = vcombine.low %v2316_v4, %v2320_v5  ;;  %v2375_v3 = vld [vmem:[#allocation13 + $0xa30] sm:$0xff]  ;;  %v2372_v4 = vld [vmem:[#allocation13 + $0xa18] sm:$0xff] }
 0x2cc   : > { %3607 = vmatpush1.bf16.msra.mxu0 %v10448_v10  ;;  %3689 = vmatpush1.bf16.msra.mxu1 %v10450_v11  ;;  %v2323_v10 = vld [vmem:[#allocation13 + $0x890] sm:$0xff]  ;;  %v2376_v5 = vld [vmem:[#allocation13 + $0xa38] sm:$0xff] }
 0x2cd   : > { %3608 = vmatprep.subr.bf16.mxu0 %v10457_v12  ;;  %3690 = vmatprep.subr.bf16.mxu1 %v10459_v13  ;;  %v2327_v11 = vld [vmem:[#allocation13 + $0x8b0] sm:$0xff]  ;;  %v2324_v12 = vld [vmem:[#allocation13 + $0x898] sm:$0xff] }
 0x2ce   : > { %v2328_v13 = vld [vmem:[#allocation13 + $0x8b8] sm:$0xff]  ;;  %v10513_v16 = vcombine.high %v2323_v10, %v2327_v11  ;;  %v10512_v21 = vcombine.low %v2323_v10, %v2327_v11  ;;  %v2379_v10 = vld [vmem:[#allocation13 + $0xa50] sm:$0xff] }
 0x2cf   : > { %v10515_v17 = vcombine.high %v2324_v12, %v2328_v13  ;;  %v10514_v22 = vcombine.low %v2324_v12, %v2328_v13  ;;  %v2383_v11 = vld [vmem:[#allocation13 + $0xa70] sm:$0xff]  ;;  %v2380_v12 = vld [vmem:[#allocation13 + $0xa58] sm:$0xff] }
 0x2d0   : > { %3609 = vmatpush1.bf16.msra.mxu0 %v10456_v18  ;;  %3691 = vmatpush1.bf16.msra.mxu1 %v10458_v19  ;;  %v2331_v18 = vld [vmem:[#allocation13 + $0x8d0] sm:$0xff]  ;;  %v2384_v13 = vld [vmem:[#allocation13 + $0xa78] sm:$0xff] }
 0x2d1   : > { %3610 = vmatprep.subr.bf16.mxu0 %v10465_v20  ;;  %3692 = vmatprep.subr.bf16.mxu1 %v10467_v52  ;;  %v2335_v19 = vld [vmem:[#allocation13 + $0x8f0] sm:$0xff]  ;;  %v2332_v20 = vld [vmem:[#allocation13 + $0x8d8] sm:$0xff] }
 0x2d2   : > { %v2336_v52 = vld [vmem:[#allocation13 + $0x8f8] sm:$0xff]  ;;  %v10521_v23 = vcombine.high %v2331_v18, %v2335_v19  ;;  %v10520_v32 = vcombine.low %v2331_v18, %v2335_v19  ;;  %v2387_v18 = vld [vmem:[#allocation13 + $0xa90] sm:$0xff] }
 0x2d3   : > { %v10523_v26 = vcombine.high %v2332_v20, %v2336_v52  ;;  %v10522_v33 = vcombine.low %v2332_v20, %v2336_v52  ;;  %v2391_v19 = vld [vmem:[#allocation13 + $0xab0] sm:$0xff]  ;;  %v2388_v20 = vld [vmem:[#allocation13 + $0xa98] sm:$0xff] }
 0x2d4   : > { %3611 = vmatpush1.bf16.msra.mxu0 %v10464_v27  ;;  %3693 = vmatpush1.bf16.msra.mxu1 %v10466_v28  ;;  %v2339_v27 = vld [vmem:[#allocation13 + $0x910] sm:$0xff]  ;;  %v2392_v52 = vld [vmem:[#allocation13 + $0xab8] sm:$0xff]  ;;  %v10576_v24 = vcombine.low %v2387_v18, %v2391_v19 }
 0x2d5   : > { %3612 = vmatprep.subr.bf16.mxu0 %v10473_v30  ;;  %3694 = vmatprep.subr.bf16.mxu1 %v10475_v31  ;;  %v2343_v28 = vld [vmem:[#allocation13 + $0x930] sm:$0xff]  ;;  %v2340_v30 = vld [vmem:[#allocation13 + $0x918] sm:$0xff] }
 0x2d6   : > { %v12871_v42 = vpop.f32.mrb[0].mxu0  ;;  %v12873_v43 = vpop.f32.mrb[0].mxu1  ;;  %v2344_v31 = vld [vmem:[#allocation13 + $0x938] sm:$0xff]  ;;  %v10529_v34 = vcombine.high %v2339_v27, %v2343_v28  ;;  %v10528_v41 = vcombine.low %v2339_v27, %v2343_v28  ;;  %v2395_v27 = vld [vmem:[#allocation13 + $0xad0] sm:$0xff] }
 0x2d7   : > { %v12875_v47 = vpop.f32.mrb[1].mxu0  ;;  %v12877_v48 = vpop.f32.mrb[1].mxu1  ;;  %v10531_v35 = vcombine.high %v2340_v30, %v2344_v31  ;;  %v10530_v44 = vcombine.low %v2340_v30, %v2344_v31  ;;  %v2399_v28 = vld [vmem:[#allocation13 + $0xaf0] sm:$0xff]  ;;  %v2396_v30 = vld [vmem:[#allocation13 + $0xad8] sm:$0xff] }
 0x2d8   : > { %v1943_v49 = vpop.f32.mrb[2].mxu0  ;;  %v2025_v50 = vpop.f32.mrb[2].mxu1  ;;  %3613 = vmatpush1.bf16.msra.mxu0 %v10472_v36  ;;  %3695 = vmatpush1.bf16.msra.mxu1 %v10474_v37  ;;  %v2347_v36 = vld [vmem:[#allocation13 + $0x950] sm:$0xff]  ;;  %v2400_v31 = vld [vmem:[#allocation13 + $0xaf8] sm:$0xff] }
 0x2d9   : > { %v1944_v54 = vpop.f32.mrb[3].mxu0  ;;  %v2026_v55 = vpop.f32.mrb[3].mxu1  ;;  %3614 = vmatprep.subr.bf16.mxu0 %v10481_v38  ;;  %3696 = vmatprep.subr.bf16.mxu1 %v10483_v39  ;;  %v2351_v37 = vld [vmem:[#allocation13 + $0x970] sm:$0xff]  ;;  %v2348_v38 = vld [vmem:[#allocation13 + $0x958] sm:$0xff] }
 0x2da   : > { %v2352_v39 = vld [vmem:[#allocation13 + $0x978] sm:$0xff]  ;;  %v10537_v45 = vcombine.high %v2347_v36, %v2351_v37  ;;  %v2355_v49 = vld [vmem:[#allocation13 + $0x990] sm:$0xff]  ;;  %v10536_v54 = vcombine.low %v2347_v36, %v2351_v37 }
 0x2db   : > { %v10539_v46 = vcombine.high %v2348_v38, %v2352_v39  ;;  %v2359_v50 = vld [vmem:[#allocation13 + $0x9b0] sm:$0xff]  ;;  %v10538_v55 = vcombine.low %v2348_v38, %v2352_v39  ;;  %v2404_v36 = vld [vmem:[#allocation13 + $0xb18] sm:$0xff]  ;;  %v864_v38 = vlaneseq  ;;  %v10584_v39 = vcombine.low %v2395_v27, %v2399_v28 }
 0x2dc   : > { %3615 = vmatpush1.bf16.msra.mxu0 %v10480_v51  ;;  %3697 = vmatpush1.bf16.msra.mxu1 %v10482_v53  ;;  %v2356_v51 = vld [vmem:[#allocation13 + $0x998] sm:$0xff] }
 0x2dd   : > { %3616 = vmatprep.subr.bf16.mxu0 %v10489_v56  ;;  %3698 = vmatprep.subr.bf16.mxu1 %v10491_v57  ;;  %v2360_v53 = vld [vmem:[#allocation13 + $0x9b8] sm:$0xff]  ;;  %v10545_v56 = vcombine.high %v2355_v49, %v2359_v50 }
 0x2de   : > { %v10547_v57 = vcombine.high %v2356_v51, %v2360_v53  ;;  %v2408_v37 = vld [vmem:[#allocation13 + $0xb38] sm:$0xff] }
 0x2e0   : > { %3617 = vmatpush1.bf16.msra.mxu0 %v10488_v62  ;;  %3699 = vmatpush1.bf16.msra.mxu1 %v10490_v63  ;;  %v10544_v62 = vcombine.low %v2355_v49, %v2359_v50  ;;  %v10546_v63 = vcombine.low %v2356_v51, %v2360_v53  ;;  %v2412_v49 = vld [vmem:[#allocation13 + $0xb58] sm:$0xff]  ;;  %v12887_v51 = vshrl.u32 %v864_v38, 7  ;;  %v3834_v38 = vld [vmem:[#allocation14 + $0x80] sm:$0xff] }
 0x2e1   : > { %3618 = vmatprep.subr.bf16.mxu0 %v10497_v0  ;;  %3700 = vmatprep.subr.bf16.mxu1 %v10499_v1  ;;  %v10553_v0 = vcombine.high %v2363_v58, %v2367_v59  ;;  %v10555_v1 = vcombine.high %v2364_v61, %v2368_v29  ;;  %v2416_v50 = vld [vmem:[#allocation13 + $0xb78] sm:$0xff] }
 0x2e4   : > { %3619 = vmatpush1.bf16.msra.mxu0 %v10496_v6  ;;  %3701 = vmatpush1.bf16.msra.mxu1 %v10498_v7  ;;  %v10552_v6 = vcombine.low %v2363_v58, %v2367_v59  ;;  %v10554_v7 = vcombine.low %v2364_v61, %v2368_v29  ;;  %v2423_v58 = vld [vmem:[#allocation13 + $0xbb0] sm:$0xff]  ;;  %v2420_v59 = vld [vmem:[#allocation13 + $0xb98] sm:$0xff]  ;;  %v12890_v29 = vsub.s32 0, %v12887_v51 }
 0x2e5   : > { %3620 = vmatprep.subr.bf16.mxu0 %v10505_v8  ;;  %3702 = vmatprep.subr.bf16.mxu1 %v10507_v9  ;;  %v10561_v8 = vcombine.high %v2371_v2, %v2375_v3  ;;  %v10563_v9 = vcombine.high %v2372_v4, %v2376_v5  ;;  %v2424_v61 = vld [vmem:[#allocation13 + $0xbb8] sm:$0xff] }
 0x2e8   : > { %3621 = vmatpush1.bf16.msra.mxu0 %v10504_v14  ;;  %3703 = vmatpush1.bf16.msra.mxu1 %v10506_v15  ;;  %v10560_v14 = vcombine.low %v2371_v2, %v2375_v3  ;;  %v10562_v15 = vcombine.low %v2372_v4, %v2376_v5  ;;  %v10611_v3 = vcombine.high %v2420_v59, %v2424_v61  ;;  %v2427_v4 = vld [vmem:[#allocation13 + $0xbd0] sm:$0xff]  ;;  %v12898_v5 = vsub.s32 1, %v12887_v51 }
 0x2e9   : > { %3622 = vmatprep.subr.bf16.mxu0 %v10513_v16  ;;  %3704 = vmatprep.subr.bf16.mxu1 %v10515_v17  ;;  %v10569_v16 = vcombine.high %v2379_v10, %v2383_v11  ;;  %v10571_v17 = vcombine.high %v2380_v12, %v2384_v13 }
 0x2ec   : > { %3623 = vmatpush1.bf16.msra.mxu0 %v10512_v21  ;;  %3705 = vmatpush1.bf16.msra.mxu1 %v10514_v22  ;;  %v10568_v21 = vcombine.low %v2379_v10, %v2383_v11  ;;  %v10570_v22 = vcombine.low %v2380_v12, %v2384_v13  ;;  %v10610_v12 = vcombine.low %v2420_v59, %v2424_v61  ;;  %v3850_v59 = vld [vmem:[#allocation14 + $0x100] sm:$0xff] }
 0x2ed   : > { %3624 = vmatprep.subr.bf16.mxu0 %v10521_v23  ;;  %3706 = vmatprep.subr.bf16.mxu1 %v10523_v26  ;;  %v10577_v23 = vcombine.high %v2387_v18, %v2391_v19  ;;  %v10579_v26 = vcombine.high %v2388_v20, %v2392_v52  ;;  %v3822_v18 = vld [vmem:[#allocation14 + $0x20] sm:$0xff]  ;;  %v3819_v19 = vld [vmem:[#allocation14 + $0x8] sm:$0xff] }
 0x2ee   : > { %v3854_v61 = vld [vmem:[#allocation14 + $0x120] sm:$0xff] }
 0x2f0   : > { %3625 = vmatpush1.bf16.msra.mxu0 %v10520_v32  ;;  %3707 = vmatpush1.bf16.msra.mxu1 %v10522_v33  ;;  %v10585_v32 = vcombine.high %v2395_v27, %v2399_v28  ;;  %v10587_v33 = vcombine.high %v2396_v30, %v2400_v31 }
 0x2f1   : > { %3626 = vmatprep.subr.bf16.mxu0 %v10529_v34  ;;  %3708 = vmatprep.subr.bf16.mxu1 %v10531_v35  ;;  %v2403_v34 = vld [vmem:[#allocation13 + $0xb10] sm:$0xff] }
 0x2f2   : > { %v2407_v35 = vld [vmem:[#allocation13 + $0xb30] sm:$0xff] }
 0x2f3   : > { %v10592_v53 = vcombine.low %v2403_v34, %v2407_v35 }
 0x2f4   : > { %3627 = vmatpush1.bf16.msra.mxu0 %v10528_v41  ;;  %3709 = vmatpush1.bf16.msra.mxu1 %v10530_v44  ;;  %v10586_v41 = vcombine.low %v2396_v30, %v2400_v31  ;;  %v10595_v44 = vcombine.high %v2404_v36, %v2408_v37  ;;  %v3826_v30 = vld [vmem:[#allocation14 + $0x40] sm:$0xff] }
 0x2f5   : > { %3628 = vmatprep.subr.bf16.mxu0 %v10537_v45  ;;  %3710 = vmatprep.subr.bf16.mxu1 %v10539_v46  ;;  %v2411_v45 = vld [vmem:[#allocation13 + $0xb50] sm:$0xff] }
 0x2f6   : > { %v2415_v46 = vld [vmem:[#allocation13 + $0xb70] sm:$0xff] }
 0x2f8   : > { %3629 = vmatpush1.bf16.msra.mxu0 %v10536_v54  ;;  %3711 = vmatpush1.bf16.msra.mxu1 %v10538_v55  ;;  %v10594_v54 = vcombine.low %v2404_v36, %v2408_v37  ;;  %v10601_v55 = vcombine.high %v2411_v45, %v2415_v46 }
 0x2f9   : > { %3630 = vmatprep.subr.bf16.mxu0 %v10545_v56  ;;  %3712 = vmatprep.subr.bf16.mxu1 %v10547_v57  ;;  %v10603_v56 = vcombine.high %v2412_v49, %v2416_v50  ;;  %v2419_v57 = vld [vmem:[#allocation13 + $0xb90] sm:$0xff] }
 0x2fa   : > { %v10609_v2 = vcombine.high %v2419_v57, %v2423_v58  ;;  %v10608_v11 = vcombine.low %v2419_v57, %v2423_v58 }
 0x2fc   : > { %3631 = vmatpush1.bf16.msra.mxu0 %v10544_v62  ;;  %3713 = vmatpush1.bf16.msra.mxu1 %v10546_v63  ;;  %v10600_v62 = vcombine.low %v2411_v45, %v2415_v46  ;;  %v10602_v63 = vcombine.low %v2412_v49, %v2416_v50  ;;  %v3842_v50 = vld [vmem:[#allocation14 + $0xc0] sm:$0xff] }
 0x2fd   : > { %3632 = vmatprep.subr.bf16.mxu0 %v10553_v0  ;;  %3714 = vmatprep.subr.bf16.mxu1 %v10555_v1  ;;  %v12892_v0 = vld [vmem:[#allocation16] sm:$0xff]  ;;  %v12895_v1 = vsub.s32 2, %v12887_v51 }
 0x2fe   : > { %v867_v10 = vrot.slane %v12892_v0, %v12890_v29 }
 0x2ff   : > { %v875_v13 = vrot.slane %v12892_v0, %v12895_v1 }
 0x300   : > { %3633 = vmatpush1.bf16.msra.mxu0 %v10552_v6  ;;  %3715 = vmatpush1.bf16.msra.mxu1 %v10554_v7  ;;  %v2431_v6 = vld [vmem:[#allocation13 + $0xbf0] sm:$0xff]  ;;  %v2428_v7 = vld [vmem:[#allocation13 + $0xbd8] sm:$0xff] }
 0x301   : > { %3643 = vmatprep.subr.bf16.mxu0 %v10561_v8  ;;  %3725 = vmatprep.subr.bf16.mxu1 %v10563_v9  ;;  %v2432_v8 = vld [vmem:[#allocation13 + $0xbf8] sm:$0xff]  ;;  %v12901_v9 = vsub.s32 3, %v12887_v51 }
 0x303   : > { %10628 = vmatmul.mubr.msk.bf16.vlgmr.msra.gmra.mrb[12].mxu0 %vm12823_vm3, %v12827_v25  ;;  %10631 = vmatmul.mubr.msk.bf16.vlgmr.msra.gmra.mrb[12].mxu1 %vm12823_vm3, %v12827_v25  ;;  %v10578_v25 = vcombine.low %v2388_v20, %v2392_v52  ;;  %v3823_v20 = vld [vmem:[#allocation14 + $0x28] sm:$0xff]  ;;  %v879_v52 = vrot.slane %v12892_v0, %v12901_v9 }
 0x304   : > { %3644 = vmatpush1.bf16.msra.mxu0 %v10560_v14  ;;  %3726 = vmatpush1.bf16.msra.mxu1 %v10562_v15  ;;  %v10617_v14 = vcombine.high %v2427_v4, %v2431_v6  ;;  %v10619_v15 = vcombine.high %v2428_v7, %v2432_v8  ;;  %v10641_v28 = vcombine.high %v3819_v19, %v3823_v20 }
 0x305   : > { %3645 = vmatprep.subr.bf16.mxu0 %v10569_v16  ;;  %3727 = vmatprep.subr.bf16.mxu1 %v10571_v17  ;;  %v3818_v16 = vld [vmem:[#allocation14] sm:$0xff]  ;;  %v871_v17 = vrot.slane %v12892_v0, %v12898_v5 }
 0x306   : > { %3675 = vmatprep.mubr.bf16.mxu0 %v12359_v40  ;;  %3757 = vmatprep.mubr.bf16.mxu1 %v12359_v40  ;;  %v10593_v40 = vcombine.high %v2403_v34, %v2407_v35  ;;  %v10639_v27 = vcombine.high %v3818_v16, %v3822_v18  ;;  %v10640_v35 = vcombine.low %v3819_v19, %v3823_v20  ;;  %v12927_v20 = vsub.s32 7, %v12887_v51 }
 0x307   : > { %v11501_v31 = vadd.f32 %v12875_v47, %v871_v17  ;;  %v3839_v47 = vld [vmem:[#allocation14 + $0xa8] sm:$0xff] }
 0x308   : > { %3646 = vmatpush1.bf16.msra.mxu0 %v10568_v21  ;;  %3728 = vmatpush1.bf16.msra.mxu1 %v10570_v22  ;;  %v11500_v21 = vadd.f32 %v12871_v42, %v867_v10  ;;  %v10616_v22 = vcombine.low %v2427_v4, %v2431_v6  ;;  %v10638_v42 = vcombine.low %v3818_v16, %v3822_v18  ;;  %v3862_v10 = vld [vmem:[#allocation14 + $0x160] sm:$0xff]  ;;  %v12924_v16 = vsub.s32 5, %v12887_v51 }
 0x309   : > { %3647 = vmatprep.subr.bf16.mxu0 %v10577_v23  ;;  %3729 = vmatprep.subr.bf16.mxu1 %v10579_v26  ;;  %v10618_v23 = vcombine.low %v2428_v7, %v2432_v8  ;;  %v11502_v26 = vadd.f32 %v12873_v43, %v875_v13  ;;  %v10671_v4 = vcombine.high %v3850_v59, %v3854_v61  ;;  %v3858_v7 = vld [vmem:[#allocation14 + $0x140] sm:$0xff] }
 0x30a   : > { %v10422_v34 = vmul.f32 -1.442695, %v11500_v21  ;;  %v10670_v18 = vcombine.low %v3850_v59, %v3854_v61  ;;  %v3882_v61 = vld [vmem:[#allocation14 + $0x200] sm:$0xff] }
 0x30b   : > { %v10424_v36 = vmul.f32 -1.442695, %v11502_v26  ;;  %v3866_v26 = vld [vmem:[#allocation14 + $0x180] sm:$0xff] }
 0x30c   : > { %3648 = vmatpush1.bf16.msra.mxu0 %v10576_v24  ;;  %3730 = vmatpush1.bf16.msra.mxu1 %v10578_v25  ;;  %v3830_v24 = vld [vmem:[#allocation14 + $0x60] sm:$0xff]  ;;  %v3827_v25 = vld [vmem:[#allocation14 + $0x48] sm:$0xff]  ;;  %11808 = vpow2.f32 %v10422_v34  ;;  %v895_v34 = vrot.slane %v12892_v0, %v12927_v20 }
 0x30d   : > { %3649 = vmatprep.subr.bf16.mxu0 %v10585_v32  ;;  %3731 = vmatprep.subr.bf16.mxu1 %v10587_v33  ;;  %v3831_v32 = vld [vmem:[#allocation14 + $0x68] sm:$0xff]  ;;  %v11503_v33 = vadd.f32 %v12877_v48, %v879_v52  ;;  %v10647_v43 = vcombine.high %v3826_v30, %v3830_v24  ;;  %v10646_v48 = vcombine.low %v3826_v30, %v3830_v24  ;;  %11810 = vpow2.f32 %v10424_v36 }
 0x30e   : > { %v10649_v37 = vcombine.high %v3827_v25, %v3831_v32  ;;  %v10648_v45 = vcombine.low %v3827_v25, %v3831_v32  ;;  %v3867_v30 = vld [vmem:[#allocation14 + $0x188] sm:$0xff] }
 0x310   : > { %3650 = vmatpush1.bf16.msra.mxu0 %v10584_v39  ;;  %3732 = vmatpush1.bf16.msra.mxu1 %v10586_v41  ;;  %v10423_v39 = vmul.f32 -1.442695, %v11501_v31  ;;  %v3838_v41 = vld [vmem:[#allocation14 + $0xa0] sm:$0xff]  ;;  %v3871_v31 = vld [vmem:[#allocation14 + $0x1a8] sm:$0xff] }
 0x311   : > { %3651 = vmatprep.subr.bf16.mxu0 %v10593_v40  ;;  %3733 = vmatprep.subr.bf16.mxu1 %v10595_v44  ;;  %v3835_v40 = vld [vmem:[#allocation14 + $0x88] sm:$0xff]  ;;  %v10425_v44 = vmul.f32 -1.442695, %v11503_v33  ;;  %v10655_v46 = vcombine.high %v3834_v38, %v3838_v41 }
 0x312   : > { %v10657_v49 = vcombine.high %v3835_v40, %v3839_v47  ;;  %11812 = vpow2.f32 %v10423_v39 }
 0x313   : > { %11814 = vpow2.f32 %v10425_v44 }
 0x314   : > { %3652 = vmatpush1.bf16.msra.mxu0 %v10592_v53  ;;  %3734 = vmatpush1.bf16.msra.mxu1 %v10594_v54  ;;  %v3846_v53 = vld [vmem:[#allocation14 + $0xe0] sm:$0xff]  ;;  %v3843_v54 = vld [vmem:[#allocation14 + $0xc8] sm:$0xff] }
 0x315   : > { %3653 = vmatprep.subr.bf16.mxu0 %v10601_v55  ;;  %3735 = vmatprep.subr.bf16.mxu1 %v10603_v56  ;;  %v3847_v55 = vld [vmem:[#allocation14 + $0xe8] sm:$0xff]  ;;  %v10654_v56 = vcombine.low %v3834_v38, %v3838_v41  ;;  %v10663_v57 = vcombine.high %v3842_v50, %v3846_v53  ;;  %v3878_v41 = vld [vmem:[#allocation14 + $0x1e0] sm:$0xff] }
 0x316   : > { %v10665_v58 = vcombine.high %v3843_v54, %v3847_v55  ;;  %v11809_v8 = vpop.eup %11808 }
 0x317   : > { %v11811_v13 = vpop.eup %11810  ;;  %v2198_v21 = vadd.f32 1.0, %v11809_v8 }
 0x318   : > { %3654 = vmatpush1.bf16.msra.mxu0 %v10600_v62  ;;  %3736 = vmatpush1.bf16.msra.mxu1 %v10602_v63  ;;  %v3851_v62 = vld [vmem:[#allocation14 + $0x108] sm:$0xff] }
 0x319   : > { %3655 = vmatprep.subr.bf16.mxu0 %v10609_v2  ;;  %3737 = vmatprep.subr.bf16.mxu1 %v10611_v3  ;;  %v3855_v63 = vld [vmem:[#allocation14 + $0x128] sm:$0xff]  ;;  %v10662_v2 = vcombine.low %v3842_v50, %v3846_v53  ;;  %v10664_v3 = vcombine.low %v3843_v54, %v3847_v55  ;;  %11816 = vrcp.f32 %v2198_v21  ;;  %v10688_v55 = vcombine.low %v3867_v30, %v3871_v31 }
 0x31a   : > { %v10673_v6 = vcombine.high %v3851_v62, %v3855_v63  ;;  %v10672_v19 = vcombine.low %v3851_v62, %v3855_v63  ;;  %v3886_v63 = vld [vmem:[#allocation14 + $0x220] sm:$0xff] }
 0x31c   : > { %3656 = vmatpush1.bf16.msra.mxu0 %v10608_v11  ;;  %3738 = vmatpush1.bf16.msra.mxu1 %v10610_v12  ;;  %v3859_v11 = vld [vmem:[#allocation14 + $0x148] sm:$0xff]  ;;  %v11813_v17 = vpop.eup %11812 }
 0x31d   : > { %3657 = vmatprep.subr.bf16.mxu0 %v10617_v14  ;;  %3739 = vmatprep.subr.bf16.mxu1 %v10619_v15  ;;  %v3863_v12 = vld [vmem:[#allocation14 + $0x168] sm:$0xff]  ;;  %v12918_v14 = vsub.s32 4, %v12887_v51  ;;  %v12921_v15 = vsub.s32 6, %v12887_v51  ;;  %v11815_v52 = vpop.eup %11814  ;;  %v2199_v24 = vadd.f32 1.0, %v11813_v17  ;;  %v887_v51 = vrot.slane %v12892_v0, %v12924_v16 }
 0x31e   : > { %v2211_v33 = vadd.f32 1.0, %v11815_v52 }
 0x31f   : > { %v883_v25 = vrot.slane %v12892_v0, %v12918_v14  ;;  %v891_v32 = vrot.slane %v12892_v0, %v12921_v15 }
 0x320   : > { %3658 = vmatpush1.bf16.msra.mxu0 %v10616_v22  ;;  %3740 = vmatpush1.bf16.msra.mxu1 %v10618_v23  ;;  %v10679_v22 = vcombine.high %v3858_v7, %v3862_v10  ;;  %v10681_v23 = vcombine.high %v3859_v11, %v3863_v12 }
 0x321   : > { %6167 = vmatprep.subr.bf16.mxu0 %v10639_v27  ;;  %6290 = vmatprep.subr.bf16.mxu1 %v10641_v28  ;;  %v2210_v27 = vadd.f32 1.0, %v11811_v13  ;;  %v3870_v28 = vld [vmem:[#allocation14 + $0x1a0] sm:$0xff]  ;;  %v3895_v13 = vld [vmem:[#allocation14 + $0x268] sm:$0xff] }
 0x322   : > { %v10687_v36 = vcombine.high %v3866_v26, %v3870_v28  ;;  %v10686_v0 = vcombine.low %v3866_v26, %v3870_v28  ;;  %v3902_v28 = vld [vmem:[#allocation14 + $0x2a0] sm:$0xff] }
 0x323   : > { %3676 = vmatmul.mubr.bf16.vlgmr.msra.gmra.mrb[12].mxu0 %v12865_v60  ;;  %3758 = vmatmul.mubr.bf16.vlgmr.msra.gmra.mrb[12].mxu1 %v12865_v60  ;;  %v10656_v60 = vcombine.low %v3835_v40, %v3839_v47  ;;  %11818 = vrcp.f32 %v2210_v27  ;;  %v3875_v40 = vld [vmem:[#allocation14 + $0x1c8] sm:$0xff]  ;;  %v11817_v17 = vpop.eup %11816  ;;  %v3898_v27 = vld [vmem:[#allocation14 + $0x280] sm:$0xff] }
 0x324   : > { %6168 = vmatpush1.bf16.msra.mxu0 %v10638_v42  ;;  %6291 = vmatpush1.bf16.msra.mxu1 %v10640_v35  ;;  %v10678_v42 = vcombine.low %v3858_v7, %v3862_v10  ;;  %v10680_v35 = vcombine.low %v3859_v11, %v3863_v12  ;;  %v3879_v47 = vld [vmem:[#allocation14 + $0x1e8] sm:$0xff]  ;;  %11820 = vrcp.f32 %v2199_v24  ;;  %v10703_v7 = vcombine.high %v3882_v61, %v3886_v63  ;;  %v3890_v10 = vld [vmem:[#allocation14 + $0x240] sm:$0xff] }
 0x325   : > { %6169 = vmatprep.subr.bf16.mxu0 %v10647_v43  ;;  %6292 = vmatprep.subr.bf16.mxu1 %v10649_v37  ;;  %v10689_v43 = vcombine.high %v3867_v30, %v3871_v31  ;;  %v3874_v37 = vld [vmem:[#allocation14 + $0x1c0] sm:$0xff]  ;;  %11822 = vrcp.f32 %v2211_v33  ;;  %v10697_v59 = vcombine.high %v3875_v40, %v3879_v47  ;;  %v3891_v12 = vld [vmem:[#allocation14 + $0x248] sm:$0xff] }
 0x326   : > { %v3894_v11 = vld [vmem:[#allocation14 + $0x260] sm:$0xff]  ;;  %v10713_v26 = vcombine.high %v3891_v12, %v3895_v13  ;;  %v661_v31 = vld [vmem:[#allocation11 + $0x8] sm:$0xff]  ;;  %v10712_v33 = vcombine.low %v3891_v12, %v3895_v13 }
 0x327   : > { %v3899_v24 = vld [vmem:[#allocation14 + $0x288] sm:$0xff]  ;;  %v3930_v12 = vld [vmem:[#allocation14 + $0x380] sm:$0xff] }
 0x328   : > { %6170 = vmatpush1.bf16.msra.mxu0 %v10646_v48  ;;  %6293 = vmatpush1.bf16.msra.mxu1 %v10648_v45 }
 0x329   : > { %6171 = vmatprep.subr.bf16.mxu0 %v10655_v46  ;;  %6294 = vmatprep.subr.bf16.mxu1 %v10657_v49 }
 0x32c   : > { %6172 = vmatpush1.bf16.msra.mxu0 %v10654_v56  ;;  %6295 = vmatpush1.bf16.msra.mxu1 %v10656_v60 }
 0x32d   : > { %6173 = vmatprep.subr.bf16.mxu0 %v10663_v57  ;;  %6296 = vmatprep.subr.bf16.mxu1 %v10665_v58  ;;  %v10695_v58 = vcombine.high %v3874_v37, %v3878_v41 }
 0x330   : > { %6174 = vmatpush1.bf16.msra.mxu0 %v10662_v2  ;;  %6297 = vmatpush1.bf16.msra.mxu1 %v10664_v3  ;;  %v3883_v2 = vld [vmem:[#allocation14 + $0x208] sm:$0xff] }
 0x331   : > { %6175 = vmatprep.subr.bf16.mxu0 %v10671_v4  ;;  %6298 = vmatprep.subr.bf16.mxu1 %v10673_v6  ;;  %v3887_v3 = vld [vmem:[#allocation14 + $0x228] sm:$0xff]  ;;  %v10694_v4 = vcombine.low %v3874_v37, %v3878_v41  ;;  %v10696_v6 = vcombine.low %v3875_v40, %v3879_v47  ;;  %v3906_v41 = vld [vmem:[#allocation14 + $0x2c0] sm:$0xff] }
 0x332   : > { %v10705_v8 = vcombine.high %v3883_v2, %v3887_v3  ;;  %v10704_v52 = vcombine.low %v3883_v2, %v3887_v3  ;;  %v3922_v2 = vld [vmem:[#allocation14 + $0x340] sm:$0xff] }
 0x333   : > { %v3926_v3 = vld [vmem:[#allocation14 + $0x360] sm:$0xff] }
 0x334   : > { %6176 = vmatpush1.bf16.msra.mxu0 %v10670_v18  ;;  %6299 = vmatpush1.bf16.msra.mxu1 %v10672_v19  ;;  %v11819_v18 = vpop.eup %11818  ;;  %v10702_v19 = vcombine.low %v3882_v61, %v3886_v63 }
 0x335   : > { %6177 = vmatprep.subr.bf16.mxu0 %v10679_v22  ;;  %6300 = vmatprep.subr.bf16.mxu1 %v10681_v23  ;;  %v11821_v21 = vpop.eup %11820  ;;  %v660_v22 = vld [vmem:[#allocation11] sm:$0xff]  ;;  %v10711_v23 = vcombine.high %v3890_v10, %v3894_v11 }
 0x336   : > { %v2103_v38 = vpop.f32.mrb[4].mxu0  ;;  %v2185_v39 = vpop.f32.mrb[4].mxu1 }
 0x337   : > { %v11504_v44 = vadd.f32 %v2103_v38, %v883_v25  ;;  %v11506_v48 = vadd.f32 %v2185_v39, %v891_v32  ;;  %v2105_v45 = vpop.f32.mrb[5].mxu0  ;;  %v2187_v46 = vpop.f32.mrb[5].mxu1  ;;  %v3903_v25 = vld [vmem:[#allocation14 + $0x2a8] sm:$0xff] }
 0x338   : > { %v11505_v49 = vadd.f32 %v2105_v45, %v887_v51  ;;  %v11507_v50 = vadd.f32 %v2187_v46, %v895_v34  ;;  %v2107_v53 = vpop.f32.mrb[6].mxu0  ;;  %v2189_v54 = vpop.f32.mrb[6].mxu1  ;;  %6178 = vmatpush1.bf16.msra.mxu0 %v10678_v42  ;;  %6301 = vmatpush1.bf16.msra.mxu1 %v10680_v35  ;;  %v10710_v51 = vcombine.low %v3890_v10, %v3894_v11  ;;  %v3907_v45 = vld [vmem:[#allocation14 + $0x2c8] sm:$0xff] }
 0x339   : > { %11824 = vtanh.f32 %v11504_v44  ;;  %v10426_v56 = vmul.f32 -1.442695, %v11506_v48  ;;  %v2108_v60 = vpop.f32.mrb[7].mxu0  ;;  %v2190_v57 = vpop.f32.mrb[7].mxu1  ;;  %6179 = vmatprep.subr.bf16.mxu0 %v10687_v36  ;;  %6302 = vmatprep.subr.bf16.mxu1 %v10689_v43  ;;  %v2230_v42 = vmul.f32 %v11819_v18, %v660_v22  ;;  %v10719_v36 = vcombine.high %v3898_v27, %v3902_v28  ;;  %v3910_v48 = vld [vmem:[#allocation14 + $0x2e0] sm:$0xff]  ;;  %v3911_v46 = vld [vmem:[#allocation14 + $0x2e8] sm:$0xff] }
 0x33a   : > { %11826 = vtanh.f32 %v11505_v49  ;;  %v10427_v62 = vmul.f32 -1.442695, %v11507_v50  ;;  %v11823_v30 = vpop.eup %11822  ;;  %v10721_v39 = vcombine.high %v3899_v24, %v3903_v25  ;;  %v10718_v50 = vcombine.low %v3898_v27, %v3902_v28  ;;  %v3918_v60 = vld [vmem:[#allocation14 + $0x320] sm:$0xff]  ;;  %v3915_v57 = vld [vmem:[#allocation14 + $0x308] sm:$0xff] }
 0x33b   : > { %11828 = vpow2.f32 %v10426_v56  ;;  %v2231_v37 = vmul.f32 %v11823_v30, %v661_v31  ;;  %v10720_v53 = vcombine.low %v3899_v24, %v3903_v25  ;;  %v10727_v54 = vcombine.high %v3906_v41, %v3910_v48  ;;  %v3914_v56 = vld [vmem:[#allocation14 + $0x300] sm:$0xff]  ;;  %v3931_v18 = vld [vmem:[#allocation14 + $0x388] sm:$0xff] }
 0x33c   : > { %11830 = vpow2.f32 %v10427_v62  ;;  %6180 = vmatpush1.bf16.msra.mxu0 %v10686_v0  ;;  %6303 = vmatpush1.bf16.msra.mxu1 %v10688_v55  ;;  %v10729_v55 = vcombine.high %v3907_v45, %v3911_v46  ;;  %v10728_v61 = vcombine.low %v3907_v45, %v3911_v46  ;;  %v10735_v62 = vcombine.high %v3914_v56, %v3918_v60  ;;  %v3938_v31 = vld [vmem:[#allocation14 + $0x3c0] sm:$0xff]  ;;  %v3955_v46 = vld [vmem:[#allocation14 + $0x448] sm:$0xff] }
 0x33d   : > { %6181 = vmatprep.subr.bf16.mxu0 %v10695_v58  ;;  %6304 = vmatprep.subr.bf16.mxu1 %v10697_v59  ;;  %v3919_v58 = vld [vmem:[#allocation14 + $0x328] sm:$0xff]  ;;  %v10726_v59 = vcombine.low %v3906_v41, %v3910_v48  ;;  %v10743_v10 = vcombine.high %v3922_v2, %v3926_v3  ;;  %v3942_v25 = vld [vmem:[#allocation14 + $0x3e0] sm:$0xff] }
 0x33e   : > { %v10737_v63 = vcombine.high %v3915_v57, %v3919_v58  ;;  %v10758_v41 = vcombine.low %v3938_v31, %v3942_v25  ;;  %v3954_v48 = vld [vmem:[#allocation14 + $0x440] sm:$0xff] }
 0x33f   : > { %v3958_v45 = vld [vmem:[#allocation14 + $0x460] sm:$0xff] }
 0x340   : > { %6182 = vmatpush1.bf16.msra.mxu0 %v10694_v4  ;;  %6305 = vmatpush1.bf16.msra.mxu1 %v10696_v6  ;;  %v3923_v4 = vld [vmem:[#allocation14 + $0x348] sm:$0xff] }
 0x341   : > { %6183 = vmatprep.subr.bf16.mxu0 %v10703_v7  ;;  %6306 = vmatprep.subr.bf16.mxu1 %v10705_v8  ;;  %v3927_v6 = vld [vmem:[#allocation14 + $0x368] sm:$0xff]  ;;  %v10734_v7 = vcombine.low %v3914_v56, %v3918_v60  ;;  %v10736_v8 = vcombine.low %v3915_v57, %v3919_v58  ;;  %v3962_v56 = vld [vmem:[#allocation14 + $0x480] sm:$0xff] }
 0x342   : > { %v10745_v11 = vcombine.high %v3923_v4, %v3927_v6  ;;  %v3966_v60 = vld [vmem:[#allocation14 + $0x4a0] sm:$0xff]  ;;  %v3963_v57 = vld [vmem:[#allocation14 + $0x488] sm:$0xff] }
 0x343   : > { %v11825_v32 = vpop.eup %11824  ;;  %v3967_v58 = vld [vmem:[#allocation14 + $0x4a8] sm:$0xff] }
 0x344   : > { %v11827_v34 = vpop.eup %11826  ;;  %v2232_v35 = vmul.f32 %v11825_v32, %v11817_v17  ;;  %6184 = vmatpush1.bf16.msra.mxu0 %v10702_v19  ;;  %6307 = vmatpush1.bf16.msra.mxu1 %v10704_v52  ;;  %v3934_v17 = vld [vmem:[#allocation14 + $0x3a0] sm:$0xff]  ;;  %v3935_v19 = vld [vmem:[#allocation14 + $0x3a8] sm:$0xff] }
 0x345   : > { %v11829_v43 = vpop.eup %11828  ;;  %v2233_v38 = vmul.f32 %v11827_v34, %v11821_v21  ;;  %6185 = vmatprep.subr.bf16.mxu0 %v10711_v23  ;;  %6308 = vmatprep.subr.bf16.mxu1 %v10713_v26  ;;  %v10742_v23 = vcombine.low %v3922_v2, %v3926_v3  ;;  %v10744_v26 = vcombine.low %v3923_v4, %v3927_v6  ;;  %v3939_v32 = vld [vmem:[#allocation14 + $0x3c8] sm:$0xff]  ;;  %v3970_v2 = vld [vmem:[#allocation14 + $0x4c0] sm:$0xff] }
 0x346   : > { %v11831_v40 = vpop.eup %11830  ;;  %v2234_v47 = vadd.f32 %v2232_v35, %v2230_v42  ;;  %v2224_v44 = vadd.f32 1.0, %v11829_v43  ;;  %v10751_v28 = vcombine.high %v3930_v12, %v3934_v17  ;;  %v10753_v30 = vcombine.high %v3931_v18, %v3935_v19  ;;  %v3946_v43 = vld [vmem:[#allocation14 + $0x400] sm:$0xff]  ;;  %v3971_v4 = vld [vmem:[#allocation14 + $0x4c8] sm:$0xff] }
 0x347   : > { %v2235_v0 = vadd.f32 %v2233_v38, %v2231_v37  ;;  %v2225_v49 = vadd.f32 1.0, %v11831_v40  ;;  %v10750_v34 = vcombine.low %v3930_v12, %v3934_v17  ;;  %v10752_v42 = vcombine.low %v3931_v18, %v3935_v19  ;;  %v3950_v37 = vld [vmem:[#allocation14 + $0x420] sm:$0xff]  ;;  %v3947_v38 = vld [vmem:[#allocation14 + $0x408] sm:$0xff] }
 0x348   : > { %11832 = vtanh.f32 %v2234_v47  ;;  %6186 = vmatpush1.bf16.msra.mxu0 %v10710_v51  ;;  %6309 = vmatpush1.bf16.msra.mxu1 %v10712_v33  ;;  %v3943_v51 = vld [vmem:[#allocation14 + $0x3e8] sm:$0xff]  ;;  %v10759_v35 = vcombine.high %v3938_v31, %v3942_v25  ;;  %v10767_v47 = vcombine.high %v3946_v43, %v3950_v37  ;;  %v3974_v3 = vld [vmem:[#allocation14 + $0x4e0] sm:$0xff] }
 0x349   : > { %11834 = vrcp.f32 %v2224_v44  ;;  %6187 = vmatprep.subr.bf16.mxu0 %v10719_v36  ;;  %6310 = vmatprep.subr.bf16.mxu1 %v10721_v39  ;;  %v10761_v36 = vcombine.high %v3939_v32, %v3943_v51  ;;  %v3951_v39 = vld [vmem:[#allocation14 + $0x428] sm:$0xff]  ;;  %v10760_v40 = vcombine.low %v3939_v32, %v3943_v51  ;;  %v3978_v12 = vld [vmem:[#allocation14 + $0x500] sm:$0xff]  ;;  %v10790_v19 = vcombine.low %v3970_v2, %v3974_v3 }
 0x34a   : > { %11836 = vtanh.f32 %v2235_v0  ;;  %v10769_v44 = vcombine.high %v3947_v38, %v3951_v39  ;;  %v3959_v0 = vld [vmem:[#allocation14 + $0x468] sm:$0xff]  ;;  %v3994_v32 = vld [vmem:[#allocation14 + $0x580] sm:$0xff] }
 0x34b   : > { %11838 = vrcp.f32 %v2225_v49  ;;  %v10766_v49 = vcombine.low %v3946_v43, %v3950_v37  ;;  %v3975_v6 = vld [vmem:[#allocation14 + $0x4e8] sm:$0xff]  ;;  %v3998_v51 = vld [vmem:[#allocation14 + $0x5a0] sm:$0xff] }
 0x34c   : > { %6188 = vmatpush1.bf16.msra.mxu0 %v10718_v50  ;;  %6311 = vmatpush1.bf16.msra.mxu1 %v10720_v53  ;;  %v10768_v50 = vcombine.low %v3947_v38, %v3951_v39  ;;  %v3979_v17 = vld [vmem:[#allocation14 + $0x508] sm:$0xff]  ;;  %v10815_v43 = vcombine.high %v3994_v32, %v3998_v51  ;;  %v4002_v38 = vld [vmem:[#allocation14 + $0x5c0] sm:$0xff] }
 0x34d   : > { %6189 = vmatprep.subr.bf16.mxu0 %v10727_v54  ;;  %6312 = vmatprep.subr.bf16.mxu1 %v10729_v55  ;;  %v10775_v54 = vcombine.high %v3954_v48, %v3958_v45  ;;  %v10777_v55 = vcombine.high %v3955_v46, %v3959_v0  ;;  %v3983_v18 = vld [vmem:[#allocation14 + $0x528] sm:$0xff]  ;;  %v4006_v39 = vld [vmem:[#allocation14 + $0x5e0] sm:$0xff] }
 0x34e   : > { %v10800_v31 = vcombine.low %v3979_v17, %v3983_v18 }
 0x350   : > { %6190 = vmatpush1.bf16.msra.mxu0 %v10726_v59  ;;  %6313 = vmatpush1.bf16.msra.mxu1 %v10728_v61  ;;  %v10774_v59 = vcombine.low %v3954_v48, %v3958_v45  ;;  %v10776_v61 = vcombine.low %v3955_v46, %v3959_v0  ;;  %v10823_v48 = vcombine.high %v4002_v38, %v4006_v39  ;;  %v4010_v46 = vld [vmem:[#allocation14 + $0x600] sm:$0xff] }
 0x351   : > { %6191 = vmatprep.subr.bf16.mxu0 %v10735_v62  ;;  %6314 = vmatprep.subr.bf16.mxu1 %v10737_v63  ;;  %v10783_v62 = vcombine.high %v3962_v56, %v3966_v60  ;;  %v10785_v63 = vcombine.high %v3963_v57, %v3967_v58  ;;  %v4014_v0 = vld [vmem:[#allocation14 + $0x620] sm:$0xff] }
 0x352   : > { %v11833_v13 = vpop.eup %11832 }
 0x353   : > { %v11835_v52 = vpop.eup %11834 }
 0x354   : > { %v11837_v21 = vpop.eup %11836  ;;  %v2238_v22 = vmul.f32 %v11835_v52, %v11833_v13  ;;  %6192 = vmatpush1.bf16.msra.mxu0 %v10734_v7  ;;  %6315 = vmatpush1.bf16.msra.mxu1 %v10736_v8  ;;  %v10782_v7 = vcombine.low %v3962_v56, %v3966_v60  ;;  %v10784_v8 = vcombine.low %v3963_v57, %v3967_v58  ;;  %v3982_v13 = vld [vmem:[#allocation14 + $0x520] sm:$0xff] }
 0x355   : > { %v11839_v27 = vpop.eup %11838  ;;  %6193 = vmatprep.subr.bf16.mxu0 %v10743_v10  ;;  %6316 = vmatprep.subr.bf16.mxu1 %v10745_v11  ;;  %v10791_v10 = vcombine.high %v3970_v2, %v3974_v3  ;;  %v10793_v11 = vcombine.high %v3971_v4, %v3975_v6  ;;  %v10792_v52 = vcombine.low %v3971_v4, %v3975_v6  ;;  %v4018_v57 = vld [vmem:[#allocation14 + $0x640] sm:$0xff] }
 0x356   : > { %v2239_v24 = vmul.f32 %v11839_v27, %v11837_v21  ;;  %v12941_v53 = vpack.c.bf16 %v2238_v22, %v2238_v22  ;;  %v10799_v21 = vcombine.high %v3978_v12, %v3982_v13  ;;  %v10801_v22 = vcombine.high %v3979_v17, %v3983_v18  ;;  %v3987_v27 = vld [vmem:[#allocation14 + $0x548] sm:$0xff]  ;;  %v4022_v58 = vld [vmem:[#allocation14 + $0x660] sm:$0xff] }
 0x357   : > { %v10831_v56 = vcombine.high %v4010_v46, %v4014_v0  ;;  %v10839_v2 = vcombine.high %v4018_v57, %v4022_v58  ;;  %v4026_v4 = vld [vmem:[#allocation14 + $0x680] sm:$0xff] }
 0x358   : > { %v12937_v33 = vpack.c.bf16 %v2239_v24, %v2239_v24  ;;  %6194 = vmatpush1.bf16.msra.mxu0 %v10742_v23  ;;  %6317 = vmatpush1.bf16.msra.mxu1 %v10744_v26  ;;  %v3986_v23 = vld [vmem:[#allocation14 + $0x540] sm:$0xff] }
 0x359   : > { %6195 = vmatprep.subr.bf16.mxu0 %v10751_v28  ;;  %6318 = vmatprep.subr.bf16.mxu1 %v10753_v30  ;;  %v3990_v26 = vld [vmem:[#allocation14 + $0x560] sm:$0xff]  ;;  %v3991_v28 = vld [vmem:[#allocation14 + $0x568] sm:$0xff]  ;;  %v10798_v30 = vcombine.low %v3978_v12, %v3982_v13 }
 0x35a   : > { %6199 = vmatprep.mubr.bf16.mxu0 %v12937_v33  ;;  %6322 = vmatprep.mubr.bf16.mxu1 %v12937_v33  ;;  %v10807_v24 = vcombine.high %v3986_v23, %v3990_v26  ;;  %v10809_v25 = vcombine.high %v3987_v27, %v3991_v28  ;;  %v4030_v6 = vld [vmem:[#allocation14 + $0x6a0] sm:$0xff] }
 0x35b   : > { %v10847_v12 = vcombine.high %v4026_v4, %v4030_v6  ;;  %v4034_v17 = vld [vmem:[#allocation14 + $0x6c0] sm:$0xff] }
 0x35c   : > { %6196 = vmatpush1.bf16.msra.mxu0 %v10750_v34  ;;  %6319 = vmatpush1.bf16.msra.mxu1 %v10752_v42  ;;  %v3995_v34 = vld [vmem:[#allocation14 + $0x588] sm:$0xff]  ;;  %v4038_v18 = vld [vmem:[#allocation14 + $0x6e0] sm:$0xff] }
 0x35d   : > { %6197 = vmatprep.subr.bf16.mxu0 %v10759_v35  ;;  %6320 = vmatprep.subr.bf16.mxu1 %v10761_v36  ;;  %v3999_v42 = vld [vmem:[#allocation14 + $0x5a8] sm:$0xff]  ;;  %v10806_v35 = vcombine.low %v3986_v23, %v3990_v26  ;;  %v10808_v36 = vcombine.low %v3987_v27, %v3991_v28  ;;  %v10855_v23 = vcombine.high %v4034_v17, %v4038_v18  ;;  %v4042_v27 = vld [vmem:[#allocation14 + $0x700] sm:$0xff] }
 0x35e   : > { %v10817_v37 = vcombine.high %v3995_v34, %v3999_v42  ;;  %v4046_v28 = vld [vmem:[#allocation14 + $0x720] sm:$0xff] }
 0x360   : > { %6198 = vmatpush1.bf16.msra.mxu0 %v10758_v41  ;;  %6321 = vmatpush1.bf16.msra.mxu1 %v10760_v40  ;;  %v4003_v41 = vld [vmem:[#allocation14 + $0x5c8] sm:$0xff] }
 0x361   : > { %6208 = vmatprep.subr.bf16.mxu0 %v10767_v47  ;;  %6331 = vmatprep.subr.bf16.mxu1 %v10769_v44  ;;  %v4007_v40 = vld [vmem:[#allocation14 + $0x5e8] sm:$0xff]  ;;  %v10814_v47 = vcombine.low %v3994_v32, %v3998_v51  ;;  %v10816_v44 = vcombine.low %v3995_v34, %v3999_v42  ;;  %v10863_v32 = vcombine.high %v4042_v27, %v4046_v28  ;;  %v4050_v34 = vld [vmem:[#allocation14 + $0x740] sm:$0xff] }
 0x362   : > { %v10825_v45 = vcombine.high %v4003_v41, %v4007_v40  ;;  %v4054_v42 = vld [vmem:[#allocation14 + $0x760] sm:$0xff] }
 0x363   : > { %6200 = vmatmul.mubr.bf16.vlgmr.msra.gmra.mrb[16].mxu0 %v12941_v53  ;;  %6323 = vmatmul.mubr.bf16.vlgmr.msra.gmra.mrb[16].mxu1 %v12941_v53 }
 0x364   : > { %6209 = vmatpush1.bf16.msra.mxu0 %v10766_v49  ;;  %6332 = vmatpush1.bf16.msra.mxu1 %v10768_v50  ;;  %v4011_v49 = vld [vmem:[#allocation14 + $0x608] sm:$0xff] }
 0x365   : > { %6210 = vmatprep.subr.bf16.mxu0 %v10775_v54  ;;  %6333 = vmatprep.subr.bf16.mxu1 %v10777_v55  ;;  %v4015_v50 = vld [vmem:[#allocation14 + $0x628] sm:$0xff]  ;;  %v10822_v54 = vcombine.low %v4002_v38, %v4006_v39  ;;  %v10824_v55 = vcombine.low %v4003_v41, %v4007_v40  ;;  %v10871_v38 = vcombine.high %v4050_v34, %v4054_v42  ;;  %v4058_v41 = vld [vmem:[#allocation14 + $0x780] sm:$0xff] }
 0x366   : > { %v10833_v60 = vcombine.high %v4011_v49, %v4015_v50  ;;  %v4062_v40 = vld [vmem:[#allocation14 + $0x7a0] sm:$0xff] }
 0x368   : > { %6211 = vmatpush1.bf16.msra.mxu0 %v10774_v59  ;;  %6334 = vmatpush1.bf16.msra.mxu1 %v10776_v61  ;;  %v4019_v59 = vld [vmem:[#allocation14 + $0x648] sm:$0xff] }
 0x369   : > { %6212 = vmatprep.subr.bf16.mxu0 %v10783_v62  ;;  %6335 = vmatprep.subr.bf16.mxu1 %v10785_v63  ;;  %v4023_v61 = vld [vmem:[#allocation14 + $0x668] sm:$0xff]  ;;  %v10830_v62 = vcombine.low %v4010_v46, %v4014_v0  ;;  %v10832_v63 = vcombine.low %v4011_v49, %v4015_v50  ;;  %v10879_v46 = vcombine.high %v4058_v41, %v4062_v40  ;;  %v4066_v49 = vld [vmem:[#allocation14 + $0x7c0] sm:$0xff] }
 0x36a   : > { %v10841_v3 = vcombine.high %v4019_v59, %v4023_v61  ;;  %v4070_v50 = vld [vmem:[#allocation14 + $0x7e0] sm:$0xff] }
 0x36c   : > { %6213 = vmatpush1.bf16.msra.mxu0 %v10782_v7  ;;  %6336 = vmatpush1.bf16.msra.mxu1 %v10784_v8  ;;  %v4027_v7 = vld [vmem:[#allocation14 + $0x688] sm:$0xff] }
 0x36d   : > { %6214 = vmatprep.subr.bf16.mxu0 %v10791_v10  ;;  %6337 = vmatprep.subr.bf16.mxu1 %v10793_v11  ;;  %v4031_v8 = vld [vmem:[#allocation14 + $0x6a8] sm:$0xff]  ;;  %v10838_v10 = vcombine.low %v4018_v57, %v4022_v58  ;;  %v10840_v11 = vcombine.low %v4019_v59, %v4023_v61  ;;  %v12945_v59 = vld [vmem:[#allocation14 + $0x800] sm:$0xff] }
 0x36e   : > { %v10849_v13 = vcombine.high %v4027_v7, %v4031_v8  ;;  %v12947_v61 = vld [vmem:[#allocation14 + $0x820] sm:$0xff] }
 0x370   : > { %6215 = vmatpush1.bf16.msra.mxu0 %v10790_v19  ;;  %6338 = vmatpush1.bf16.msra.mxu1 %v10792_v52  ;;  %v4035_v19 = vld [vmem:[#allocation14 + $0x6c8] sm:$0xff] }
 0x371   : > { %6216 = vmatprep.subr.bf16.mxu0 %v10799_v21  ;;  %6339 = vmatprep.subr.bf16.mxu1 %v10801_v22  ;;  %v4039_v52 = vld [vmem:[#allocation14 + $0x6e8] sm:$0xff]  ;;  %v10846_v21 = vcombine.low %v4026_v4, %v4030_v6  ;;  %v10848_v22 = vcombine.low %v4027_v7, %v4031_v8  ;;  %v10887_v6 = vcombine.high %v4066_v49, %v4070_v50 }
 0x372   : > { %v10857_v26 = vcombine.high %v4035_v19, %v4039_v52  ;;  %v12951_v7 = vld [vmem:[#allocation14 + $0x828] sm:$0xff] }
 0x374   : > { %6217 = vmatpush1.bf16.msra.mxu0 %v10798_v30  ;;  %6340 = vmatpush1.bf16.msra.mxu1 %v10800_v31  ;;  %v4043_v30 = vld [vmem:[#allocation14 + $0x708] sm:$0xff] }
 0x375   : > { %6218 = vmatprep.subr.bf16.mxu0 %v10807_v24  ;;  %6341 = vmatprep.subr.bf16.mxu1 %v10809_v25  ;;  %v4047_v31 = vld [vmem:[#allocation14 + $0x728] sm:$0xff]  ;;  %v10854_v24 = vcombine.low %v4034_v17, %v4038_v18  ;;  %v10856_v25 = vcombine.low %v4035_v19, %v4039_v52  ;;  %v10886_v17 = vcombine.low %v4066_v49, %v4070_v50 }
 0x376   : > { %v10865_v51 = vcombine.high %v4043_v30, %v4047_v31  ;;  %v10895_v19 = vcombine.high %v12945_v59, %v12947_v61 }
 0x378   : > { %6219 = vmatpush1.bf16.msra.mxu0 %v10806_v35  ;;  %6342 = vmatpush1.bf16.msra.mxu1 %v10808_v36  ;;  %v4051_v35 = vld [vmem:[#allocation14 + $0x748] sm:$0xff] }
 0x379   : > { %6220 = vmatprep.subr.bf16.mxu0 %v10815_v43  ;;  %6343 = vmatprep.subr.bf16.mxu1 %v10817_v37  ;;  %v4055_v36 = vld [vmem:[#allocation14 + $0x768] sm:$0xff]  ;;  %v10862_v43 = vcombine.low %v4042_v27, %v4046_v28  ;;  %v10864_v37 = vcombine.low %v4043_v30, %v4047_v31 }
 0x37a   : > { %v10873_v39 = vcombine.high %v4051_v35, %v4055_v36 }
 0x37c   : > { %6221 = vmatpush1.bf16.msra.mxu0 %v10814_v47  ;;  %6344 = vmatpush1.bf16.msra.mxu1 %v10816_v44  ;;  %v4059_v47 = vld [vmem:[#allocation14 + $0x788] sm:$0xff] }
 0x37d   : > { %6222 = vmatprep.subr.bf16.mxu0 %v10823_v48  ;;  %6345 = vmatprep.subr.bf16.mxu1 %v10825_v45  ;;  %v4063_v44 = vld [vmem:[#allocation14 + $0x7a8] sm:$0xff]  ;;  %v10870_v48 = vcombine.low %v4050_v34, %v4054_v42  ;;  %v10872_v45 = vcombine.low %v4051_v35, %v4055_v36 }
 0x37e   : > { %v10881_v0 = vcombine.high %v4059_v47, %v4063_v44  ;;  %v10880_v4 = vcombine.low %v4059_v47, %v4063_v44 }
 0x380   : > { %6223 = vmatpush1.bf16.msra.mxu0 %v10822_v54  ;;  %6346 = vmatpush1.bf16.msra.mxu1 %v10824_v55 }
 0x381   : > { %6224 = vmatprep.subr.bf16.mxu0 %v10831_v56  ;;  %6347 = vmatprep.subr.bf16.mxu1 %v10833_v60  ;;  %v4067_v56 = vld [vmem:[#allocation14 + $0x7c8] sm:$0xff] }
 0x382   : > { %v4071_v60 = vld [vmem:[#allocation14 + $0x7e8] sm:$0xff] }
 0x383   : > { %v10888_v18 = vcombine.low %v4067_v56, %v4071_v60 }
 0x384   : > { %6225 = vmatpush1.bf16.msra.mxu0 %v10830_v62  ;;  %6348 = vmatpush1.bf16.msra.mxu1 %v10832_v63  ;;  %v12949_v62 = vld [vmem:[#allocation14 + $0x808] sm:$0xff] }
 0x385   : > { %6226 = vmatprep.subr.bf16.mxu0 %v10839_v2  ;;  %6349 = vmatprep.subr.bf16.mxu1 %v10841_v3  ;;  %v10878_v3 = vcombine.low %v4058_v41, %v4062_v40  ;;  %v10897_v52 = vcombine.high %v12949_v62, %v12951_v7 }
 0x388   : > { %6227 = vmatpush1.bf16.msra.mxu0 %v10838_v10  ;;  %6350 = vmatpush1.bf16.msra.mxu1 %v10840_v11  ;;  %v10889_v11 = vcombine.high %v4067_v56, %v4071_v60 }
 0x389   : > { %6228 = vmatprep.subr.bf16.mxu0 %v10847_v12  ;;  %6351 = vmatprep.subr.bf16.mxu1 %v10849_v13  ;;  %v10894_v12 = vcombine.low %v12945_v59, %v12947_v61  ;;  %v10896_v13 = vcombine.low %v12949_v62, %v12951_v7 }
 0x38c   : > { %6229 = vmatpush1.bf16.msra.mxu0 %v10846_v21  ;;  %6352 = vmatpush1.bf16.msra.mxu1 %v10848_v22  ;;  %v2434_v21 = vld [vmem:[#allocation16 + $0x8] sm:$0xff] }
 0x38d   : > { %6230 = vmatprep.subr.bf16.mxu0 %v10855_v23  ;;  %6353 = vmatprep.subr.bf16.mxu1 %v10857_v26  ;;  %v2441_v22 = vrot.slane %v2434_v21, %v12890_v29  ;;  %v2449_v23 = vrot.slane %v2434_v21, %v12895_v1  ;;  %v2445_v26 = vrot.slane %v2434_v21, %v12898_v5 }
 0x38e   : > { %v2453_v27 = vrot.slane %v2434_v21, %v12901_v9  ;;  %v2457_v41 = vrot.slane %v2434_v21, %v12918_v14  ;;  %v2465_v40 = vrot.slane %v2434_v21, %v12921_v15  ;;  %v2461_v44 = vrot.slane %v2434_v21, %v12924_v16 }
 0x390   : > { %6231 = vmatpush1.bf16.msra.mxu0 %v10854_v24  ;;  %6354 = vmatpush1.bf16.msra.mxu1 %v10856_v25 }
 0x391   : > { %6232 = vmatprep.subr.bf16.mxu0 %v10863_v32  ;;  %6355 = vmatprep.subr.bf16.mxu1 %v10865_v51 }
 0x394   : > { %6233 = vmatpush1.bf16.msra.mxu0 %v10862_v43  ;;  %6356 = vmatpush1.bf16.msra.mxu1 %v10864_v37 }
 0x395   : > { %6234 = vmatprep.subr.bf16.mxu0 %v10871_v38  ;;  %6357 = vmatprep.subr.bf16.mxu1 %v10873_v39 }
 0x396   : > { %v3513_v54 = vpop.f32.mrb[8].mxu0  ;;  %v3595_v55 = vpop.f32.mrb[8].mxu1 }
 0x397   : > { %v3515_v57 = vpop.f32.mrb[9].mxu0  ;;  %v3597_v58 = vpop.f32.mrb[9].mxu1  ;;  %v11508_v28 = vadd.f32 %v3513_v54, %v2441_v22  ;;  %v11510_v30 = vadd.f32 %v3595_v55, %v2449_v23 }
 0x398   : > { %v3517_v63 = vpop.f32.mrb[10].mxu0  ;;  %v3599_v2 = vpop.f32.mrb[10].mxu1  ;;  %6235 = vmatpush1.bf16.msra.mxu0 %v10870_v48  ;;  %6358 = vmatpush1.bf16.msra.mxu1 %v10872_v45  ;;  %v11509_v31 = vadd.f32 %v3515_v57, %v2445_v26  ;;  %v11511_v24 = vadd.f32 %v3597_v58, %v2453_v27  ;;  %v2469_v48 = vrot.slane %v2434_v21, %v12927_v20 }
 0x399   : > { %v3518_v8 = vpop.f32.mrb[11].mxu0  ;;  %v3600_v10 = vpop.f32.mrb[11].mxu1  ;;  %6236 = vmatprep.subr.bf16.mxu0 %v10879_v46  ;;  %6359 = vmatprep.subr.bf16.mxu1 %v10881_v0  ;;  %v10632_v25 = vmul.f32 -1.442695, %v11508_v28  ;;  %v10634_v32 = vmul.f32 -1.442695, %v11510_v30 }
 0x39a   : > { %v10633_v51 = vmul.f32 -1.442695, %v11509_v31  ;;  %v10635_v34 = vmul.f32 -1.442695, %v11511_v24  ;;  %v662_v10 = vld [vmem:[#allocation11 + $0x10] sm:$0xff] }
 0x39b   : > { %11840 = vpow2.f32 %v10632_v25 }
 0x39c   : > { %6237 = vmatpush1.bf16.msra.mxu0 %v10878_v3  ;;  %6360 = vmatpush1.bf16.msra.mxu1 %v10880_v4  ;;  %11842 = vpow2.f32 %v10634_v32 }
 0x39d   : > { %6238 = vmatprep.subr.bf16.mxu0 %v10887_v6  ;;  %6361 = vmatprep.subr.bf16.mxu1 %v10889_v11  ;;  %11844 = vpow2.f32 %v10633_v51 }
 0x39e   : > { %11846 = vpow2.f32 %v10635_v34 }
 0x3a0   : > { %6239 = vmatpush1.bf16.msra.mxu0 %v10886_v17  ;;  %6362 = vmatpush1.bf16.msra.mxu1 %v10888_v18  ;;  %v663_v17 = vld [vmem:[#allocation11 + $0x18] sm:$0xff] }
 0x3a1   : > { %6249 = vmatprep.subr.bf16.mxu0 %v10895_v19  ;;  %6372 = vmatprep.subr.bf16.mxu1 %v10897_v52 }
 0x3a5   : > { %v11841_v42 = vpop.eup %11840 }
 0x3a6   : > { %v11843_v35 = vpop.eup %11842  ;;  %v3772_v37 = vadd.f32 1.0, %v11841_v42 }
 0x3a7   : > { %v11845_v36 = vpop.eup %11844  ;;  %v3784_v38 = vadd.f32 1.0, %v11843_v35  ;;  %v4082_v35 = vld [vmem:[#allocation14 + $0x840] sm:$0xff] }
 0x3a8   : > { %v11847_v43 = vpop.eup %11846  ;;  %v3773_v39 = vadd.f32 1.0, %v11845_v36  ;;  %11848 = vrcp.f32 %v3772_v37  ;;  %v4083_v37 = vld [vmem:[#allocation14 + $0x848] sm:$0xff] }
 0x3a9   : > { %v3785_v47 = vadd.f32 1.0, %v11847_v43  ;;  %11850 = vrcp.f32 %v3784_v38  ;;  %v4086_v43 = vld [vmem:[#allocation14 + $0x860] sm:$0xff]  ;;  %v4087_v38 = vld [vmem:[#allocation14 + $0x868] sm:$0xff] }
 0x3aa   : > { %11852 = vrcp.f32 %v3773_v39  ;;  %v657_v39 = vld [vmem:[#allocation10 + $0x28] sm:$0xff] }
 0x3ab   : > { %11854 = vrcp.f32 %v3785_v47  ;;  %v10903_v47 = vcombine.high %v4082_v35, %v4086_v43 }
 0x3b2   : > { %v11849_v4 = vpop.eup %11848 }
 0x3b3   : > { %v11851_v6 = vpop.eup %11850 }
 0x3b4   : > { %v11853_v8 = vpop.eup %11852  ;;  %v3804_v52 = vmul.f32 %v11851_v6, %v662_v10 }
 0x3b5   : > { %v11855_v11 = vpop.eup %11854 }
 0x3b6   : > { %v3805_v23 = vmul.f32 %v11855_v11, %v663_v17  ;;  %v4114_v11 = vld [vmem:[#allocation14 + $0x940] sm:$0xff] }
 0x3b7   : > { %v4118_v17 = vld [vmem:[#allocation14 + $0x960] sm:$0xff] }
 0x3f6   : > { %v3677_v45 = vpop.f32.mrb[12].mxu0  ;;  %v3759_v46 = vpop.f32.mrb[12].mxu1 }
 0x3f7   : > { %v11512_v0 = vadd.f32 %v3677_v45, %v2457_v41  ;;  %v11514_v49 = vadd.f32 %v3759_v46, %v2465_v40  ;;  %v3679_v50 = vpop.f32.mrb[13].mxu0  ;;  %v3761_v54 = vpop.f32.mrb[13].mxu1  ;;  %v4094_v45 = vld [vmem:[#allocation14 + $0x8a0] sm:$0xff]  ;;  %v4091_v46 = vld [vmem:[#allocation14 + $0x888] sm:$0xff] }
 0x3f8   : > { %v11513_v55 = vadd.f32 %v3679_v50, %v2461_v44  ;;  %v11515_v56 = vadd.f32 %v3761_v54, %v2469_v48  ;;  %v3681_v60 = vpop.f32.mrb[14].mxu0  ;;  %v3763_v57 = vpop.f32.mrb[14].mxu1  ;;  %v10905_v44 = vcombine.high %v4083_v37, %v4087_v38  ;;  %v4090_v48 = vld [vmem:[#allocation14 + $0x880] sm:$0xff]  ;;  %v10902_v50 = vcombine.low %v4082_v35, %v4086_v43  ;;  %v4135_v35 = vld [vmem:[#allocation14 + $0x9e8] sm:$0xff] }
 0x3f9   : > { %11856 = vtanh.f32 %v11512_v0  ;;  %v10636_v58 = vmul.f32 -1.442695, %v11514_v49  ;;  %v3682_v63 = vpop.f32.mrb[15].mxu0  ;;  %v3764_v2 = vpop.f32.mrb[15].mxu1  ;;  %v4095_v0 = vld [vmem:[#allocation14 + $0x8a8] sm:$0xff]  ;;  %v12975_v49 = vpack.c.bf16 %v657_v39, %v657_v39  ;;  %v10904_v54 = vcombine.low %v4083_v37, %v4087_v38  ;;  %v4098_v60 = vld [vmem:[#allocation14 + $0x8c0] sm:$0xff] }
 0x3fa   : > { %11858 = vtanh.f32 %v11513_v55  ;;  %v10637_v3 = vmul.f32 -1.442695, %v11515_v56  ;;  %v10911_v55 = vcombine.high %v4090_v48, %v4094_v45  ;;  %v10913_v56 = vcombine.high %v4091_v46, %v4095_v0  ;;  %v4102_v57 = vld [vmem:[#allocation14 + $0x8e0] sm:$0xff]  ;;  %v4103_v63 = vld [vmem:[#allocation14 + $0x8e8] sm:$0xff] }
 0x3fb   : > { %11860 = vpow2.f32 %v10636_v58  ;;  %v4099_v58 = vld [vmem:[#allocation14 + $0x8c8] sm:$0xff]  ;;  %v10910_v59 = vcombine.low %v4090_v48, %v4094_v45  ;;  %v10912_v61 = vcombine.low %v4091_v46, %v4095_v0  ;;  %v10919_v62 = vcombine.high %v4098_v60, %v4102_v57  ;;  %v4138_v39 = vld [vmem:[#allocation14 + $0xa00] sm:$0xff] }
 0x3fc   : > { %11862 = vpow2.f32 %v10637_v3  ;;  %v10921_v7 = vcombine.high %v4099_v58, %v4103_v63  ;;  %v4107_v2 = vld [vmem:[#allocation14 + $0x908] sm:$0xff]  ;;  %v10920_v6 = vcombine.low %v4099_v58, %v4103_v63 }
 0x3fd   : > { %v4111_v3 = vld [vmem:[#allocation14 + $0x928] sm:$0xff] }
 0x3fe   : > { %v10929_v10 = vcombine.high %v4107_v2, %v4111_v3  ;;  %v4143_v48 = vld [vmem:[#allocation14 + $0xa28] sm:$0xff] }
 0x403   : > { %v11857_v18 = vpop.eup %11856 }
 0x404   : > { %v11859_v19 = vpop.eup %11858  ;;  %v3806_v21 = vmul.f32 %v11857_v18, %v11849_v4  ;;  %v10918_v4 = vcombine.low %v4098_v60, %v4102_v57  ;;  %v4115_v18 = vld [vmem:[#allocation14 + $0x948] sm:$0xff] }
 0x405   : > { %v11861_v22 = vpop.eup %11860  ;;  %v3807_v26 = vmul.f32 %v11859_v19, %v11853_v8  ;;  %v4119_v19 = vld [vmem:[#allocation14 + $0x968] sm:$0xff] }
 0x406   : > { %v11863_v27 = vpop.eup %11862  ;;  %v3808_v28 = vadd.f32 %v3806_v21, %v3804_v52  ;;  %v3798_v30 = vadd.f32 1.0, %v11861_v22  ;;  %v10928_v21 = vcombine.low %v4107_v2, %v4111_v3  ;;  %v10935_v22 = vcombine.high %v4114_v11, %v4118_v17  ;;  %v4151_v60 = vld [vmem:[#allocation14 + $0xa68] sm:$0xff] }
 0x407   : > { %v3809_v31 = vadd.f32 %v3807_v26, %v3805_v23  ;;  %v3799_v24 = vadd.f32 1.0, %v11863_v27  ;;  %v10937_v23 = vcombine.high %v4115_v18, %v4119_v19  ;;  %v4122_v26 = vld [vmem:[#allocation14 + $0x980] sm:$0xff] }
 0x408   : > { %11864 = vtanh.f32 %v3808_v28  ;;  %v4126_v27 = vld [vmem:[#allocation14 + $0x9a0] sm:$0xff]  ;;  %v4123_v28 = vld [vmem:[#allocation14 + $0x988] sm:$0xff] }
 0x409   : > { %11866 = vrcp.f32 %v3798_v30  ;;  %v4127_v30 = vld [vmem:[#allocation14 + $0x9a8] sm:$0xff] }
 0x40a   : > { %11868 = vtanh.f32 %v3809_v31  ;;  %v10934_v31 = vcombine.low %v4114_v11, %v4118_v17  ;;  %v10944_v43 = vcombine.low %v4123_v28, %v4127_v30  ;;  %v4167_v11 = vld [vmem:[#allocation14 + $0xae8] sm:$0xff] }
 0x40b   : > { %11870 = vrcp.f32 %v3799_v24  ;;  %v10936_v24 = vcombine.low %v4115_v18, %v4119_v19 }
 0x412   : > { %v11865_v25 = vpop.eup %11864 }
 0x413   : > { %v11867_v32 = vpop.eup %11866 }
 0x414   : > { %v11869_v51 = vpop.eup %11868  ;;  %v3812_v34 = vmul.f32 %v11867_v32, %v11865_v25  ;;  %v10943_v25 = vcombine.high %v4122_v26, %v4126_v27  ;;  %v10945_v32 = vcombine.high %v4123_v28, %v4127_v30 }
 0x415   : > { %v11871_v42 = vpop.eup %11870 }
 0x416   : > { %v3813_v36 = vmul.f32 %v11871_v42, %v11869_v51  ;;  %v12971_v40 = vpack.c.bf16 %v3812_v34, %v3812_v34  ;;  %v4130_v51 = vld [vmem:[#allocation14 + $0x9c0] sm:$0xff]  ;;  %v4131_v42 = vld [vmem:[#allocation14 + $0x9c8] sm:$0xff] }
 0x417   : > { %v4134_v34 = vld [vmem:[#allocation14 + $0x9e0] sm:$0xff]  ;;  %v10953_v38 = vcombine.high %v4131_v42, %v4135_v35  ;;  %v10952_v46 = vcombine.low %v4131_v42, %v4135_v35 }
 0x418   : > { %v12969_v41 = vpack.c.bf16 %v3813_v36, %v3813_v36  ;;  %v10942_v36 = vcombine.low %v4122_v26, %v4126_v27  ;;  %v10951_v37 = vcombine.high %v4130_v51, %v4134_v34  ;;  %v10950_v45 = vcombine.low %v4130_v51, %v4134_v34  ;;  %v4175_v26 = vld [vmem:[#allocation14 + $0xb28] sm:$0xff] }
 0x419   : > { %v4183_v51 = vld [vmem:[#allocation14 + $0xb68] sm:$0xff] }
 0x41a   : > { %6240 = vmatprep.mubr.bf16.mxu0 %v12969_v41  ;;  %6363 = vmatprep.mubr.bf16.mxu1 %v12969_v41 }
 0x41b   : > { %6241 = vmatmul.mubr.bf16.vlgmr.msra.gmra.mrb[16].mxu0 %v12971_v40  ;;  %6364 = vmatmul.mubr.bf16.vlgmr.msra.gmra.mrb[16].mxu1 %v12971_v40 }
 0x41c   : > { %6250 = vmatpush1.bf16.msra.mxu0 %v10894_v12  ;;  %6373 = vmatpush1.bf16.msra.mxu1 %v10896_v13  ;;  %v4106_v12 = vld [vmem:[#allocation14 + $0x900] sm:$0xff] }
 0x41d   : > { %6251 = vmatprep.subr.bf16.mxu0 %v10903_v47  ;;  %6374 = vmatprep.subr.bf16.mxu1 %v10905_v44  ;;  %v4110_v13 = vld [vmem:[#allocation14 + $0x920] sm:$0xff]  ;;  %v4139_v44 = vld [vmem:[#allocation14 + $0xa08] sm:$0xff] }
 0x41e   : > { %6281 = vmatprep.mubr.bf16.mxu0 %v12975_v49  ;;  %6404 = vmatprep.mubr.bf16.mxu1 %v12975_v49  ;;  %v10927_v8 = vcombine.high %v4106_v12, %v4110_v13  ;;  %v10926_v52 = vcombine.low %v4106_v12, %v4110_v13  ;;  %v4142_v47 = vld [vmem:[#allocation14 + $0xa20] sm:$0xff]  ;;  %v10960_v58 = vcombine.low %v4139_v44, %v4143_v48  ;;  %v4159_v12 = vld [vmem:[#allocation14 + $0xaa8] sm:$0xff] }
 0x41f   : > { %v10959_v0 = vcombine.high %v4138_v39, %v4142_v47  ;;  %v10958_v57 = vcombine.low %v4138_v39, %v4142_v47  ;;  %v4191_v39 = vld [vmem:[#allocation14 + $0xba8] sm:$0xff] }
 0x420   : > { %6252 = vmatpush1.bf16.msra.mxu0 %v10902_v50  ;;  %6375 = vmatpush1.bf16.msra.mxu1 %v10904_v54  ;;  %v10961_v50 = vcombine.high %v4139_v44, %v4143_v48  ;;  %v4146_v54 = vld [vmem:[#allocation14 + $0xa40] sm:$0xff] }
 0x421   : > { %6253 = vmatprep.subr.bf16.mxu0 %v10911_v55  ;;  %6376 = vmatprep.subr.bf16.mxu1 %v10913_v56  ;;  %v4150_v55 = vld [vmem:[#allocation14 + $0xa60] sm:$0xff]  ;;  %v4147_v56 = vld [vmem:[#allocation14 + $0xa48] sm:$0xff] }
 0x422   : > { %v10967_v63 = vcombine.high %v4146_v54, %v4150_v55  ;;  %v10966_v13 = vcombine.low %v4146_v54, %v4150_v55  ;;  %v10968_v2 = vcombine.low %v4147_v56, %v4151_v60  ;;  %v4199_v54 = vld [vmem:[#allocation14 + $0xbe8] sm:$0xff] }
 0x424   : > { %6254 = vmatpush1.bf16.msra.mxu0 %v10910_v59  ;;  %6377 = vmatpush1.bf16.msra.mxu1 %v10912_v61  ;;  %v10969_v59 = vcombine.high %v4147_v56, %v4151_v60  ;;  %v4154_v61 = vld [vmem:[#allocation14 + $0xa80] sm:$0xff] }
 0x425   : > { %6255 = vmatprep.subr.bf16.mxu0 %v10919_v62  ;;  %6378 = vmatprep.subr.bf16.mxu1 %v10921_v7  ;;  %v4158_v62 = vld [vmem:[#allocation14 + $0xaa0] sm:$0xff]  ;;  %v4155_v7 = vld [vmem:[#allocation14 + $0xa88] sm:$0xff] }
 0x426   : > { %v10975_v3 = vcombine.high %v4154_v61, %v4158_v62  ;;  %v10974_v17 = vcombine.low %v4154_v61, %v4158_v62  ;;  %v10976_v18 = vcombine.low %v4155_v7, %v4159_v12  ;;  %v3825_v61 = vld [vmem:[#allocation14 + $0x38] sm:$0xff] }
 0x428   : > { %6256 = vmatpush1.bf16.msra.mxu0 %v10918_v4  ;;  %6379 = vmatpush1.bf16.msra.mxu1 %v10920_v6  ;;  %v10977_v4 = vcombine.high %v4155_v7, %v4159_v12  ;;  %v4162_v6 = vld [vmem:[#allocation14 + $0xac0] sm:$0xff] }
 0x429   : > { %6257 = vmatprep.subr.bf16.mxu0 %v10927_v8  ;;  %6380 = vmatprep.subr.bf16.mxu1 %v10929_v10  ;;  %v4166_v8 = vld [vmem:[#allocation14 + $0xae0] sm:$0xff]  ;;  %v4163_v10 = vld [vmem:[#allocation14 + $0xac8] sm:$0xff] }
 0x42a   : > { %v10983_v19 = vcombine.high %v4162_v6, %v4166_v8  ;;  %v10982_v27 = vcombine.low %v4162_v6, %v4166_v8  ;;  %v10984_v28 = vcombine.low %v4163_v10, %v4167_v11  ;;  %v656_v12 = vld [vmem:[#allocation10 + $0x20] sm:$0xff]  ;;  %v3832_v6 = vld [vmem:[#allocation14 + $0x70] sm:$0xff]  ;;  %v3829_v8 = vld [vmem:[#allocation14 + $0x58] sm:$0xff] }
 0x42c   : > { %6258 = vmatpush1.bf16.msra.mxu0 %v10926_v52  ;;  %6381 = vmatpush1.bf16.msra.mxu1 %v10928_v21  ;;  %v10985_v52 = vcombine.high %v4163_v10, %v4167_v11  ;;  %v4170_v21 = vld [vmem:[#allocation14 + $0xb00] sm:$0xff]  ;;  %v3833_v10 = vld [vmem:[#allocation14 + $0x78] sm:$0xff] }
 0x42d   : > { %6259 = vmatprep.subr.bf16.mxu0 %v10935_v22  ;;  %6382 = vmatprep.subr.bf16.mxu1 %v10937_v23  ;;  %v4174_v22 = vld [vmem:[#allocation14 + $0xb20] sm:$0xff]  ;;  %v4171_v23 = vld [vmem:[#allocation14 + $0xb08] sm:$0xff] }
 0x42e   : > { %v10991_v30 = vcombine.high %v4170_v21, %v4174_v22  ;;  %v10990_v34 = vcombine.low %v4170_v21, %v4174_v22  ;;  %v10992_v42 = vcombine.low %v4171_v23, %v4175_v26  ;;  %v3840_v21 = vld [vmem:[#allocation14 + $0xb0] sm:$0xff]  ;;  %v3837_v22 = vld [vmem:[#allocation14 + $0x98] sm:$0xff] }
 0x430   : > { %6260 = vmatpush1.bf16.msra.mxu0 %v10934_v31  ;;  %6383 = vmatpush1.bf16.msra.mxu1 %v10936_v24  ;;  %v10993_v31 = vcombine.high %v4171_v23, %v4175_v26  ;;  %v4178_v24 = vld [vmem:[#allocation14 + $0xb40] sm:$0xff]  ;;  %v3841_v23 = vld [vmem:[#allocation14 + $0xb8] sm:$0xff] }
 0x431   : > { %6261 = vmatprep.subr.bf16.mxu0 %v10943_v25  ;;  %6384 = vmatprep.subr.bf16.mxu1 %v10945_v32  ;;  %v4182_v25 = vld [vmem:[#allocation14 + $0xb60] sm:$0xff]  ;;  %v4179_v32 = vld [vmem:[#allocation14 + $0xb48] sm:$0xff] }
 0x432   : > { %v10999_v35 = vcombine.high %v4178_v24, %v4182_v25  ;;  %v10998_v47 = vcombine.low %v4178_v24, %v4182_v25  ;;  %v11000_v44 = vcombine.low %v4179_v32, %v4183_v51  ;;  %v3848_v24 = vld [vmem:[#allocation14 + $0xf0] sm:$0xff]  ;;  %v3845_v25 = vld [vmem:[#allocation14 + $0xd8] sm:$0xff] }
 0x434   : > { %6262 = vmatpush1.bf16.msra.mxu0 %v10942_v36  ;;  %6385 = vmatpush1.bf16.msra.mxu1 %v10944_v43  ;;  %v11001_v36 = vcombine.high %v4179_v32, %v4183_v51  ;;  %v4186_v43 = vld [vmem:[#allocation14 + $0xb80] sm:$0xff]  ;;  %v3849_v32 = vld [vmem:[#allocation14 + $0xf8] sm:$0xff] }
 0x435   : > { %6263 = vmatprep.subr.bf16.mxu0 %v10951_v37  ;;  %6386 = vmatprep.subr.bf16.mxu1 %v10953_v38  ;;  %v4190_v37 = vld [vmem:[#allocation14 + $0xba0] sm:$0xff]  ;;  %v4187_v38 = vld [vmem:[#allocation14 + $0xb88] sm:$0xff] }
 0x436   : > { %v11007_v48 = vcombine.high %v4186_v43, %v4190_v37  ;;  %v11006_v55 = vcombine.low %v4186_v43, %v4190_v37  ;;  %v11008_v56 = vcombine.low %v4187_v38, %v4191_v39  ;;  %v3856_v43 = vld [vmem:[#allocation14 + $0x130] sm:$0xff]  ;;  %v3853_v37 = vld [vmem:[#allocation14 + $0x118] sm:$0xff] }
 0x438   : > { %6264 = vmatpush1.bf16.msra.mxu0 %v10950_v45  ;;  %6387 = vmatpush1.bf16.msra.mxu1 %v10952_v46  ;;  %v11009_v45 = vcombine.high %v4187_v38, %v4191_v39  ;;  %v4194_v46 = vld [vmem:[#allocation14 + $0xbc0] sm:$0xff]  ;;  %v3857_v38 = vld [vmem:[#allocation14 + $0x138] sm:$0xff] }
 0x439   : > { %6265 = vmatprep.subr.bf16.mxu0 %v10959_v0  ;;  %6388 = vmatprep.subr.bf16.mxu1 %v10961_v50  ;;  %v4198_v0 = vld [vmem:[#allocation14 + $0xbe0] sm:$0xff]  ;;  %v4195_v50 = vld [vmem:[#allocation14 + $0xbc8] sm:$0xff] }
 0x43a   : > { %v11015_v60 = vcombine.high %v4194_v46, %v4198_v0  ;;  %v11014_v62 = vcombine.low %v4194_v46, %v4198_v0  ;;  %v11016_v7 = vcombine.low %v4195_v50, %v4199_v54  ;;  %v3864_v46 = vld [vmem:[#allocation14 + $0x170] sm:$0xff]  ;;  %v3861_v0 = vld [vmem:[#allocation14 + $0x158] sm:$0xff] }
 0x43c   : > { %6266 = vmatpush1.bf16.msra.mxu0 %v10958_v57  ;;  %6389 = vmatpush1.bf16.msra.mxu1 %v10960_v58  ;;  %v11017_v57 = vcombine.high %v4195_v50, %v4199_v54  ;;  %v3820_v58 = vld [vmem:[#allocation14 + $0x10] sm:$0xff]  ;;  %v3865_v50 = vld [vmem:[#allocation14 + $0x178] sm:$0xff] }
 0x43d   : > { %6267 = vmatprep.subr.bf16.mxu0 %v10967_v63  ;;  %6390 = vmatprep.subr.bf16.mxu1 %v10969_v59  ;;  %v3824_v63 = vld [vmem:[#allocation14 + $0x30] sm:$0xff]  ;;  %v3821_v59 = vld [vmem:[#allocation14 + $0x18] sm:$0xff] }
 0x43e   : > { %v10642_v11 = vcombine.low %v3820_v58, %v3824_v63 }
 0x440   : > { %6268 = vmatpush1.bf16.msra.mxu0 %v10966_v13  ;;  %6391 = vmatpush1.bf16.msra.mxu1 %v10968_v2  ;;  %v10643_v13 = vcombine.high %v3820_v58, %v3824_v63  ;;  %v10645_v2 = vcombine.high %v3821_v59, %v3825_v61  ;;  %v3872_v58 = vld [vmem:[#allocation14 + $0x1b0] sm:$0xff]  ;;  %v3869_v63 = vld [vmem:[#allocation14 + $0x198] sm:$0xff] }
 0x441   : > { %6269 = vmatprep.subr.bf16.mxu0 %v10975_v3  ;;  %6392 = vmatprep.subr.bf16.mxu1 %v10977_v4  ;;  %v3828_v3 = vld [vmem:[#allocation14 + $0x50] sm:$0xff]  ;;  %v12987_v4 = vpack.c.bf16 %v656_v12, %v656_v12 }
 0x442   : > { %v10650_v26 = vcombine.low %v3828_v3, %v3832_v6 }
 0x444   : > { %6270 = vmatpush1.bf16.msra.mxu0 %v10974_v17  ;;  %6393 = vmatpush1.bf16.msra.mxu1 %v10976_v18  ;;  %v10644_v17 = vcombine.low %v3821_v59, %v3825_v61  ;;  %v10651_v18 = vcombine.high %v3828_v3, %v3832_v6  ;;  %v3873_v59 = vld [vmem:[#allocation14 + $0x1b8] sm:$0xff] }
 0x445   : > { %6271 = vmatprep.subr.bf16.mxu0 %v10983_v19  ;;  %6394 = vmatprep.subr.bf16.mxu1 %v10985_v52  ;;  %v10653_v19 = vcombine.high %v3829_v8, %v3833_v10  ;;  %v3836_v52 = vld [vmem:[#allocation14 + $0x90] sm:$0xff]  ;;  %v10693_v12 = vcombine.high %v3869_v63, %v3873_v59  ;;  %v3877_v3 = vld [vmem:[#allocation14 + $0x1d8] sm:$0xff] }
 0x446   : > { %v10658_v51 = vcombine.low %v3836_v52, %v3840_v21  ;;  %v3881_v6 = vld [vmem:[#allocation14 + $0x1f8] sm:$0xff] }
 0x448   : > { %6272 = vmatpush1.bf16.msra.mxu0 %v10982_v27  ;;  %6395 = vmatpush1.bf16.msra.mxu1 %v10984_v28  ;;  %v10652_v27 = vcombine.low %v3829_v8, %v3833_v10  ;;  %v10659_v28 = vcombine.high %v3836_v52, %v3840_v21  ;;  %v10692_v10 = vcombine.low %v3869_v63, %v3873_v59  ;;  %v3885_v52 = vld [vmem:[#allocation14 + $0x218] sm:$0xff] }
 0x449   : > { %6273 = vmatprep.subr.bf16.mxu0 %v10991_v30  ;;  %6396 = vmatprep.subr.bf16.mxu1 %v10993_v31  ;;  %v10661_v30 = vcombine.high %v3837_v22, %v3841_v23  ;;  %v3844_v31 = vld [vmem:[#allocation14 + $0xd0] sm:$0xff]  ;;  %v3889_v21 = vld [vmem:[#allocation14 + $0x238] sm:$0xff] }
 0x44a   : > { %v10666_v39 = vcombine.low %v3844_v31, %v3848_v24 }
 0x44c   : > { %6274 = vmatpush1.bf16.msra.mxu0 %v10990_v34  ;;  %6397 = vmatpush1.bf16.msra.mxu1 %v10992_v42  ;;  %v10660_v34 = vcombine.low %v3837_v22, %v3841_v23  ;;  %v10667_v42 = vcombine.high %v3844_v31, %v3848_v24  ;;  %v10700_v23 = vcombine.low %v3877_v3, %v3881_v6  ;;  %v3893_v31 = vld [vmem:[#allocation14 + $0x258] sm:$0xff] }
 0x44d   : > { %6275 = vmatprep.subr.bf16.mxu0 %v10999_v35  ;;  %6398 = vmatprep.subr.bf16.mxu1 %v11001_v36  ;;  %v10669_v35 = vcombine.high %v3845_v25, %v3849_v32  ;;  %v3852_v36 = vld [vmem:[#allocation14 + $0x110] sm:$0xff]  ;;  %v3897_v24 = vld [vmem:[#allocation14 + $0x278] sm:$0xff] }
 0x44e   : > { %v10674_v54 = vcombine.low %v3852_v36, %v3856_v43 }
 0x450   : > { %6276 = vmatpush1.bf16.msra.mxu0 %v10998_v47  ;;  %6399 = vmatpush1.bf16.msra.mxu1 %v11000_v44  ;;  %v10668_v47 = vcombine.low %v3845_v25, %v3849_v32  ;;  %v10675_v44 = vcombine.high %v3852_v36, %v3856_v43  ;;  %v10708_v32 = vcombine.low %v3885_v52, %v3889_v21  ;;  %v3901_v36 = vld [vmem:[#allocation14 + $0x298] sm:$0xff] }
 0x451   : > { %6277 = vmatprep.subr.bf16.mxu0 %v11007_v48  ;;  %6400 = vmatprep.subr.bf16.mxu1 %v11009_v45  ;;  %v10677_v48 = vcombine.high %v3853_v37, %v3857_v38  ;;  %v3860_v45 = vld [vmem:[#allocation14 + $0x150] sm:$0xff]  ;;  %v3905_v43 = vld [vmem:[#allocation14 + $0x2b8] sm:$0xff] }
 0x452   : > { %v10682_v61 = vcombine.low %v3860_v45, %v3864_v46 }
 0x454   : > { %6278 = vmatpush1.bf16.msra.mxu0 %v11006_v55  ;;  %6401 = vmatpush1.bf16.msra.mxu1 %v11008_v56  ;;  %v10676_v55 = vcombine.low %v3853_v37, %v3857_v38  ;;  %v10683_v56 = vcombine.high %v3860_v45, %v3864_v46  ;;  %v10716_v38 = vcombine.low %v3893_v31, %v3897_v24  ;;  %v3909_v45 = vld [vmem:[#allocation14 + $0x2d8] sm:$0xff] }
 0x455   : > { %6279 = vmatprep.subr.bf16.mxu0 %v11015_v60  ;;  %6402 = vmatprep.subr.bf16.mxu1 %v11017_v57  ;;  %v10685_v60 = vcombine.high %v3861_v0, %v3865_v50  ;;  %v3868_v57 = vld [vmem:[#allocation14 + $0x190] sm:$0xff]  ;;  %v3913_v46 = vld [vmem:[#allocation14 + $0x2f8] sm:$0xff] }
 0x456   : > { %v10690_v8 = vcombine.low %v3868_v57, %v3872_v58  ;;  %v10732_v59 = vcombine.low %v3909_v45, %v3913_v46 }
 0x458   : > { %6280 = vmatpush1.bf16.msra.mxu0 %v11014_v62  ;;  %6403 = vmatpush1.bf16.msra.mxu1 %v11016_v7  ;;  %v10684_v62 = vcombine.low %v3861_v0, %v3865_v50  ;;  %v10691_v7 = vcombine.high %v3868_v57, %v3872_v58  ;;  %v10724_v50 = vcombine.low %v3901_v36, %v3905_v43  ;;  %v3917_v57 = vld [vmem:[#allocation14 + $0x318] sm:$0xff] }
 0x459   : > { %6413 = vmatprep.subr.bf16.mxu0 %v10643_v13  ;;  %6536 = vmatprep.subr.bf16.mxu1 %v10645_v2  ;;  %v3876_v13 = vld [vmem:[#allocation14 + $0x1d0] sm:$0xff]  ;;  %v3921_v58 = vld [vmem:[#allocation14 + $0x338] sm:$0xff] }
 0x45a   : > { %v3880_v2 = vld [vmem:[#allocation14 + $0x1f0] sm:$0xff] }
 0x45b   : > { %6282 = vmatmul.mubr.bf16.vlgmr.msra.gmra.mrb[16].mxu0 %v12987_v4  ;;  %6405 = vmatmul.mubr.bf16.vlgmr.msra.gmra.mrb[16].mxu1 %v12987_v4  ;;  %v10698_v22 = vcombine.low %v3876_v13, %v3880_v2 }
 0x45c   : > { %6414 = vmatpush1.bf16.msra.mxu0 %v10642_v11  ;;  %6445 = vmatprep.mubr.bf16.mxu0 %v12937_v33  ;;  %v10699_v11 = vcombine.high %v3876_v13, %v3880_v2  ;;  %v3925_v13 = vld [vmem:[#allocation14 + $0x358] sm:$0xff] }
 0x45d   : > { %6537 = vmatpush1.bf16.msra.mxu1 %v10644_v17  ;;  %6568 = vmatprep.mubr.bf16.mxu1 %v12937_v33  ;;  %v10701_v17 = vcombine.high %v3877_v3, %v3881_v6  ;;  %v3929_v2 = vld [vmem:[#allocation14 + $0x378] sm:$0xff]  ;;  %v10740_v6 = vcombine.low %v3917_v57, %v3921_v58 }
 0x45e   : > { %6415 = vmatprep.subr.bf16.mxu0 %v10651_v18  ;;  %6538 = vmatprep.subr.bf16.mxu1 %v10653_v19  ;;  %v3884_v18 = vld [vmem:[#allocation14 + $0x210] sm:$0xff] }
 0x45f   : > { %v3888_v19 = vld [vmem:[#allocation14 + $0x230] sm:$0xff] }
 0x460   : > { %6416 = vmatpush1.bf16.msra.mxu0 %v10650_v26  ;;  %v10707_v26 = vcombine.high %v3884_v18, %v3888_v19  ;;  %v10706_v25 = vcombine.low %v3884_v18, %v3888_v19  ;;  %v3933_v18 = vld [vmem:[#allocation14 + $0x398] sm:$0xff] }
 0x461   : > { %6539 = vmatpush1.bf16.msra.mxu1 %v10652_v27  ;;  %6417 = vmatprep.subr.bf16.mxu0 %v10659_v28  ;;  %v10709_v27 = vcombine.high %v3885_v52, %v3889_v21  ;;  %v3892_v28 = vld [vmem:[#allocation14 + $0x250] sm:$0xff]  ;;  %v3937_v19 = vld [vmem:[#allocation14 + $0x3b8] sm:$0xff]  ;;  %v10748_v21 = vcombine.low %v3925_v13, %v3929_v2 }
 0x462   : > { %6540 = vmatprep.subr.bf16.mxu1 %v10661_v30  ;;  %v3896_v30 = vld [vmem:[#allocation14 + $0x270] sm:$0xff] }
 0x463   : > { %v10714_v37 = vcombine.low %v3892_v28, %v3896_v30 }
 0x464   : > { %6418 = vmatpush1.bf16.msra.mxu0 %v10658_v51  ;;  %v10715_v51 = vcombine.high %v3892_v28, %v3896_v30  ;;  %v3941_v28 = vld [vmem:[#allocation14 + $0x3d8] sm:$0xff] }
 0x465   : > { %6541 = vmatpush1.bf16.msra.mxu1 %v10660_v34  ;;  %6419 = vmatprep.subr.bf16.mxu0 %v10667_v42  ;;  %v10717_v34 = vcombine.high %v3893_v31, %v3897_v24  ;;  %v3900_v42 = vld [vmem:[#allocation14 + $0x290] sm:$0xff]  ;;  %v3945_v30 = vld [vmem:[#allocation14 + $0x3f8] sm:$0xff]  ;;  %v10756_v24 = vcombine.low %v3933_v18, %v3937_v19 }
 0x466   : > { %6542 = vmatprep.subr.bf16.mxu1 %v10669_v35  ;;  %v3904_v35 = vld [vmem:[#allocation14 + $0x2b0] sm:$0xff] }
 0x467   : > { %v10722_v0 = vcombine.low %v3900_v42, %v3904_v35 }
 0x468   : > { %6420 = vmatpush1.bf16.msra.mxu0 %v10666_v39  ;;  %v10723_v39 = vcombine.high %v3900_v42, %v3904_v35  ;;  %v3949_v42 = vld [vmem:[#allocation14 + $0x418] sm:$0xff] }
 0x469   : > { %6543 = vmatpush1.bf16.msra.mxu1 %v10668_v47  ;;  %6421 = vmatprep.subr.bf16.mxu0 %v10675_v44  ;;  %v10725_v47 = vcombine.high %v3901_v36, %v3905_v43  ;;  %v3908_v44 = vld [vmem:[#allocation14 + $0x2d0] sm:$0xff]  ;;  %v3953_v35 = vld [vmem:[#allocation14 + $0x438] sm:$0xff]  ;;  %v10764_v43 = vcombine.low %v3941_v28, %v3945_v30 }
 0x46a   : > { %6544 = vmatprep.subr.bf16.mxu1 %v10677_v48  ;;  %v3912_v48 = vld [vmem:[#allocation14 + $0x2f0] sm:$0xff] }
 0x46b   : > { %v10730_v63 = vcombine.low %v3908_v44, %v3912_v48 }
 0x46c   : > { %6422 = vmatpush1.bf16.msra.mxu0 %v10674_v54  ;;  %v10731_v54 = vcombine.high %v3908_v44, %v3912_v48  ;;  %v3957_v48 = vld [vmem:[#allocation14 + $0x458] sm:$0xff] }
 0x46d   : > { %6545 = vmatpush1.bf16.msra.mxu1 %v10676_v55  ;;  %6423 = vmatprep.subr.bf16.mxu0 %v10683_v56  ;;  %v10733_v55 = vcombine.high %v3909_v45, %v3913_v46  ;;  %v3916_v56 = vld [vmem:[#allocation14 + $0x310] sm:$0xff]  ;;  %v3961_v45 = vld [vmem:[#allocation14 + $0x478] sm:$0xff]  ;;  %v10772_v46 = vcombine.low %v3949_v42, %v3953_v35 }
 0x46e   : > { %6546 = vmatprep.subr.bf16.mxu1 %v10685_v60  ;;  %v3920_v60 = vld [vmem:[#allocation14 + $0x330] sm:$0xff] }
 0x46f   : > { %v10738_v3 = vcombine.low %v3916_v56, %v3920_v60 }
 0x470   : > { %6424 = vmatpush1.bf16.msra.mxu0 %v10682_v61  ;;  %v10739_v61 = vcombine.high %v3916_v56, %v3920_v60  ;;  %v3965_v56 = vld [vmem:[#allocation14 + $0x498] sm:$0xff] }
 0x471   : > { %6547 = vmatpush1.bf16.msra.mxu1 %v10684_v62  ;;  %6425 = vmatprep.subr.bf16.mxu0 %v10691_v7  ;;  %v10741_v62 = vcombine.high %v3917_v57, %v3921_v58  ;;  %v3924_v7 = vld [vmem:[#allocation14 + $0x350] sm:$0xff]  ;;  %v3969_v60 = vld [vmem:[#allocation14 + $0x4b8] sm:$0xff]  ;;  %v10780_v58 = vcombine.low %v3957_v48, %v3961_v45 }
 0x472   : > { %6548 = vmatprep.subr.bf16.mxu1 %v10693_v12  ;;  %v3928_v12 = vld [vmem:[#allocation14 + $0x370] sm:$0xff] }
 0x473   : > { %v10746_v52 = vcombine.low %v3924_v7, %v3928_v12 }
 0x474   : > { %6426 = vmatpush1.bf16.msra.mxu0 %v10690_v8  ;;  %v10747_v8 = vcombine.high %v3924_v7, %v3928_v12  ;;  %v3973_v7 = vld [vmem:[#allocation14 + $0x4d8] sm:$0xff] }
 0x475   : > { %6549 = vmatpush1.bf16.msra.mxu1 %v10692_v10  ;;  %6427 = vmatprep.subr.bf16.mxu0 %v10699_v11  ;;  %v10749_v10 = vcombine.high %v3925_v13, %v3929_v2  ;;  %v3932_v11 = vld [vmem:[#allocation14 + $0x390] sm:$0xff]  ;;  %v3977_v12 = vld [vmem:[#allocation14 + $0x4f8] sm:$0xff]  ;;  %v10788_v2 = vcombine.low %v3965_v56, %v3969_v60 }
 0x476   : > { %6550 = vmatprep.subr.bf16.mxu1 %v10701_v17  ;;  %v3936_v17 = vld [vmem:[#allocation14 + $0x3b0] sm:$0xff] }
 0x477   : > { %v10754_v31 = vcombine.low %v3932_v11, %v3936_v17 }
 0x478   : > { %6428 = vmatpush1.bf16.msra.mxu0 %v10698_v22  ;;  %v10755_v22 = vcombine.high %v3932_v11, %v3936_v17  ;;  %v3981_v11 = vld [vmem:[#allocation14 + $0x518] sm:$0xff] }
 0x479   : > { %6551 = vmatpush1.bf16.msra.mxu1 %v10700_v23  ;;  %6429 = vmatprep.subr.bf16.mxu0 %v10707_v26  ;;  %v10757_v23 = vcombine.high %v3933_v18, %v3937_v19  ;;  %v3940_v26 = vld [vmem:[#allocation14 + $0x3d0] sm:$0xff]  ;;  %v3985_v17 = vld [vmem:[#allocation14 + $0x538] sm:$0xff]  ;;  %v10796_v19 = vcombine.low %v3973_v7, %v3977_v12 }
 0x47a   : > { %6552 = vmatprep.subr.bf16.mxu1 %v10709_v27  ;;  %v3944_v27 = vld [vmem:[#allocation14 + $0x3f0] sm:$0xff] }
 0x47b   : > { %v10762_v36 = vcombine.low %v3940_v26, %v3944_v27 }
 0x47c   : > { %6430 = vmatpush1.bf16.msra.mxu0 %v10706_v25  ;;  %v10763_v25 = vcombine.high %v3940_v26, %v3944_v27  ;;  %v3989_v26 = vld [vmem:[#allocation14 + $0x558] sm:$0xff] }
 0x47d   : > { %6553 = vmatpush1.bf16.msra.mxu1 %v10708_v32  ;;  %6431 = vmatprep.subr.bf16.mxu0 %v10715_v51  ;;  %v10765_v32 = vcombine.high %v3941_v28, %v3945_v30  ;;  %v3948_v51 = vld [vmem:[#allocation14 + $0x410] sm:$0xff]  ;;  %v3993_v27 = vld [vmem:[#allocation14 + $0x578] sm:$0xff]  ;;  %v10804_v30 = vcombine.low %v3981_v11, %v3985_v17 }
 0x47e   : > { %6554 = vmatprep.subr.bf16.mxu1 %v10717_v34  ;;  %v3952_v34 = vld [vmem:[#allocation14 + $0x430] sm:$0xff] }
 0x47f   : > { %v10770_v44 = vcombine.low %v3948_v51, %v3952_v34 }
 0x480   : > { %6432 = vmatpush1.bf16.msra.mxu0 %v10714_v37  ;;  %v10771_v37 = vcombine.high %v3948_v51, %v3952_v34  ;;  %v3997_v51 = vld [vmem:[#allocation14 + $0x598] sm:$0xff] }
 0x481   : > { %6555 = vmatpush1.bf16.msra.mxu1 %v10716_v38  ;;  %6433 = vmatprep.subr.bf16.mxu0 %v10723_v39  ;;  %v10773_v38 = vcombine.high %v3949_v42, %v3953_v35  ;;  %v3956_v39 = vld [vmem:[#allocation14 + $0x450] sm:$0xff]  ;;  %v4001_v34 = vld [vmem:[#allocation14 + $0x5b8] sm:$0xff]  ;;  %v10812_v35 = vcombine.low %v3989_v26, %v3993_v27 }
 0x482   : > { %6556 = vmatprep.subr.bf16.mxu1 %v10725_v47  ;;  %v3960_v47 = vld [vmem:[#allocation14 + $0x470] sm:$0xff] }
 0x483   : > { %v10778_v57 = vcombine.low %v3956_v39, %v3960_v47 }
 0x484   : > { %6434 = vmatpush1.bf16.msra.mxu0 %v10722_v0  ;;  %v10779_v0 = vcombine.high %v3956_v39, %v3960_v47  ;;  %v4005_v39 = vld [vmem:[#allocation14 + $0x5d8] sm:$0xff] }
 0x485   : > { %6557 = vmatpush1.bf16.msra.mxu1 %v10724_v50  ;;  %6435 = vmatprep.subr.bf16.mxu0 %v10731_v54  ;;  %v3964_v50 = vld [vmem:[#allocation14 + $0x490] sm:$0xff]  ;;  %v4009_v47 = vld [vmem:[#allocation14 + $0x5f8] sm:$0xff] }
 0x486   : > { %6558 = vmatprep.subr.bf16.mxu1 %v10733_v55  ;;  %v3968_v54 = vld [vmem:[#allocation14 + $0x4b0] sm:$0xff]  ;;  %v10781_v55 = vcombine.high %v3957_v48, %v3961_v45  ;;  %v10820_v48 = vcombine.low %v3997_v51, %v4001_v34 }
 0x487   : > { %v10786_v13 = vcombine.low %v3964_v50, %v3968_v54 }
 0x488   : > { %6436 = vmatpush1.bf16.msra.mxu0 %v10730_v63  ;;  %v10787_v63 = vcombine.high %v3964_v50, %v3968_v54  ;;  %v4016_v50 = vld [vmem:[#allocation14 + $0x630] sm:$0xff]  ;;  %v4013_v54 = vld [vmem:[#allocation14 + $0x618] sm:$0xff] }
 0x489   : > { %6559 = vmatpush1.bf16.msra.mxu1 %v10732_v59  ;;  %6437 = vmatprep.subr.bf16.mxu0 %v10739_v61  ;;  %v10789_v59 = vcombine.high %v3965_v56, %v3969_v60  ;;  %v3972_v61 = vld [vmem:[#allocation14 + $0x4d0] sm:$0xff]  ;;  %v10828_v60 = vcombine.low %v4005_v39, %v4009_v47 }
 0x48a   : > { %6560 = vmatprep.subr.bf16.mxu1 %v10741_v62  ;;  %v3976_v62 = vld [vmem:[#allocation14 + $0x4f0] sm:$0xff] }
 0x48b   : > { %v10794_v18 = vcombine.low %v3972_v61, %v3976_v62 }
 0x48c   : > { %6438 = vmatpush1.bf16.msra.mxu0 %v10738_v3  ;;  %v10795_v3 = vcombine.high %v3972_v61, %v3976_v62  ;;  %v4021_v61 = vld [vmem:[#allocation14 + $0x658] sm:$0xff] }
 0x48d   : > { %6561 = vmatpush1.bf16.msra.mxu1 %v10740_v6  ;;  %6439 = vmatprep.subr.bf16.mxu0 %v10747_v8  ;;  %v10797_v6 = vcombine.high %v3973_v7, %v3977_v12  ;;  %v3980_v8 = vld [vmem:[#allocation14 + $0x510] sm:$0xff]  ;;  %v4025_v62 = vld [vmem:[#allocation14 + $0x678] sm:$0xff] }
 0x48e   : > { %6562 = vmatprep.subr.bf16.mxu1 %v10749_v10  ;;  %v3984_v10 = vld [vmem:[#allocation14 + $0x530] sm:$0xff] }
 0x48f   : > { %v10802_v28 = vcombine.low %v3980_v8, %v3984_v10 }
 0x490   : > { %6440 = vmatpush1.bf16.msra.mxu0 %v10746_v52  ;;  %v10803_v52 = vcombine.high %v3980_v8, %v3984_v10  ;;  %v4029_v8 = vld [vmem:[#allocation14 + $0x698] sm:$0xff] }
 0x491   : > { %6563 = vmatpush1.bf16.msra.mxu1 %v10748_v21  ;;  %6441 = vmatprep.subr.bf16.mxu0 %v10755_v22  ;;  %v10805_v21 = vcombine.high %v3981_v11, %v3985_v17  ;;  %v3988_v22 = vld [vmem:[#allocation14 + $0x550] sm:$0xff]  ;;  %v4033_v10 = vld [vmem:[#allocation14 + $0x6b8] sm:$0xff]  ;;  %v10844_v17 = vcombine.low %v4021_v61, %v4025_v62 }
 0x492   : > { %6564 = vmatprep.subr.bf16.mxu1 %v10757_v23  ;;  %v3992_v23 = vld [vmem:[#allocation14 + $0x570] sm:$0xff] }
 0x493   : > { %v10810_v42 = vcombine.low %v3988_v22, %v3992_v23 }
 0x494   : > { %6442 = vmatpush1.bf16.msra.mxu0 %v10754_v31  ;;  %v10811_v31 = vcombine.high %v3988_v22, %v3992_v23  ;;  %v4037_v22 = vld [vmem:[#allocation14 + $0x6d8] sm:$0xff] }
 0x495   : > { %6565 = vmatpush1.bf16.msra.mxu1 %v10756_v24  ;;  %6443 = vmatprep.subr.bf16.mxu0 %v10763_v25  ;;  %v10813_v24 = vcombine.high %v3989_v26, %v3993_v27  ;;  %v3996_v25 = vld [vmem:[#allocation14 + $0x590] sm:$0xff]  ;;  %v4041_v23 = vld [vmem:[#allocation14 + $0x6f8] sm:$0xff]  ;;  %v10852_v27 = vcombine.low %v4029_v8, %v4033_v10 }
 0x496   : > { %6566 = vmatprep.subr.bf16.mxu1 %v10765_v32  ;;  %v4000_v32 = vld [vmem:[#allocation14 + $0x5b0] sm:$0xff] }
 0x498   : > { %6444 = vmatpush1.bf16.msra.mxu0 %v10762_v36  ;;  %v10819_v36 = vcombine.high %v3996_v25, %v4000_v32 }
 0x499   : > { %6567 = vmatpush1.bf16.msra.mxu1 %v10764_v43  ;;  %6454 = vmatprep.subr.bf16.mxu0 %v10771_v37  ;;  %v10821_v43 = vcombine.high %v3997_v51, %v4001_v34  ;;  %v4004_v37 = vld [vmem:[#allocation14 + $0x5d0] sm:$0xff]  ;;  %v10860_v34 = vcombine.low %v4037_v22, %v4041_v23 }
 0x49a   : > { %6577 = vmatprep.subr.bf16.mxu1 %v10773_v38  ;;  %v4008_v38 = vld [vmem:[#allocation14 + $0x5f0] sm:$0xff] }
 0x49b   : > { %6446 = vmatmul.mubr.bf16.vlgmr.msra.gmra.mrb[20].mxu0 %v12941_v53  ;;  %v10827_v45 = vcombine.high %v4004_v37, %v4008_v38  ;;  %v10826_v56 = vcombine.low %v4004_v37, %v4008_v38  ;;  %v4053_v37 = vld [vmem:[#allocation14 + $0x758] sm:$0xff] }
 0x49c   : > { %6569 = vmatmul.mubr.bf16.vlgmr.msra.gmra.mrb[20].mxu1 %v12941_v53  ;;  %6455 = vmatpush1.bf16.msra.mxu0 %v10770_v44  ;;  %v10818_v44 = vcombine.low %v3996_v25, %v4000_v32  ;;  %v4045_v25 = vld [vmem:[#allocation14 + $0x718] sm:$0xff] }
 0x49d   : > { %6486 = vmatprep.mubr.bf16.mxu0 %v12969_v41  ;;  %6578 = vmatpush1.bf16.msra.mxu1 %v10772_v46  ;;  %v10829_v46 = vcombine.high %v4005_v39, %v4009_v47  ;;  %v4049_v32 = vld [vmem:[#allocation14 + $0x738] sm:$0xff] }
 0x49e   : > { %6609 = vmatprep.mubr.bf16.mxu1 %v12969_v41  ;;  %6456 = vmatprep.subr.bf16.mxu0 %v10779_v0  ;;  %v4012_v0 = vld [vmem:[#allocation14 + $0x610] sm:$0xff]  ;;  %v4057_v38 = vld [vmem:[#allocation14 + $0x778] sm:$0xff]  ;;  %v10868_v47 = vcombine.low %v4045_v25, %v4049_v32 }
 0x49f   : > { %6579 = vmatprep.subr.bf16.mxu1 %v10781_v55  ;;  %v4017_v55 = vld [vmem:[#allocation14 + $0x638] sm:$0xff]  ;;  %v10834_v7 = vcombine.low %v4012_v0, %v4016_v50 }
 0x4a0   : > { %6457 = vmatpush1.bf16.msra.mxu0 %v10778_v57  ;;  %v10835_v57 = vcombine.high %v4012_v0, %v4016_v50  ;;  %v10836_v12 = vcombine.low %v4013_v54, %v4017_v55  ;;  %v4061_v0 = vld [vmem:[#allocation14 + $0x798] sm:$0xff] }
 0x4a1   : > { %6580 = vmatpush1.bf16.msra.mxu1 %v10780_v58  ;;  %6458 = vmatprep.subr.bf16.mxu0 %v10787_v63  ;;  %v10837_v58 = vcombine.high %v4013_v54, %v4017_v55  ;;  %v4020_v63 = vld [vmem:[#allocation14 + $0x650] sm:$0xff]  ;;  %v4065_v50 = vld [vmem:[#allocation14 + $0x7b8] sm:$0xff]  ;;  %v10876_v55 = vcombine.low %v4053_v37, %v4057_v38 }
 0x4a2   : > { %6581 = vmatprep.subr.bf16.mxu1 %v10789_v59  ;;  %v4024_v59 = vld [vmem:[#allocation14 + $0x670] sm:$0xff] }
 0x4a3   : > { %v10842_v11 = vcombine.low %v4020_v63, %v4024_v59 }
 0x4a4   : > { %6459 = vmatpush1.bf16.msra.mxu0 %v10786_v13  ;;  %v10843_v13 = vcombine.high %v4020_v63, %v4024_v59  ;;  %v4069_v63 = vld [vmem:[#allocation14 + $0x7d8] sm:$0xff] }
 0x4a5   : > { %6582 = vmatpush1.bf16.msra.mxu1 %v10788_v2  ;;  %6460 = vmatprep.subr.bf16.mxu0 %v10795_v3  ;;  %v10845_v2 = vcombine.high %v4021_v61, %v4025_v62  ;;  %v4028_v3 = vld [vmem:[#allocation14 + $0x690] sm:$0xff]  ;;  %v4073_v59 = vld [vmem:[#allocation14 + $0x7f8] sm:$0xff]  ;;  %v10884_v62 = vcombine.low %v4061_v0, %v4065_v50 }
 0x4a6   : > { %6583 = vmatprep.subr.bf16.mxu1 %v10797_v6  ;;  %v4032_v6 = vld [vmem:[#allocation14 + $0x6b0] sm:$0xff] }
 0x4a7   : > { %v10850_v26 = vcombine.low %v4028_v3, %v4032_v6 }
 0x4a8   : > { %6461 = vmatpush1.bf16.msra.mxu0 %v10794_v18  ;;  %v10851_v18 = vcombine.high %v4028_v3, %v4032_v6  ;;  %v4077_v3 = vld [vmem:[#allocation14 + $0x818] sm:$0xff] }
 0x4a9   : > { %6584 = vmatpush1.bf16.msra.mxu1 %v10796_v19  ;;  %6462 = vmatprep.subr.bf16.mxu0 %v10803_v52  ;;  %v10853_v19 = vcombine.high %v4029_v8, %v4033_v10  ;;  %v4036_v52 = vld [vmem:[#allocation14 + $0x6d0] sm:$0xff]  ;;  %v4081_v6 = vld [vmem:[#allocation14 + $0x838] sm:$0xff]  ;;  %v10892_v10 = vcombine.low %v4069_v63, %v4073_v59 }
 0x4aa   : > { %6585 = vmatprep.subr.bf16.mxu1 %v10805_v21  ;;  %v4040_v21 = vld [vmem:[#allocation14 + $0x6f0] sm:$0xff] }
 0x4ab   : > { %v10858_v51 = vcombine.low %v4036_v52, %v4040_v21 }
 0x4ac   : > { %6463 = vmatpush1.bf16.msra.mxu0 %v10802_v28  ;;  %v10859_v28 = vcombine.high %v4036_v52, %v4040_v21  ;;  %v4085_v52 = vld [vmem:[#allocation14 + $0x858] sm:$0xff] }
 0x4ad   : > { %6586 = vmatpush1.bf16.msra.mxu1 %v10804_v30  ;;  %6464 = vmatprep.subr.bf16.mxu0 %v10811_v31  ;;  %v10861_v30 = vcombine.high %v4037_v22, %v4041_v23  ;;  %v4044_v31 = vld [vmem:[#allocation14 + $0x710] sm:$0xff]  ;;  %v4089_v21 = vld [vmem:[#allocation14 + $0x878] sm:$0xff]  ;;  %v10900_v23 = vcombine.low %v4077_v3, %v4081_v6 }
 0x4ae   : > { %6587 = vmatprep.subr.bf16.mxu1 %v10813_v24  ;;  %v4048_v24 = vld [vmem:[#allocation14 + $0x730] sm:$0xff] }
 0x4af   : > { %v10866_v39 = vcombine.low %v4044_v31, %v4048_v24 }
 0x4b0   : > { %6465 = vmatpush1.bf16.msra.mxu0 %v10810_v42  ;;  %v10867_v42 = vcombine.high %v4044_v31, %v4048_v24  ;;  %v4093_v31 = vld [vmem:[#allocation14 + $0x898] sm:$0xff] }
 0x4b1   : > { %6588 = vmatpush1.bf16.msra.mxu1 %v10812_v35  ;;  %6466 = vmatprep.subr.bf16.mxu0 %v10819_v36  ;;  %v10869_v35 = vcombine.high %v4045_v25, %v4049_v32  ;;  %v4052_v36 = vld [vmem:[#allocation14 + $0x750] sm:$0xff]  ;;  %v4097_v24 = vld [vmem:[#allocation14 + $0x8b8] sm:$0xff]  ;;  %v10908_v32 = vcombine.low %v4085_v52, %v4089_v21 }
 0x4b2   : > { %6589 = vmatprep.subr.bf16.mxu1 %v10821_v43  ;;  %v4056_v43 = vld [vmem:[#allocation14 + $0x770] sm:$0xff] }
 0x4b3   : > { %v10874_v54 = vcombine.low %v4052_v36, %v4056_v43 }
 0x4b4   : > { %6467 = vmatpush1.bf16.msra.mxu0 %v10818_v44  ;;  %v10875_v44 = vcombine.high %v4052_v36, %v4056_v43  ;;  %v4101_v36 = vld [vmem:[#allocation14 + $0x8d8] sm:$0xff] }
 0x4b5   : > { %6590 = vmatpush1.bf16.msra.mxu1 %v10820_v48  ;;  %6468 = vmatprep.subr.bf16.mxu0 %v10827_v45  ;;  %v10877_v48 = vcombine.high %v4053_v37, %v4057_v38  ;;  %v4060_v45 = vld [vmem:[#allocation14 + $0x790] sm:$0xff]  ;;  %v4105_v43 = vld [vmem:[#allocation14 + $0x8f8] sm:$0xff]  ;;  %v10916_v38 = vcombine.low %v4093_v31, %v4097_v24 }
 0x4b6   : > { %6591 = vmatprep.subr.bf16.mxu1 %v10829_v46  ;;  %v4064_v46 = vld [vmem:[#allocation14 + $0x7b0] sm:$0xff] }
 0x4b7   : > { %v10882_v61 = vcombine.low %v4060_v45, %v4064_v46 }
 0x4b8   : > { %6469 = vmatpush1.bf16.msra.mxu0 %v10826_v56  ;;  %v10883_v56 = vcombine.high %v4060_v45, %v4064_v46  ;;  %v4109_v45 = vld [vmem:[#allocation14 + $0x918] sm:$0xff] }
 0x4b9   : > { %6592 = vmatpush1.bf16.msra.mxu1 %v10828_v60  ;;  %6470 = vmatprep.subr.bf16.mxu0 %v10835_v57  ;;  %v10885_v60 = vcombine.high %v4061_v0, %v4065_v50  ;;  %v4068_v57 = vld [vmem:[#allocation14 + $0x7d0] sm:$0xff]  ;;  %v4113_v46 = vld [vmem:[#allocation14 + $0x938] sm:$0xff]  ;;  %v10924_v50 = vcombine.low %v4101_v36, %v4105_v43 }
 0x4ba   : > { %6593 = vmatprep.subr.bf16.mxu1 %v10837_v58  ;;  %v4072_v58 = vld [vmem:[#allocation14 + $0x7f0] sm:$0xff] }
 0x4bb   : > { %v10890_v8 = vcombine.low %v4068_v57, %v4072_v58 }
 0x4bc   : > { %6471 = vmatpush1.bf16.msra.mxu0 %v10834_v7  ;;  %v10891_v7 = vcombine.high %v4068_v57, %v4072_v58  ;;  %v4121_v57 = vld [vmem:[#allocation14 + $0x978] sm:$0xff] }
 0x4bd   : > { %6594 = vmatpush1.bf16.msra.mxu1 %v10836_v12  ;;  %6472 = vmatprep.subr.bf16.mxu0 %v10843_v13  ;;  %v10893_v12 = vcombine.high %v4069_v63, %v4073_v59  ;;  %v4076_v13 = vld [vmem:[#allocation14 + $0x810] sm:$0xff]  ;;  %v10932_v63 = vcombine.low %v4109_v45, %v4113_v46 }
 0x4be   : > { %6595 = vmatprep.subr.bf16.mxu1 %v10845_v2  ;;  %v4080_v2 = vld [vmem:[#allocation14 + $0x830] sm:$0xff] }
 0x4bf   : > { %v10898_v22 = vcombine.low %v4076_v13, %v4080_v2 }
 0x4c0   : > { %6473 = vmatpush1.bf16.msra.mxu0 %v10842_v11  ;;  %v10899_v11 = vcombine.high %v4076_v13, %v4080_v2  ;;  %v4129_v13 = vld [vmem:[#allocation14 + $0x9b8] sm:$0xff] }
 0x4c1   : > { %6596 = vmatpush1.bf16.msra.mxu1 %v10844_v17  ;;  %6474 = vmatprep.subr.bf16.mxu0 %v10851_v18  ;;  %v10901_v17 = vcombine.high %v4077_v3, %v4081_v6  ;;  %v4084_v18 = vld [vmem:[#allocation14 + $0x850] sm:$0xff] }
 0x4c2   : > { %6597 = vmatprep.subr.bf16.mxu1 %v10853_v19  ;;  %v4088_v19 = vld [vmem:[#allocation14 + $0x870] sm:$0xff] }
 0x4c3   : > { %v10906_v25 = vcombine.low %v4084_v18, %v4088_v19 }
 0x4c4   : > { %6475 = vmatpush1.bf16.msra.mxu0 %v10850_v26  ;;  %v10907_v26 = vcombine.high %v4084_v18, %v4088_v19  ;;  %v4137_v18 = vld [vmem:[#allocation14 + $0x9f8] sm:$0xff] }
 0x4c5   : > { %6598 = vmatpush1.bf16.msra.mxu1 %v10852_v27  ;;  %6476 = vmatprep.subr.bf16.mxu0 %v10859_v28  ;;  %v10909_v27 = vcombine.high %v4085_v52, %v4089_v21  ;;  %v4092_v28 = vld [vmem:[#allocation14 + $0x890] sm:$0xff] }
 0x4c6   : > { %6599 = vmatprep.subr.bf16.mxu1 %v10861_v30  ;;  %v4096_v30 = vld [vmem:[#allocation14 + $0x8b0] sm:$0xff] }
 0x4c7   : > { %v10914_v37 = vcombine.low %v4092_v28, %v4096_v30 }
 0x4c8   : > { %6477 = vmatpush1.bf16.msra.mxu0 %v10858_v51  ;;  %v10915_v51 = vcombine.high %v4092_v28, %v4096_v30  ;;  %v4145_v28 = vld [vmem:[#allocation14 + $0xa38] sm:$0xff] }
 0x4c9   : > { %6600 = vmatpush1.bf16.msra.mxu1 %v10860_v34  ;;  %6478 = vmatprep.subr.bf16.mxu0 %v10867_v42  ;;  %v10917_v34 = vcombine.high %v4093_v31, %v4097_v24  ;;  %v4100_v42 = vld [vmem:[#allocation14 + $0x8d0] sm:$0xff] }
 0x4ca   : > { %6601 = vmatprep.subr.bf16.mxu1 %v10869_v35  ;;  %v4104_v35 = vld [vmem:[#allocation14 + $0x8f0] sm:$0xff] }
 0x4cb   : > { %v10922_v0 = vcombine.low %v4100_v42, %v4104_v35 }
 0x4cc   : > { %6479 = vmatpush1.bf16.msra.mxu0 %v10866_v39  ;;  %v10923_v39 = vcombine.high %v4100_v42, %v4104_v35  ;;  %v4153_v42 = vld [vmem:[#allocation14 + $0xa78] sm:$0xff] }
 0x4cd   : > { %6602 = vmatpush1.bf16.msra.mxu1 %v10868_v47  ;;  %6480 = vmatprep.subr.bf16.mxu0 %v10875_v44  ;;  %v10925_v47 = vcombine.high %v4101_v36, %v4105_v43  ;;  %v4108_v44 = vld [vmem:[#allocation14 + $0x910] sm:$0xff] }
 0x4ce   : > { %6603 = vmatprep.subr.bf16.mxu1 %v10877_v48  ;;  %v4112_v48 = vld [vmem:[#allocation14 + $0x930] sm:$0xff] }
 0x4cf   : > { %v10930_v58 = vcombine.low %v4108_v44, %v4112_v48 }
 0x4d0   : > { %6481 = vmatpush1.bf16.msra.mxu0 %v10874_v54  ;;  %v10931_v54 = vcombine.high %v4108_v44, %v4112_v48  ;;  %v4161_v44 = vld [vmem:[#allocation14 + $0xab8] sm:$0xff] }
 0x4d1   : > { %6604 = vmatpush1.bf16.msra.mxu1 %v10876_v55  ;;  %6482 = vmatprep.subr.bf16.mxu0 %v10883_v56  ;;  %v4116_v55 = vld [vmem:[#allocation14 + $0x950] sm:$0xff] }
 0x4d2   : > { %6605 = vmatprep.subr.bf16.mxu1 %v10885_v60  ;;  %v4120_v56 = vld [vmem:[#allocation14 + $0x970] sm:$0xff]  ;;  %v4117_v60 = vld [vmem:[#allocation14 + $0x958] sm:$0xff] }
 0x4d3   : > { %v10939_v59 = vcombine.high %v4116_v55, %v4120_v56  ;;  %v10938_v2 = vcombine.low %v4116_v55, %v4120_v56  ;;  %v10940_v3 = vcombine.low %v4117_v60, %v4121_v57  ;;  %v4169_v55 = vld [vmem:[#allocation14 + $0xaf8] sm:$0xff] }
 0x4d4   : > { %6483 = vmatpush1.bf16.msra.mxu0 %v10882_v61  ;;  %v10941_v61 = vcombine.high %v4117_v60, %v4121_v57 }
 0x4d5   : > { %6606 = vmatpush1.bf16.msra.mxu1 %v10884_v62  ;;  %6484 = vmatprep.subr.bf16.mxu0 %v10891_v7  ;;  %v4124_v62 = vld [vmem:[#allocation14 + $0x990] sm:$0xff] }
 0x4d6   : > { %6607 = vmatprep.subr.bf16.mxu1 %v10893_v12  ;;  %v4128_v7 = vld [vmem:[#allocation14 + $0x9b0] sm:$0xff]  ;;  %v4125_v12 = vld [vmem:[#allocation14 + $0x998] sm:$0xff] }
 0x4d7   : > { %v10947_v6 = vcombine.high %v4124_v62, %v4128_v7  ;;  %v10946_v19 = vcombine.low %v4124_v62, %v4128_v7  ;;  %v10948_v52 = vcombine.low %v4125_v12, %v4129_v13  ;;  %v4177_v62 = vld [vmem:[#allocation14 + $0xb38] sm:$0xff] }
 0x4d8   : > { %6485 = vmatpush1.bf16.msra.mxu0 %v10890_v8  ;;  %v10949_v8 = vcombine.high %v4125_v12, %v4129_v13 }
 0x4d9   : > { %6608 = vmatpush1.bf16.msra.mxu1 %v10892_v10  ;;  %6495 = vmatprep.subr.bf16.mxu0 %v10899_v11  ;;  %v4132_v10 = vld [vmem:[#allocation14 + $0x9d0] sm:$0xff] }
 0x4da   : > { %6618 = vmatprep.subr.bf16.mxu1 %v10901_v17  ;;  %v4136_v11 = vld [vmem:[#allocation14 + $0x9f0] sm:$0xff]  ;;  %v4133_v17 = vld [vmem:[#allocation14 + $0x9d8] sm:$0xff] }
 0x4db   : > { %6487 = vmatmul.mubr.bf16.vlgmr.msra.gmra.mrb[20].mxu0 %v12971_v40  ;;  %v10955_v21 = vcombine.high %v4132_v10, %v4136_v11  ;;  %v10954_v30 = vcombine.low %v4132_v10, %v4136_v11  ;;  %v10956_v31 = vcombine.low %v4133_v17, %v4137_v18  ;;  %v4185_v10 = vld [vmem:[#allocation14 + $0xb78] sm:$0xff] }
 0x4dc   : > { %6610 = vmatmul.mubr.bf16.vlgmr.msra.gmra.mrb[20].mxu1 %v12971_v40  ;;  %6496 = vmatpush1.bf16.msra.mxu0 %v10898_v22  ;;  %v10957_v22 = vcombine.high %v4133_v17, %v4137_v18 }
 0x4dd   : > { %6619 = vmatpush1.bf16.msra.mxu1 %v10900_v23  ;;  %6497 = vmatprep.subr.bf16.mxu0 %v10907_v26  ;;  %v4140_v23 = vld [vmem:[#allocation14 + $0xa10] sm:$0xff] }
 0x4de   : > { %6620 = vmatprep.subr.bf16.mxu1 %v10909_v27  ;;  %6527 = vmatprep.mubr.bf16.mxu0 %v12975_v49  ;;  %v4144_v26 = vld [vmem:[#allocation14 + $0xa30] sm:$0xff]  ;;  %v4141_v27 = vld [vmem:[#allocation14 + $0xa18] sm:$0xff] }
 0x4df   : > { %6650 = vmatprep.mubr.bf16.mxu1 %v12975_v49  ;;  %v10933_v49 = vcombine.high %v4109_v45, %v4113_v46  ;;  %v10963_v24 = vcombine.high %v4140_v23, %v4144_v26  ;;  %v10962_v35 = vcombine.low %v4140_v23, %v4144_v26  ;;  %v10964_v36 = vcombine.low %v4141_v27, %v4145_v28  ;;  %v4193_v23 = vld [vmem:[#allocation14 + $0xbb8] sm:$0xff] }
 0x4e0   : > { %6498 = vmatpush1.bf16.msra.mxu0 %v10906_v25  ;;  %v10965_v25 = vcombine.high %v4141_v27, %v4145_v28 }
 0x4e1   : > { %6621 = vmatpush1.bf16.msra.mxu1 %v10908_v32  ;;  %6499 = vmatprep.subr.bf16.mxu0 %v10915_v51  ;;  %v4148_v32 = vld [vmem:[#allocation14 + $0xa50] sm:$0xff] }
 0x4e2   : > { %6622 = vmatprep.subr.bf16.mxu1 %v10917_v34  ;;  %v4152_v51 = vld [vmem:[#allocation14 + $0xa70] sm:$0xff]  ;;  %v4149_v34 = vld [vmem:[#allocation14 + $0xa58] sm:$0xff] }
 0x4e3   : > { %v10971_v43 = vcombine.high %v4148_v32, %v4152_v51  ;;  %v10970_v48 = vcombine.low %v4148_v32, %v4152_v51  ;;  %v10972_v45 = vcombine.low %v4149_v34, %v4153_v42  ;;  %v4201_v32 = vld [vmem:[#allocation14 + $0xbf8] sm:$0xff] }
 0x4e4   : > { %6500 = vmatpush1.bf16.msra.mxu0 %v10914_v37  ;;  %v10973_v37 = vcombine.high %v4149_v34, %v4153_v42 }
 0x4e5   : > { %6623 = vmatpush1.bf16.msra.mxu1 %v10916_v38  ;;  %6501 = vmatprep.subr.bf16.mxu0 %v10923_v39  ;;  %v4156_v38 = vld [vmem:[#allocation14 + $0xa90] sm:$0xff] }
 0x4e6   : > { %6624 = vmatprep.subr.bf16.mxu1 %v10925_v47  ;;  %v4160_v39 = vld [vmem:[#allocation14 + $0xab0] sm:$0xff]  ;;  %v4157_v47 = vld [vmem:[#allocation14 + $0xa98] sm:$0xff] }
 0x4e7   : > { %v10979_v46 = vcombine.high %v4156_v38, %v4160_v39  ;;  %v10978_v56 = vcombine.low %v4156_v38, %v4160_v39  ;;  %v10980_v60 = vcombine.low %v4157_v47, %v4161_v44  ;;  %v6713_v38 = vld [vmem:[#allocation14 + $0xc28] sm:$0xff] }
 0x4e8   : > { %6502 = vmatpush1.bf16.msra.mxu0 %v10922_v0  ;;  %v10981_v0 = vcombine.high %v4157_v47, %v4161_v44 }
 0x4e9   : > { %6625 = vmatpush1.bf16.msra.mxu1 %v10924_v50  ;;  %6503 = vmatprep.subr.bf16.mxu0 %v10931_v54  ;;  %v4164_v50 = vld [vmem:[#allocation14 + $0xad0] sm:$0xff] }
 0x4ea   : > { %6626 = vmatprep.subr.bf16.mxu1 %v10933_v49  ;;  %v4168_v54 = vld [vmem:[#allocation14 + $0xaf0] sm:$0xff]  ;;  %v4165_v49 = vld [vmem:[#allocation14 + $0xad8] sm:$0xff] }
 0x4eb   : > { %v10987_v57 = vcombine.high %v4164_v50, %v4168_v54  ;;  %v10986_v7 = vcombine.low %v4164_v50, %v4168_v54  ;;  %v10988_v12 = vcombine.low %v4165_v49, %v4169_v55  ;;  %v6717_v50 = vld [vmem:[#allocation14 + $0xc48] sm:$0xff] }
 0x4ec   : > { %6504 = vmatpush1.bf16.msra.mxu0 %v10930_v58  ;;  %v10989_v58 = vcombine.high %v4165_v49, %v4169_v55  ;;  %v6721_v54 = vld [vmem:[#allocation14 + $0xc68] sm:$0xff] }
 0x4ed   : > { %6627 = vmatpush1.bf16.msra.mxu1 %v10932_v63  ;;  %6505 = vmatprep.subr.bf16.mxu0 %v10939_v59  ;;  %v4172_v63 = vld [vmem:[#allocation14 + $0xb10] sm:$0xff] }
 0x4ee   : > { %6628 = vmatprep.subr.bf16.mxu1 %v10941_v61  ;;  %v4176_v59 = vld [vmem:[#allocation14 + $0xb30] sm:$0xff]  ;;  %v4173_v61 = vld [vmem:[#allocation14 + $0xb18] sm:$0xff] }
 0x4ef   : > { %v10995_v13 = vcombine.high %v4172_v63, %v4176_v59  ;;  %v10994_v11 = vcombine.low %v4172_v63, %v4176_v59  ;;  %v10996_v17 = vcombine.low %v4173_v61, %v4177_v62  ;;  %v6729_v63 = vld [vmem:[#allocation14 + $0xca8] sm:$0xff] }
 0x4f0   : > { %6506 = vmatpush1.bf16.msra.mxu0 %v10938_v2  ;;  %v10997_v2 = vcombine.high %v4173_v61, %v4177_v62  ;;  %v11038_v61 = vcombine.low %v6717_v50, %v6721_v54 }
 0x4f1   : > { %6629 = vmatpush1.bf16.msra.mxu1 %v10940_v3  ;;  %6507 = vmatprep.subr.bf16.mxu0 %v10947_v6  ;;  %v4180_v3 = vld [vmem:[#allocation14 + $0xb50] sm:$0xff] }
 0x4f2   : > { %6630 = vmatprep.subr.bf16.mxu1 %v10949_v8  ;;  %v4184_v6 = vld [vmem:[#allocation14 + $0xb70] sm:$0xff]  ;;  %v4181_v8 = vld [vmem:[#allocation14 + $0xb58] sm:$0xff] }
 0x4f3   : > { %v11003_v18 = vcombine.high %v4180_v3, %v4184_v6  ;;  %v11002_v26 = vcombine.low %v4180_v3, %v4184_v6  ;;  %v11004_v27 = vcombine.low %v4181_v8, %v4185_v10  ;;  %v6737_v3 = vld [vmem:[#allocation14 + $0xce8] sm:$0xff] }
 0x4f4   : > { %6508 = vmatpush1.bf16.msra.mxu0 %v10946_v19  ;;  %v11005_v19 = vcombine.high %v4181_v8, %v4185_v10 }
 0x4f5   : > { %6631 = vmatpush1.bf16.msra.mxu1 %v10948_v52  ;;  %6509 = vmatprep.subr.bf16.mxu0 %v10955_v21  ;;  %v4188_v52 = vld [vmem:[#allocation14 + $0xb90] sm:$0xff] }
 0x4f6   : > { %6632 = vmatprep.subr.bf16.mxu1 %v10957_v22  ;;  %v4192_v21 = vld [vmem:[#allocation14 + $0xbb0] sm:$0xff]  ;;  %v4189_v22 = vld [vmem:[#allocation14 + $0xb98] sm:$0xff] }
 0x4f7   : > { %v11011_v28 = vcombine.high %v4188_v52, %v4192_v21  ;;  %v11010_v51 = vcombine.low %v4188_v52, %v4192_v21  ;;  %v11012_v34 = vcombine.low %v4189_v22, %v4193_v23 }
 0x4f8   : > { %6510 = vmatpush1.bf16.msra.mxu0 %v10954_v30  ;;  %v11013_v30 = vcombine.high %v4189_v22, %v4193_v23 }
 0x4f9   : > { %6633 = vmatpush1.bf16.msra.mxu1 %v10956_v31  ;;  %6511 = vmatprep.subr.bf16.mxu0 %v10963_v24  ;;  %v4196_v31 = vld [vmem:[#allocation14 + $0xbd0] sm:$0xff] }
 0x4fa   : > { %6634 = vmatprep.subr.bf16.mxu1 %v10965_v25  ;;  %v4200_v24 = vld [vmem:[#allocation14 + $0xbf0] sm:$0xff]  ;;  %v4197_v25 = vld [vmem:[#allocation14 + $0xbd8] sm:$0xff] }
 0x4fb   : > { %v11019_v42 = vcombine.high %v4196_v31, %v4200_v24  ;;  %v11018_v39 = vcombine.low %v4196_v31, %v4200_v24  ;;  %v11020_v47 = vcombine.low %v4197_v25, %v4201_v32 }
 0x4fc   : > { %6512 = vmatpush1.bf16.msra.mxu0 %v10962_v35  ;;  %v11021_v35 = vcombine.high %v4197_v25, %v4201_v32 }
 0x4fd   : > { %6635 = vmatpush1.bf16.msra.mxu1 %v10964_v36  ;;  %6513 = vmatprep.subr.bf16.mxu0 %v10971_v43  ;;  %v6708_v36 = vld [vmem:[#allocation14 + $0xc00] sm:$0xff] }
 0x4fe   : > { %6636 = vmatprep.subr.bf16.mxu1 %v10973_v37  ;;  %v6712_v43 = vld [vmem:[#allocation14 + $0xc20] sm:$0xff]  ;;  %v6709_v37 = vld [vmem:[#allocation14 + $0xc08] sm:$0xff] }
 0x4ff   : > { %v11029_v44 = vcombine.high %v6708_v36, %v6712_v43  ;;  %v11030_v49 = vcombine.low %v6709_v37, %v6713_v38 }
 0x500   : > { %6514 = vmatpush1.bf16.msra.mxu0 %v10970_v48  ;;  %v11031_v48 = vcombine.high %v6709_v37, %v6713_v38 }
 0x501   : > { %6637 = vmatpush1.bf16.msra.mxu1 %v10972_v45  ;;  %6515 = vmatprep.subr.bf16.mxu0 %v10979_v46  ;;  %v6716_v45 = vld [vmem:[#allocation14 + $0xc40] sm:$0xff] }
 0x502   : > { %6638 = vmatprep.subr.bf16.mxu1 %v10981_v0  ;;  %v6720_v46 = vld [vmem:[#allocation14 + $0xc60] sm:$0xff]  ;;  %v11028_v0 = vcombine.low %v6708_v36, %v6712_v43 }
 0x503   : > { %v11037_v55 = vcombine.high %v6716_v45, %v6720_v46  ;;  %v11036_v59 = vcombine.low %v6716_v45, %v6720_v46 }
 0x504   : > { %6516 = vmatpush1.bf16.msra.mxu0 %v10978_v56  ;;  %v6724_v56 = vld [vmem:[#allocation14 + $0xc80] sm:$0xff] }
 0x505   : > { %6639 = vmatpush1.bf16.msra.mxu1 %v10980_v60  ;;  %6517 = vmatprep.subr.bf16.mxu0 %v10987_v57  ;;  %v6728_v60 = vld [vmem:[#allocation14 + $0xca0] sm:$0xff]  ;;  %v11039_v57 = vcombine.high %v6717_v50, %v6721_v54  ;;  %v6769_v50 = vld [vmem:[#allocation14 + $0xde8] sm:$0xff] }
 0x506   : > { %6640 = vmatprep.subr.bf16.mxu1 %v10989_v58  ;;  %v6725_v58 = vld [vmem:[#allocation14 + $0xc88] sm:$0xff]  ;;  %v11045_v62 = vcombine.high %v6724_v56, %v6728_v60  ;;  %v11044_v6 = vcombine.low %v6724_v56, %v6728_v60 }
 0x508   : > { %6518 = vmatpush1.bf16.msra.mxu0 %v10986_v7  ;;  %v11047_v7 = vcombine.high %v6725_v58, %v6729_v63 }
 0x509   : > { %6641 = vmatpush1.bf16.msra.mxu1 %v10988_v12  ;;  %6519 = vmatprep.subr.bf16.mxu0 %v10995_v13  ;;  %v6732_v12 = vld [vmem:[#allocation14 + $0xcc0] sm:$0xff] }
 0x50a   : > { %6642 = vmatprep.subr.bf16.mxu1 %v10997_v2  ;;  %v6736_v13 = vld [vmem:[#allocation14 + $0xce0] sm:$0xff]  ;;  %v6733_v2 = vld [vmem:[#allocation14 + $0xcc8] sm:$0xff] }
 0x50b   : > { %v11053_v8 = vcombine.high %v6732_v12, %v6736_v13  ;;  %v11055_v10 = vcombine.high %v6733_v2, %v6737_v3  ;;  %v11052_v52 = vcombine.low %v6732_v12, %v6736_v13  ;;  %v11054_v21 = vcombine.low %v6733_v2, %v6737_v3 }
 0x50c   : > { %6520 = vmatpush1.bf16.msra.mxu0 %v10994_v11  ;;  %v6740_v11 = vld [vmem:[#allocation14 + $0xd00] sm:$0xff] }
 0x50d   : > { %6643 = vmatpush1.bf16.msra.mxu1 %v10996_v17  ;;  %6521 = vmatprep.subr.bf16.mxu0 %v11003_v18  ;;  %v6744_v17 = vld [vmem:[#allocation14 + $0xd20] sm:$0xff]  ;;  %v6741_v18 = vld [vmem:[#allocation14 + $0xd08] sm:$0xff] }
 0x50e   : > { %6644 = vmatprep.subr.bf16.mxu1 %v11005_v19  ;;  %v6745_v19 = vld [vmem:[#allocation14 + $0xd28] sm:$0xff]  ;;  %v11061_v22 = vcombine.high %v6740_v11, %v6744_v17  ;;  %v11060_v31 = vcombine.low %v6740_v11, %v6744_v17 }
 0x50f   : > { %v11063_v23 = vcombine.high %v6741_v18, %v6745_v19  ;;  %v11062_v24 = vcombine.low %v6741_v18, %v6745_v19 }
 0x510   : > { %6522 = vmatpush1.bf16.msra.mxu0 %v11002_v26  ;;  %v6748_v26 = vld [vmem:[#allocation14 + $0xd40] sm:$0xff] }
 0x511   : > { %6645 = vmatpush1.bf16.msra.mxu1 %v11004_v27  ;;  %6523 = vmatprep.subr.bf16.mxu0 %v11011_v28  ;;  %v6752_v27 = vld [vmem:[#allocation14 + $0xd60] sm:$0xff]  ;;  %v6749_v28 = vld [vmem:[#allocation14 + $0xd48] sm:$0xff] }
 0x512   : > { %6646 = vmatprep.subr.bf16.mxu1 %v11013_v30  ;;  %v6753_v30 = vld [vmem:[#allocation14 + $0xd68] sm:$0xff]  ;;  %v11069_v25 = vcombine.high %v6748_v26, %v6752_v27  ;;  %v11068_v36 = vcombine.low %v6748_v26, %v6752_v27 }
 0x513   : > { %v11071_v32 = vcombine.high %v6749_v28, %v6753_v30  ;;  %v11070_v43 = vcombine.low %v6749_v28, %v6753_v30 }
 0x514   : > { %6524 = vmatpush1.bf16.msra.mxu0 %v11010_v51  ;;  %v6756_v51 = vld [vmem:[#allocation14 + $0xd80] sm:$0xff] }
 0x515   : > { %6647 = vmatpush1.bf16.msra.mxu1 %v11012_v34  ;;  %6525 = vmatprep.subr.bf16.mxu0 %v11019_v42  ;;  %v6760_v34 = vld [vmem:[#allocation14 + $0xda0] sm:$0xff]  ;;  %v6757_v42 = vld [vmem:[#allocation14 + $0xd88] sm:$0xff] }
 0x516   : > { %6648 = vmatprep.subr.bf16.mxu1 %v11021_v35  ;;  %v6761_v35 = vld [vmem:[#allocation14 + $0xda8] sm:$0xff]  ;;  %v11077_v37 = vcombine.high %v6756_v51, %v6760_v34 }
 0x518   : > { %6526 = vmatpush1.bf16.msra.mxu0 %v11018_v39 }
 0x519   : > { %6649 = vmatpush1.bf16.msra.mxu1 %v11020_v47  ;;  %9057 = vmatprep.subr.bf16.mxu0 %v11029_v44  ;;  %v11079_v47 = vcombine.high %v6757_v42, %v6761_v35  ;;  %v6764_v44 = vld [vmem:[#allocation14 + $0xdc0] sm:$0xff] }
 0x51a   : > { %9180 = vmatprep.subr.bf16.mxu1 %v11031_v48  ;;  %v6768_v48 = vld [vmem:[#allocation14 + $0xde0] sm:$0xff] }
 0x51b   : > { %6528 = vmatmul.mubr.bf16.vlgmr.msra.gmra.mrb[20].mxu0 %v12987_v4  ;;  %v11084_v12 = vcombine.low %v6764_v44, %v6768_v48 }
 0x51c   : > { %6651 = vmatmul.mubr.bf16.vlgmr.msra.gmra.mrb[20].mxu1 %v12987_v4  ;;  %9058 = vmatpush1.bf16.msra.mxu0 %v11028_v0  ;;  %v11046_v4 = vcombine.low %v6725_v58, %v6729_v63  ;;  %v6765_v0 = vld [vmem:[#allocation14 + $0xdc8] sm:$0xff]  ;;  %v11085_v58 = vcombine.high %v6764_v44, %v6768_v48 }
 0x51d   : > { %9089 = vmatprep.mubr.bf16.mxu0 %v12937_v33  ;;  %9181 = vmatpush1.bf16.msra.mxu1 %v11030_v49  ;;  %v11087_v63 = vcombine.high %v6765_v0, %v6769_v50  ;;  %v11086_v13 = vcombine.low %v6765_v0, %v6769_v50 }
 0x51e   : > { %9212 = vmatprep.mubr.bf16.mxu1 %v12937_v33  ;;  %9059 = vmatprep.subr.bf16.mxu0 %v11037_v55  ;;  %v11076_v55 = vcombine.low %v6756_v51, %v6760_v34 }
 0x51f   : > { %9182 = vmatprep.subr.bf16.mxu1 %v11039_v57  ;;  %v11078_v57 = vcombine.low %v6757_v42, %v6761_v35 }
 0x520   : > { %9060 = vmatpush1.bf16.msra.mxu0 %v11036_v59  ;;  %v6772_v59 = vld [vmem:[#allocation14 + $0xe00] sm:$0xff] }
 0x521   : > { %9183 = vmatpush1.bf16.msra.mxu1 %v11038_v61  ;;  %9061 = vmatprep.subr.bf16.mxu0 %v11045_v62  ;;  %v6776_v61 = vld [vmem:[#allocation14 + $0xe20] sm:$0xff]  ;;  %v6773_v62 = vld [vmem:[#allocation14 + $0xe08] sm:$0xff] }
 0x522   : > { %9184 = vmatprep.subr.bf16.mxu1 %v11047_v7  ;;  %v6777_v7 = vld [vmem:[#allocation14 + $0xe28] sm:$0xff]  ;;  %v11093_v2 = vcombine.high %v6772_v59, %v6776_v61  ;;  %v11092_v11 = vcombine.low %v6772_v59, %v6776_v61  ;;  %v6820_v59 = vld [vmem:[#allocation14 + $0xf80] sm:$0xff] }
 0x523   : > { %v11095_v3 = vcombine.high %v6773_v62, %v6777_v7  ;;  %v11094_v17 = vcombine.low %v6773_v62, %v6777_v7  ;;  %v6824_v61 = vld [vmem:[#allocation14 + $0xfa0] sm:$0xff]  ;;  %v6821_v62 = vld [vmem:[#allocation14 + $0xf88] sm:$0xff] }
 0x524   : > { %9062 = vmatpush1.bf16.msra.mxu0 %v11044_v6  ;;  %v6780_v6 = vld [vmem:[#allocation14 + $0xe40] sm:$0xff]  ;;  %v6825_v7 = vld [vmem:[#allocation14 + $0xfa8] sm:$0xff] }
 0x525   : > { %9185 = vmatpush1.bf16.msra.mxu1 %v11046_v4  ;;  %9063 = vmatprep.subr.bf16.mxu0 %v11053_v8  ;;  %v6784_v4 = vld [vmem:[#allocation14 + $0xe60] sm:$0xff]  ;;  %v6781_v8 = vld [vmem:[#allocation14 + $0xe48] sm:$0xff] }
 0x526   : > { %9186 = vmatprep.subr.bf16.mxu1 %v11055_v10  ;;  %v6785_v10 = vld [vmem:[#allocation14 + $0xe68] sm:$0xff]  ;;  %v11101_v18 = vcombine.high %v6780_v6, %v6784_v4  ;;  %v11100_v26 = vcombine.low %v6780_v6, %v6784_v4  ;;  %v6828_v6 = vld [vmem:[#allocation14 + $0xfc0] sm:$0xff] }
 0x527   : > { %v11103_v19 = vcombine.high %v6781_v8, %v6785_v10  ;;  %v11102_v27 = vcombine.low %v6781_v8, %v6785_v10  ;;  %v6832_v4 = vld [vmem:[#allocation14 + $0xfe0] sm:$0xff]  ;;  %v6829_v8 = vld [vmem:[#allocation14 + $0xfc8] sm:$0xff] }
 0x528   : > { %9064 = vmatpush1.bf16.msra.mxu0 %v11052_v52  ;;  %v6788_v52 = vld [vmem:[#allocation14 + $0xe80] sm:$0xff]  ;;  %v6833_v10 = vld [vmem:[#allocation14 + $0xfe8] sm:$0xff] }
 0x529   : > { %9187 = vmatpush1.bf16.msra.mxu1 %v11054_v21  ;;  %9065 = vmatprep.subr.bf16.mxu0 %v11061_v22  ;;  %v6792_v21 = vld [vmem:[#allocation14 + $0xea0] sm:$0xff]  ;;  %v6789_v22 = vld [vmem:[#allocation14 + $0xe88] sm:$0xff] }
 0x52a   : > { %9188 = vmatprep.subr.bf16.mxu1 %v11063_v23  ;;  %v6793_v23 = vld [vmem:[#allocation14 + $0xea8] sm:$0xff]  ;;  %v11109_v28 = vcombine.high %v6788_v52, %v6792_v21  ;;  %v11108_v51 = vcombine.low %v6788_v52, %v6792_v21  ;;  %v6836_v52 = vld [vmem:[#allocation14 + $0x1000] sm:$0xff] }
 0x52b   : > { %v11111_v30 = vcombine.high %v6789_v22, %v6793_v23  ;;  %v11110_v34 = vcombine.low %v6789_v22, %v6793_v23  ;;  %v6840_v21 = vld [vmem:[#allocation14 + $0x1020] sm:$0xff]  ;;  %v6837_v22 = vld [vmem:[#allocation14 + $0x1008] sm:$0xff] }
 0x52c   : > { %9066 = vmatpush1.bf16.msra.mxu0 %v11060_v31  ;;  %v6796_v31 = vld [vmem:[#allocation14 + $0xec0] sm:$0xff]  ;;  %v6841_v23 = vld [vmem:[#allocation14 + $0x1028] sm:$0xff] }
 0x52d   : > { %9189 = vmatpush1.bf16.msra.mxu1 %v11062_v24  ;;  %9067 = vmatprep.subr.bf16.mxu0 %v11069_v25  ;;  %v6800_v24 = vld [vmem:[#allocation14 + $0xee0] sm:$0xff]  ;;  %v6797_v25 = vld [vmem:[#allocation14 + $0xec8] sm:$0xff] }
 0x52e   : > { %v13005_v38 = vpop.f32.mrb[16].mxu0  ;;  %v13007_v39 = vpop.f32.mrb[16].mxu1  ;;  %9190 = vmatprep.subr.bf16.mxu1 %v11071_v32  ;;  %v6801_v32 = vld [vmem:[#allocation14 + $0xee8] sm:$0xff]  ;;  %v11117_v42 = vcombine.high %v6796_v31, %v6800_v24  ;;  %v11116_v44 = vcombine.low %v6796_v31, %v6800_v24  ;;  %v6844_v31 = vld [vmem:[#allocation14 + $0x1040] sm:$0xff] }
 0x52f   : > { %v13009_v45 = vpop.f32.mrb[17].mxu0  ;;  %v13011_v46 = vpop.f32.mrb[17].mxu1  ;;  %v11119_v35 = vcombine.high %v6797_v25, %v6801_v32  ;;  %v11118_v48 = vcombine.low %v6797_v25, %v6801_v32  ;;  %v6848_v24 = vld [vmem:[#allocation14 + $0x1060] sm:$0xff]  ;;  %v11156_v25 = vcombine.low %v6836_v52, %v6840_v21  ;;  %v6845_v32 = vld [vmem:[#allocation14 + $0x1048] sm:$0xff] }
 0x530   : > { %v6287_v54 = vpop.f32.mrb[18].mxu0  ;;  %v6410_v49 = vpop.f32.mrb[18].mxu1  ;;  %9068 = vmatpush1.bf16.msra.mxu0 %v11068_v36  ;;  %v6804_v36 = vld [vmem:[#allocation14 + $0xf00] sm:$0xff] }
 0x531   : > { %9191 = vmatpush1.bf16.msra.mxu1 %v11070_v43  ;;  %v6288_v56 = vpop.f32.mrb[19].mxu0  ;;  %v6411_v60 = vpop.f32.mrb[19].mxu1  ;;  %9069 = vmatprep.subr.bf16.mxu0 %v11077_v37  ;;  %v6808_v43 = vld [vmem:[#allocation14 + $0xf20] sm:$0xff]  ;;  %v6805_v37 = vld [vmem:[#allocation14 + $0xf08] sm:$0xff] }
 0x532   : > { %9192 = vmatprep.subr.bf16.mxu1 %v11079_v47  ;;  %v6809_v47 = vld [vmem:[#allocation14 + $0xf28] sm:$0xff]  ;;  %v11125_v0 = vcombine.high %v6804_v36, %v6808_v43  ;;  %v6812_v54 = vld [vmem:[#allocation14 + $0xf40] sm:$0xff]  ;;  %v11124_v60 = vcombine.low %v6804_v36, %v6808_v43 }
 0x533   : > { %v11127_v50 = vcombine.high %v6805_v37, %v6809_v47  ;;  %v6816_v49 = vld [vmem:[#allocation14 + $0xf60] sm:$0xff]  ;;  %v6817_v56 = vld [vmem:[#allocation14 + $0xf68] sm:$0xff] }
 0x534   : > { %9070 = vmatpush1.bf16.msra.mxu0 %v11076_v55  ;;  %v6813_v55 = vld [vmem:[#allocation14 + $0xf48] sm:$0xff]  ;;  %v6856_v36 = vld [vmem:[#allocation14 + $0x10a0] sm:$0xff] }
 0x535   : > { %9193 = vmatpush1.bf16.msra.mxu1 %v11078_v57  ;;  %9071 = vmatprep.subr.bf16.mxu0 %v11085_v58  ;;  %v11126_v57 = vcombine.low %v6805_v37, %v6809_v47  ;;  %v11133_v58 = vcombine.high %v6812_v54, %v6816_v49  ;;  %v6853_v37 = vld [vmem:[#allocation14 + $0x1088] sm:$0xff] }
 0x536   : > { %9194 = vmatprep.subr.bf16.mxu1 %v11087_v63  ;;  %v11135_v63 = vcombine.high %v6813_v55, %v6817_v56  ;;  %v6857_v47 = vld [vmem:[#allocation14 + $0x10a8] sm:$0xff] }
 0x538   : > { %9072 = vmatpush1.bf16.msra.mxu0 %v11084_v12  ;;  %v11132_v12 = vcombine.low %v6812_v54, %v6816_v49  ;;  %v6860_v54 = vld [vmem:[#allocation14 + $0x10c0] sm:$0xff] }
 0x539   : > { %9195 = vmatpush1.bf16.msra.mxu1 %v11086_v13  ;;  %9073 = vmatprep.subr.bf16.mxu0 %v11093_v2  ;;  %v11134_v13 = vcombine.low %v6813_v55, %v6817_v56  ;;  %v11141_v2 = vcombine.high %v6820_v59, %v6824_v61  ;;  %v6864_v49 = vld [vmem:[#allocation14 + $0x10e0] sm:$0xff]  ;;  %v6861_v55 = vld [vmem:[#allocation14 + $0x10c8] sm:$0xff] }
 0x53a   : > { %9196 = vmatprep.subr.bf16.mxu1 %v11095_v3  ;;  %v11143_v3 = vcombine.high %v6821_v62, %v6825_v7  ;;  %v6865_v56 = vld [vmem:[#allocation14 + $0x10e8] sm:$0xff] }
 0x53c   : > { %9074 = vmatpush1.bf16.msra.mxu0 %v11092_v11  ;;  %v11140_v11 = vcombine.low %v6820_v59, %v6824_v61  ;;  %v6868_v59 = vld [vmem:[#allocation14 + $0x1100] sm:$0xff] }
 0x53d   : > { %9197 = vmatpush1.bf16.msra.mxu1 %v11094_v17  ;;  %9075 = vmatprep.subr.bf16.mxu0 %v11101_v18  ;;  %v11142_v17 = vcombine.low %v6821_v62, %v6825_v7  ;;  %v11149_v18 = vcombine.high %v6828_v6, %v6832_v4  ;;  %v6872_v61 = vld [vmem:[#allocation14 + $0x1120] sm:$0xff]  ;;  %v6869_v62 = vld [vmem:[#allocation14 + $0x1108] sm:$0xff] }
 0x53e   : > { %9198 = vmatprep.subr.bf16.mxu1 %v11103_v19  ;;  %v11151_v19 = vcombine.high %v6829_v8, %v6833_v10  ;;  %v6873_v7 = vld [vmem:[#allocation14 + $0x1128] sm:$0xff] }
 0x540   : > { %9076 = vmatpush1.bf16.msra.mxu0 %v11100_v26  ;;  %v11148_v26 = vcombine.low %v6828_v6, %v6832_v4  ;;  %v6876_v6 = vld [vmem:[#allocation14 + $0x1140] sm:$0xff] }
 0x541   : > { %9199 = vmatpush1.bf16.msra.mxu1 %v11102_v27  ;;  %9077 = vmatprep.subr.bf16.mxu0 %v11109_v28  ;;  %v11150_v27 = vcombine.low %v6829_v8, %v6833_v10  ;;  %v11157_v28 = vcombine.high %v6836_v52, %v6840_v21  ;;  %v6880_v4 = vld [vmem:[#allocation14 + $0x1160] sm:$0xff]  ;;  %v6877_v8 = vld [vmem:[#allocation14 + $0x1148] sm:$0xff] }
 0x542   : > { %9200 = vmatprep.subr.bf16.mxu1 %v11111_v30  ;;  %v11159_v30 = vcombine.high %v6837_v22, %v6841_v23  ;;  %v6881_v10 = vld [vmem:[#allocation14 + $0x1168] sm:$0xff]  ;;  %v6884_v52 = vld [vmem:[#allocation14 + $0x1180] sm:$0xff] }
 0x543   : > { %v6888_v21 = vld [vmem:[#allocation14 + $0x11a0] sm:$0xff] }
 0x544   : > { %9078 = vmatpush1.bf16.msra.mxu0 %v11108_v51  ;;  %v6849_v51 = vld [vmem:[#allocation14 + $0x1068] sm:$0xff] }
 0x545   : > { %9201 = vmatpush1.bf16.msra.mxu1 %v11110_v34  ;;  %9079 = vmatprep.subr.bf16.mxu0 %v11117_v42  ;;  %v11158_v34 = vcombine.low %v6837_v22, %v6841_v23  ;;  %v11165_v42 = vcombine.high %v6844_v31, %v6848_v24  ;;  %v11167_v43 = vcombine.high %v6845_v32, %v6849_v51  ;;  %v6885_v22 = vld [vmem:[#allocation14 + $0x1188] sm:$0xff] }
 0x546   : > { %9202 = vmatprep.subr.bf16.mxu1 %v11119_v35  ;;  %v6852_v35 = vld [vmem:[#allocation14 + $0x1080] sm:$0xff]  ;;  %v6889_v23 = vld [vmem:[#allocation14 + $0x11a8] sm:$0xff] }
 0x548   : > { %9080 = vmatpush1.bf16.msra.mxu0 %v11116_v44  ;;  %v11164_v44 = vcombine.low %v6844_v31, %v6848_v24  ;;  %v6892_v31 = vld [vmem:[#allocation14 + $0x11c0] sm:$0xff] }
 0x549   : > { %9203 = vmatpush1.bf16.msra.mxu1 %v11118_v48  ;;  %9081 = vmatprep.subr.bf16.mxu0 %v11125_v0  ;;  %v11166_v48 = vcombine.low %v6845_v32, %v6849_v51  ;;  %v11173_v0 = vcombine.high %v6852_v35, %v6856_v36  ;;  %v6896_v24 = vld [vmem:[#allocation14 + $0x11e0] sm:$0xff]  ;;  %v6897_v32 = vld [vmem:[#allocation14 + $0x11e8] sm:$0xff]  ;;  %v11204_v51 = vcombine.low %v6884_v52, %v6888_v21 }
 0x54a   : > { %9204 = vmatprep.subr.bf16.mxu1 %v11127_v50  ;;  %v11175_v50 = vcombine.high %v6853_v37, %v6857_v47 }
 0x54c   : > { %9082 = vmatpush1.bf16.msra.mxu0 %v11124_v60  ;;  %v11172_v60 = vcombine.low %v6852_v35, %v6856_v36  ;;  %v6900_v36 = vld [vmem:[#allocation14 + $0x1200] sm:$0xff] }
 0x54d   : > { %9205 = vmatpush1.bf16.msra.mxu1 %v11126_v57  ;;  %9083 = vmatprep.subr.bf16.mxu0 %v11133_v58  ;;  %v11174_v57 = vcombine.low %v6853_v37, %v6857_v47  ;;  %v11181_v58 = vcombine.high %v6860_v54, %v6864_v49  ;;  %v6901_v37 = vld [vmem:[#allocation14 + $0x1208] sm:$0xff] }
 0x54e   : > { %9206 = vmatprep.subr.bf16.mxu1 %v11135_v63  ;;  %v11183_v63 = vcombine.high %v6861_v55, %v6865_v56  ;;  %v6905_v47 = vld [vmem:[#allocation14 + $0x1228] sm:$0xff] }
 0x550   : > { %9084 = vmatpush1.bf16.msra.mxu0 %v11132_v12  ;;  %v11180_v12 = vcombine.low %v6860_v54, %v6864_v49  ;;  %v6908_v54 = vld [vmem:[#allocation14 + $0x1240] sm:$0xff] }
 0x551   : > { %9207 = vmatpush1.bf16.msra.mxu1 %v11134_v13  ;;  %9085 = vmatprep.subr.bf16.mxu0 %v11141_v2  ;;  %v11182_v13 = vcombine.low %v6861_v55, %v6865_v56  ;;  %v11189_v2 = vcombine.high %v6868_v59, %v6872_v61  ;;  %v6912_v49 = vld [vmem:[#allocation14 + $0x1260] sm:$0xff]  ;;  %v6909_v55 = vld [vmem:[#allocation14 + $0x1248] sm:$0xff] }
 0x552   : > { %9208 = vmatprep.subr.bf16.mxu1 %v11143_v3  ;;  %v11191_v3 = vcombine.high %v6869_v62, %v6873_v7  ;;  %v6913_v56 = vld [vmem:[#allocation14 + $0x1268] sm:$0xff] }
 0x554   : > { %9086 = vmatpush1.bf16.msra.mxu0 %v11140_v11  ;;  %v11188_v11 = vcombine.low %v6868_v59, %v6872_v61  ;;  %v6916_v59 = vld [vmem:[#allocation14 + $0x1280] sm:$0xff] }
 0x555   : > { %9209 = vmatpush1.bf16.msra.mxu1 %v11142_v17  ;;  %9087 = vmatprep.subr.bf16.mxu0 %v11149_v18  ;;  %v11190_v17 = vcombine.low %v6869_v62, %v6873_v7  ;;  %v11197_v18 = vcombine.high %v6876_v6, %v6880_v4  ;;  %v6920_v61 = vld [vmem:[#allocation14 + $0x12a0] sm:$0xff]  ;;  %v6917_v62 = vld [vmem:[#allocation14 + $0x1288] sm:$0xff] }
 0x556   : > { %9210 = vmatprep.subr.bf16.mxu1 %v11151_v19  ;;  %v11199_v19 = vcombine.high %v6877_v8, %v6881_v10  ;;  %v6921_v7 = vld [vmem:[#allocation14 + $0x12a8] sm:$0xff] }
 0x558   : > { %9088 = vmatpush1.bf16.msra.mxu0 %v11148_v26  ;;  %v11196_v26 = vcombine.low %v6876_v6, %v6880_v4  ;;  %v6924_v6 = vld [vmem:[#allocation14 + $0x12c0] sm:$0xff] }
 0x559   : > { %9211 = vmatpush1.bf16.msra.mxu1 %v11150_v27  ;;  %9098 = vmatprep.subr.bf16.mxu0 %v11157_v28  ;;  %v11198_v27 = vcombine.low %v6877_v8, %v6881_v10  ;;  %v11205_v28 = vcombine.high %v6884_v52, %v6888_v21  ;;  %v6928_v4 = vld [vmem:[#allocation14 + $0x12e0] sm:$0xff]  ;;  %v6925_v8 = vld [vmem:[#allocation14 + $0x12c8] sm:$0xff] }
 0x55a   : > { %9221 = vmatprep.subr.bf16.mxu1 %v11159_v30  ;;  %v11207_v30 = vcombine.high %v6885_v22, %v6889_v23  ;;  %v6929_v10 = vld [vmem:[#allocation14 + $0x12e8] sm:$0xff]  ;;  %v6932_v52 = vld [vmem:[#allocation14 + $0x1300] sm:$0xff] }
 0x55b   : > { %9090 = vmatmul.mubr.bf16.vlgmr.msra.gmra.mrb[24].mxu0 %v12941_v53  ;;  %v6936_v21 = vld [vmem:[#allocation14 + $0x1320] sm:$0xff] }
 0x55c   : > { %9213 = vmatmul.mubr.bf16.vlgmr.msra.gmra.mrb[24].mxu1 %v12941_v53  ;;  %9099 = vmatpush1.bf16.msra.mxu0 %v11156_v25  ;;  %v6893_v25 = vld [vmem:[#allocation14 + $0x11c8] sm:$0xff] }
 0x55d   : > { %9130 = vmatprep.mubr.bf16.mxu0 %v12969_v41  ;;  %9222 = vmatpush1.bf16.msra.mxu1 %v11158_v34  ;;  %v11206_v34 = vcombine.low %v6885_v22, %v6889_v23  ;;  %v11215_v35 = vcombine.high %v6893_v25, %v6897_v32  ;;  %v6933_v22 = vld [vmem:[#allocation14 + $0x1308] sm:$0xff] }
 0x55e   : > { %9253 = vmatprep.mubr.bf16.mxu1 %v12969_v41  ;;  %9100 = vmatprep.subr.bf16.mxu0 %v11165_v42  ;;  %v11213_v42 = vcombine.high %v6892_v31, %v6896_v24  ;;  %v6937_v23 = vld [vmem:[#allocation14 + $0x1328] sm:$0xff] }
 0x55f   : > { %9223 = vmatprep.subr.bf16.mxu1 %v11167_v43  ;;  %v6904_v43 = vld [vmem:[#allocation14 + $0x1220] sm:$0xff] }
 0x560   : > { %9101 = vmatpush1.bf16.msra.mxu0 %v11164_v44  ;;  %v11212_v44 = vcombine.low %v6892_v31, %v6896_v24  ;;  %v6940_v31 = vld [vmem:[#allocation14 + $0x1340] sm:$0xff] }
 0x561   : > { %9224 = vmatpush1.bf16.msra.mxu1 %v11166_v48  ;;  %9102 = vmatprep.subr.bf16.mxu0 %v11173_v0  ;;  %v11214_v48 = vcombine.low %v6893_v25, %v6897_v32  ;;  %v11221_v0 = vcombine.high %v6900_v36, %v6904_v43  ;;  %v6944_v24 = vld [vmem:[#allocation14 + $0x1360] sm:$0xff]  ;;  %v6941_v25 = vld [vmem:[#allocation14 + $0x1348] sm:$0xff] }
 0x562   : > { %9225 = vmatprep.subr.bf16.mxu1 %v11175_v50  ;;  %v11223_v50 = vcombine.high %v6901_v37, %v6905_v47  ;;  %v6945_v32 = vld [vmem:[#allocation14 + $0x1368] sm:$0xff] }
 0x564   : > { %9103 = vmatpush1.bf16.msra.mxu0 %v11172_v60  ;;  %v11220_v60 = vcombine.low %v6900_v36, %v6904_v43  ;;  %v6948_v36 = vld [vmem:[#allocation14 + $0x1380] sm:$0xff] }
 0x565   : > { %9226 = vmatpush1.bf16.msra.mxu1 %v11174_v57  ;;  %9104 = vmatprep.subr.bf16.mxu0 %v11181_v58  ;;  %v11222_v57 = vcombine.low %v6901_v37, %v6905_v47  ;;  %v11229_v58 = vcombine.high %v6908_v54, %v6912_v49  ;;  %v6952_v43 = vld [vmem:[#allocation14 + $0x13a0] sm:$0xff]  ;;  %v6949_v37 = vld [vmem:[#allocation14 + $0x1388] sm:$0xff] }
 0x566   : > { %9227 = vmatprep.subr.bf16.mxu1 %v11183_v63  ;;  %v11231_v63 = vcombine.high %v6909_v55, %v6913_v56  ;;  %v6953_v47 = vld [vmem:[#allocation14 + $0x13a8] sm:$0xff] }
 0x568   : > { %9105 = vmatpush1.bf16.msra.mxu0 %v11180_v12  ;;  %v11228_v12 = vcombine.low %v6908_v54, %v6912_v49  ;;  %v6956_v54 = vld [vmem:[#allocation14 + $0x13c0] sm:$0xff] }
 0x569   : > { %9228 = vmatpush1.bf16.msra.mxu1 %v11182_v13  ;;  %9106 = vmatprep.subr.bf16.mxu0 %v11189_v2  ;;  %v11230_v13 = vcombine.low %v6909_v55, %v6913_v56  ;;  %v11237_v2 = vcombine.high %v6916_v59, %v6920_v61  ;;  %v6960_v49 = vld [vmem:[#allocation14 + $0x13e0] sm:$0xff]  ;;  %v6957_v55 = vld [vmem:[#allocation14 + $0x13c8] sm:$0xff] }
 0x56a   : > { %9229 = vmatprep.subr.bf16.mxu1 %v11191_v3  ;;  %v11239_v3 = vcombine.high %v6917_v62, %v6921_v7  ;;  %v6961_v56 = vld [vmem:[#allocation14 + $0x13e8] sm:$0xff] }
 0x56c   : > { %9107 = vmatpush1.bf16.msra.mxu0 %v11188_v11  ;;  %v11236_v11 = vcombine.low %v6916_v59, %v6920_v61  ;;  %v6964_v59 = vld [vmem:[#allocation14 + $0x1400] sm:$0xff] }
 0x56d   : > { %9230 = vmatpush1.bf16.msra.mxu1 %v11190_v17  ;;  %9108 = vmatprep.subr.bf16.mxu0 %v11197_v18  ;;  %v11238_v17 = vcombine.low %v6917_v62, %v6921_v7  ;;  %v11245_v18 = vcombine.high %v6924_v6, %v6928_v4  ;;  %v6968_v61 = vld [vmem:[#allocation14 + $0x1420] sm:$0xff]  ;;  %v6965_v62 = vld [vmem:[#allocation14 + $0x1408] sm:$0xff] }
 0x56e   : > { %9231 = vmatprep.subr.bf16.mxu1 %v11199_v19  ;;  %v11247_v19 = vcombine.high %v6925_v8, %v6929_v10  ;;  %v6969_v7 = vld [vmem:[#allocation14 + $0x1428] sm:$0xff] }
 0x570   : > { %9109 = vmatpush1.bf16.msra.mxu0 %v11196_v26  ;;  %v11244_v26 = vcombine.low %v6924_v6, %v6928_v4  ;;  %v6972_v6 = vld [vmem:[#allocation14 + $0x1440] sm:$0xff] }
 0x571   : > { %9232 = vmatpush1.bf16.msra.mxu1 %v11198_v27  ;;  %9110 = vmatprep.subr.bf16.mxu0 %v11205_v28  ;;  %v11246_v27 = vcombine.low %v6925_v8, %v6929_v10  ;;  %v11253_v28 = vcombine.high %v6932_v52, %v6936_v21  ;;  %v6976_v4 = vld [vmem:[#allocation14 + $0x1460] sm:$0xff]  ;;  %v6973_v8 = vld [vmem:[#allocation14 + $0x1448] sm:$0xff] }
 0x572   : > { %9233 = vmatprep.subr.bf16.mxu1 %v11207_v30  ;;  %v11255_v30 = vcombine.high %v6933_v22, %v6937_v23  ;;  %v6977_v10 = vld [vmem:[#allocation14 + $0x1468] sm:$0xff] }
 0x574   : > { %9111 = vmatpush1.bf16.msra.mxu0 %v11204_v51  ;;  %v11252_v51 = vcombine.low %v6932_v52, %v6936_v21  ;;  %v11295_v52 = vcombine.high %v6973_v8, %v6977_v10  ;;  %v6980_v21 = vld [vmem:[#allocation14 + $0x1480] sm:$0xff] }
 0x575   : > { %9234 = vmatpush1.bf16.msra.mxu1 %v11206_v34  ;;  %9112 = vmatprep.subr.bf16.mxu0 %v11213_v42  ;;  %v11254_v34 = vcombine.low %v6933_v22, %v6937_v23  ;;  %v11261_v42 = vcombine.high %v6940_v31, %v6944_v24  ;;  %v6984_v22 = vld [vmem:[#allocation14 + $0x14a0] sm:$0xff] }
 0x576   : > { %9235 = vmatprep.subr.bf16.mxu1 %v11215_v35  ;;  %v11263_v35 = vcombine.high %v6941_v25, %v6945_v32 }
 0x578   : > { %9113 = vmatpush1.bf16.msra.mxu0 %v11212_v44  ;;  %v11260_v44 = vcombine.low %v6940_v31, %v6944_v24  ;;  %v11301_v31 = vcombine.high %v6980_v21, %v6984_v22 }
 0x579   : > { %9236 = vmatpush1.bf16.msra.mxu1 %v11214_v48  ;;  %9114 = vmatprep.subr.bf16.mxu0 %v11221_v0  ;;  %v11262_v48 = vcombine.low %v6941_v25, %v6945_v32  ;;  %v11269_v0 = vcombine.high %v6948_v36, %v6952_v43  ;;  %v6988_v25 = vld [vmem:[#allocation14 + $0x14c0] sm:$0xff] }
 0x57a   : > { %9237 = vmatprep.subr.bf16.mxu1 %v11223_v50  ;;  %v11271_v50 = vcombine.high %v6949_v37, %v6953_v47  ;;  %v6992_v32 = vld [vmem:[#allocation14 + $0x14e0] sm:$0xff] }
 0x57c   : > { %9115 = vmatpush1.bf16.msra.mxu0 %v11220_v60  ;;  %v11268_v60 = vcombine.low %v6948_v36, %v6952_v43  ;;  %v11309_v36 = vcombine.high %v6988_v25, %v6992_v32 }
 0x57d   : > { %9238 = vmatpush1.bf16.msra.mxu1 %v11222_v57  ;;  %9116 = vmatprep.subr.bf16.mxu0 %v11229_v58  ;;  %v11270_v57 = vcombine.low %v6949_v37, %v6953_v47  ;;  %v11277_v58 = vcombine.high %v6956_v54, %v6960_v49  ;;  %v6996_v37 = vld [vmem:[#allocation14 + $0x1500] sm:$0xff] }
 0x57e   : > { %9239 = vmatprep.subr.bf16.mxu1 %v11231_v63  ;;  %v11279_v63 = vcombine.high %v6957_v55, %v6961_v56  ;;  %v7000_v47 = vld [vmem:[#allocation14 + $0x1520] sm:$0xff] }
 0x580   : > { %9117 = vmatpush1.bf16.msra.mxu0 %v11228_v12  ;;  %v11276_v12 = vcombine.low %v6956_v54, %v6960_v49  ;;  %v11317_v54 = vcombine.high %v6996_v37, %v7000_v47 }
 0x581   : > { %9240 = vmatpush1.bf16.msra.mxu1 %v11230_v13  ;;  %9118 = vmatprep.subr.bf16.mxu0 %v11237_v2  ;;  %v11278_v13 = vcombine.low %v6957_v55, %v6961_v56  ;;  %v11285_v2 = vcombine.high %v6964_v59, %v6968_v61  ;;  %v7004_v55 = vld [vmem:[#allocation14 + $0x1540] sm:$0xff] }
 0x582   : > { %9241 = vmatprep.subr.bf16.mxu1 %v11239_v3  ;;  %v11287_v3 = vcombine.high %v6965_v62, %v6969_v7  ;;  %v7008_v56 = vld [vmem:[#allocation14 + $0x1560] sm:$0xff] }
 0x584   : > { %9119 = vmatpush1.bf16.msra.mxu0 %v11236_v11  ;;  %v659_v11 = vld [vmem:[#allocation10 + $0x38] sm:$0xff] }
 0x585   : > { %9242 = vmatpush1.bf16.msra.mxu1 %v11238_v17  ;;  %9120 = vmatprep.subr.bf16.mxu0 %v11245_v18  ;;  %v11284_v17 = vcombine.low %v6964_v59, %v6968_v61  ;;  %v11286_v18 = vcombine.low %v6965_v62, %v6969_v7  ;;  %v13017_v23 = vpack.c.bf16 %v659_v11, %v659_v11  ;;  %v7012_v62 = vld [vmem:[#allocation14 + $0x1580] sm:$0xff]  ;;  %v7021_v11 = vld [vmem:[#allocation14 + $0x15c8] sm:$0xff] }
 0x586   : > { %9243 = vmatprep.subr.bf16.mxu1 %v11247_v19  ;;  %v11293_v19 = vcombine.high %v6972_v6, %v6976_v4  ;;  %v11325_v59 = vcombine.high %v7004_v55, %v7008_v56  ;;  %v7016_v7 = vld [vmem:[#allocation14 + $0x15a0] sm:$0xff] }
 0x588   : > { %9121 = vmatpush1.bf16.msra.mxu0 %v11244_v26  ;;  %v6981_v26 = vld [vmem:[#allocation14 + $0x1488] sm:$0xff] }
 0x589   : > { %9244 = vmatpush1.bf16.msra.mxu1 %v11246_v27  ;;  %9122 = vmatprep.subr.bf16.mxu0 %v11253_v28  ;;  %v6985_v27 = vld [vmem:[#allocation14 + $0x14a8] sm:$0xff]  ;;  %v11292_v28 = vcombine.low %v6972_v6, %v6976_v4  ;;  %v11333_v6 = vcombine.high %v7012_v62, %v7016_v7 }
 0x58a   : > { %9245 = vmatprep.subr.bf16.mxu1 %v11255_v30  ;;  %v11294_v30 = vcombine.low %v6973_v8, %v6977_v10  ;;  %v11303_v24 = vcombine.high %v6981_v26, %v6985_v27  ;;  %v7020_v8 = vld [vmem:[#allocation14 + $0x15c0] sm:$0xff] }
 0x58b   : > { %v7024_v10 = vld [vmem:[#allocation14 + $0x15e0] sm:$0xff] }
 0x58c   : > { %9123 = vmatpush1.bf16.msra.mxu0 %v11252_v51  ;;  %v6989_v51 = vld [vmem:[#allocation14 + $0x14c8] sm:$0xff] }
 0x58d   : > { %9246 = vmatpush1.bf16.msra.mxu1 %v11254_v34  ;;  %9124 = vmatprep.subr.bf16.mxu0 %v11261_v42  ;;  %v6993_v34 = vld [vmem:[#allocation14 + $0x14e8] sm:$0xff]  ;;  %v11300_v42 = vcombine.low %v6980_v21, %v6984_v22  ;;  %v7028_v22 = vld [vmem:[#allocation14 + $0x1600] sm:$0xff] }
 0x58e   : > { %9247 = vmatprep.subr.bf16.mxu1 %v11263_v35  ;;  %v11302_v35 = vcombine.low %v6981_v26, %v6985_v27  ;;  %v11311_v43 = vcombine.high %v6989_v51, %v6993_v34  ;;  %v7032_v26 = vld [vmem:[#allocation14 + $0x1620] sm:$0xff]  ;;  %v7029_v27 = vld [vmem:[#allocation14 + $0x1608] sm:$0xff] }
 0x590   : > { %9125 = vmatpush1.bf16.msra.mxu0 %v11260_v44  ;;  %v6997_v44 = vld [vmem:[#allocation14 + $0x1508] sm:$0xff] }
 0x591   : > { %9248 = vmatpush1.bf16.msra.mxu1 %v11262_v48  ;;  %9126 = vmatprep.subr.bf16.mxu0 %v11269_v0  ;;  %v7001_v48 = vld [vmem:[#allocation14 + $0x1528] sm:$0xff]  ;;  %v11308_v0 = vcombine.low %v6988_v25, %v6992_v32  ;;  %v7036_v32 = vld [vmem:[#allocation14 + $0x1640] sm:$0xff] }
 0x592   : > { %9249 = vmatprep.subr.bf16.mxu1 %v11271_v50  ;;  %v11310_v50 = vcombine.low %v6989_v51, %v6993_v34  ;;  %v11319_v49 = vcombine.high %v6997_v44, %v7001_v48  ;;  %v7040_v51 = vld [vmem:[#allocation14 + $0x1660] sm:$0xff]  ;;  %v7037_v34 = vld [vmem:[#allocation14 + $0x1648] sm:$0xff] }
 0x594   : > { %9127 = vmatpush1.bf16.msra.mxu0 %v11268_v60  ;;  %v7005_v60 = vld [vmem:[#allocation14 + $0x1548] sm:$0xff] }
 0x595   : > { %9250 = vmatpush1.bf16.msra.mxu1 %v11270_v57  ;;  %9128 = vmatprep.subr.bf16.mxu0 %v11277_v58  ;;  %v7009_v57 = vld [vmem:[#allocation14 + $0x1568] sm:$0xff]  ;;  %v11316_v58 = vcombine.low %v6996_v37, %v7000_v47  ;;  %v7044_v47 = vld [vmem:[#allocation14 + $0x1680] sm:$0xff] }
 0x596   : > { %9251 = vmatprep.subr.bf16.mxu1 %v11279_v63  ;;  %v11318_v63 = vcombine.low %v6997_v44, %v7001_v48  ;;  %v11327_v61 = vcombine.high %v7005_v60, %v7009_v57  ;;  %v7048_v44 = vld [vmem:[#allocation14 + $0x16a0] sm:$0xff]  ;;  %v7045_v48 = vld [vmem:[#allocation14 + $0x1688] sm:$0xff] }
 0x598   : > { %9129 = vmatpush1.bf16.msra.mxu0 %v11276_v12  ;;  %v7013_v12 = vld [vmem:[#allocation14 + $0x1588] sm:$0xff] }
 0x599   : > { %9252 = vmatpush1.bf16.msra.mxu1 %v11278_v13  ;;  %9139 = vmatprep.subr.bf16.mxu0 %v11285_v2  ;;  %v7017_v13 = vld [vmem:[#allocation14 + $0x15a8] sm:$0xff]  ;;  %v11324_v2 = vcombine.low %v7004_v55, %v7008_v56  ;;  %v7052_v56 = vld [vmem:[#allocation14 + $0x16c0] sm:$0xff] }
 0x59a   : > { %9262 = vmatprep.subr.bf16.mxu1 %v11287_v3  ;;  %v11326_v3 = vcombine.low %v7005_v60, %v7009_v57  ;;  %v11335_v4 = vcombine.high %v7013_v12, %v7017_v13  ;;  %v7056_v60 = vld [vmem:[#allocation14 + $0x16e0] sm:$0xff]  ;;  %v7053_v57 = vld [vmem:[#allocation14 + $0x16c8] sm:$0xff] }
 0x59b   : > { %9131 = vmatmul.mubr.bf16.vlgmr.msra.gmra.mrb[24].mxu0 %v12971_v40 }
 0x59c   : > { %9254 = vmatmul.mubr.bf16.vlgmr.msra.gmra.mrb[24].mxu1 %v12971_v40  ;;  %9140 = vmatpush1.bf16.msra.mxu0 %v11284_v17  ;;  %v7025_v17 = vld [vmem:[#allocation14 + $0x15e8] sm:$0xff] }
 0x59d   : > { %9263 = vmatpush1.bf16.msra.mxu1 %v11286_v18  ;;  %9141 = vmatprep.subr.bf16.mxu0 %v11293_v19  ;;  %v11332_v18 = vcombine.low %v7012_v62, %v7016_v7  ;;  %v11334_v19 = vcombine.low %v7013_v12, %v7017_v13  ;;  %v11343_v21 = vcombine.high %v7021_v11, %v7025_v17  ;;  %v7060_v7 = vld [vmem:[#allocation14 + $0x1700] sm:$0xff]  ;;  %v7061_v13 = vld [vmem:[#allocation14 + $0x1708] sm:$0xff] }
 0x59e   : > { %9264 = vmatprep.subr.bf16.mxu1 %v11295_v52  ;;  %9171 = vmatprep.mubr.bf16.mxu0 %v13017_v23  ;;  %v11341_v52 = vcombine.high %v7020_v8, %v7024_v10  ;;  %v7064_v12 = vld [vmem:[#allocation14 + $0x1720] sm:$0xff] }
 0x59f   : > { %9294 = vmatprep.mubr.bf16.mxu1 %v13017_v23 }
 0x5a0   : > { %9142 = vmatpush1.bf16.msra.mxu0 %v11292_v28  ;;  %v7033_v28 = vld [vmem:[#allocation14 + $0x1628] sm:$0xff] }
 0x5a1   : > { %9265 = vmatpush1.bf16.msra.mxu1 %v11294_v30  ;;  %9143 = vmatprep.subr.bf16.mxu0 %v11301_v31  ;;  %v11340_v30 = vcombine.low %v7020_v8, %v7024_v10  ;;  %v11342_v31 = vcombine.low %v7021_v11, %v7025_v17  ;;  %v11351_v25 = vcombine.high %v7029_v27, %v7033_v28  ;;  %v7068_v10 = vld [vmem:[#allocation14 + $0x1740] sm:$0xff]  ;;  %v7069_v17 = vld [vmem:[#allocation14 + $0x1748] sm:$0xff] }
 0x5a2   : > { %9266 = vmatprep.subr.bf16.mxu1 %v11303_v24  ;;  %v11349_v24 = vcombine.high %v7028_v22, %v7032_v26  ;;  %v7072_v11 = vld [vmem:[#allocation14 + $0x1760] sm:$0xff] }
 0x5a4   : > { %9144 = vmatpush1.bf16.msra.mxu0 %v11300_v42  ;;  %v7041_v42 = vld [vmem:[#allocation14 + $0x1668] sm:$0xff] }
 0x5a5   : > { %9267 = vmatpush1.bf16.msra.mxu1 %v11302_v35  ;;  %9145 = vmatprep.subr.bf16.mxu0 %v11309_v36  ;;  %v11348_v35 = vcombine.low %v7028_v22, %v7032_v26  ;;  %v11350_v36 = vcombine.low %v7029_v27, %v7033_v28  ;;  %v11359_v37 = vcombine.high %v7037_v34, %v7041_v42  ;;  %v7076_v26 = vld [vmem:[#allocation14 + $0x1780] sm:$0xff]  ;;  %v7077_v28 = vld [vmem:[#allocation14 + $0x1788] sm:$0xff] }
 0x5a6   : > { %9268 = vmatprep.subr.bf16.mxu1 %v11311_v43  ;;  %v11357_v43 = vcombine.high %v7036_v32, %v7040_v51  ;;  %v7080_v27 = vld [vmem:[#allocation14 + $0x17a0] sm:$0xff] }
 0x5a8   : > { %9146 = vmatpush1.bf16.msra.mxu0 %v11308_v0  ;;  %v7049_v0 = vld [vmem:[#allocation14 + $0x16a8] sm:$0xff] }
 0x5a9   : > { %9269 = vmatpush1.bf16.msra.mxu1 %v11310_v50  ;;  %9147 = vmatprep.subr.bf16.mxu0 %v11317_v54  ;;  %v11356_v50 = vcombine.low %v7036_v32, %v7040_v51  ;;  %v11358_v54 = vcombine.low %v7037_v34, %v7041_v42  ;;  %v11367_v55 = vcombine.high %v7045_v48, %v7049_v0  ;;  %v7084_v34 = vld [vmem:[#allocation14 + $0x17c0] sm:$0xff] }
 0x5aa   : > { %9270 = vmatprep.subr.bf16.mxu1 %v11319_v49  ;;  %v11365_v49 = vcombine.high %v7044_v47, %v7048_v44  ;;  %v11397_v32 = vcombine.high %v7076_v26, %v7080_v27  ;;  %v7088_v42 = vld [vmem:[#allocation14 + $0x17e0] sm:$0xff] }
 0x5ac   : > { %9148 = vmatpush1.bf16.msra.mxu0 %v11316_v58  ;;  %v7057_v58 = vld [vmem:[#allocation14 + $0x16e8] sm:$0xff] }
 0x5ad   : > { %9271 = vmatpush1.bf16.msra.mxu1 %v11318_v63  ;;  %9149 = vmatprep.subr.bf16.mxu0 %v11325_v59  ;;  %v11364_v63 = vcombine.low %v7044_v47, %v7048_v44  ;;  %v11366_v59 = vcombine.low %v7045_v48, %v7049_v0  ;;  %v11375_v62 = vcombine.high %v7053_v57, %v7057_v58 }
 0x5ae   : > { %9272 = vmatprep.subr.bf16.mxu1 %v11327_v61  ;;  %v11373_v61 = vcombine.high %v7052_v56, %v7056_v60  ;;  %v11405_v48 = vcombine.high %v7084_v34, %v7088_v42 }
 0x5b0   : > { %9150 = vmatpush1.bf16.msra.mxu0 %v11324_v2  ;;  %v7065_v2 = vld [vmem:[#allocation14 + $0x1728] sm:$0xff] }
 0x5b1   : > { %9273 = vmatpush1.bf16.msra.mxu1 %v11326_v3  ;;  %9151 = vmatprep.subr.bf16.mxu0 %v11333_v6  ;;  %v11372_v3 = vcombine.low %v7052_v56, %v7056_v60  ;;  %v11374_v6 = vcombine.low %v7053_v57, %v7057_v58  ;;  %v11383_v8 = vcombine.high %v7061_v13, %v7065_v2  ;;  %v6711_v56 = vld [vmem:[#allocation14 + $0xc18] sm:$0xff] }
 0x5b2   : > { %9274 = vmatprep.subr.bf16.mxu1 %v11335_v4  ;;  %v11381_v4 = vcombine.high %v7060_v7, %v7064_v12  ;;  %v6715_v60 = vld [vmem:[#allocation14 + $0xc38] sm:$0xff]  ;;  %v11404_v58 = vcombine.low %v7084_v34, %v7088_v42 }
 0x5b4   : > { %9152 = vmatpush1.bf16.msra.mxu0 %v11332_v18  ;;  %v7073_v18 = vld [vmem:[#allocation14 + $0x1768] sm:$0xff] }
 0x5b5   : > { %9275 = vmatpush1.bf16.msra.mxu1 %v11334_v19  ;;  %9153 = vmatprep.subr.bf16.mxu0 %v11341_v52  ;;  %v11380_v19 = vcombine.low %v7060_v7, %v7064_v12  ;;  %v11382_v52 = vcombine.low %v7061_v13, %v7065_v2  ;;  %v11391_v22 = vcombine.high %v7069_v17, %v7073_v18 }
 0x5b6   : > { %9276 = vmatprep.subr.bf16.mxu1 %v11343_v21  ;;  %v11389_v21 = vcombine.high %v7068_v10, %v7072_v11  ;;  %v11035_v12 = vcombine.high %v6711_v56, %v6715_v60 }
 0x5b8   : > { %9154 = vmatpush1.bf16.msra.mxu0 %v11340_v30  ;;  %v7081_v30 = vld [vmem:[#allocation14 + $0x17a8] sm:$0xff] }
 0x5b9   : > { %9277 = vmatpush1.bf16.msra.mxu1 %v11342_v31  ;;  %9155 = vmatprep.subr.bf16.mxu0 %v11349_v24  ;;  %v11388_v31 = vcombine.low %v7068_v10, %v7072_v11  ;;  %v13023_v24 = vld [vmem:[#allocation16 + $0x10] sm:$0xff]  ;;  %v11399_v51 = vcombine.high %v7077_v28, %v7081_v30  ;;  %v11398_v44 = vcombine.low %v7077_v28, %v7081_v30  ;;  %v6723_v10 = vld [vmem:[#allocation14 + $0xc78] sm:$0xff] }
 0x5ba   : > { %9278 = vmatprep.subr.bf16.mxu1 %v11351_v25  ;;  %v11390_v25 = vcombine.low %v7069_v17, %v7073_v18  ;;  %v4218_v47 = vrot.slane %v13023_v24, %v12895_v1  ;;  %v4222_v0 = vrot.slane %v13023_v24, %v12901_v9  ;;  %v11034_v11 = vcombine.low %v6711_v56, %v6715_v60  ;;  %v6726_v18 = vld [vmem:[#allocation14 + $0xc90] sm:$0xff]  ;;  %v6751_v60 = vld [vmem:[#allocation14 + $0xd58] sm:$0xff] }
 0x5bc   : > { %9156 = vmatpush1.bf16.msra.mxu0 %v11348_v35  ;;  %v7085_v35 = vld [vmem:[#allocation14 + $0x17c8] sm:$0xff]  ;;  %v11519_v7 = vadd.f32 %v13011_v46, %v4222_v0 }
 0x5bd   : > { %9279 = vmatpush1.bf16.msra.mxu1 %v11350_v36  ;;  %9157 = vmatprep.subr.bf16.mxu0 %v11357_v43  ;;  %v7089_v36 = vld [vmem:[#allocation14 + $0x17e8] sm:$0xff]  ;;  %v4210_v43 = vrot.slane %v13023_v24, %v12890_v29 }
 0x5be   : > { %9280 = vmatprep.subr.bf16.mxu1 %v11359_v37  ;;  %v11396_v37 = vcombine.low %v7076_v26, %v7080_v27  ;;  %v11025_v17 = vmul.f32 -1.442695, %v11519_v7 }
 0x5bf   : > { %v11516_v57 = vadd.f32 %v13005_v38, %v4210_v43  ;;  %v6742_v43 = vld [vmem:[#allocation14 + $0xd10] sm:$0xff] }
 0x5c0   : > { %9158 = vmatpush1.bf16.msra.mxu0 %v11356_v50  ;;  %v11407_v50 = vcombine.high %v7085_v35, %v7089_v36 }
 0x5c1   : > { %9281 = vmatpush1.bf16.msra.mxu1 %v11358_v54  ;;  %9159 = vmatprep.subr.bf16.mxu0 %v11365_v49  ;;  %v6710_v54 = vld [vmem:[#allocation14 + $0xc10] sm:$0xff]  ;;  %v11022_v38 = vmul.f32 -1.442695, %v11516_v57  ;;  %v6755_v57 = vld [vmem:[#allocation14 + $0xd78] sm:$0xff] }
 0x5c2   : > { %9282 = vmatprep.subr.bf16.mxu1 %v11367_v55  ;;  %v6714_v49 = vld [vmem:[#allocation14 + $0xc30] sm:$0xff]  ;;  %v4214_v55 = vrot.slane %v13023_v24, %v12898_v5 }
 0x5c3   : > { %11872 = vpow2.f32 %v11022_v38 }
 0x5c4   : > { %9160 = vmatpush1.bf16.msra.mxu0 %v11364_v63  ;;  %v658_v63 = vld [vmem:[#allocation10 + $0x30] sm:$0xff]  ;;  %v11517_v13 = vadd.f32 %v13009_v45, %v4214_v55 }
 0x5c5   : > { %9283 = vmatpush1.bf16.msra.mxu1 %v11366_v59  ;;  %9161 = vmatprep.subr.bf16.mxu0 %v11373_v61  ;;  %v11518_v59 = vadd.f32 %v13007_v39, %v4218_v47  ;;  %v11406_v61 = vcombine.low %v7085_v35, %v7089_v36  ;;  %v13037_v2 = vpack.c.bf16 %v658_v63, %v658_v63  ;;  %v6743_v47 = vld [vmem:[#allocation14 + $0xd18] sm:$0xff]  ;;  %v6754_v55 = vld [vmem:[#allocation14 + $0xd70] sm:$0xff] }
 0x5c6   : > { %9284 = vmatprep.subr.bf16.mxu1 %v11375_v62  ;;  %v11033_v62 = vcombine.high %v6710_v54, %v6714_v49 }
 0x5c7   : > { %v11024_v39 = vmul.f32 -1.442695, %v11518_v59 }
 0x5c8   : > { %9162 = vmatpush1.bf16.msra.mxu0 %v11372_v3  ;;  %v6718_v3 = vld [vmem:[#allocation14 + $0xc50] sm:$0xff] }
 0x5c9   : > { %9285 = vmatpush1.bf16.msra.mxu1 %v11374_v6  ;;  %9163 = vmatprep.subr.bf16.mxu0 %v11381_v4  ;;  %v6722_v6 = vld [vmem:[#allocation14 + $0xc70] sm:$0xff]  ;;  %v11032_v4 = vcombine.low %v6710_v54, %v6714_v49  ;;  %11874 = vpow2.f32 %v11024_v39 }
 0x5ca   : > { %9286 = vmatprep.subr.bf16.mxu1 %v11383_v8  ;;  %v6719_v8 = vld [vmem:[#allocation14 + $0xc58] sm:$0xff]  ;;  %v11041_v46 = vcombine.high %v6718_v3, %v6722_v6  ;;  %v11040_v26 = vcombine.low %v6718_v3, %v6722_v6  ;;  %11876 = vpow2.f32 %v11025_v17  ;;  %v6750_v49 = vld [vmem:[#allocation14 + $0xd50] sm:$0xff]  ;;  %v4230_v17 = vrot.slane %v13023_v24, %v12924_v16 }
 0x5cb   : > { %v11043_v45 = vcombine.high %v6719_v8, %v6723_v10  ;;  %v11042_v27 = vcombine.low %v6719_v8, %v6723_v10  ;;  %v11073_v7 = vcombine.high %v6750_v49, %v6754_v55  ;;  %v6758_v3 = vld [vmem:[#allocation14 + $0xd90] sm:$0xff]  ;;  %v6759_v8 = vld [vmem:[#allocation14 + $0xd98] sm:$0xff] }
 0x5cc   : > { %9164 = vmatpush1.bf16.msra.mxu0 %v11380_v19  ;;  %v6730_v19 = vld [vmem:[#allocation14 + $0xcb0] sm:$0xff]  ;;  %v6763_v10 = vld [vmem:[#allocation14 + $0xdb8] sm:$0xff] }
 0x5cd   : > { %9287 = vmatpush1.bf16.msra.mxu1 %v11382_v52  ;;  %9165 = vmatprep.subr.bf16.mxu0 %v11389_v21  ;;  %v11023_v52 = vmul.f32 -1.442695, %v11517_v13  ;;  %v6727_v21 = vld [vmem:[#allocation14 + $0xc98] sm:$0xff]  ;;  %v11049_v28 = vcombine.high %v6726_v18, %v6730_v19  ;;  %v11048_v34 = vcombine.low %v6726_v18, %v6730_v19  ;;  %v11075_v13 = vcombine.high %v6751_v60, %v6755_v57  ;;  %v6762_v6 = vld [vmem:[#allocation14 + $0xdb0] sm:$0xff] }
 0x5ce   : > { %9288 = vmatprep.subr.bf16.mxu1 %v11391_v22  ;;  %v6731_v22 = vld [vmem:[#allocation14 + $0xcb8] sm:$0xff]  ;;  %v4238_v18 = vrot.slane %v13023_v24, %v12927_v20  ;;  %v11074_v19 = vcombine.low %v6751_v60, %v6755_v57 }
 0x5cf   : > { %v11051_v30 = vcombine.high %v6727_v21, %v6731_v22  ;;  %11878 = vpow2.f32 %v11023_v52  ;;  %v11050_v42 = vcombine.low %v6727_v21, %v6731_v22  ;;  %v11081_v52 = vcombine.high %v6758_v3, %v6762_v6  ;;  %v6766_v22 = vld [vmem:[#allocation14 + $0xdd0] sm:$0xff] }
 0x5d0   : > { %9166 = vmatpush1.bf16.msra.mxu0 %v11388_v31  ;;  %v6734_v31 = vld [vmem:[#allocation14 + $0xcd0] sm:$0xff]  ;;  %v11083_v21 = vcombine.high %v6759_v8, %v6763_v10 }
 0x5d1   : > { %9289 = vmatpush1.bf16.msra.mxu1 %v11390_v25  ;;  %9167 = vmatprep.subr.bf16.mxu0 %v11397_v32  ;;  %v6738_v25 = vld [vmem:[#allocation14 + $0xcf0] sm:$0xff]  ;;  %v6735_v32 = vld [vmem:[#allocation14 + $0xcd8] sm:$0xff] }
 0x5d2   : > { %9290 = vmatprep.subr.bf16.mxu1 %v11399_v51  ;;  %v6739_v51 = vld [vmem:[#allocation14 + $0xcf8] sm:$0xff]  ;;  %v11057_v35 = vcombine.high %v6734_v31, %v6738_v25 }
 0x5d3   : > { %v11059_v36 = vcombine.high %v6735_v32, %v6739_v51 }
 0x5d4   : > { %9168 = vmatpush1.bf16.msra.mxu0 %v11396_v37  ;;  %v6746_v37 = vld [vmem:[#allocation14 + $0xd30] sm:$0xff] }
 0x5d5   : > { %9291 = vmatpush1.bf16.msra.mxu1 %v11398_v44  ;;  %9169 = vmatprep.subr.bf16.mxu0 %v11405_v48  ;;  %v11056_v44 = vcombine.low %v6734_v31, %v6738_v25  ;;  %v11058_v48 = vcombine.low %v6735_v32, %v6739_v51  ;;  %v11065_v0 = vcombine.high %v6742_v43, %v6746_v37  ;;  %v6767_v31 = vld [vmem:[#allocation14 + $0xdd8] sm:$0xff] }
 0x5d6   : > { %9292 = vmatprep.subr.bf16.mxu1 %v11407_v50  ;;  %v11873_v50 = vpop.eup %11872  ;;  %v11064_v63 = vcombine.low %v6742_v43, %v6746_v37  ;;  %v6771_v25 = vld [vmem:[#allocation14 + $0xdf8] sm:$0xff]  ;;  %v11082_v37 = vcombine.low %v6759_v8, %v6763_v10 }
 0x5d7   : > { %v11875_v56 = vpop.eup %11874  ;;  %v11090_v60 = vcombine.low %v6767_v31, %v6771_v25 }
 0x5d8   : > { %9170 = vmatpush1.bf16.msra.mxu0 %v11404_v58  ;;  %v11877_v58 = vpop.eup %11876 }
 0x5d9   : > { %9293 = vmatpush1.bf16.msra.mxu1 %v11406_v61  ;;  %9303 = vmatprep.subr.bf16.mxu0 %v11033_v62  ;;  %v11879_v59 = vpop.eup %11878  ;;  %v6665_v61 = vadd.f32 1.0, %v11873_v50  ;;  %v6678_v38 = vadd.f32 1.0, %v11877_v58  ;;  %v6778_v50 = vld [vmem:[#allocation14 + $0xe30] sm:$0xff] }
 0x5da   : > { %9426 = vmatprep.subr.bf16.mxu1 %v11035_v12  ;;  %v6677_v12 = vadd.f32 1.0, %v11875_v56  ;;  %v6666_v39 = vadd.f32 1.0, %v11879_v59  ;;  %v6786_v59 = vld [vmem:[#allocation14 + $0xe70] sm:$0xff] }
 0x5db   : > { %9172 = vmatmul.mubr.bf16.vlgmr.msra.gmra.mrb[24].mxu0 %v13037_v2  ;;  %11880 = vrcp.f32 %v6665_v61 }
 0x5dc   : > { %9295 = vmatmul.mubr.bf16.vlgmr.msra.gmra.mrb[24].mxu1 %v13037_v2  ;;  %9304 = vmatpush1.bf16.msra.mxu0 %v11032_v4  ;;  %v4226_v4 = vrot.slane %v13023_v24, %v12918_v14  ;;  %11882 = vrcp.f32 %v6677_v12 }
 0x5dd   : > { %9335 = vmatprep.mubr.bf16.mxu0 %v12937_v33  ;;  %9427 = vmatpush1.bf16.msra.mxu1 %v11034_v11  ;;  %v4234_v11 = vrot.slane %v13023_v24, %v12921_v15  ;;  %11884 = vrcp.f32 %v6678_v38  ;;  %v665_v38 = vld [vmem:[#allocation11 + $0x28] sm:$0xff] }
 0x5de   : > { %9458 = vmatprep.mubr.bf16.mxu1 %v12937_v33  ;;  %9305 = vmatprep.subr.bf16.mxu0 %v11041_v46  ;;  %v6747_v33 = vld [vmem:[#allocation14 + $0xd38] sm:$0xff]  ;;  %v11072_v46 = vcombine.low %v6750_v49, %v6754_v55  ;;  %11886 = vrcp.f32 %v6666_v39 }
 0x5df   : > { %9428 = vmatprep.subr.bf16.mxu1 %v11043_v45  ;;  %v11067_v54 = vcombine.high %v6743_v47, %v6747_v33  ;;  %v11066_v62 = vcombine.low %v6743_v47, %v6747_v33  ;;  %v6775_v49 = vld [vmem:[#allocation14 + $0xe18] sm:$0xff] }
 0x5e0   : > { %9306 = vmatpush1.bf16.msra.mxu0 %v11040_v26  ;;  %v6770_v26 = vld [vmem:[#allocation14 + $0xdf0] sm:$0xff]  ;;  %v6779_v55 = vld [vmem:[#allocation14 + $0xe38] sm:$0xff] }
 0x5e1   : > { %9429 = vmatpush1.bf16.msra.mxu1 %v11042_v27  ;;  %9307 = vmatprep.subr.bf16.mxu0 %v11049_v28  ;;  %v11089_v47 = vcombine.high %v6766_v22, %v6770_v26  ;;  %v11088_v56 = vcombine.low %v6766_v22, %v6770_v26  ;;  %v11099_v58 = vcombine.high %v6775_v49, %v6779_v55 }
 0x5e2   : > { %9430 = vmatprep.subr.bf16.mxu1 %v11051_v30 }
 0x5e4   : > { %9308 = vmatpush1.bf16.msra.mxu0 %v11048_v34 }
 0x5e5   : > { %9431 = vmatpush1.bf16.msra.mxu1 %v11050_v42  ;;  %9309 = vmatprep.subr.bf16.mxu0 %v11057_v35  ;;  %v11080_v42 = vcombine.low %v6758_v3, %v6762_v6  ;;  %v11881_v61 = vpop.eup %11880  ;;  %v664_v6 = vld [vmem:[#allocation11 + $0x20] sm:$0xff] }
 0x5e6   : > { %9432 = vmatprep.subr.bf16.mxu1 %v11059_v36  ;;  %v11883_v12 = vpop.eup %11882 }
 0x5e7   : > { %v11885_v3 = vpop.eup %11884 }
 0x5e8   : > { %9310 = vmatpush1.bf16.msra.mxu0 %v11056_v44  ;;  %v11887_v10 = vpop.eup %11886 }
 0x5e9   : > { %9433 = vmatpush1.bf16.msra.mxu1 %v11058_v48  ;;  %9311 = vmatprep.subr.bf16.mxu0 %v11065_v0  ;;  %v11091_v48 = vcombine.high %v6767_v31, %v6771_v25  ;;  %v6774_v0 = vld [vmem:[#allocation14 + $0xe10] sm:$0xff] }
 0x5ea   : > { %9434 = vmatprep.subr.bf16.mxu1 %v11067_v54  ;;  %v11097_v57 = vcombine.high %v6774_v0, %v6778_v50 }
 0x5ec   : > { %9312 = vmatpush1.bf16.msra.mxu0 %v11064_v63  ;;  %v6782_v63 = vld [vmem:[#allocation14 + $0xe50] sm:$0xff] }
 0x5ed   : > { %9435 = vmatpush1.bf16.msra.mxu1 %v11066_v62  ;;  %9313 = vmatprep.subr.bf16.mxu0 %v11073_v7  ;;  %v6783_v62 = vld [vmem:[#allocation14 + $0xe58] sm:$0xff]  ;;  %v11105_v8 = vcombine.high %v6782_v63, %v6786_v59  ;;  %v11104_v26 = vcombine.low %v6782_v63, %v6786_v59  ;;  %v6818_v63 = vld [vmem:[#allocation14 + $0xf70] sm:$0xff] }
 0x5ee   : > { %v6529_v45 = vpop.f32.mrb[20].mxu0  ;;  %9436 = vmatprep.subr.bf16.mxu1 %v11075_v13  ;;  %v6787_v7 = vld [vmem:[#allocation14 + $0xe78] sm:$0xff]  ;;  %v11096_v13 = vcombine.low %v6774_v0, %v6778_v50  ;;  %v6806_v0 = vld [vmem:[#allocation14 + $0xf10] sm:$0xff] }
 0x5ef   : > { %v11520_v27 = vadd.f32 %v6529_v45, %v4226_v4  ;;  %v6652_v28 = vpop.f32.mrb[20].mxu1  ;;  %v6531_v30 = vpop.f32.mrb[21].mxu0  ;;  %v11098_v4 = vcombine.low %v6775_v49, %v6779_v55  ;;  %v11107_v39 = vcombine.high %v6783_v62, %v6787_v7  ;;  %v6697_v45 = vmul.f32 %v11883_v12, %v664_v6  ;;  %v6810_v50 = vld [vmem:[#allocation14 + $0xf30] sm:$0xff]  ;;  %v6811_v49 = vld [vmem:[#allocation14 + $0xf38] sm:$0xff] }
 0x5f0   : > { %v11522_v32 = vadd.f32 %v6652_v28, %v4234_v11  ;;  %v11521_v51 = vadd.f32 %v6531_v30, %v4230_v17  ;;  %v6654_v34 = vpop.f32.mrb[21].mxu1  ;;  %v6533_v24 = vpop.f32.mrb[22].mxu0  ;;  %9314 = vmatpush1.bf16.msra.mxu0 %v11072_v46  ;;  %v6790_v11 = vld [vmem:[#allocation14 + $0xe90] sm:$0xff]  ;;  %v11106_v28 = vcombine.low %v6783_v62, %v6787_v7  ;;  %v6815_v59 = vld [vmem:[#allocation14 + $0xf58] sm:$0xff]  ;;  %v11128_v62 = vcombine.low %v6806_v0, %v6810_v50 }
 0x5f1   : > { %11888 = vtanh.f32 %v11520_v27  ;;  %v11523_v35 = vadd.f32 %v6654_v34, %v4238_v18  ;;  %v6656_v36 = vpop.f32.mrb[22].mxu1  ;;  %9437 = vmatpush1.bf16.msra.mxu1 %v11074_v19  ;;  %v6534_v43 = vpop.f32.mrb[23].mxu0  ;;  %9315 = vmatprep.subr.bf16.mxu0 %v11081_v52  ;;  %v6794_v17 = vld [vmem:[#allocation14 + $0xeb0] sm:$0xff]  ;;  %v6791_v18 = vld [vmem:[#allocation14 + $0xe98] sm:$0xff] }
 0x5f2   : > { %v11026_v33 = vmul.f32 -1.442695, %v11522_v32  ;;  %11890 = vtanh.f32 %v11521_v51  ;;  %v6657_v44 = vpop.f32.mrb[23].mxu1  ;;  %9438 = vmatprep.subr.bf16.mxu1 %v11083_v21  ;;  %v6795_v19 = vld [vmem:[#allocation14 + $0xeb8] sm:$0xff]  ;;  %v6698_v21 = vmul.f32 %v11885_v3, %v665_v38  ;;  %v11113_v30 = vcombine.high %v6790_v11, %v6794_v17  ;;  %v6798_v51 = vld [vmem:[#allocation14 + $0xed0] sm:$0xff] }
 0x5f3   : > { %v11027_v54 = vmul.f32 -1.442695, %v11523_v35  ;;  %v11115_v32 = vcombine.high %v6791_v18, %v6795_v19  ;;  %v6802_v34 = vld [vmem:[#allocation14 + $0xef0] sm:$0xff]  ;;  %v6799_v36 = vld [vmem:[#allocation14 + $0xed8] sm:$0xff] }
 0x5f4   : > { %11892 = vpow2.f32 %v11026_v33  ;;  %9316 = vmatpush1.bf16.msra.mxu0 %v11080_v42  ;;  %v6803_v43 = vld [vmem:[#allocation14 + $0xef8] sm:$0xff]  ;;  %v11114_v33 = vcombine.low %v6791_v18, %v6795_v19  ;;  %v11121_v44 = vcombine.high %v6798_v51, %v6802_v34  ;;  %v11120_v55 = vcombine.low %v6798_v51, %v6802_v34  ;;  %v6822_v6 = vld [vmem:[#allocation14 + $0xf90] sm:$0xff] }
 0x5f5   : > { %11894 = vpow2.f32 %v11027_v54  ;;  %9439 = vmatpush1.bf16.msra.mxu1 %v11082_v37  ;;  %9317 = vmatprep.subr.bf16.mxu0 %v11089_v47  ;;  %v11112_v47 = vcombine.low %v6790_v11, %v6794_v17  ;;  %v6807_v54 = vld [vmem:[#allocation14 + $0xf18] sm:$0xff]  ;;  %v6826_v38 = vld [vmem:[#allocation14 + $0xfb0] sm:$0xff] }
 0x5f6   : > { %9440 = vmatprep.subr.bf16.mxu1 %v11091_v48  ;;  %v11123_v48 = vcombine.high %v6799_v36, %v6803_v43  ;;  %v11130_v7 = vcombine.low %v6807_v54, %v6811_v49  ;;  %v11145_v19 = vcombine.high %v6822_v6, %v6826_v38  ;;  %v6842_v51 = vld [vmem:[#allocation14 + $0x1030] sm:$0xff]  ;;  %v6839_v34 = vld [vmem:[#allocation14 + $0x1018] sm:$0xff] }
 0x5f8   : > { %9318 = vmatpush1.bf16.msra.mxu0 %v11088_v56  ;;  %v11122_v56 = vcombine.low %v6799_v36, %v6803_v43 }
 0x5f9   : > { %9441 = vmatpush1.bf16.msra.mxu1 %v11090_v60  ;;  %9319 = vmatprep.subr.bf16.mxu0 %v11097_v57  ;;  %v11129_v60 = vcombine.high %v6806_v0, %v6810_v50  ;;  %v11131_v57 = vcombine.high %v6807_v54, %v6811_v49  ;;  %v6854_v54 = vld [vmem:[#allocation14 + $0x1090] sm:$0xff] }
 0x5fa   : > { %9442 = vmatprep.subr.bf16.mxu1 %v11099_v58  ;;  %v6814_v58 = vld [vmem:[#allocation14 + $0xf50] sm:$0xff] }
 0x5fb   : > { %v11889_v46 = vpop.eup %11888  ;;  %v11137_v12 = vcombine.high %v6814_v58, %v6818_v63  ;;  %v11136_v11 = vcombine.low %v6814_v58, %v6818_v63  ;;  %v6858_v49 = vld [vmem:[#allocation14 + $0x10b0] sm:$0xff] }
 0x5fc   : > { %v11891_v52 = vpop.eup %11890  ;;  %v6699_v22 = vmul.f32 %v11889_v46, %v11881_v61  ;;  %9320 = vmatpush1.bf16.msra.mxu0 %v11096_v13  ;;  %v6819_v61 = vld [vmem:[#allocation14 + $0xf78] sm:$0xff]  ;;  %v11177_v63 = vcombine.high %v6854_v54, %v6858_v49 }
 0x5fd   : > { %v6700_v27 = vmul.f32 %v11891_v52, %v11887_v10  ;;  %9443 = vmatpush1.bf16.msra.mxu1 %v11098_v4  ;;  %9321 = vmatprep.subr.bf16.mxu0 %v11105_v8  ;;  %v11139_v3 = vcombine.high %v6815_v59, %v6819_v61  ;;  %v6823_v8 = vld [vmem:[#allocation14 + $0xf98] sm:$0xff]  ;;  %v11138_v18 = vcombine.low %v6815_v59, %v6819_v61  ;;  %v6862_v61 = vld [vmem:[#allocation14 + $0x10d0] sm:$0xff] }
 0x5fe   : > { %v11893_v31 = vpop.eup %11892  ;;  %v6701_v25 = vadd.f32 %v6699_v22, %v6697_v45  ;;  %9444 = vmatprep.subr.bf16.mxu1 %v11107_v39  ;;  %v6827_v10 = vld [vmem:[#allocation14 + $0xfb8] sm:$0xff]  ;;  %v6830_v45 = vld [vmem:[#allocation14 + $0xfd0] sm:$0xff] }
 0x5ff   : > { %v11895_v24 = vpop.eup %11894  ;;  %v6691_v42 = vadd.f32 1.0, %v11893_v31  ;;  %v6702_v35 = vadd.f32 %v6700_v27, %v6698_v21  ;;  %v11147_v52 = vcombine.high %v6823_v8, %v6827_v10  ;;  %v6834_v21 = vld [vmem:[#allocation14 + $0xff0] sm:$0xff]  ;;  %v6835_v27 = vld [vmem:[#allocation14 + $0xff8] sm:$0xff] }
 0x600   : > { %11896 = vtanh.f32 %v6701_v25  ;;  %v6692_v37 = vadd.f32 1.0, %v11895_v24  ;;  %9322 = vmatpush1.bf16.msra.mxu0 %v11104_v26  ;;  %v6831_v26 = vld [vmem:[#allocation14 + $0xfd8] sm:$0xff]  ;;  %v11153_v31 = vcombine.high %v6830_v45, %v6834_v21 }
 0x601   : > { %11898 = vrcp.f32 %v6691_v42  ;;  %9445 = vmatpush1.bf16.msra.mxu1 %v11106_v28  ;;  %9323 = vmatprep.subr.bf16.mxu0 %v11113_v30  ;;  %v11144_v28 = vcombine.low %v6822_v6, %v6826_v38  ;;  %v11146_v30 = vcombine.low %v6823_v8, %v6827_v10  ;;  %v11155_v25 = vcombine.high %v6831_v26, %v6835_v27  ;;  %v6843_v24 = vld [vmem:[#allocation14 + $0x1038] sm:$0xff]  ;;  %v6870_v38 = vld [vmem:[#allocation14 + $0x1110] sm:$0xff] }
 0x602   : > { %11900 = vtanh.f32 %v6702_v35  ;;  %9446 = vmatprep.subr.bf16.mxu1 %v11115_v32  ;;  %v6838_v32 = vld [vmem:[#allocation14 + $0x1010] sm:$0xff]  ;;  %v11152_v42 = vcombine.low %v6830_v45, %v6834_v21  ;;  %v11154_v35 = vcombine.low %v6831_v26, %v6835_v27  ;;  %v11163_v43 = vcombine.high %v6839_v34, %v6843_v24  ;;  %v6871_v8 = vld [vmem:[#allocation14 + $0x1118] sm:$0xff] }
 0x603   : > { %11902 = vrcp.f32 %v6692_v37  ;;  %v11161_v36 = vcombine.high %v6838_v32, %v6842_v51  ;;  %v6846_v37 = vld [vmem:[#allocation14 + $0x1050] sm:$0xff]  ;;  %v11162_v0 = vcombine.low %v6839_v34, %v6843_v24  ;;  %v6875_v10 = vld [vmem:[#allocation14 + $0x1138] sm:$0xff] }
 0x604   : > { %9324 = vmatpush1.bf16.msra.mxu0 %v11112_v47  ;;  %v6850_v47 = vld [vmem:[#allocation14 + $0x1070] sm:$0xff]  ;;  %v6883_v45 = vld [vmem:[#allocation14 + $0x1178] sm:$0xff]  ;;  %v11194_v26 = vcombine.low %v6871_v8, %v6875_v10 }
 0x605   : > { %9447 = vmatpush1.bf16.msra.mxu1 %v11114_v33  ;;  %9325 = vmatprep.subr.bf16.mxu0 %v11121_v44  ;;  %v11160_v33 = vcombine.low %v6838_v32, %v6842_v51  ;;  %v6847_v44 = vld [vmem:[#allocation14 + $0x1058] sm:$0xff]  ;;  %v11169_v50 = vcombine.high %v6846_v37, %v6850_v47 }
 0x606   : > { %9448 = vmatprep.subr.bf16.mxu1 %v11123_v48  ;;  %v6851_v48 = vld [vmem:[#allocation14 + $0x1078] sm:$0xff] }
 0x607   : > { %v11170_v58 = vcombine.low %v6847_v44, %v6851_v48  ;;  %v6891_v32 = vld [vmem:[#allocation14 + $0x11b8] sm:$0xff] }
 0x608   : > { %9326 = vmatpush1.bf16.msra.mxu0 %v11120_v55  ;;  %v11171_v55 = vcombine.high %v6847_v44, %v6851_v48 }
 0x609   : > { %9449 = vmatpush1.bf16.msra.mxu1 %v11122_v56  ;;  %9327 = vmatprep.subr.bf16.mxu0 %v11129_v60  ;;  %v6855_v56 = vld [vmem:[#allocation14 + $0x1098] sm:$0xff] }
 0x60a   : > { %v11897_v13 = vpop.eup %11896  ;;  %9450 = vmatprep.subr.bf16.mxu1 %v11131_v57  ;;  %v6859_v60 = vld [vmem:[#allocation14 + $0x10b8] sm:$0xff]  ;;  %v11168_v57 = vcombine.low %v6846_v37, %v6850_v47 }
 0x60b   : > { %v11899_v4 = vpop.eup %11898  ;;  %v11179_v59 = vcombine.high %v6855_v56, %v6859_v60  ;;  %v6899_v37 = vld [vmem:[#allocation14 + $0x11f8] sm:$0xff] }
 0x60c   : > { %v11901_v39 = vpop.eup %11900  ;;  %9328 = vmatpush1.bf16.msra.mxu0 %v11128_v62  ;;  %v13060_v17 = vmul.f32 %v11899_v4, %v11897_v13  ;;  %v6866_v62 = vld [vmem:[#allocation14 + $0x10f0] sm:$0xff]  ;;  %v11176_v13 = vcombine.low %v6854_v54, %v6858_v49  ;;  %v6903_v54 = vld [vmem:[#allocation14 + $0x1218] sm:$0xff] }
 0x60d   : > { %v11903_v46 = vpop.eup %11902  ;;  %9451 = vmatpush1.bf16.msra.mxu1 %v11130_v7  ;;  %9329 = vmatprep.subr.bf16.mxu0 %v11137_v12  ;;  %v6863_v7 = vld [vmem:[#allocation14 + $0x10d8] sm:$0xff]  ;;  %v6874_v4 = vld [vmem:[#allocation14 + $0x1130] sm:$0xff] }
 0x60e   : > { %9452 = vmatprep.subr.bf16.mxu1 %v11139_v3  ;;  %v13062_v22 = vmul.f32 %v11903_v46, %v11901_v39  ;;  %9597 = vst [vmem:[%s13058_s21] sm:$0xff] %v13060_v17  ;;  %v6867_v12 = vld [vmem:[#allocation14 + $0x10f8] sm:$0xff]  ;;  %v11185_v3 = vcombine.high %v6862_v61, %v6866_v62  ;;  %v11195_v46 = vcombine.high %v6871_v8, %v6875_v10 }
 0x60f   : > { %v11187_v6 = vcombine.high %v6863_v7, %v6867_v12  ;;  %v11186_v39 = vcombine.low %v6863_v7, %v6867_v12  ;;  %v11192_v21 = vcombine.low %v6870_v38, %v6874_v4  ;;  %v6907_v49 = vld [vmem:[#allocation14 + $0x1238] sm:$0xff] }
 0x610   : > { %9330 = vmatpush1.bf16.msra.mxu0 %v11136_v11  ;;  %9598 = vst [vmem:[%s13058_s21 + $0x8] sm:$0xff] %v13062_v22  ;;  %v11193_v11 = vcombine.high %v6870_v38, %v6874_v4  ;;  %v11226_v7 = vcombine.low %v6903_v54, %v6907_v49  ;;  %v6923_v38 = vld [vmem:[#allocation14 + $0x12b8] sm:$0xff] }
 0x611   : > { %9453 = vmatpush1.bf16.msra.mxu1 %v11138_v18  ;;  %9331 = vmatprep.subr.bf16.mxu0 %v11145_v19  ;;  %v6878_v18 = vld [vmem:[#allocation14 + $0x1150] sm:$0xff] }
 0x612   : > { %9454 = vmatprep.subr.bf16.mxu1 %v11147_v52  ;;  %v6882_v19 = vld [vmem:[#allocation14 + $0x1170] sm:$0xff]  ;;  %v6879_v52 = vld [vmem:[#allocation14 + $0x1158] sm:$0xff] }
 0x613   : > { %v11201_v27 = vcombine.high %v6878_v18, %v6882_v19  ;;  %v11200_v51 = vcombine.low %v6878_v18, %v6882_v19  ;;  %v11202_v34 = vcombine.low %v6879_v52, %v6883_v45  ;;  %v6931_v18 = vld [vmem:[#allocation14 + $0x12f8] sm:$0xff] }
 0x614   : > { %9332 = vmatpush1.bf16.msra.mxu0 %v11144_v28  ;;  %v11203_v28 = vcombine.high %v6879_v52, %v6883_v45 }
 0x615   : > { %9455 = vmatpush1.bf16.msra.mxu1 %v11146_v30  ;;  %9333 = vmatprep.subr.bf16.mxu0 %v11153_v31  ;;  %v6886_v30 = vld [vmem:[#allocation14 + $0x1190] sm:$0xff] }
 0x616   : > { %9456 = vmatprep.subr.bf16.mxu1 %v11155_v25  ;;  %v6890_v31 = vld [vmem:[#allocation14 + $0x11b0] sm:$0xff]  ;;  %v6887_v25 = vld [vmem:[#allocation14 + $0x1198] sm:$0xff] }
 0x617   : > { %v11209_v24 = vcombine.high %v6886_v30, %v6890_v31  ;;  %v11208_v47 = vcombine.low %v6886_v30, %v6890_v31  ;;  %v6939_v30 = vld [vmem:[#allocation14 + $0x1338] sm:$0xff] }
 0x618   : > { %9334 = vmatpush1.bf16.msra.mxu0 %v11152_v42  ;;  %v11211_v42 = vcombine.high %v6887_v25, %v6891_v32 }
 0x619   : > { %9457 = vmatpush1.bf16.msra.mxu1 %v11154_v35  ;;  %9344 = vmatprep.subr.bf16.mxu0 %v11161_v36  ;;  %v6894_v35 = vld [vmem:[#allocation14 + $0x11d0] sm:$0xff] }
 0x61a   : > { %9467 = vmatprep.subr.bf16.mxu1 %v11163_v43  ;;  %v6898_v36 = vld [vmem:[#allocation14 + $0x11f0] sm:$0xff]  ;;  %v6895_v43 = vld [vmem:[#allocation14 + $0x11d8] sm:$0xff] }
 0x61b   : > { %9336 = vmatmul.mubr.bf16.vlgmr.msra.gmra.mrb[28].mxu0 %v12941_v53  ;;  %v11217_v44 = vcombine.high %v6894_v35, %v6898_v36  ;;  %v11219_v48 = vcombine.high %v6895_v43, %v6899_v37 }
 0x61c   : > { %9459 = vmatmul.mubr.bf16.vlgmr.msra.gmra.mrb[28].mxu1 %v12941_v53  ;;  %9345 = vmatpush1.bf16.msra.mxu0 %v11160_v33  ;;  %v11178_v53 = vcombine.low %v6855_v56, %v6859_v60  ;;  %v11210_v33 = vcombine.low %v6887_v25, %v6891_v32  ;;  %v11218_v56 = vcombine.low %v6895_v43, %v6899_v37 }
 0x61d   : > { %9376 = vmatprep.mubr.bf16.mxu0 %v12969_v41  ;;  %9468 = vmatpush1.bf16.msra.mxu1 %v11162_v0  ;;  %v6902_v0 = vld [vmem:[#allocation14 + $0x1210] sm:$0xff] }
 0x61e   : > { %9499 = vmatprep.mubr.bf16.mxu1 %v12969_v41  ;;  %9346 = vmatprep.subr.bf16.mxu0 %v11169_v50  ;;  %v11184_v41 = vcombine.low %v6862_v61, %v6866_v62  ;;  %v6906_v50 = vld [vmem:[#allocation14 + $0x1230] sm:$0xff]  ;;  %v6915_v61 = vld [vmem:[#allocation14 + $0x1278] sm:$0xff] }
 0x61f   : > { %9469 = vmatprep.subr.bf16.mxu1 %v11171_v55  ;;  %v11216_v55 = vcombine.low %v6894_v35, %v6898_v36  ;;  %v11225_v60 = vcombine.high %v6902_v0, %v6906_v50  ;;  %v11224_v62 = vcombine.low %v6902_v0, %v6906_v50  ;;  %v6947_v35 = vld [vmem:[#allocation14 + $0x1378] sm:$0xff] }
 0x620   : > { %9347 = vmatpush1.bf16.msra.mxu0 %v11168_v57  ;;  %v11227_v57 = vcombine.high %v6903_v54, %v6907_v49  ;;  %v6955_v0 = vld [vmem:[#allocation14 + $0x13b8] sm:$0xff] }
 0x621   : > { %9470 = vmatpush1.bf16.msra.mxu1 %v11170_v58  ;;  %9348 = vmatprep.subr.bf16.mxu0 %v11177_v63  ;;  %v6910_v58 = vld [vmem:[#allocation14 + $0x1250] sm:$0xff] }
 0x622   : > { %9471 = vmatprep.subr.bf16.mxu1 %v11179_v59  ;;  %v6914_v63 = vld [vmem:[#allocation14 + $0x1270] sm:$0xff]  ;;  %v6911_v59 = vld [vmem:[#allocation14 + $0x1258] sm:$0xff] }
 0x623   : > { %v11233_v12 = vcombine.high %v6910_v58, %v6914_v63  ;;  %v11232_v4 = vcombine.low %v6910_v58, %v6914_v63  ;;  %v11234_v8 = vcombine.low %v6911_v59, %v6915_v61  ;;  %v6963_v58 = vld [vmem:[#allocation14 + $0x13f8] sm:$0xff] }
 0x624   : > { %9349 = vmatpush1.bf16.msra.mxu0 %v11176_v13  ;;  %v11235_v13 = vcombine.high %v6911_v59, %v6915_v61 }
 0x625   : > { %9472 = vmatpush1.bf16.msra.mxu1 %v11178_v53  ;;  %9350 = vmatprep.subr.bf16.mxu0 %v11185_v3  ;;  %v6918_v53 = vld [vmem:[#allocation14 + $0x1290] sm:$0xff] }
 0x626   : > { %9473 = vmatprep.subr.bf16.mxu1 %v11187_v6  ;;  %v6922_v3 = vld [vmem:[#allocation14 + $0x12b0] sm:$0xff]  ;;  %v6919_v6 = vld [vmem:[#allocation14 + $0x1298] sm:$0xff] }
 0x627   : > { %v11241_v10 = vcombine.high %v6918_v53, %v6922_v3  ;;  %v11240_v19 = vcombine.low %v6918_v53, %v6922_v3  ;;  %v11242_v52 = vcombine.low %v6919_v6, %v6923_v38  ;;  %v6971_v53 = vld [vmem:[#allocation14 + $0x1438] sm:$0xff] }
 0x628   : > { %9351 = vmatpush1.bf16.msra.mxu0 %v11184_v41  ;;  %v11243_v41 = vcombine.high %v6919_v6, %v6923_v38 }
 0x629   : > { %9474 = vmatpush1.bf16.msra.mxu1 %v11186_v39  ;;  %9352 = vmatprep.subr.bf16.mxu0 %v11193_v11  ;;  %v6926_v39 = vld [vmem:[#allocation14 + $0x12d0] sm:$0xff] }
 0x62a   : > { %9475 = vmatprep.subr.bf16.mxu1 %v11195_v46  ;;  %v6930_v11 = vld [vmem:[#allocation14 + $0x12f0] sm:$0xff]  ;;  %v6927_v46 = vld [vmem:[#allocation14 + $0x12d8] sm:$0xff] }
 0x62b   : > { %v11249_v45 = vcombine.high %v6926_v39, %v6930_v11  ;;  %v11248_v31 = vcombine.low %v6926_v39, %v6930_v11  ;;  %v11250_v25 = vcombine.low %v6927_v46, %v6931_v18  ;;  %v6979_v39 = vld [vmem:[#allocation14 + $0x1478] sm:$0xff] }
 0x62c   : > { %9353 = vmatpush1.bf16.msra.mxu0 %v11192_v21  ;;  %v11251_v21 = vcombine.high %v6927_v46, %v6931_v18 }
 0x62d   : > { %9476 = vmatpush1.bf16.msra.mxu1 %v11194_v26  ;;  %9354 = vmatprep.subr.bf16.mxu0 %v11201_v27  ;;  %v6934_v26 = vld [vmem:[#allocation14 + $0x1310] sm:$0xff] }
 0x62e   : > { %9477 = vmatprep.subr.bf16.mxu1 %v11203_v28  ;;  %v6938_v27 = vld [vmem:[#allocation14 + $0x1330] sm:$0xff]  ;;  %v6935_v28 = vld [vmem:[#allocation14 + $0x1318] sm:$0xff] }
 0x62f   : > { %v11257_v32 = vcombine.high %v6934_v26, %v6938_v27  ;;  %v11256_v36 = vcombine.low %v6934_v26, %v6938_v27  ;;  %v11258_v43 = vcombine.low %v6935_v28, %v6939_v30  ;;  %v6987_v26 = vld [vmem:[#allocation14 + $0x14b8] sm:$0xff] }
 0x630   : > { %9355 = vmatpush1.bf16.msra.mxu0 %v11200_v51  ;;  %v11259_v51 = vcombine.high %v6935_v28, %v6939_v30 }
 0x631   : > { %9478 = vmatpush1.bf16.msra.mxu1 %v11202_v34  ;;  %9356 = vmatprep.subr.bf16.mxu0 %v11209_v24  ;;  %v6942_v34 = vld [vmem:[#allocation14 + $0x1350] sm:$0xff] }
 0x632   : > { %9479 = vmatprep.subr.bf16.mxu1 %v11211_v42  ;;  %v6946_v24 = vld [vmem:[#allocation14 + $0x1370] sm:$0xff]  ;;  %v6943_v42 = vld [vmem:[#allocation14 + $0x1358] sm:$0xff] }
 0x633   : > { %v11265_v37 = vcombine.high %v6942_v34, %v6946_v24  ;;  %v11264_v50 = vcombine.low %v6942_v34, %v6946_v24  ;;  %v11266_v54 = vcombine.low %v6943_v42, %v6947_v35  ;;  %v6995_v34 = vld [vmem:[#allocation14 + $0x14f8] sm:$0xff] }
 0x634   : > { %9357 = vmatpush1.bf16.msra.mxu0 %v11208_v47  ;;  %v11267_v47 = vcombine.high %v6943_v42, %v6947_v35 }
 0x635   : > { %9480 = vmatpush1.bf16.msra.mxu1 %v11210_v33  ;;  %9358 = vmatprep.subr.bf16.mxu0 %v11217_v44  ;;  %v6950_v33 = vld [vmem:[#allocation14 + $0x1390] sm:$0xff] }
 0x636   : > { %9481 = vmatprep.subr.bf16.mxu1 %v11219_v48  ;;  %v6954_v44 = vld [vmem:[#allocation14 + $0x13b0] sm:$0xff]  ;;  %v6951_v48 = vld [vmem:[#allocation14 + $0x1398] sm:$0xff] }
 0x637   : > { %v11273_v49 = vcombine.high %v6950_v33, %v6954_v44  ;;  %v11272_v63 = vcombine.low %v6950_v33, %v6954_v44  ;;  %v11274_v59 = vcombine.low %v6951_v48, %v6955_v0 }
 0x638   : > { %9359 = vmatpush1.bf16.msra.mxu0 %v11216_v55  ;;  %v11275_v55 = vcombine.high %v6951_v48, %v6955_v0  ;;  %v7006_v0 = vld [vmem:[#allocation14 + $0x1550] sm:$0xff] }
 0x639   : > { %9482 = vmatpush1.bf16.msra.mxu1 %v11218_v56  ;;  %9360 = vmatprep.subr.bf16.mxu0 %v11225_v60  ;;  %v6958_v56 = vld [vmem:[#allocation14 + $0x13d0] sm:$0xff] }
 0x63a   : > { %9483 = vmatprep.subr.bf16.mxu1 %v11227_v57  ;;  %v6962_v60 = vld [vmem:[#allocation14 + $0x13f0] sm:$0xff]  ;;  %v6959_v57 = vld [vmem:[#allocation14 + $0x13d8] sm:$0xff] }
 0x63b   : > { %v11281_v61 = vcombine.high %v6958_v56, %v6962_v60  ;;  %v11280_v3 = vcombine.low %v6958_v56, %v6962_v60  ;;  %v11282_v6 = vcombine.low %v6959_v57, %v6963_v58 }
 0x63c   : > { %9361 = vmatpush1.bf16.msra.mxu0 %v11224_v62  ;;  %v11283_v62 = vcombine.high %v6959_v57, %v6963_v58  ;;  %v7014_v58 = vld [vmem:[#allocation14 + $0x1590] sm:$0xff] }
 0x63d   : > { %9484 = vmatpush1.bf16.msra.mxu1 %v11226_v7  ;;  %9362 = vmatprep.subr.bf16.mxu0 %v11233_v12  ;;  %v6966_v7 = vld [vmem:[#allocation14 + $0x1410] sm:$0xff] }
 0x63e   : > { %9485 = vmatprep.subr.bf16.mxu1 %v11235_v13  ;;  %v6970_v12 = vld [vmem:[#allocation14 + $0x1430] sm:$0xff]  ;;  %v6967_v13 = vld [vmem:[#allocation14 + $0x1418] sm:$0xff] }
 0x63f   : > { %v11289_v38 = vcombine.high %v6966_v7, %v6970_v12  ;;  %v11288_v11 = vcombine.low %v6966_v7, %v6970_v12  ;;  %v11290_v46 = vcombine.low %v6967_v13, %v6971_v53 }
 0x640   : > { %9363 = vmatpush1.bf16.msra.mxu0 %v11232_v4  ;;  %v11291_v4 = vcombine.high %v6967_v13, %v6971_v53  ;;  %v7022_v53 = vld [vmem:[#allocation14 + $0x15d0] sm:$0xff] }
 0x641   : > { %9486 = vmatpush1.bf16.msra.mxu1 %v11234_v8  ;;  %9364 = vmatprep.subr.bf16.mxu0 %v11241_v10  ;;  %v6974_v8 = vld [vmem:[#allocation14 + $0x1450] sm:$0xff] }
 0x642   : > { %9487 = vmatprep.subr.bf16.mxu1 %v11243_v41  ;;  %v6978_v10 = vld [vmem:[#allocation14 + $0x1470] sm:$0xff]  ;;  %v6975_v41 = vld [vmem:[#allocation14 + $0x1458] sm:$0xff] }
 0x643   : > { %v11297_v18 = vcombine.high %v6974_v8, %v6978_v10  ;;  %v11296_v27 = vcombine.low %v6974_v8, %v6978_v10  ;;  %v11298_v28 = vcombine.low %v6975_v41, %v6979_v39 }
 0x644   : > { %9365 = vmatpush1.bf16.msra.mxu0 %v11240_v19  ;;  %v11299_v19 = vcombine.high %v6975_v41, %v6979_v39  ;;  %v7030_v39 = vld [vmem:[#allocation14 + $0x1610] sm:$0xff] }
 0x645   : > { %9488 = vmatpush1.bf16.msra.mxu1 %v11242_v52  ;;  %9366 = vmatprep.subr.bf16.mxu0 %v11249_v45  ;;  %v6982_v52 = vld [vmem:[#allocation14 + $0x1490] sm:$0xff] }
 0x646   : > { %9489 = vmatprep.subr.bf16.mxu1 %v11251_v21  ;;  %v6986_v45 = vld [vmem:[#allocation14 + $0x14b0] sm:$0xff]  ;;  %v6983_v21 = vld [vmem:[#allocation14 + $0x1498] sm:$0xff] }
 0x647   : > { %v11305_v30 = vcombine.high %v6982_v52, %v6986_v45  ;;  %v11304_v24 = vcombine.low %v6982_v52, %v6986_v45 }
 0x648   : > { %9367 = vmatpush1.bf16.msra.mxu0 %v11248_v31  ;;  %v11307_v31 = vcombine.high %v6983_v21, %v6987_v26 }
 0x649   : > { %9490 = vmatpush1.bf16.msra.mxu1 %v11250_v25  ;;  %9368 = vmatprep.subr.bf16.mxu0 %v11257_v32  ;;  %v6990_v25 = vld [vmem:[#allocation14 + $0x14d0] sm:$0xff] }
 0x64a   : > { %9491 = vmatprep.subr.bf16.mxu1 %v11259_v51  ;;  %v6994_v32 = vld [vmem:[#allocation14 + $0x14f0] sm:$0xff]  ;;  %v6991_v51 = vld [vmem:[#allocation14 + $0x14d8] sm:$0xff] }
 0x64b   : > { %v11313_v42 = vcombine.high %v6990_v25, %v6994_v32  ;;  %v11315_v35 = vcombine.high %v6991_v51, %v6995_v34  ;;  %v11312_v33 = vcombine.low %v6990_v25, %v6994_v32  ;;  %v11314_v44 = vcombine.low %v6991_v51, %v6995_v34  ;;  %v7046_v34 = vld [vmem:[#allocation14 + $0x1690] sm:$0xff] }
 0x64c   : > { %9369 = vmatpush1.bf16.msra.mxu0 %v11256_v36  ;;  %v6998_v36 = vld [vmem:[#allocation14 + $0x1510] sm:$0xff] }
 0x64d   : > { %9492 = vmatpush1.bf16.msra.mxu1 %v11258_v43  ;;  %9370 = vmatprep.subr.bf16.mxu0 %v11265_v37  ;;  %v7002_v43 = vld [vmem:[#allocation14 + $0x1530] sm:$0xff]  ;;  %v6999_v37 = vld [vmem:[#allocation14 + $0x1518] sm:$0xff] }
 0x64e   : > { %9493 = vmatprep.subr.bf16.mxu1 %v11267_v47  ;;  %v7003_v47 = vld [vmem:[#allocation14 + $0x1538] sm:$0xff]  ;;  %v11321_v48 = vcombine.high %v6998_v36, %v7002_v43 }
 0x64f   : > { %v11322_v56 = vcombine.low %v6999_v37, %v7003_v47 }
 0x650   : > { %9371 = vmatpush1.bf16.msra.mxu0 %v11264_v50  ;;  %v7010_v50 = vld [vmem:[#allocation14 + $0x1570] sm:$0xff] }
 0x651   : > { %9494 = vmatpush1.bf16.msra.mxu1 %v11266_v54  ;;  %9372 = vmatprep.subr.bf16.mxu0 %v11273_v49  ;;  %v7007_v54 = vld [vmem:[#allocation14 + $0x1558] sm:$0xff]  ;;  %v11329_v60 = vcombine.high %v7006_v0, %v7010_v50 }
 0x652   : > { %9495 = vmatprep.subr.bf16.mxu1 %v11275_v55  ;;  %v7011_v49 = vld [vmem:[#allocation14 + $0x1578] sm:$0xff]  ;;  %v11320_v55 = vcombine.low %v6998_v36, %v7002_v43 }
 0x653   : > { %v11331_v57 = vcombine.high %v7007_v54, %v7011_v49  ;;  %v11330_v7 = vcombine.low %v7007_v54, %v7011_v49  ;;  %v7062_v49 = vld [vmem:[#allocation14 + $0x1710] sm:$0xff] }
 0x654   : > { %9373 = vmatpush1.bf16.msra.mxu0 %v11272_v63  ;;  %v7018_v63 = vld [vmem:[#allocation14 + $0x15b0] sm:$0xff] }
 0x655   : > { %9496 = vmatpush1.bf16.msra.mxu1 %v11274_v59  ;;  %9374 = vmatprep.subr.bf16.mxu0 %v11281_v61  ;;  %v7015_v59 = vld [vmem:[#allocation14 + $0x1598] sm:$0xff]  ;;  %v11337_v12 = vcombine.high %v7014_v58, %v7018_v63 }
 0x656   : > { %9497 = vmatprep.subr.bf16.mxu1 %v11283_v62  ;;  %v7019_v61 = vld [vmem:[#allocation14 + $0x15b8] sm:$0xff]  ;;  %v11328_v62 = vcombine.low %v7006_v0, %v7010_v50 }
 0x657   : > { %v11339_v13 = vcombine.high %v7015_v59, %v7019_v61  ;;  %v11338_v8 = vcombine.low %v7015_v59, %v7019_v61  ;;  %v7070_v61 = vld [vmem:[#allocation14 + $0x1750] sm:$0xff] }
 0x658   : > { %9375 = vmatpush1.bf16.msra.mxu0 %v11280_v3  ;;  %v7026_v3 = vld [vmem:[#allocation14 + $0x15f0] sm:$0xff] }
 0x659   : > { %9498 = vmatpush1.bf16.msra.mxu1 %v11282_v6  ;;  %9385 = vmatprep.subr.bf16.mxu0 %v11289_v38  ;;  %v7023_v6 = vld [vmem:[#allocation14 + $0x15d8] sm:$0xff]  ;;  %v11345_v10 = vcombine.high %v7022_v53, %v7026_v3 }
 0x65a   : > { %9508 = vmatprep.subr.bf16.mxu1 %v11291_v4  ;;  %v7027_v38 = vld [vmem:[#allocation14 + $0x15f8] sm:$0xff]  ;;  %v11336_v4 = vcombine.low %v7014_v58, %v7018_v63 }
 0x65b   : > { %9377 = vmatmul.mubr.bf16.vlgmr.msra.gmra.mrb[28].mxu0 %v12971_v40  ;;  %v11347_v41 = vcombine.high %v7023_v6, %v7027_v38  ;;  %v11346_v52 = vcombine.low %v7023_v6, %v7027_v38  ;;  %v7078_v38 = vld [vmem:[#allocation14 + $0x1790] sm:$0xff] }
 0x65c   : > { %9500 = vmatmul.mubr.bf16.vlgmr.msra.gmra.mrb[28].mxu1 %v12971_v40  ;;  %9386 = vmatpush1.bf16.msra.mxu0 %v11288_v11  ;;  %v11306_v40 = vcombine.low %v6983_v21, %v6987_v26  ;;  %v7034_v11 = vld [vmem:[#allocation14 + $0x1630] sm:$0xff] }
 0x65d   : > { %9509 = vmatpush1.bf16.msra.mxu1 %v11290_v46  ;;  %9387 = vmatprep.subr.bf16.mxu0 %v11297_v18  ;;  %v7031_v46 = vld [vmem:[#allocation14 + $0x1618] sm:$0xff]  ;;  %v11353_v45 = vcombine.high %v7030_v39, %v7034_v11  ;;  %v7038_v26 = vld [vmem:[#allocation14 + $0x1650] sm:$0xff] }
 0x65e   : > { %9510 = vmatprep.subr.bf16.mxu1 %v11299_v19  ;;  %9417 = vmatprep.mubr.bf16.mxu0 %v13017_v23  ;;  %v7035_v18 = vld [vmem:[#allocation14 + $0x1638] sm:$0xff]  ;;  %v11344_v19 = vcombine.low %v7022_v53, %v7026_v3 }
 0x65f   : > { %9540 = vmatprep.mubr.bf16.mxu1 %v13017_v23  ;;  %v11323_v23 = vcombine.high %v6999_v37, %v7003_v47  ;;  %v11355_v21 = vcombine.high %v7031_v46, %v7035_v18  ;;  %v11354_v25 = vcombine.low %v7031_v46, %v7035_v18  ;;  %v7054_v47 = vld [vmem:[#allocation14 + $0x16d0] sm:$0xff] }
 0x660   : > { %9388 = vmatpush1.bf16.msra.mxu0 %v11296_v27  ;;  %v7042_v27 = vld [vmem:[#allocation14 + $0x1670] sm:$0xff] }
 0x661   : > { %9511 = vmatpush1.bf16.msra.mxu1 %v11298_v28  ;;  %9389 = vmatprep.subr.bf16.mxu0 %v11305_v30  ;;  %v7039_v28 = vld [vmem:[#allocation14 + $0x1658] sm:$0xff]  ;;  %v11361_v32 = vcombine.high %v7038_v26, %v7042_v27  ;;  %v7086_v18 = vld [vmem:[#allocation14 + $0x17d0] sm:$0xff] }
 0x662   : > { %9512 = vmatprep.subr.bf16.mxu1 %v11307_v31  ;;  %v7043_v30 = vld [vmem:[#allocation14 + $0x1678] sm:$0xff]  ;;  %v11352_v31 = vcombine.low %v7030_v39, %v7034_v11 }
 0x663   : > { %v11363_v51 = vcombine.high %v7039_v28, %v7043_v30  ;;  %v11362_v36 = vcombine.low %v7039_v28, %v7043_v30 }
 0x664   : > { %9390 = vmatpush1.bf16.msra.mxu0 %v11304_v24  ;;  %v7050_v24 = vld [vmem:[#allocation14 + $0x16b0] sm:$0xff] }
 0x665   : > { %9513 = vmatpush1.bf16.msra.mxu1 %v11306_v40  ;;  %9391 = vmatprep.subr.bf16.mxu0 %v11313_v42  ;;  %v7047_v40 = vld [vmem:[#allocation14 + $0x1698] sm:$0xff]  ;;  %v11369_v43 = vcombine.high %v7046_v34, %v7050_v24 }
 0x666   : > { %9514 = vmatprep.subr.bf16.mxu1 %v11315_v35  ;;  %v7051_v42 = vld [vmem:[#allocation14 + $0x16b8] sm:$0xff]  ;;  %v11360_v35 = vcombine.low %v7038_v26, %v7042_v27 }
 0x667   : > { %v11371_v37 = vcombine.high %v7047_v40, %v7051_v42  ;;  %v11370_v0 = vcombine.low %v7047_v40, %v7051_v42  ;;  %v11780_v40 = vld [vmem:[#allocation17 + $0x50] sm:$0xff]  }
 0x668   : > { %9392 = vmatpush1.bf16.msra.mxu0 %v11312_v33  ;;  %v7058_v33 = vld [vmem:[#allocation14 + $0x16f0] sm:$0xff] }
 0x669   : > { %9515 = vmatpush1.bf16.msra.mxu1 %v11314_v44  ;;  %9393 = vmatprep.subr.bf16.mxu0 %v11321_v48  ;;  %v7055_v44 = vld [vmem:[#allocation14 + $0x16d8] sm:$0xff]  ;;  %v11377_v50 = vcombine.high %v7054_v47, %v7058_v33  ;;  %v11781_v42 = vld [vmem:[#allocation17 + $0x10] sm:$0xff]  }
 0x66a   : > { %9516 = vmatprep.subr.bf16.mxu1 %v11323_v23  ;;  %v7059_v48 = vld [vmem:[#allocation14 + $0x16f8] sm:$0xff]  ;;  %v11368_v23 = vcombine.low %v7046_v34, %v7050_v24  ;;  %v9602_v34 = vpack.c.bf16 %v13062_v22, %v13062_v22  ;;  %v11779_v24 = vld [vmem:[#allocation17 + $0x8] sm:$0xff]  }
 0x66b   : > { %v11379_v54 = vcombine.high %v7055_v44, %v7059_v48  ;;  %v11378_v58 = vcombine.low %v7055_v44, %v7059_v48  ;;  %v11787_v22 = vld [vmem:[#allocation17 + $0x28] sm:$0xff]  }
 0x66c   : > { %9394 = vmatpush1.bf16.msra.mxu0 %v11320_v55  ;;  %v7066_v55 = vld [vmem:[#allocation14 + $0x1730] sm:$0xff] }
 0x66d   : > { %9517 = vmatpush1.bf16.msra.mxu1 %v11322_v56  ;;  %9395 = vmatprep.subr.bf16.mxu0 %v11329_v60  ;;  %v7063_v56 = vld [vmem:[#allocation14 + $0x1718] sm:$0xff]  ;;  %v11385_v63 = vcombine.high %v7062_v49, %v7066_v55 }
 0x66e   : > { %9518 = vmatprep.subr.bf16.mxu1 %v11331_v57  ;;  %v7067_v60 = vld [vmem:[#allocation14 + $0x1738] sm:$0xff]  ;;  %v11376_v57 = vcombine.low %v7054_v47, %v7058_v33  ;;  %v11786_v47 = vld [vmem:[#allocation17 + $0x68] sm:$0xff]  }
 0x66f   : > { %v11387_v59 = vcombine.high %v7063_v56, %v7067_v60  ;;  %v11386_v53 = vcombine.low %v7063_v56, %v7067_v60  ;;  %v11791_v60 = vld [vmem:[#allocation17 + $0x38] sm:$0xff]  }
 0x670   : > { %9396 = vmatpush1.bf16.msra.mxu0 %v11328_v62  ;;  %v7074_v62 = vld [vmem:[#allocation14 + $0x1770] sm:$0xff] }
 0x671   : > { %9519 = vmatpush1.bf16.msra.mxu1 %v11330_v7  ;;  %9397 = vmatprep.subr.bf16.mxu0 %v11337_v12  ;;  %v7071_v7 = vld [vmem:[#allocation14 + $0x1758] sm:$0xff]  ;;  %v11393_v3 = vcombine.high %v7070_v61, %v7074_v62 }
 0x672   : > { %9520 = vmatprep.subr.bf16.mxu1 %v11339_v13  ;;  %v7075_v12 = vld [vmem:[#allocation14 + $0x1778] sm:$0xff]  ;;  %v11384_v13 = vcombine.low %v7062_v49, %v7066_v55 }
 0x673   : > { %v11395_v6 = vcombine.high %v7071_v7, %v7075_v12  ;;  %v11394_v39 = vcombine.low %v7071_v7, %v7075_v12  ;;  %v11790_v55 = vld [vmem:[#allocation17 + $0x78] sm:$0xff]   ;;  %v11797_v7 = vld [vmem:[#allocation17 + $0x90] sm:$0xff]  }
 0x674   : > { %9398 = vmatpush1.bf16.msra.mxu0 %v11336_v4  ;;  %v7082_v4 = vld [vmem:[#allocation14 + $0x17b0] sm:$0xff]  ;;  %v11798_v12 = vld [vmem:[#allocation17 + $0xd8] sm:$0xff]  }
 0x675   : > { %9521 = vmatpush1.bf16.msra.mxu1 %v11338_v8  ;;  %9399 = vmatprep.subr.bf16.mxu0 %v11345_v10  ;;  %v7079_v8 = vld [vmem:[#allocation14 + $0x1798] sm:$0xff]  ;;  %v11401_v11 = vcombine.high %v7078_v38, %v7082_v4 }
 0x676   : > { %9522 = vmatprep.subr.bf16.mxu1 %v11347_v41  ;;  %v7083_v10 = vld [vmem:[#allocation14 + $0x17b8] sm:$0xff]  ;;  %v11392_v41 = vcombine.low %v7070_v61, %v7074_v62  ;;  %v11795_v61 = vld [vmem:[#allocation17 + $0x88] sm:$0xff]   ;;  %v11796_v62 = vld [vmem:[#allocation17 + $0xd0] sm:$0xff]  }
 0x677   : > { %v11403_v46 = vcombine.high %v7079_v8, %v7083_v10  ;;  %v11402_v26 = vcombine.low %v7079_v8, %v7083_v10  ;;  %v11806_v8 = vld [vmem:[#allocation17 + $0xf8] sm:$0xff]  }
 0x678   : > { %9400 = vmatpush1.bf16.msra.mxu0 %v11344_v19  ;;  %v7090_v19 = vld [vmem:[#allocation14 + $0x17f0] sm:$0xff]  ;;  %v11807_v10 = vld [vmem:[#allocation17 + $0xb8] sm:$0xff]  }
 0x679   : > { %9523 = vmatpush1.bf16.msra.mxu1 %v11346_v52  ;;  %9401 = vmatprep.subr.bf16.mxu0 %v11353_v45  ;;  %v7087_v52 = vld [vmem:[#allocation14 + $0x17d8] sm:$0xff]  ;;  %v11409_v27 = vcombine.high %v7086_v18, %v7090_v19  ;;  %v11408_v30 = vcombine.low %v7086_v18, %v7090_v19 }
 0x67a   : > { %9524 = vmatprep.subr.bf16.mxu1 %v11355_v21  ;;  %v7091_v45 = vld [vmem:[#allocation14 + $0x17f8] sm:$0xff]  ;;  %v11400_v21 = vcombine.low %v7078_v38, %v7082_v4  ;;  %v11804_v38 = vld [vmem:[#allocation17 + $0xf0] sm:$0xff]  }
 0x67b   : > { %v11411_v28 = vcombine.high %v7087_v52, %v7091_v45  ;;  %v11805_v4 = vld [vmem:[#allocation17 + $0xb0] sm:$0xff]  }
 0x67c   : > { %9402 = vmatpush1.bf16.msra.mxu0 %v11352_v31  ;;  %v11410_v31 = vcombine.low %v7087_v52, %v7091_v45 }
 0x67d   : > { %9525 = vmatpush1.bf16.msra.mxu1 %v11354_v25  ;;  %9403 = vmatprep.subr.bf16.mxu0 %v11361_v32  ;;  %v11776_v25 = vld [vmem:[#allocation17 + $0x40] sm:$0xff]  }
 0x67e   : > { %9526 = vmatprep.subr.bf16.mxu1 %v11363_v51  ;;  %v11777_v32 = vld [vmem:[#allocation17] sm:$0xff]   ;;  %v11778_v51 = vld [vmem:[#allocation17 + $0x48] sm:$0xff]  }
 0x680   : > { %9404 = vmatpush1.bf16.msra.mxu0 %v11360_v35  ;;  %v11782_v35 = vld [vmem:[#allocation17 + $0x58] sm:$0xff]  }
 0x681   : > { %9527 = vmatpush1.bf16.msra.mxu1 %v11362_v36  ;;  %9405 = vmatprep.subr.bf16.mxu0 %v11369_v43  ;;  %v11783_v36 = vld [vmem:[#allocation17 + $0x18] sm:$0xff]   ;;  %v11784_v43 = vld [vmem:[#allocation17 + $0x60] sm:$0xff]  }
 0x682   : > { %9528 = vmatprep.subr.bf16.mxu1 %v11371_v37  ;;  %v11785_v37 = vld [vmem:[#allocation17 + $0x20] sm:$0xff]  }
 0x684   : > { %9406 = vmatpush1.bf16.msra.mxu0 %v11368_v23 }
 0x685   : > { %9529 = vmatpush1.bf16.msra.mxu1 %v11370_v0  ;;  %9407 = vmatprep.subr.bf16.mxu0 %v11377_v50  ;;  %v11789_v50 = vld [vmem:[#allocation17 + $0x30] sm:$0xff]  }
 0x686   : > { %9530 = vmatprep.subr.bf16.mxu1 %v11379_v54 }
 0x688   : > { %9408 = vmatpush1.bf16.msra.mxu0 %v11376_v57  ;;  %v9601_v57 = vpack.c.bf16 %v13060_v17, %v13060_v17  ;;  %v11802_v17 = vld [vmem:[#allocation17 + $0xe8] sm:$0xff]  }
 0x689   : > { %9531 = vmatpush1.bf16.msra.mxu1 %v11378_v58  ;;  %9409 = vmatprep.subr.bf16.mxu0 %v11385_v63  ;;  %v11792_v58 = vld [vmem:[#allocation17 + $0xc0] sm:$0xff]  }
 0x68a   : > { %9532 = vmatprep.subr.bf16.mxu1 %v11387_v59  ;;  %v11793_v63 = vld [vmem:[#allocation17 + $0x80] sm:$0xff]   ;;  %v11794_v59 = vld [vmem:[#allocation17 + $0xc8] sm:$0xff]  }
 0x68c   : > { %9410 = vmatpush1.bf16.msra.mxu0 %v11384_v13  ;;  %v11799_v13 = vld [vmem:[#allocation17 + $0x98] sm:$0xff]  }
 0x68d   : > { %9533 = vmatpush1.bf16.msra.mxu1 %v11386_v53  ;;  %9411 = vmatprep.subr.bf16.mxu0 %v11393_v3  ;;  %v11800_v53 = vld [vmem:[#allocation17 + $0xe0] sm:$0xff]  }
 0x68e   : > { %9534 = vmatprep.subr.bf16.mxu1 %v11395_v6  ;;  %v11801_v3 = vld [vmem:[#allocation17 + $0xa0] sm:$0xff]   ;;  %v11803_v6 = vld [vmem:[#allocation17 + $0xa8] sm:$0xff]  }
 0x690   : > { %9412 = vmatpush1.bf16.msra.mxu0 %v11392_v41  ;;  %v7093_v41 = vld [vmem:[#allocation16 + $0x18] sm:$0xff] }
 0x691   : > { %9535 = vmatpush1.bf16.msra.mxu1 %v11394_v39  ;;  %9413 = vmatprep.subr.bf16.mxu0 %v11401_v11  ;;  %v7100_v39 = vrot.slane %v7093_v41, %v12890_v29  ;;  %v7108_v11 = vrot.slane %v7093_v41, %v12895_v1  ;;  %v7112_v18 = vrot.slane %v7093_v41, %v12901_v9 }
 0x692   : > { %9536 = vmatprep.subr.bf16.mxu1 %v11403_v46  ;;  %v7104_v46 = vrot.slane %v7093_v41, %v12898_v5  ;;  %v7116_v9 = vrot.slane %v7093_v41, %v12918_v14 }
 0x694   : > { %9414 = vmatpush1.bf16.msra.mxu0 %v11400_v21 }
 0x695   : > { %9537 = vmatpush1.bf16.msra.mxu1 %v11402_v26  ;;  %9415 = vmatprep.subr.bf16.mxu0 %v11409_v27 }
 0x696   : > { %9538 = vmatprep.subr.bf16.mxu1 %v11411_v28 }
 0x698   : > { %9416 = vmatpush1.bf16.msra.mxu0 %v11408_v30 }
 0x699   : > { %9539 = vmatpush1.bf16.msra.mxu1 %v11410_v31  ;;  %11456 = vmatprep.subr.bf16.mxu0 %v11776_v25 }
 0x69a   : > { %11478 = vmatprep.subr.bf16.mxu1 %v11792_v58 }
 0x69b   : > { %9418 = vmatmul.mubr.bf16.vlgmr.msra.gmra.mrb[28].mxu0 %v13037_v2 }
 0x69c   : > { %9541 = vmatmul.mubr.bf16.vlgmr.msra.gmra.mrb[28].mxu1 %v13037_v2  ;;  %11457 = vmatpush3.bf16.msra.mxu0 %v11777_v32  ;;  %v11788_v2 = vld [vmem:[#allocation17 + $0x70] sm:$0xff]  }
 0x69d   : > { %9900 = vmatprep.mubr.bf16.mxu0 %v9602_v34  ;;  %11458 = vmatprep.subr.bf16.mxu0 %v11778_v51 }
 0x69e   : > { %11479 = vmatpush3.bf16.msra.mxu1 %v11793_v63 }
 0x69f   : > { %11480 = vmatprep.subr.bf16.mxu1 %v11794_v59 }
 0x6a0   : > { %11459 = vmatpush3.bf16.msra.mxu0 %v11779_v24  ;;  %v7124_v24 = vrot.slane %v7093_v41, %v12921_v15 }
 0x6a1   : > { %11460 = vmatprep.subr.bf16.mxu0 %v11780_v40  ;;  %v7120_v40 = vrot.slane %v7093_v41, %v12924_v16 }
 0x6a2   : > { %11481 = vmatpush3.bf16.msra.mxu1 %v11795_v61 }
 0x6a3   : > { %11482 = vmatprep.subr.bf16.mxu1 %v11796_v62 }
 0x6a4   : > { %11461 = vmatpush3.bf16.msra.mxu0 %v11781_v42  ;;  %v7128_v42 = vrot.slane %v7093_v41, %v12927_v20 }
 0x6a5   : > { %11462 = vmatprep.subr.bf16.mxu0 %v11782_v35 }
 0x6a6   : > { %11483 = vmatpush3.bf16.msra.mxu1 %v11797_v7 }
 0x6a7   : > { %11484 = vmatprep.subr.bf16.mxu1 %v11798_v12 }
 0x6a8   : > { %11463 = vmatpush3.bf16.msra.mxu0 %v11783_v36 }
 0x6a9   : > { %11464 = vmatprep.subr.bf16.mxu0 %v11784_v43 }
 0x6aa   : > { %11485 = vmatpush3.bf16.msra.mxu1 %v11799_v13 }
 0x6ab   : > { %11486 = vmatprep.subr.bf16.mxu1 %v11800_v53 }
 0x6ac   : > { %11465 = vmatpush3.bf16.msra.mxu0 %v11785_v37 }
 0x6ad   : > { %11466 = vmatprep.subr.bf16.mxu0 %v11786_v47 }
 0x6ae   : > { %v9173_v33 = vpop.f32.mrb[24].mxu0  ;;  %11487 = vmatpush3.bf16.msra.mxu1 %v11801_v3 }
 0x6af   : > { %v9296_v44 = vpop.f32.mrb[24].mxu1  ;;  %v9175_v48 = vpop.f32.mrb[25].mxu0  ;;  %11488 = vmatprep.subr.bf16.mxu1 %v11802_v17  ;;  %v11524_v19 = vadd.f32 %v9173_v33, %v7100_v39 }
 0x6b0   : > { %v9298_v23 = vpop.f32.mrb[25].mxu1  ;;  %v9177_v0 = vpop.f32.mrb[26].mxu0  ;;  %11467 = vmatpush3.bf16.msra.mxu0 %v11787_v22  ;;  %v11526_v52 = vadd.f32 %v9296_v44, %v7108_v11  ;;  %v11525_v45 = vadd.f32 %v9175_v48, %v7104_v46 }
 0x6b1   : > { %v9300_v54 = vpop.f32.mrb[26].mxu1  ;;  %v9178_v49 = vpop.f32.mrb[27].mxu0  ;;  %11468 = vmatprep.subr.bf16.mxu0 %v11788_v2  ;;  %v11527_v21 = vadd.f32 %v9298_v23, %v7112_v18  ;;  %v11412_v26 = vmul.f32 -1.442695, %v11524_v19 }
 0x6b2   : > { %v9301_v56 = vpop.f32.mrb[27].mxu1  ;;  %11489 = vmatpush3.bf16.msra.mxu1 %v11803_v6  ;;  %v11414_v27 = vmul.f32 -1.442695, %v11526_v52  ;;  %v11413_v28 = vmul.f32 -1.442695, %v11525_v45  ;;  %v666_v54 = vld [vmem:[#allocation11 + $0x30] sm:$0xff] }
 0x6b3   : > { %11490 = vmatprep.subr.bf16.mxu1 %v11804_v38  ;;  %v11415_v30 = vmul.f32 -1.442695, %v11527_v21  ;;  %11904 = vpow2.f32 %v11412_v26  ;;  %v11418_v52 = vld [vmem:[#allocation19] ss:$0 sm:$0xff] }
 0x6b4   : > { %11469 = vmatpush3.bf16.msra.mxu0 %v11789_v50  ;;  %11906 = vpow2.f32 %v11414_v27 }
 0x6b5   : > { %11470 = vmatprep.subr.bf16.mxu0 %v11790_v55  ;;  %11908 = vpow2.f32 %v11413_v28  ;;  %v667_v55 = vld [vmem:[#allocation11 + $0x38] sm:$0xff] }
 0x6b6   : > { %11491 = vmatpush3.bf16.msra.mxu1 %v11805_v4  ;;  %11910 = vpow2.f32 %v11415_v30 }
 0x6b7   : > { %11492 = vmatprep.subr.bf16.mxu1 %v11806_v8 }
 0x6b8   : > { %11471 = vmatpush3.bf16.msra.mxu0 %v11791_v60 }
 0x6ba   : > { %11493 = vmatpush3.bf16.msra.mxu1 %v11807_v10 }
 0x6bb   : > { %9901 = vmatmul.mubr.bf16.vlgmr.msra.gmra.mrb[32].mxu0 %v9601_v57 }
 0x6bd   : > { %v11905_v31 = vpop.eup %11904 }
 0x6be   : > { %v11907_v29 = vpop.eup %11906  ;;  %v9555_v32 = vadd.f32 1.0, %v11905_v31 }
 0x6bf   : > { %v11909_v25 = vpop.eup %11908  ;;  %v9567_v5 = vadd.f32 1.0, %v11907_v29 }
 0x6c0   : > { %v11911_v1 = vpop.eup %11910  ;;  %v9556_v51 = vadd.f32 1.0, %v11909_v25  ;;  %11912 = vrcp.f32 %v9555_v32 }
 0x6c1   : > { %v9568_v34 = vadd.f32 1.0, %v11911_v1  ;;  %11914 = vrcp.f32 %v9567_v5 }
 0x6c2   : > { %11916 = vrcp.f32 %v9556_v51 }
 0x6c3   : > { %11918 = vrcp.f32 %v9568_v34 }
 0x6ca   : > { %v11913_v20 = vpop.eup %11912 }
 0x6cb   : > { %v11915_v0 = vpop.eup %11914 }
 0x6cc   : > { %v11917_v50 = vpop.eup %11916  ;;  %v9587_v57 = vmul.f32 %v11915_v0, %v666_v54 }
 0x6cd   : > { %v11919_v49 = vpop.eup %11918 }
 0x6ce   : > { %v9588_v63 = vmul.f32 %v11919_v49, %v667_v55 }
 0x76e   : > { %v9419_v35 = vpop.f32.mrb[28].mxu0 }
 0x76f   : > { %v11528_v36 = vadd.f32 %v9419_v35, %v7116_v9  ;;  %v9542_v43 = vpop.f32.mrb[28].mxu1  ;;  %v9421_v37 = vpop.f32.mrb[29].mxu0 }
 0x770   : > { %v11530_v47 = vadd.f32 %v9542_v43, %v7124_v24  ;;  %v11529_v22 = vadd.f32 %v9421_v37, %v7120_v40  ;;  %v9544_v2 = vpop.f32.mrb[29].mxu1  ;;  %v9423_v33 = vpop.f32.mrb[30].mxu0 }
 0x771   : > { %11920 = vtanh.f32 %v11528_v36  ;;  %v11531_v14 = vadd.f32 %v9544_v2, %v7128_v42  ;;  %v9546_v44 = vpop.f32.mrb[30].mxu1  ;;  %v9424_v15 = vpop.f32.mrb[31].mxu0 }
 0x772   : > { %v11416_v48 = vmul.f32 -1.442695, %v11530_v47  ;;  %11922 = vtanh.f32 %v11529_v22  ;;  %v9547_v16 = vpop.f32.mrb[31].mxu1 }
 0x773   : > { %v11417_v23 = vmul.f32 -1.442695, %v11531_v14 }
 0x774   : > { %11924 = vpow2.f32 %v11416_v48 }
 0x775   : > { %11926 = vpow2.f32 %v11417_v23 }
 0x77b   : > { %v11921_v56 = vpop.eup %11920 }
 0x77c   : > { %v11923_v60 = vpop.eup %11922  ;;  %v9589_v58 = vmul.f32 %v11921_v56, %v11913_v20 }
 0x77d   : > { %v9590_v59 = vmul.f32 %v11923_v60, %v11917_v50 }
 0x77e   : > { %v11925_v61 = vpop.eup %11924  ;;  %v9591_v62 = vadd.f32 %v9589_v58, %v9587_v57 }
 0x77f   : > { %v11927_v7 = vpop.eup %11926  ;;  %v9581_v12 = vadd.f32 1.0, %v11925_v61  ;;  %v9592_v13 = vadd.f32 %v9590_v59, %v9588_v63 }
 0x780   : > { %11928 = vtanh.f32 %v9591_v62  ;;  %v9582_v53 = vadd.f32 1.0, %v11927_v7 }
 0x781   : > { %11930 = vrcp.f32 %v9581_v12 }
 0x782   : > { %11932 = vtanh.f32 %v9592_v13 }
 0x783   : > { %11934 = vrcp.f32 %v9582_v53 }
 0x78a   : > { %v11929_v3 = vpop.eup %11928 }
 0x78b   : > { %v11931_v17 = vpop.eup %11930 }
 0x78c   : > { %v11933_v6 = vpop.eup %11932  ;;  %v9595_v38 = vmul.f32 %v11931_v17, %v11929_v3 }
 0x78d   : > { %v11935_v4 = vpop.eup %11934 }
 0x78e   : > { %v11472_v8 = vpop.f32.mrb[32].mxu0  ;;  %v9596_v10 = vmul.f32 %v11935_v4, %v11933_v6  ;;  %9599 = vst [vmem:[%s13058_s21 + $0x10] sm:$0xff] %v9595_v38  ;;  %v9603_v19 = vpack.c.bf16 %v9595_v38, %v9595_v38 }
 0x78f   : > { %v11473_v41 = vpop.f32.mrb[33].mxu0 }
 0x790   : > { %v11474_v39 = vadd.f32 %v11473_v41, %v11472_v8  ;;  %v11475_v11 = vpop.f32.mrb[34].mxu0  ;;  %9600 = vst [vmem:[%s13058_s21 + $0x18] sm:$0xff] %v9596_v10  ;;  %v9604_v46 = vpack.c.bf16 %v9596_v10, %v9596_v10 }
 0x791   : > { %v11476_v18 = vpop.f32.mrb[35].mxu0 }
 0x792   : > { %9940 = vmatprep.mubr.bf16.mxu1 %v9604_v46  ;;  %v9903_v26 = vadd.f32 %v11474_v39, %v11418_v52 }
 0x793   : > { %9941 = vmatmul.mubr.bf16.vlgmr.msra.gmra.mrb[32].mxu1 %v9603_v19 }
 0x866   : > { %v11494_v45 = vpop.f32.mrb[32].mxu1 }
 0x867   : > { %v11495_v21 = vpop.f32.mrb[33].mxu1 }
 0x868   : > { %v11496_v27 = vadd.f32 %v11495_v21, %v11494_v45  ;;  %v11497_v28 = vpop.f32.mrb[34].mxu1 }
 0x869   : > { %v11498_v30 = vpop.f32.mrb[35].mxu1 }
 0x86a   : > { %v9943_v31 = vadd.f32 %v11496_v27, %v9903_v26 }
 0x86c   : > { %9948 = vst [vmem:[%s612_s26] sm:$0xff] %v9943_v31 }
 0x86d   : > { %12263 = shalt.err (!%p12260_p0)
}
 0x86e   : > { %s12264_s17 = scalar_lea.hbm %s13097_s2, 128  ;;  %s12268_s29 = scalar_lea.hbm %s13241_s16, 256 }
 0x86f   : > { %p12265_p7 = scmp.ne.s32.totalorder %s13097_s2, %s12264_s17  ;;  %p12269_p13 = scmp.lt.u32.totalorder %s13097_s2, %s13241_s16 }
 0x870   : > { %p12270_p3 = scmp.lt.u32.totalorder %s12268_s29, %s12264_s17  ;;  %p12272_p2 = scmp.lt.u32.totalorder %s12264_s17, %s13097_s2 }
 0x871   : > { %p12266_p8 = pnand %p12265_p7, %p13242_p1 }
 0x872   : > { %p12271_p9 = por %p12270_p3, %p12269_p13 }
 0x873   : > { %p12267_p6 = pneg %p12266_p8 }
 0x874   : > { %p12273_p10 = por %p12272_p2, %p12271_p9 }
 0x876   : > { %p12274_p5 = pnand %p12273_p10, %p12267_p6 }
 0x878   : > { %12277 = shalt.err (!%p12274_p5)
}
 0x879   : > { %11666 = dma.vmem_to_hbm [thread:$0]  (%p13242_p1), %s13099_s11, 128, %s13097_s2, %s9950_s18  }
 0x87a PF: > { %s13243_s13 = sld [smem:[#allocation28_spill]]  ;;  %s13244_s9 = sld [smem:[#allocation35_spill]] }
 0x87b   : > { %s13245_s20 = sld [smem:[#allocation29_spill]] }
 0x880   : > { %s9983_s21 = sand.u32 1, %s13243_s13   ;;  %p13246_p4 = scmp.ne.s32.totalorder %s13244_s9, 0 }
 0x881   : > { %p13247_p11 = scmp.ge.s32.totalorder %s13245_s20, 2  ;;  %s9984_s12 = scalar_lea.sflag [#allocation4], %s9983_s21 }
 0x883   : > { %p11704_p12 = pnand %p13247_p11, %p13246_p4 }
 0x885   : > { %12319 = dma.done.wait (!%p11704_p12), %s9984_s12, 128  }
 0x886   : > { %12321 = vsyncadd (!%p11704_p12), %s9984_s12, 4294967168  ;;  %s13248_s24 = sld [smem:[#allocation32_spill]]  ;;  %s13249_s26 = sld [smem:[#allocation33_spill]] }
 0x887   : > { %s13250_s21 = smov %s12328_s22  ;;  %s13251_s22 = smov %s12332_s23 }
 0x88c   : > { %p33_p0 = scmp.ge.s32.totalorder %s13248_s24, 4   ;;  %s13252_s23 = smov %s13249_s26 }
 0x88e   :  { %35 = sbr.rel (!%p33_p0) target bundleno = 20 (0x14), region = 182 }
 0x895   :  { %9997 = vsyncpa [#allocation3], 1 }
 0x896   :  { %9999 = vsyncpa [#allocation3 + $0x1], 1 }
 0x897   :  { %10000 = vsyncpa [#allocation6], 1 }
 0x898   :  { %10002 = vsyncpa [#allocation6 + $0x1], 1 }
 0x899   :  { %10003 = vsyncpa [#allocation9], 1 }
 0x89a   :  { %10004 = vsyncpa [#allocation12], 1 }
 0x89b   :  { %10005 = vsyncpa [#allocation15], 1 }
 0x89c   :  { %10006 = vsyncpa [#allocation18], 1 }
 0x89d   :  { %10007 = vsyncpa [#allocation4], 1 }
 0x89e   :  { %10009 = vsyncpa [#allocation4 + $0x1], 1 }

</bundles_post_ra>
